<compile_context>
chip_gen: v7x
topology: tpu7x:2x2x1
jax: 0.10.0
libtpu: 0.0.40
codegen_flags: <defaults>
</compile_context>

<pallas_src>
import functools

import jax
import jax.numpy as jnp
from jax.experimental import pallas as pl
from jax.experimental.pallas import tpu as pltpu


def _round_up(x, m):
    return ((x + m - 1) // m) * m


# ----------------------------------------------------------------------------
# Pallas kernel: tiled, fused  act(A @ B + bias)
# ----------------------------------------------------------------------------
def _mm_bias_act_kernel(a_ref, b_ref, bias_ref, o_ref, acc_ref, *, act):
    @pl.when(pl.program_id(2) == 0)
    def _():
        # Fold the bias add into the accumulator init (saves an epilogue add).
        acc_ref[...] = jnp.broadcast_to(bias_ref[...], acc_ref.shape)

    acc_ref[...] += jnp.dot(a_ref[...], b_ref[...],
                            preferred_element_type=jnp.float32)

    @pl.when(pl.program_id(2) == pl.num_programs(2) - 1)
    def _():
        acc = acc_ref[...]                          # f32 epilogue (v5e-safe)
        if act == "lrelu":
            acc = jnp.where(acc >= 0.0, acc, 0.2 * acc)
        o_ref[...] = acc.astype(o_ref.dtype)


def _pick_tiles(M, K, N):
    # Maximize tile size (minimize grid steps) subject to a comfortable VMEM
    # budget; with these caps the worst case is ~12 MiB of live VMEM
    # (double-buffered bf16 inputs + f32 acc/out), fine on v5e/v6e/v7x.
    tm = min(512, _round_up(M, 8))
    tn = min(512, _round_up(N, 128))
    tk = min(2048, _round_up(K, 128))
    return tm, tn, tk


def matmul_bias_act(a, b, bias, act="none"):
    """C = act(A @ B + bias).  A:(M,K) B:(K,N) bias:(N,)  -> (M,N) float32."""
    M, K = a.shape
    K2, N = b.shape
    assert K == K2

    tm, tn, tk = _pick_tiles(M, K, N)
    Mp, Np, Kp = _round_up(M, tm), _round_up(N, tn), _round_up(K, tk)

    # bf16 MXU operands; zero-padding is exact for the K reduction.
    a_p = jnp.pad(a.astype(jnp.bfloat16), ((0, Mp - M), (0, Kp - K)))
    b_p = jnp.pad(b.astype(jnp.bfloat16), ((0, Kp - K), (0, Np - N)))
    bias_p = jnp.pad(bias.astype(jnp.float32), (0, Np - N)).reshape(1, Np)

    out = pl.pallas_call(
        functools.partial(_mm_bias_act_kernel, act=act),
        grid_spec=pltpu.PrefetchScalarGridSpec(
            num_scalar_prefetch=0,
            grid=(Mp // tm, Np // tn, Kp // tk),
            in_specs=[
                pl.BlockSpec((tm, tk), lambda i, j, k: (i, k)),
                pl.BlockSpec((tk, tn), lambda i, j, k: (k, j)),
                pl.BlockSpec((1, tn), lambda i, j, k: (0, j)),
            ],
            out_specs=pl.BlockSpec((tm, tn), lambda i, j, k: (i, j)),
            scratch_shapes=[pltpu.VMEM((tm, tn), jnp.float32)],
        ),
        out_shape=jax.ShapeDtypeStruct((Mp, Np), jnp.float32),
        compiler_params=pltpu.CompilerParams(
            dimension_semantics=("parallel", "parallel", "arbitrary"),
            vmem_limit_bytes=32 * 1024 * 1024,
        ),
        cost_estimate=pl.CostEstimate(
            flops=2 * Mp * Np * Kp,
            bytes_accessed=Mp * Kp * 2 + Kp * Np * 2 + Np * 4 + Mp * Np * 4,
            transcendentals=0,
        ),
    )(a_p, b_p, bias_p)
    return out[:M, :N]


# ----------------------------------------------------------------------------
# Conv2d built on the Pallas matmul kernel (im2col glue in plain JAX)
# ----------------------------------------------------------------------------
def _im2col(x, kh, kw, stride, pad):
    # x: (N, H, W, C) -> (N*Ho*Wo, kh*kw*C)
    n, h, w, c = x.shape
    xp = jnp.pad(x, ((0, 0), (pad, pad), (pad, pad), (0, 0)))
    ho = (h + 2 * pad - kh) // stride + 1
    wo = (w + 2 * pad - kw) // stride + 1
    patches = []
    for i in range(kh):
        for j in range(kw):
            patches.append(
                xp[:, i:i + stride * ho:stride, j:j + stride * wo:stride, :])
    cols = jnp.concatenate(patches, axis=-1)            # (N, Ho, Wo, kh*kw*C)
    return cols.reshape(n * ho * wo, kh * kw * c), (n, ho, wo)


def conv2d(x, w, b, stride, pad, act="none"):
    # x: NHWC;  w: (Cout, Cin, kh, kw) torch Conv2d layout;  b: (Cout,)
    cout, cin, kh, kw = w.shape
    cols, (n, ho, wo) = _im2col(x, kh, kw, stride, pad)
    wm = jnp.transpose(w, (2, 3, 1, 0)).reshape(kh * kw * cin, cout)
    out = matmul_bias_act(cols, wm, b, act)
    return out.reshape(n, ho, wo, cout)


# ----------------------------------------------------------------------------
# Deterministic parameter init (+ eval-mode BatchNorm folding)
# ----------------------------------------------------------------------------
def _conv_params(key, cout, cin, kh, kw, scale=0.05):
    k1, k2 = jax.random.split(key)
    w = jax.random.normal(k1, (cout, cin, kh, kw), jnp.float32) * scale
    b = jax.random.normal(k2, (cout,), jnp.float32) * scale
    return w, b


def _fold_bn(w, b, eps=1e-5):
    # BatchNorm2d at default init: gamma=1, beta=0, running_mean=0, running_var=1.
    s = 1.0 / jnp.sqrt(1.0 + eps)
    return w * s, b * s


def init_params(input_channels):
    keys = jax.random.split(jax.random.PRNGKey(0), 5)
    p = {}
    # discriminator_block(input_channels, 64, normalize=False)
    p["c1"] = _conv_params(keys[0], 64, input_channels, 4, 4)
    # discriminator_block(64, 128) / (128, 256) / (256, 512) -> Conv + BN
    p["c2"] = _fold_bn(*_conv_params(keys[1], 128, 64, 4, 4))
    p["c3"] = _fold_bn(*_conv_params(keys[2], 256, 128, 4, 4))
    p["c4"] = _fold_bn(*_conv_params(keys[3], 512, 256, 4, 4))
    # final Conv2d(512, 1, kernel_size=4, padding=1), stride 1, no activation
    p["c5"] = _conv_params(keys[4], 1, 512, 4, 4)
    return p


# ----------------------------------------------------------------------------
# MultiScaleDiscriminator.forward
# ----------------------------------------------------------------------------
def multiscale_discriminator_forward(params, img_A, img_B):
    # torch.cat((img_A, img_B), 1): channel concat in NCHW
    x = jnp.concatenate([img_A, img_B], axis=1)
    x = jnp.transpose(x, (0, 2, 3, 1))                  # NCHW -> NHWC
    # 4x [Conv(k4,s2,p1) (+BN folded) + LeakyReLU(0.2)]
    h = conv2d(x, *params["c1"], stride=2, pad=1, act="lrelu")
    h = conv2d(h, *params["c2"], stride=2, pad=1, act="lrelu")
    h = conv2d(h, *params["c3"], stride=2, pad=1, act="lrelu")
    h = conv2d(h, *params["c4"], stride=2, pad=1, act="lrelu")
    # final Conv2d(512, 1, k=4, s=1, p=1), no activation
    h = conv2d(h, *params["c5"], stride=1, pad=1, act="none")
    return jnp.transpose(h, (0, 3, 1, 2))               # NHWC -> NCHW


if __name__ == "__main__":
    B, C_A, C_B, H, W = 2, 3, 3, 32, 32
    ka, kb = jax.random.split(jax.random.PRNGKey(0))
    img_A = jax.random.normal(ka, (B, C_A, H, W), jnp.float32)
    img_B = jax.random.normal(kb, (B, C_B, H, W), jnp.float32)

    params = init_params(C_A + C_B)
    y = jax.jit(multiscale_discriminator_forward)(params, img_A, img_B)
    y = jax.block_until_ready(y)

    # 32 -> 16 -> 8 -> 4 -> 2 (stride-2 blocks), then k4/s1/p1 -> 1x1 patch map
    assert y.shape == (B, 1, 1, 1), y.shape
    assert bool(jnp.all(jnp.isfinite(y)))
    print("KERNEL_OK")
</pallas_src>

<mosaic_0001>
module attributes {stable_mosaic.version = 11 : i64} {
  func.func @_mm_bias_act_kernel(%arg0: i32, %arg1: i32, %arg2: i32, %arg3: memref<512x128xbf16, #tpu.memory_space<vmem>>, %arg4: memref<128x128xbf16, #tpu.memory_space<vmem>>, %arg5: memref<1x128xf32, #tpu.memory_space<vmem>>, %arg6: memref<512x128xf32, #tpu.memory_space<vmem>>, %arg7: memref<512x128xf32, #tpu.memory_space<vmem>>) attributes {dimension_semantics = [#tpu.dimension_semantics<parallel>, #tpu.dimension_semantics<parallel>, #tpu.dimension_semantics<arbitrary>], iteration_bounds = array<i64: 1, 1, 1>, scalar_prefetch = 0 : i64, scratch_operands = 1 : i64, tpu.core_type = #tpu.core_type<tc>, window_params = [{transform_indices = @transform_0, window_bounds = array<i64: 512, 128>}, {transform_indices = @transform_1, window_bounds = array<i64: 128, 128>}, {transform_indices = @transform_2, window_bounds = array<i64: 1, 128>}, {transform_indices = @transform_3, window_bounds = array<i64: 512, 128>}]} {
    %c0_i32 = arith.constant 0 : i32
    %0 = arith.cmpi eq, %arg2, %c0_i32 : i32
    %1 = arith.extui %0 : i1 to i32
    %c0_i32_0 = arith.constant 0 : i32
    %2 = arith.cmpi ne, %1, %c0_i32_0 : i32
    scf.if %2 {
      %c0_10 = arith.constant 0 : index
      %c0_11 = arith.constant 0 : index
      %12 = vector.load %arg5[%c0_10, %c0_11] : memref<1x128xf32, #tpu.memory_space<vmem>>, vector<1x128xf32>
      %13 = vector.shape_cast %12 : vector<1x128xf32> to vector<1x128xf32>
      %14 = vector.broadcast %13 : vector<1x128xf32> to vector<512x128xf32>
      %c0_12 = arith.constant 0 : index
      %c0_13 = arith.constant 0 : index
      %15 = vector.load %arg7[%c0_12, %c0_13] : memref<512x128xf32, #tpu.memory_space<vmem>>, vector<512x128xf32>
      tpu.vector_store %arg7[%c0_12, %c0_13], %14 {strides = array<i32>} : memref<512x128xf32, #tpu.memory_space<vmem>>, vector<512x128xf32>,
    } else {
    }
    %c0 = arith.constant 0 : index
    %c0_1 = arith.constant 0 : index
    %3 = vector.load %arg7[%c0, %c0_1] : memref<512x128xf32, #tpu.memory_space<vmem>>, vector<512x128xf32>
    %c0_2 = arith.constant 0 : index
    %c0_3 = arith.constant 0 : index
    %4 = vector.load %arg3[%c0_2, %c0_3] : memref<512x128xbf16, #tpu.memory_space<vmem>>, vector<512x128xbf16>
    %c0_4 = arith.constant 0 : index
    %c0_5 = arith.constant 0 : index
    %5 = vector.load %arg4[%c0_4, %c0_5] : memref<128x128xbf16, #tpu.memory_space<vmem>>, vector<128x128xbf16>
    %cst = arith.constant dense<0.000000e+00> : vector<512x128xf32>
    %6 = tpu.matmul %4, %5, %cst {dimension_numbers = #tpu.dot_dimension_numbers<[1], [0], [0], [1], [0, 0, 1, 1], [], []>} : vector<512x128xbf16>, vector<128x128xbf16>, vector<512x128xf32> -> vector<512x128xf32>
    %7 = arith.addf %3, %6 : vector<512x128xf32>
    %c0_6 = arith.constant 0 : index
    %c0_7 = arith.constant 0 : index
    %8 = vector.load %arg7[%c0_6, %c0_7] : memref<512x128xf32, #tpu.memory_space<vmem>>, vector<512x128xf32>
    tpu.vector_store %arg7[%c0_6, %c0_7], %7 {strides = array<i32>} : memref<512x128xf32, #tpu.memory_space<vmem>>, vector<512x128xf32>,
    %c0_i32_8 = arith.constant 0 : i32
    %9 = arith.cmpi eq, %arg2, %c0_i32_8 : i32
    %10 = arith.extui %9 : i1 to i32
    %c0_i32_9 = arith.constant 0 : i32
    %11 = arith.cmpi ne, %10, %c0_i32_9 : i32
    scf.if %11 {
      %c0_10 = arith.constant 0 : index
      %c0_11 = arith.constant 0 : index
      %12 = vector.load %arg7[%c0_10, %c0_11] : memref<512x128xf32, #tpu.memory_space<vmem>>, vector<512x128xf32>
      %cst_12 = arith.constant 0.000000e+00 : f32
      %13 = vector.broadcast %cst_12 : f32 to vector<512x128xf32>
      %14 = arith.cmpf oge, %12, %13 : vector<512x128xf32>
      %cst_13 = arith.constant 2.000000e-01 : f32
      %15 = vector.broadcast %cst_13 : f32 to vector<512x128xf32>
      %16 = arith.mulf %15, %12 : vector<512x128xf32>
      %17 = arith.select %14, %12, %16 : vector<512x128xi1>, vector<512x128xf32>
      %c0_14 = arith.constant 0 : index
      %c0_15 = arith.constant 0 : index
      %18 = vector.load %arg6[%c0_14, %c0_15] : memref<512x128xf32, #tpu.memory_space<vmem>>, vector<512x128xf32>
      tpu.vector_store %arg6[%c0_14, %c0_15], %17 {strides = array<i32>} : memref<512x128xf32, #tpu.memory_space<vmem>>, vector<512x128xf32>,
    } else {
    }
    return
  }
  func.func @transform_0(%arg0: i32, %arg1: i32, %arg2: i32) -> (i32, i32) {
    %c0_i32 = arith.constant 0 : i32
    return %arg0, %arg2 : i32, i32
  }
  func.func @transform_1(%arg0: i32, %arg1: i32, %arg2: i32) -> (i32, i32) {
    %c0_i32 = arith.constant 0 : i32
    return %arg2, %arg1 : i32, i32
  }
  func.func @transform_2(%arg0: i32, %arg1: i32, %arg2: i32) -> (i32, i32) {
    %c0_i32 = arith.constant 0 : i32
    %c0_i32_0 = arith.constant 0 : i32
    return %c0_i32, %arg1 : i32, i32
  }
  func.func @transform_3(%arg0: i32, %arg1: i32, %arg2: i32) -> (i32, i32) {
    %c0_i32 = arith.constant 0 : i32
    return %arg0, %arg1 : i32, i32
  }
}

module attributes {stable_mosaic.version = 11 : i64} {
  func.func @_mm_bias_act_kernel(%arg0: i32, %arg1: i32, %arg2: i32, %arg3: memref<128x1024xbf16, #tpu.memory_space<vmem>>, %arg4: memref<1024x128xbf16, #tpu.memory_space<vmem>>, %arg5: memref<1x128xf32, #tpu.memory_space<vmem>>, %arg6: memref<128x128xf32, #tpu.memory_space<vmem>>, %arg7: memref<128x128xf32, #tpu.memory_space<vmem>>) attributes {dimension_semantics = [#tpu.dimension_semantics<parallel>, #tpu.dimension_semantics<parallel>, #tpu.dimension_semantics<arbitrary>], iteration_bounds = array<i64: 1, 1, 1>, scalar_prefetch = 0 : i64, scratch_operands = 1 : i64, tpu.core_type = #tpu.core_type<tc>, window_params = [{transform_indices = @transform_0, window_bounds = array<i64: 128, 1024>}, {transform_indices = @transform_1, window_bounds = array<i64: 1024, 128>}, {transform_indices = @transform_2, window_bounds = array<i64: 1, 128>}, {transform_indices = @transform_3, window_bounds = array<i64: 128, 128>}]} {
    %c0_i32 = arith.constant 0 : i32
    %0 = arith.cmpi eq, %arg2, %c0_i32 : i32
    %1 = arith.extui %0 : i1 to i32
    %c0_i32_0 = arith.constant 0 : i32
    %2 = arith.cmpi ne, %1, %c0_i32_0 : i32
    scf.if %2 {
      %c0_10 = arith.constant 0 : index
      %c0_11 = arith.constant 0 : index
      %12 = vector.load %arg5[%c0_10, %c0_11] : memref<1x128xf32, #tpu.memory_space<vmem>>, vector<1x128xf32>
      %13 = vector.shape_cast %12 : vector<1x128xf32> to vector<1x128xf32>
      %14 = vector.broadcast %13 : vector<1x128xf32> to vector<128x128xf32>
      %c0_12 = arith.constant 0 : index
      %c0_13 = arith.constant 0 : index
      %15 = vector.load %arg7[%c0_12, %c0_13] : memref<128x128xf32, #tpu.memory_space<vmem>>, vector<128x128xf32>
      tpu.vector_store %arg7[%c0_12, %c0_13], %14 {strides = array<i32>} : memref<128x128xf32, #tpu.memory_space<vmem>>, vector<128x128xf32>,
    } else {
    }
    %c0 = arith.constant 0 : index
    %c0_1 = arith.constant 0 : index
    %3 = vector.load %arg7[%c0, %c0_1] : memref<128x128xf32, #tpu.memory_space<vmem>>, vector<128x128xf32>
    %c0_2 = arith.constant 0 : index
    %c0_3 = arith.constant 0 : index
    %4 = vector.load %arg3[%c0_2, %c0_3] : memref<128x1024xbf16, #tpu.memory_space<vmem>>, vector<128x1024xbf16>
    %c0_4 = arith.constant 0 : index
    %c0_5 = arith.constant 0 : index
    %5 = vector.load %arg4[%c0_4, %c0_5] : memref<1024x128xbf16, #tpu.memory_space<vmem>>, vector<1024x128xbf16>
    %cst = arith.constant dense<0.000000e+00> : vector<128x128xf32>
    %6 = tpu.matmul %4, %5, %cst {dimension_numbers = #tpu.dot_dimension_numbers<[1], [0], [0], [1], [0, 0, 1, 1], [], []>} : vector<128x1024xbf16>, vector<1024x128xbf16>, vector<128x128xf32> -> vector<128x128xf32>
    %7 = arith.addf %3, %6 : vector<128x128xf32>
    %c0_6 = arith.constant 0 : index
    %c0_7 = arith.constant 0 : index
    %8 = vector.load %arg7[%c0_6, %c0_7] : memref<128x128xf32, #tpu.memory_space<vmem>>, vector<128x128xf32>
    tpu.vector_store %arg7[%c0_6, %c0_7], %7 {strides = array<i32>} : memref<128x128xf32, #tpu.memory_space<vmem>>, vector<128x128xf32>,
    %c0_i32_8 = arith.constant 0 : i32
    %9 = arith.cmpi eq, %arg2, %c0_i32_8 : i32
    %10 = arith.extui %9 : i1 to i32
    %c0_i32_9 = arith.constant 0 : i32
    %11 = arith.cmpi ne, %10, %c0_i32_9 : i32
    scf.if %11 {
      %c0_10 = arith.constant 0 : index
      %c0_11 = arith.constant 0 : index
      %12 = vector.load %arg7[%c0_10, %c0_11] : memref<128x128xf32, #tpu.memory_space<vmem>>, vector<128x128xf32>
      %cst_12 = arith.constant 0.000000e+00 : f32
      %13 = vector.broadcast %cst_12 : f32 to vector<128x128xf32>
      %14 = arith.cmpf oge, %12, %13 : vector<128x128xf32>
      %cst_13 = arith.constant 2.000000e-01 : f32
      %15 = vector.broadcast %cst_13 : f32 to vector<128x128xf32>
      %16 = arith.mulf %15, %12 : vector<128x128xf32>
      %17 = arith.select %14, %12, %16 : vector<128x128xi1>, vector<128x128xf32>
      %c0_14 = arith.constant 0 : index
      %c0_15 = arith.constant 0 : index
      %18 = vector.load %arg6[%c0_14, %c0_15] : memref<128x128xf32, #tpu.memory_space<vmem>>, vector<128x128xf32>
      tpu.vector_store %arg6[%c0_14, %c0_15], %17 {strides = array<i32>} : memref<128x128xf32, #tpu.memory_space<vmem>>, vector<128x128xf32>,
    } else {
    }
    return
  }
  func.func @transform_0(%arg0: i32, %arg1: i32, %arg2: i32) -> (i32, i32) {
    %c0_i32 = arith.constant 0 : i32
    return %arg0, %arg2 : i32, i32
  }
  func.func @transform_1(%arg0: i32, %arg1: i32, %arg2: i32) -> (i32, i32) {
    %c0_i32 = arith.constant 0 : i32
    return %arg2, %arg1 : i32, i32
  }
  func.func @transform_2(%arg0: i32, %arg1: i32, %arg2: i32) -> (i32, i32) {
    %c0_i32 = arith.constant 0 : i32
    %c0_i32_0 = arith.constant 0 : i32
    return %c0_i32, %arg1 : i32, i32
  }
  func.func @transform_3(%arg0: i32, %arg1: i32, %arg2: i32) -> (i32, i32) {
    %c0_i32 = arith.constant 0 : i32
    return %arg0, %arg1 : i32, i32
  }
}

module attributes {stable_mosaic.version = 11 : i64} {
  func.func @_mm_bias_act_kernel(%arg0: i32, %arg1: i32, %arg2: i32, %arg3: memref<32x2048xbf16, #tpu.memory_space<vmem>>, %arg4: memref<2048x256xbf16, #tpu.memory_space<vmem>>, %arg5: memref<1x256xf32, #tpu.memory_space<vmem>>, %arg6: memref<32x256xf32, #tpu.memory_space<vmem>>, %arg7: memref<32x256xf32, #tpu.memory_space<vmem>>) attributes {dimension_semantics = [#tpu.dimension_semantics<parallel>, #tpu.dimension_semantics<parallel>, #tpu.dimension_semantics<arbitrary>], iteration_bounds = array<i64: 1, 1, 1>, scalar_prefetch = 0 : i64, scratch_operands = 1 : i64, tpu.core_type = #tpu.core_type<tc>, window_params = [{transform_indices = @transform_0, window_bounds = array<i64: 32, 2048>}, {transform_indices = @transform_1, window_bounds = array<i64: 2048, 256>}, {transform_indices = @transform_2, window_bounds = array<i64: 1, 256>}, {transform_indices = @transform_3, window_bounds = array<i64: 32, 256>}]} {
    %c0_i32 = arith.constant 0 : i32
    %0 = arith.cmpi eq, %arg2, %c0_i32 : i32
    %1 = arith.extui %0 : i1 to i32
    %c0_i32_0 = arith.constant 0 : i32
    %2 = arith.cmpi ne, %1, %c0_i32_0 : i32
    scf.if %2 {
      %c0_10 = arith.constant 0 : index
      %c0_11 = arith.constant 0 : index
      %12 = vector.load %arg5[%c0_10, %c0_11] : memref<1x256xf32, #tpu.memory_space<vmem>>, vector<1x256xf32>
      %13 = vector.shape_cast %12 : vector<1x256xf32> to vector<1x256xf32>
      %14 = vector.broadcast %13 : vector<1x256xf32> to vector<32x256xf32>
      %c0_12 = arith.constant 0 : index
      %c0_13 = arith.constant 0 : index
      %15 = vector.load %arg7[%c0_12, %c0_13] : memref<32x256xf32, #tpu.memory_space<vmem>>, vector<32x256xf32>
      tpu.vector_store %arg7[%c0_12, %c0_13], %14 {strides = array<i32>} : memref<32x256xf32, #tpu.memory_space<vmem>>, vector<32x256xf32>,
    } else {
    }
    %c0 = arith.constant 0 : index
    %c0_1 = arith.constant 0 : index
    %3 = vector.load %arg7[%c0, %c0_1] : memref<32x256xf32, #tpu.memory_space<vmem>>, vector<32x256xf32>
    %c0_2 = arith.constant 0 : index
    %c0_3 = arith.constant 0 : index
    %4 = vector.load %arg3[%c0_2, %c0_3] : memref<32x2048xbf16, #tpu.memory_space<vmem>>, vector<32x2048xbf16>
    %c0_4 = arith.constant 0 : index
    %c0_5 = arith.constant 0 : index
    %5 = vector.load %arg4[%c0_4, %c0_5] : memref<2048x256xbf16, #tpu.memory_space<vmem>>, vector<2048x256xbf16>
    %cst = arith.constant dense<0.000000e+00> : vector<32x256xf32>
    %6 = tpu.matmul %4, %5, %cst {dimension_numbers = #tpu.dot_dimension_numbers<[1], [0], [0], [1], [0, 0, 1, 1], [], []>} : vector<32x2048xbf16>, vector<2048x256xbf16>, vector<32x256xf32> -> vector<32x256xf32>
    %7 = arith.addf %3, %6 : vector<32x256xf32>
    %c0_6 = arith.constant 0 : index
    %c0_7 = arith.constant 0 : index
    %8 = vector.load %arg7[%c0_6, %c0_7] : memref<32x256xf32, #tpu.memory_space<vmem>>, vector<32x256xf32>
    tpu.vector_store %arg7[%c0_6, %c0_7], %7 {strides = array<i32>} : memref<32x256xf32, #tpu.memory_space<vmem>>, vector<32x256xf32>,
    %c0_i32_8 = arith.constant 0 : i32
    %9 = arith.cmpi eq, %arg2, %c0_i32_8 : i32
    %10 = arith.extui %9 : i1 to i32
    %c0_i32_9 = arith.constant 0 : i32
    %11 = arith.cmpi ne, %10, %c0_i32_9 : i32
    scf.if %11 {
      %c0_10 = arith.constant 0 : index
      %c0_11 = arith.constant 0 : index
      %12 = vector.load %arg7[%c0_10, %c0_11] : memref<32x256xf32, #tpu.memory_space<vmem>>, vector<32x256xf32>
      %cst_12 = arith.constant 0.000000e+00 : f32
      %13 = vector.broadcast %cst_12 : f32 to vector<32x256xf32>
      %14 = arith.cmpf oge, %12, %13 : vector<32x256xf32>
      %cst_13 = arith.constant 2.000000e-01 : f32
      %15 = vector.broadcast %cst_13 : f32 to vector<32x256xf32>
      %16 = arith.mulf %15, %12 : vector<32x256xf32>
      %17 = arith.select %14, %12, %16 : vector<32x256xi1>, vector<32x256xf32>
      %c0_14 = arith.constant 0 : index
      %c0_15 = arith.constant 0 : index
      %18 = vector.load %arg6[%c0_14, %c0_15] : memref<32x256xf32, #tpu.memory_space<vmem>>, vector<32x256xf32>
      tpu.vector_store %arg6[%c0_14, %c0_15], %17 {strides = array<i32>} : memref<32x256xf32, #tpu.memory_space<vmem>>, vector<32x256xf32>,
    } else {
    }
    return
  }
  func.func @transform_0(%arg0: i32, %arg1: i32, %arg2: i32) -> (i32, i32) {
    %c0_i32 = arith.constant 0 : i32
    return %arg0, %arg2 : i32, i32
  }
  func.func @transform_1(%arg0: i32, %arg1: i32, %arg2: i32) -> (i32, i32) {
    %c0_i32 = arith.constant 0 : i32
    return %arg2, %arg1 : i32, i32
  }
  func.func @transform_2(%arg0: i32, %arg1: i32, %arg2: i32) -> (i32, i32) {
    %c0_i32 = arith.constant 0 : i32
    %c0_i32_0 = arith.constant 0 : i32
    return %c0_i32, %arg1 : i32, i32
  }
  func.func @transform_3(%arg0: i32, %arg1: i32, %arg2: i32) -> (i32, i32) {
    %c0_i32 = arith.constant 0 : i32
    return %arg0, %arg1 : i32, i32
  }
}

module attributes {stable_mosaic.version = 11 : i64} {
  func.func @_mm_bias_act_kernel(%arg0: i32, %arg1: i32, %arg2: i32, %arg3: memref<8x2048xbf16, #tpu.memory_space<vmem>>, %arg4: memref<2048x512xbf16, #tpu.memory_space<vmem>>, %arg5: memref<1x512xf32, #tpu.memory_space<vmem>>, %arg6: memref<8x512xf32, #tpu.memory_space<vmem>>, %arg7: memref<8x512xf32, #tpu.memory_space<vmem>>) attributes {dimension_semantics = [#tpu.dimension_semantics<parallel>, #tpu.dimension_semantics<parallel>, #tpu.dimension_semantics<arbitrary>], iteration_bounds = array<i64: 1, 1, 2>, scalar_prefetch = 0 : i64, scratch_operands = 1 : i64, tpu.core_type = #tpu.core_type<tc>, window_params = [{transform_indices = @transform_0, window_bounds = array<i64: 8, 2048>}, {transform_indices = @transform_1, window_bounds = array<i64: 2048, 512>}, {transform_indices = @transform_2, window_bounds = array<i64: 1, 512>}, {transform_indices = @transform_3, window_bounds = array<i64: 8, 512>}]} {
    %c0_i32 = arith.constant 0 : i32
    %0 = arith.cmpi eq, %arg2, %c0_i32 : i32
    %1 = arith.extui %0 : i1 to i32
    %c0_i32_0 = arith.constant 0 : i32
    %2 = arith.cmpi ne, %1, %c0_i32_0 : i32
    scf.if %2 {
      %c0_9 = arith.constant 0 : index
      %c0_10 = arith.constant 0 : index
      %12 = vector.load %arg5[%c0_9, %c0_10] : memref<1x512xf32, #tpu.memory_space<vmem>>, vector<1x512xf32>
      %13 = vector.shape_cast %12 : vector<1x512xf32> to vector<1x512xf32>
      %14 = vector.broadcast %13 : vector<1x512xf32> to vector<8x512xf32>
      %c0_11 = arith.constant 0 : index
      %c0_12 = arith.constant 0 : index
      %15 = vector.load %arg7[%c0_11, %c0_12] : memref<8x512xf32, #tpu.memory_space<vmem>>, vector<8x512xf32>
      tpu.vector_store %arg7[%c0_11, %c0_12], %14 {strides = array<i32>} : memref<8x512xf32, #tpu.memory_space<vmem>>, vector<8x512xf32>,
    } else {
    }
    %c0 = arith.constant 0 : index
    %c0_1 = arith.constant 0 : index
    %3 = vector.load %arg7[%c0, %c0_1] : memref<8x512xf32, #tpu.memory_space<vmem>>, vector<8x512xf32>
    %c0_2 = arith.constant 0 : index
    %c0_3 = arith.constant 0 : index
    %4 = vector.load %arg3[%c0_2, %c0_3] : memref<8x2048xbf16, #tpu.memory_space<vmem>>, vector<8x2048xbf16>
    %c0_4 = arith.constant 0 : index
    %c0_5 = arith.constant 0 : index
    %5 = vector.load %arg4[%c0_4, %c0_5] : memref<2048x512xbf16, #tpu.memory_space<vmem>>, vector<2048x512xbf16>
    %cst = arith.constant dense<0.000000e+00> : vector<8x512xf32>
    %6 = tpu.matmul %4, %5, %cst {dimension_numbers = #tpu.dot_dimension_numbers<[1], [0], [0], [1], [0, 0, 1, 1], [], []>} : vector<8x2048xbf16>, vector<2048x512xbf16>, vector<8x512xf32> -> vector<8x512xf32>
    %7 = arith.addf %3, %6 : vector<8x512xf32>
    %c0_6 = arith.constant 0 : index
    %c0_7 = arith.constant 0 : index
    %8 = vector.load %arg7[%c0_6, %c0_7] : memref<8x512xf32, #tpu.memory_space<vmem>>, vector<8x512xf32>
    tpu.vector_store %arg7[%c0_6, %c0_7], %7 {strides = array<i32>} : memref<8x512xf32, #tpu.memory_space<vmem>>, vector<8x512xf32>,
    %c1_i32 = arith.constant 1 : i32
    %9 = arith.cmpi eq, %arg2, %c1_i32 : i32
    %10 = arith.extui %9 : i1 to i32
    %c0_i32_8 = arith.constant 0 : i32
    %11 = arith.cmpi ne, %10, %c0_i32_8 : i32
    scf.if %11 {
      %c0_9 = arith.constant 0 : index
      %c0_10 = arith.constant 0 : index
      %12 = vector.load %arg7[%c0_9, %c0_10] : memref<8x512xf32, #tpu.memory_space<vmem>>, vector<8x512xf32>
      %cst_11 = arith.constant 0.000000e+00 : f32
      %13 = vector.broadcast %cst_11 : f32 to vector<8x512xf32>
      %14 = arith.cmpf oge, %12, %13 : vector<8x512xf32>
      %cst_12 = arith.constant 2.000000e-01 : f32
      %15 = vector.broadcast %cst_12 : f32 to vector<8x512xf32>
      %16 = arith.mulf %15, %12 : vector<8x512xf32>
      %17 = arith.select %14, %12, %16 : vector<8x512xi1>, vector<8x512xf32>
      %c0_13 = arith.constant 0 : index
      %c0_14 = arith.constant 0 : index
      %18 = vector.load %arg6[%c0_13, %c0_14] : memref<8x512xf32, #tpu.memory_space<vmem>>, vector<8x512xf32>
      tpu.vector_store %arg6[%c0_13, %c0_14], %17 {strides = array<i32>} : memref<8x512xf32, #tpu.memory_space<vmem>>, vector<8x512xf32>,
    } else {
    }
    return
  }
  func.func @transform_0(%arg0: i32, %arg1: i32, %arg2: i32) -> (i32, i32) {
    %c0_i32 = arith.constant 0 : i32
    return %arg0, %arg2 : i32, i32
  }
  func.func @transform_1(%arg0: i32, %arg1: i32, %arg2: i32) -> (i32, i32) {
    %c0_i32 = arith.constant 0 : i32
    return %arg2, %arg1 : i32, i32
  }
  func.func @transform_2(%arg0: i32, %arg1: i32, %arg2: i32) -> (i32, i32) {
    %c0_i32 = arith.constant 0 : i32
    %c0_i32_0 = arith.constant 0 : i32
    return %c0_i32, %arg1 : i32, i32
  }
  func.func @transform_3(%arg0: i32, %arg1: i32, %arg2: i32) -> (i32, i32) {
    %c0_i32 = arith.constant 0 : i32
    return %arg0, %arg1 : i32, i32
  }
}

module attributes {stable_mosaic.version = 11 : i64} {
  func.func @_mm_bias_act_kernel(%arg0: i32, %arg1: i32, %arg2: i32, %arg3: memref<8x2048xbf16, #tpu.memory_space<vmem>>, %arg4: memref<2048x128xbf16, #tpu.memory_space<vmem>>, %arg5: memref<1x128xf32, #tpu.memory_space<vmem>>, %arg6: memref<8x128xf32, #tpu.memory_space<vmem>>, %arg7: memref<8x128xf32, #tpu.memory_space<vmem>>) attributes {dimension_semantics = [#tpu.dimension_semantics<parallel>, #tpu.dimension_semantics<parallel>, #tpu.dimension_semantics<arbitrary>], iteration_bounds = array<i64: 1, 1, 4>, scalar_prefetch = 0 : i64, scratch_operands = 1 : i64, tpu.core_type = #tpu.core_type<tc>, window_params = [{transform_indices = @transform_0, window_bounds = array<i64: 8, 2048>}, {transform_indices = @transform_1, window_bounds = array<i64: 2048, 128>}, {transform_indices = @transform_2, window_bounds = array<i64: 1, 128>}, {transform_indices = @transform_3, window_bounds = array<i64: 8, 128>}]} {
    %c0_i32 = arith.constant 0 : i32
    %0 = arith.cmpi eq, %arg2, %c0_i32 : i32
    %1 = arith.extui %0 : i1 to i32
    %c0_i32_0 = arith.constant 0 : i32
    %2 = arith.cmpi ne, %1, %c0_i32_0 : i32
    scf.if %2 {
      %c0_9 = arith.constant 0 : index
      %c0_10 = arith.constant 0 : index
      %12 = vector.load %arg5[%c0_9, %c0_10] : memref<1x128xf32, #tpu.memory_space<vmem>>, vector<1x128xf32>
      %13 = vector.shape_cast %12 : vector<1x128xf32> to vector<1x128xf32>
      %14 = vector.broadcast %13 : vector<1x128xf32> to vector<8x128xf32>
      %c0_11 = arith.constant 0 : index
      %c0_12 = arith.constant 0 : index
      %15 = vector.load %arg7[%c0_11, %c0_12] : memref<8x128xf32, #tpu.memory_space<vmem>>, vector<8x128xf32>
      tpu.vector_store %arg7[%c0_11, %c0_12], %14 {strides = array<i32>} : memref<8x128xf32, #tpu.memory_space<vmem>>, vector<8x128xf32>,
    } else {
    }
    %c0 = arith.constant 0 : index
    %c0_1 = arith.constant 0 : index
    %3 = vector.load %arg7[%c0, %c0_1] : memref<8x128xf32, #tpu.memory_space<vmem>>, vector<8x128xf32>
    %c0_2 = arith.constant 0 : index
    %c0_3 = arith.constant 0 : index
    %4 = vector.load %arg3[%c0_2, %c0_3] : memref<8x2048xbf16, #tpu.memory_space<vmem>>, vector<8x2048xbf16>
    %c0_4 = arith.constant 0 : index
    %c0_5 = arith.constant 0 : index
    %5 = vector.load %arg4[%c0_4, %c0_5] : memref<2048x128xbf16, #tpu.memory_space<vmem>>, vector<2048x128xbf16>
    %cst = arith.constant dense<0.000000e+00> : vector<8x128xf32>
    %6 = tpu.matmul %4, %5, %cst {dimension_numbers = #tpu.dot_dimension_numbers<[1], [0], [0], [1], [0, 0, 1, 1], [], []>} : vector<8x2048xbf16>, vector<2048x128xbf16>, vector<8x128xf32> -> vector<8x128xf32>
    %7 = arith.addf %3, %6 : vector<8x128xf32>
    %c0_6 = arith.constant 0 : index
    %c0_7 = arith.constant 0 : index
    %8 = vector.load %arg7[%c0_6, %c0_7] : memref<8x128xf32, #tpu.memory_space<vmem>>, vector<8x128xf32>
    tpu.vector_store %arg7[%c0_6, %c0_7], %7 {strides = array<i32>} : memref<8x128xf32, #tpu.memory_space<vmem>>, vector<8x128xf32>,
    %c3_i32 = arith.constant 3 : i32
    %9 = arith.cmpi eq, %arg2, %c3_i32 : i32
    %10 = arith.extui %9 : i1 to i32
    %c0_i32_8 = arith.constant 0 : i32
    %11 = arith.cmpi ne, %10, %c0_i32_8 : i32
    scf.if %11 {
      %c0_9 = arith.constant 0 : index
      %c0_10 = arith.constant 0 : index
      %12 = vector.load %arg7[%c0_9, %c0_10] : memref<8x128xf32, #tpu.memory_space<vmem>>, vector<8x128xf32>
      %c0_11 = arith.constant 0 : index
      %c0_12 = arith.constant 0 : index
      %13 = vector.load %arg6[%c0_11, %c0_12] : memref<8x128xf32, #tpu.memory_space<vmem>>, vector<8x128xf32>
      tpu.vector_store %arg6[%c0_11, %c0_12], %12 {strides = array<i32>} : memref<8x128xf32, #tpu.memory_space<vmem>>, vector<8x128xf32>,
    } else {
    }
    return
  }
  func.func @transform_0(%arg0: i32, %arg1: i32, %arg2: i32) -> (i32, i32) {
    %c0_i32 = arith.constant 0 : i32
    return %arg0, %arg2 : i32, i32
  }
  func.func @transform_1(%arg0: i32, %arg1: i32, %arg2: i32) -> (i32, i32) {
    %c0_i32 = arith.constant 0 : i32
    return %arg2, %arg1 : i32, i32
  }
  func.func @transform_2(%arg0: i32, %arg1: i32, %arg2: i32) -> (i32, i32) {
    %c0_i32 = arith.constant 0 : i32
    %c0_i32_0 = arith.constant 0 : i32
    return %c0_i32, %arg1 : i32, i32
  }
  func.func @transform_3(%arg0: i32, %arg1: i32, %arg2: i32) -> (i32, i32) {
    %c0_i32 = arith.constant 0 : i32
    return %arg0, %arg1 : i32, i32
  }
}

</mosaic_0001>

<bundles_post_ra>
// kernel: multiscale_discriminator_forward.5
= control target key start
LH: loop header
LB: loop body
LE: loop exit
PB: predicated region body
PF: predicated region fallthrough
CT: control target
= control target key end

     0   :  { %s1836_s1 = inlined_call_operand.vmem [shape: bf16[128,128], index: 1, kind: input, shape index: {}]   ;;  %s1837_s0 = inlined_call_operand.vmem [shape: bf16[512,128], index: 0, kind: input, shape index: {}]   ;;  %s1838_s2 = inlined_call_operand.vmem [shape: f32[1,128], index: 2, kind: input, shape index: {}]   ;;  %s1839_s3 = inlined_call_operand.vmem [shape: f32[512,128], index: 3, kind: output, shape index: {}]  }
   0x1   :  { %v1395_v0 = vld [vmem:[%s1836_s1] sm:$0xff]   ;;  %v1396_v1 = vld [vmem:[%s1836_s1 + $0x8] sm:$0xff]   ;;  %v1397_v2 = vld [vmem:[%s1836_s1 + $0x10] sm:$0xff]  }
   0x2   :  { %1299 = vmatprep.subr.bf16.mxu0 %v1395_v0  ;;  %1379 = vmatprep.subr.bf16.mxu1 %v1395_v0  ;;  %v1398_v3 = vld [vmem:[%s1836_s1 + $0x18] sm:$0xff]   ;;  %v1403_v4 = vld [vmem:[%s1837_s0] sm:$0xff]   ;;  %v1400_v7 = vld [vmem:[%s1836_s1 + $0x28] sm:$0xff]  }
   0x3   :  { %1300 = vmatpush3.bf16.msra.mxu0 %v1395_v0  ;;  %1387 = vmatpush3.bf16.msra.mxu1 %v1395_v0  ;;  %v1404_v5 = vld [vmem:[%s1837_s0 + $0x80] sm:$0xff]   ;;  %v1401_v8 = vld [vmem:[%s1836_s1 + $0x30] sm:$0xff]   ;;  %v1402_v9 = vld [vmem:[%s1836_s1 + $0x38] sm:$0xff]  }
   0x4   :  { %1301 = vmatprep.subr.bf16.mxu0 %v1396_v1  ;;  %1380 = vmatprep.subr.bf16.mxu1 %v1396_v1  ;;  %v1399_v6 = vld [vmem:[%s1836_s1 + $0x20] sm:$0xff]   ;;  %v1405_v10 = vld [vmem:[%s1837_s0 + $0x8] sm:$0xff]   ;;  %v1407_v12 = vld [vmem:[%s1837_s0 + $0x10] sm:$0xff]  }
   0x5   :  { %1315 = vmatprep.mubr.bf16.mxu0 %v1403_v4  ;;  %1347 = vmatprep.mubr.bf16.mxu1 %v1404_v5  ;;  %v1406_v11 = vld [vmem:[%s1837_s0 + $0x88] sm:$0xff]   ;;  %v1408_v13 = vld [vmem:[%s1837_s0 + $0x90] sm:$0xff]   ;;  %v1409_v14 = vld [vmem:[%s1837_s0 + $0x18] sm:$0xff]  }
   0x6   :  { %v1410_v15 = vld [vmem:[%s1837_s0 + $0x98] sm:$0xff]   ;;  %v1411_v16 = vld [vmem:[%s1837_s0 + $0x20] sm:$0xff]   ;;  %v1413_v18 = vld [vmem:[%s1837_s0 + $0x28] sm:$0xff]  }
   0x7   :  { %1302 = vmatpush3.bf16.msra.mxu0 %v1396_v1  ;;  %1388 = vmatpush3.bf16.msra.mxu1 %v1396_v1  ;;  %v1412_v17 = vld [vmem:[%s1837_s0 + $0xa0] sm:$0xff]   ;;  %v1414_v19 = vld [vmem:[%s1837_s0 + $0xa8] sm:$0xff]   ;;  %v1415_v20 = vld [vmem:[%s1837_s0 + $0x30] sm:$0xff]  }
   0x8   :  { %1303 = vmatprep.subr.bf16.mxu0 %v1397_v2  ;;  %1381 = vmatprep.subr.bf16.mxu1 %v1397_v2  ;;  %v1416_v21 = vld [vmem:[%s1837_s0 + $0xb0] sm:$0xff]   ;;  %v1417_v22 = vld [vmem:[%s1837_s0 + $0x38] sm:$0xff]   ;;  %v1419_v24 = vld [vmem:[%s1837_s0 + $0x40] sm:$0xff]  }
   0x9   :  { %v1418_v23 = vld [vmem:[%s1837_s0 + $0xb8] sm:$0xff]   ;;  %v1420_v25 = vld [vmem:[%s1837_s0 + $0xc0] sm:$0xff]   ;;  %v1421_v26 = vld [vmem:[%s1837_s0 + $0x48] sm:$0xff]  }
   0xa   :  { %v1422_v27 = vld [vmem:[%s1837_s0 + $0xc8] sm:$0xff]   ;;  %v1423_v28 = vld [vmem:[%s1837_s0 + $0x50] sm:$0xff]   ;;  %v1425_v30 = vld [vmem:[%s1837_s0 + $0x58] sm:$0xff]  }
   0xb   :  { %1304 = vmatpush3.bf16.msra.mxu0 %v1397_v2  ;;  %1389 = vmatpush3.bf16.msra.mxu1 %v1397_v2  ;;  %v1424_v29 = vld [vmem:[%s1837_s0 + $0xd0] sm:$0xff]   ;;  %v1426_v31 = vld [vmem:[%s1837_s0 + $0xd8] sm:$0xff]   ;;  %v1427_v32 = vld [vmem:[%s1837_s0 + $0x60] sm:$0xff]  }
   0xc   :  { %1305 = vmatprep.subr.bf16.mxu0 %v1398_v3  ;;  %1382 = vmatprep.subr.bf16.mxu1 %v1398_v3  ;;  %v1428_v33 = vld [vmem:[%s1837_s0 + $0xe0] sm:$0xff]   ;;  %v1429_v34 = vld [vmem:[%s1837_s0 + $0x68] sm:$0xff]   ;;  %v1431_v36 = vld [vmem:[%s1837_s0 + $0x70] sm:$0xff]  }
   0xd   :  { %v1430_v35 = vld [vmem:[%s1837_s0 + $0xe8] sm:$0xff]   ;;  %v1432_v37 = vld [vmem:[%s1837_s0 + $0xf0] sm:$0xff]   ;;  %v1433_v38 = vld [vmem:[%s1837_s0 + $0x78] sm:$0xff]  }
   0xe   :  { %v1434_v39 = vld [vmem:[%s1837_s0 + $0xf8] sm:$0xff]   ;;  %v1578_v40 = vld [vmem:[%s1838_s2] ss:$0 sm:$0xff] }
   0xf   :  { %1306 = vmatpush3.bf16.msra.mxu0 %v1398_v3  ;;  %1390 = vmatpush3.bf16.msra.mxu1 %v1398_v3 }
  0x10   :  { %1307 = vmatprep.subr.bf16.mxu0 %v1399_v6  ;;  %1383 = vmatprep.subr.bf16.mxu1 %v1399_v6 }
  0x13   :  { %1308 = vmatpush3.bf16.msra.mxu0 %v1399_v6  ;;  %1391 = vmatpush3.bf16.msra.mxu1 %v1399_v6 }
  0x14   :  { %1309 = vmatprep.subr.bf16.mxu0 %v1400_v7  ;;  %1384 = vmatprep.subr.bf16.mxu1 %v1400_v7 }
  0x17   :  { %1310 = vmatpush3.bf16.msra.mxu0 %v1400_v7  ;;  %1392 = vmatpush3.bf16.msra.mxu1 %v1400_v7 }
  0x18   :  { %1311 = vmatprep.subr.bf16.mxu0 %v1401_v8  ;;  %1385 = vmatprep.subr.bf16.mxu1 %v1401_v8 }
  0x1b   :  { %1312 = vmatpush3.bf16.msra.mxu0 %v1401_v8  ;;  %1393 = vmatpush3.bf16.msra.mxu1 %v1401_v8 }
  0x1c   :  { %1313 = vmatprep.subr.bf16.mxu0 %v1402_v9  ;;  %1386 = vmatprep.subr.bf16.mxu1 %v1402_v9 }
  0x1f   :  { %1314 = vmatpush3.bf16.msra.mxu0 %v1402_v9  ;;  %1394 = vmatpush3.bf16.msra.mxu1 %v1402_v9 }
  0x22   :  { %1316 = vmatmul.mubr.bf16.vlgmr.msra.gmra.mrb[0].mxu0 %v1405_v10  ;;  %1348 = vmatmul.mubr.bf16.vlgmr.msra.gmra.mrb[0].mxu1 %v1406_v11 }
  0x23   :  { %1319 = vmatprep.mubr.bf16.mxu0 %v1407_v12  ;;  %1351 = vmatprep.mubr.bf16.mxu1 %v1408_v13 }
  0x2a   :  { %1320 = vmatmul.mubr.bf16.gmra.mrb[4].mxu0 %v1409_v14  ;;  %1352 = vmatmul.mubr.bf16.gmra.mrb[4].mxu1 %v1410_v15 }
  0x2b   :  { %1323 = vmatprep.mubr.bf16.mxu0 %v1411_v16  ;;  %1355 = vmatprep.mubr.bf16.mxu1 %v1412_v17 }
  0x32   :  { %1324 = vmatmul.mubr.bf16.gmra.mrb[8].mxu0 %v1413_v18  ;;  %1356 = vmatmul.mubr.bf16.gmra.mrb[8].mxu1 %v1414_v19 }
  0x33   :  { %1327 = vmatprep.mubr.bf16.mxu0 %v1415_v20  ;;  %1359 = vmatprep.mubr.bf16.mxu1 %v1416_v21 }
  0x3a   :  { %1328 = vmatmul.mubr.bf16.gmra.mrb[12].mxu0 %v1417_v22  ;;  %1360 = vmatmul.mubr.bf16.gmra.mrb[12].mxu1 %v1418_v23 }
  0x3b   :  { %1331 = vmatprep.mubr.bf16.mxu0 %v1419_v24  ;;  %1363 = vmatprep.mubr.bf16.mxu1 %v1420_v25 }
  0x42   :  { %1332 = vmatmul.mubr.bf16.gmra.mrb[16].mxu0 %v1421_v26  ;;  %1364 = vmatmul.mubr.bf16.gmra.mrb[16].mxu1 %v1422_v27 }
  0x43   :  { %1335 = vmatprep.mubr.bf16.mxu0 %v1423_v28  ;;  %1367 = vmatprep.mubr.bf16.mxu1 %v1424_v29 }
  0x4a   :  { %1336 = vmatmul.mubr.bf16.gmra.mrb[20].mxu0 %v1425_v30  ;;  %1368 = vmatmul.mubr.bf16.gmra.mrb[20].mxu1 %v1426_v31 }
  0x4b   :  { %1339 = vmatprep.mubr.bf16.mxu0 %v1427_v32  ;;  %1371 = vmatprep.mubr.bf16.mxu1 %v1428_v33 }
  0x52   :  { %1340 = vmatmul.mubr.bf16.gmra.mrb[24].mxu0 %v1429_v34  ;;  %1372 = vmatmul.mubr.bf16.gmra.mrb[24].mxu1 %v1430_v35 }
  0x53   :  { %1343 = vmatprep.mubr.bf16.mxu0 %v1431_v36  ;;  %1375 = vmatprep.mubr.bf16.mxu1 %v1432_v37 }
  0x5a   :  { %1344 = vmatmul.mubr.bf16.gmra.mrb[28].mxu0 %v1433_v38  ;;  %1376 = vmatmul.mubr.bf16.gmra.mrb[28].mxu1 %v1434_v39 }
  0xf5   :  { %v1317_v41 = vpop.f32.mrb[0].mxu0  ;;  %v1349_v42 = vpop.f32.mrb[0].mxu1 }
  0xf6   :  { %v765_v43 = vadd.f32 %v1317_v41, %v1578_v40  ;;  %v797_v44 = vadd.f32 %v1349_v42, %v1578_v40  ;;  %v508_v45 = vpop.f32.mrb[1].mxu0  ;;  %v636_v46 = vpop.f32.mrb[1].mxu1 }
  0xf7   :  { %v763_v47 = vadd.f32 %v1578_v40, %v508_v45  ;;  %v795_v48 = vadd.f32 %v1578_v40, %v636_v46  ;;  %v1318_v49 = vpop.f32.mrb[2].mxu0  ;;  %v1350_v50 = vpop.f32.mrb[2].mxu1 }
  0xf8   :  { %vm960_vm0 = vcmp.ge.f32.partialorder %v765_v43, 0.0  ;;  %v1024_v51 = vmul.f32 0.2, %v765_v43  ;;  %vm992_vm1 = vcmp.ge.f32.partialorder %v797_v44, 0.0  ;;  %v1056_v52 = vmul.f32 0.2, %v797_v44 }
  0xf9   :  { %vm958_vm2 = vcmp.ge.f32.partialorder %v763_v47, 0.0  ;;  %v1022_v53 = vmul.f32 0.2, %v763_v47  ;;  %vm990_vm3 = vcmp.ge.f32.partialorder %v795_v48, 0.0  ;;  %v1054_v54 = vmul.f32 0.2, %v795_v48 }
  0xfa   :  { %v1088_v55 = vsel %vm960_vm0, %v765_v43, %v1024_v51  ;;  %v1120_v56 = vsel %vm992_vm1, %v797_v44, %v1056_v52  ;;  %v766_v57 = vadd.f32 %v1318_v49, %v1578_v40  ;;  %v798_v58 = vadd.f32 %v1350_v50, %v1578_v40  ;;  %v511_v59 = vpop.f32.mrb[3].mxu0  ;;  %v639_v60 = vpop.f32.mrb[3].mxu1 }
  0xfb   :  { %1152 = vst [vmem:[%s1839_s3 + $0x10] sm:$0xff] %v1088_v55  ;;  %1184 = vst [vmem:[%s1839_s3 + $0x110] sm:$0xff] %v1120_v56  ;;  %v1086_v61 = vsel %vm958_vm2, %v763_v47, %v1022_v53  ;;  %v1118_v62 = vsel %vm990_vm3, %v795_v48, %v1054_v54  ;;  %v764_v63 = vadd.f32 %v1578_v40, %v511_v59 }
  0xfc   :  { %v796_v0 = vadd.f32 %v1578_v40, %v639_v60  ;;  %1150 = vst [vmem:[%s1839_s3] sm:$0xff] %v1086_v61  ;;  %1182 = vst [vmem:[%s1839_s3 + $0x100] sm:$0xff] %v1118_v62  ;;  %vm961_vm4 = vcmp.ge.f32.partialorder %v766_v57, 0.0  ;;  %v1025_v1 = vmul.f32 0.2, %v766_v57  ;;  %vm993_vm5 = vcmp.ge.f32.partialorder %v798_v58, 0.0 }
  0xfd   :  { %v1057_v2 = vmul.f32 0.2, %v798_v58  ;;  %vm959_vm6 = vcmp.ge.f32.partialorder %v764_v63, 0.0  ;;  %v1023_v3 = vmul.f32 0.2, %v764_v63  ;;  %v1321_v7 = vpop.f32.mrb[4].mxu0 }
  0xfe   :  { %vm991_vm7 = vcmp.ge.f32.partialorder %v796_v0, 0.0  ;;  %v1055_v4 = vmul.f32 0.2, %v796_v0  ;;  %v1089_v5 = vsel %vm961_vm4, %v766_v57, %v1025_v1  ;;  %v1353_v8 = vpop.f32.mrb[4].mxu1  ;;  %v769_v11 = vadd.f32 %v1321_v7, %v1578_v40  ;;  %v524_v13 = vpop.f32.mrb[5].mxu0 }
  0xff   :  { %v1121_v6 = vsel %vm993_vm5, %v798_v58, %v1057_v2  ;;  %1153 = vst [vmem:[%s1839_s3 + $0x18] sm:$0xff] %v1089_v5  ;;  %v1087_v9 = vsel %vm959_vm6, %v764_v63, %v1023_v3  ;;  %v801_v12 = vadd.f32 %v1353_v8, %v1578_v40  ;;  %v652_v14 = vpop.f32.mrb[5].mxu1  ;;  %v767_v15 = vadd.f32 %v1578_v40, %v524_v13  ;;  %v1322_v17 = vpop.f32.mrb[6].mxu0 }
 0x100   :  { %1185 = vst [vmem:[%s1839_s3 + $0x118] sm:$0xff] %v1121_v6  ;;  %v1119_v10 = vsel %vm991_vm7, %v796_v0, %v1055_v4  ;;  %1151 = vst [vmem:[%s1839_s3 + $0x8] sm:$0xff] %v1087_v9  ;;  %v799_v16 = vadd.f32 %v1578_v40, %v652_v14  ;;  %v1354_v18 = vpop.f32.mrb[6].mxu1  ;;  %vm964_vm8 = vcmp.ge.f32.partialorder %v769_v11, 0.0  ;;  %v1028_v19 = vmul.f32 0.2, %v769_v11 }
 0x101   :  { %1183 = vst [vmem:[%s1839_s3 + $0x108] sm:$0xff] %v1119_v10  ;;  %vm996_vm9 = vcmp.ge.f32.partialorder %v801_v12, 0.0  ;;  %v1060_v20 = vmul.f32 0.2, %v801_v12  ;;  %vm962_vm10 = vcmp.ge.f32.partialorder %v767_v15, 0.0  ;;  %v770_v25 = vadd.f32 %v1322_v17, %v1578_v40  ;;  %v527_v27 = vpop.f32.mrb[7].mxu0 }
 0x102   :  { %v1026_v21 = vmul.f32 0.2, %v767_v15  ;;  %vm994_vm11 = vcmp.ge.f32.partialorder %v799_v16, 0.0  ;;  %v1058_v22 = vmul.f32 0.2, %v799_v16  ;;  %v1092_v23 = vsel %vm964_vm8, %v769_v11, %v1028_v19  ;;  %v655_v28 = vpop.f32.mrb[7].mxu1 }
 0x103   :  { %v1124_v24 = vsel %vm996_vm9, %v801_v12, %v1060_v20  ;;  %v802_v26 = vadd.f32 %v1354_v18, %v1578_v40  ;;  %1156 = vst [vmem:[%s1839_s3 + $0x30] sm:$0xff] %v1092_v23  ;;  %v768_v31 = vadd.f32 %v1578_v40, %v527_v27  ;;  %v800_v32 = vadd.f32 %v1578_v40, %v655_v28 }
 0x104   :  { %1188 = vst [vmem:[%s1839_s3 + $0x130] sm:$0xff] %v1124_v24  ;;  %v1090_v29 = vsel %vm962_vm10, %v767_v15, %v1026_v21  ;;  %v1122_v30 = vsel %vm994_vm11, %v799_v16, %v1058_v22  ;;  %vm965_vm12 = vcmp.ge.f32.partialorder %v770_v25, 0.0  ;;  %v1029_v33 = vmul.f32 0.2, %v770_v25 }
 0x105   :  { %1154 = vst [vmem:[%s1839_s3 + $0x20] sm:$0xff] %v1090_v29  ;;  %1186 = vst [vmem:[%s1839_s3 + $0x120] sm:$0xff] %v1122_v30  ;;  %vm997_vm13 = vcmp.ge.f32.partialorder %v802_v26, 0.0  ;;  %v1061_v34 = vmul.f32 0.2, %v802_v26  ;;  %vm963_vm14 = vcmp.ge.f32.partialorder %v768_v31, 0.0 }
 0x106   :  { %v1027_v35 = vmul.f32 0.2, %v768_v31  ;;  %vm995_vm15 = vcmp.ge.f32.partialorder %v800_v32, 0.0  ;;  %v1059_v36 = vmul.f32 0.2, %v800_v32  ;;  %v1093_v37 = vsel %vm965_vm12, %v770_v25, %v1029_v33  ;;  %v1325_v39 = vpop.f32.mrb[8].mxu0 }
 0x107   :  { %v1125_v38 = vsel %vm997_vm13, %v802_v26, %v1061_v34  ;;  %v1357_v41 = vpop.f32.mrb[8].mxu1  ;;  %1157 = vst [vmem:[%s1839_s3 + $0x38] sm:$0xff] %v1093_v37  ;;  %v773_v44 = vadd.f32 %v1325_v39, %v1578_v40  ;;  %v540_v46 = vpop.f32.mrb[9].mxu0 }
 0x108   :  { %1189 = vst [vmem:[%s1839_s3 + $0x138] sm:$0xff] %v1125_v38  ;;  %v1091_v42 = vsel %vm963_vm14, %v768_v31, %v1027_v35  ;;  %v1123_v43 = vsel %vm995_vm15, %v800_v32, %v1059_v36  ;;  %v805_v45 = vadd.f32 %v1357_v41, %v1578_v40  ;;  %v668_v47 = vpop.f32.mrb[9].mxu1  ;;  %v771_v48 = vadd.f32 %v1578_v40, %v540_v46  ;;  %v1326_v50 = vpop.f32.mrb[10].mxu0 }
 0x109   :  { %1155 = vst [vmem:[%s1839_s3 + $0x28] sm:$0xff] %v1091_v42  ;;  %1187 = vst [vmem:[%s1839_s3 + $0x128] sm:$0xff] %v1123_v43  ;;  %v803_v49 = vadd.f32 %v1578_v40, %v668_v47  ;;  %v1358_v51 = vpop.f32.mrb[10].mxu1  ;;  %vm968_vm0 = vcmp.ge.f32.partialorder %v773_v44, 0.0  ;;  %v1032_v52 = vmul.f32 0.2, %v773_v44  ;;  %v774_v58 = vadd.f32 %v1326_v50, %v1578_v40 }
 0x10a   :  { %vm1000_vm1 = vcmp.ge.f32.partialorder %v805_v45, 0.0  ;;  %v1064_v53 = vmul.f32 0.2, %v805_v45  ;;  %vm966_vm2 = vcmp.ge.f32.partialorder %v771_v48, 0.0  ;;  %v1030_v54 = vmul.f32 0.2, %v771_v48 }
 0x10b   :  { %vm998_vm3 = vcmp.ge.f32.partialorder %v803_v49, 0.0  ;;  %v1062_v55 = vmul.f32 0.2, %v803_v49  ;;  %v1096_v56 = vsel %vm968_vm0, %v773_v44, %v1032_v52  ;;  %v806_v59 = vadd.f32 %v1358_v51, %v1578_v40  ;;  %v543_v60 = vpop.f32.mrb[11].mxu0  ;;  %v671_v61 = vpop.f32.mrb[11].mxu1 }
 0x10c   :  { %v1128_v57 = vsel %vm1000_vm1, %v805_v45, %v1064_v53  ;;  %1160 = vst [vmem:[%s1839_s3 + $0x50] sm:$0xff] %v1096_v56  ;;  %v1094_v62 = vsel %vm966_vm2, %v771_v48, %v1030_v54  ;;  %v772_v0 = vadd.f32 %v1578_v40, %v543_v60  ;;  %v804_v1 = vadd.f32 %v1578_v40, %v671_v61 }
 0x10d   :  { %1192 = vst [vmem:[%s1839_s3 + $0x150] sm:$0xff] %v1128_v57  ;;  %v1126_v63 = vsel %vm998_vm3, %v803_v49, %v1062_v55  ;;  %v1329_v2 = vpop.f32.mrb[12].mxu0  ;;  %v1361_v3 = vpop.f32.mrb[12].mxu1  ;;  %1158 = vst [vmem:[%s1839_s3 + $0x40] sm:$0xff] %v1094_v62  ;;  %vm969_vm4 = vcmp.ge.f32.partialorder %v774_v58, 0.0  ;;  %vm1001_vm5 = vcmp.ge.f32.partialorder %v806_v59, 0.0 }
 0x10e   :  { %1190 = vst [vmem:[%s1839_s3 + $0x140] sm:$0xff] %v1126_v63  ;;  %v1033_v4 = vmul.f32 0.2, %v774_v58  ;;  %v1065_v5 = vmul.f32 0.2, %v806_v59  ;;  %vm967_vm6 = vcmp.ge.f32.partialorder %v772_v0, 0.0  ;;  %v777_v10 = vadd.f32 %v1329_v2, %v1578_v40 }
 0x10f   :  { %v1031_v6 = vmul.f32 0.2, %v772_v0  ;;  %vm999_vm7 = vcmp.ge.f32.partialorder %v804_v1, 0.0  ;;  %v1063_v7 = vmul.f32 0.2, %v804_v1  ;;  %v809_v11 = vadd.f32 %v1361_v3, %v1578_v40  ;;  %v556_v12 = vpop.f32.mrb[13].mxu0 }
 0x110   :  { %v1097_v8 = vsel %vm969_vm4, %v774_v58, %v1033_v4  ;;  %v1129_v9 = vsel %vm1001_vm5, %v806_v59, %v1065_v5  ;;  %v684_v13 = vpop.f32.mrb[13].mxu1  ;;  %v775_v16 = vadd.f32 %v1578_v40, %v556_v12  ;;  %v1330_v18 = vpop.f32.mrb[14].mxu0  ;;  %vm972_vm8 = vcmp.ge.f32.partialorder %v777_v10, 0.0 }
 0x111   :  { %1161 = vst [vmem:[%s1839_s3 + $0x58] sm:$0xff] %v1097_v8  ;;  %1193 = vst [vmem:[%s1839_s3 + $0x158] sm:$0xff] %v1129_v9  ;;  %v1095_v14 = vsel %vm967_vm6, %v772_v0, %v1031_v6  ;;  %v1127_v15 = vsel %vm999_vm7, %v804_v1, %v1063_v7  ;;  %v807_v17 = vadd.f32 %v1578_v40, %v684_v13  ;;  %v1362_v19 = vpop.f32.mrb[14].mxu1  ;;  %v1036_v20 = vmul.f32 0.2, %v777_v10  ;;  %v559_v28 = vpop.f32.mrb[15].mxu0 }
 0x112   :  { %1159 = vst [vmem:[%s1839_s3 + $0x48] sm:$0xff] %v1095_v14  ;;  %1191 = vst [vmem:[%s1839_s3 + $0x148] sm:$0xff] %v1127_v15  ;;  %vm1004_vm9 = vcmp.ge.f32.partialorder %v809_v11, 0.0  ;;  %v1068_v21 = vmul.f32 0.2, %v809_v11  ;;  %vm970_vm10 = vcmp.ge.f32.partialorder %v775_v16, 0.0  ;;  %v778_v26 = vadd.f32 %v1330_v18, %v1578_v40 }
 0x113   :  { %v1034_v22 = vmul.f32 0.2, %v775_v16  ;;  %vm1002_vm11 = vcmp.ge.f32.partialorder %v807_v17, 0.0  ;;  %v1066_v23 = vmul.f32 0.2, %v807_v17  ;;  %v1100_v24 = vsel %vm972_vm8, %v777_v10, %v1036_v20  ;;  %v687_v29 = vpop.f32.mrb[15].mxu1 }
 0x114   :  { %v1132_v25 = vsel %vm1004_vm9, %v809_v11, %v1068_v21  ;;  %v810_v27 = vadd.f32 %v1362_v19, %v1578_v40  ;;  %1164 = vst [vmem:[%s1839_s3 + $0x70] sm:$0xff] %v1100_v24  ;;  %v776_v32 = vadd.f32 %v1578_v40, %v559_v28  ;;  %v808_v33 = vadd.f32 %v1578_v40, %v687_v29 }
 0x115   :  { %1196 = vst [vmem:[%s1839_s3 + $0x170] sm:$0xff] %v1132_v25  ;;  %v1098_v30 = vsel %vm970_vm10, %v775_v16, %v1034_v22  ;;  %v1130_v31 = vsel %vm1002_vm11, %v807_v17, %v1066_v23  ;;  %v1333_v34 = vpop.f32.mrb[16].mxu0  ;;  %v1365_v35 = vpop.f32.mrb[16].mxu1  ;;  %vm973_vm12 = vcmp.ge.f32.partialorder %v778_v26, 0.0  ;;  %v1037_v36 = vmul.f32 0.2, %v778_v26 }
 0x116   :  { %1162 = vst [vmem:[%s1839_s3 + $0x60] sm:$0xff] %v1098_v30  ;;  %1194 = vst [vmem:[%s1839_s3 + $0x160] sm:$0xff] %v1130_v31  ;;  %vm1005_vm13 = vcmp.ge.f32.partialorder %v810_v27, 0.0  ;;  %v1069_v37 = vmul.f32 0.2, %v810_v27  ;;  %vm971_vm14 = vcmp.ge.f32.partialorder %v776_v32, 0.0  ;;  %v781_v43 = vadd.f32 %v1333_v34, %v1578_v40 }
 0x117   :  { %v1035_v38 = vmul.f32 0.2, %v776_v32  ;;  %vm1003_vm15 = vcmp.ge.f32.partialorder %v808_v33, 0.0  ;;  %v1067_v39 = vmul.f32 0.2, %v808_v33  ;;  %v1101_v41 = vsel %vm973_vm12, %v778_v26, %v1037_v36  ;;  %v572_v45 = vpop.f32.mrb[17].mxu0 }
 0x118   :  { %v1133_v42 = vsel %vm1005_vm13, %v810_v27, %v1069_v37  ;;  %v813_v44 = vadd.f32 %v1365_v35, %v1578_v40  ;;  %v700_v46 = vpop.f32.mrb[17].mxu1  ;;  %1165 = vst [vmem:[%s1839_s3 + $0x78] sm:$0xff] %v1101_v41  ;;  %v779_v49 = vadd.f32 %v1578_v40, %v572_v45  ;;  %v1334_v51 = vpop.f32.mrb[18].mxu0  ;;  %vm976_vm0 = vcmp.ge.f32.partialorder %v781_v43, 0.0 }
 0x119   :  { %1197 = vst [vmem:[%s1839_s3 + $0x178] sm:$0xff] %v1133_v42  ;;  %v1099_v47 = vsel %vm971_vm14, %v776_v32, %v1035_v38  ;;  %v1131_v48 = vsel %vm1003_vm15, %v808_v33, %v1067_v39  ;;  %v811_v50 = vadd.f32 %v1578_v40, %v700_v46  ;;  %v1366_v52 = vpop.f32.mrb[18].mxu1  ;;  %v1040_v53 = vmul.f32 0.2, %v781_v43  ;;  %v575_v61 = vpop.f32.mrb[19].mxu0 }
 0x11a   :  { %1163 = vst [vmem:[%s1839_s3 + $0x68] sm:$0xff] %v1099_v47  ;;  %1195 = vst [vmem:[%s1839_s3 + $0x168] sm:$0xff] %v1131_v48  ;;  %vm1008_vm1 = vcmp.ge.f32.partialorder %v813_v44, 0.0  ;;  %v1072_v54 = vmul.f32 0.2, %v813_v44  ;;  %vm974_vm2 = vcmp.ge.f32.partialorder %v779_v49, 0.0  ;;  %v782_v59 = vadd.f32 %v1334_v51, %v1578_v40 }
 0x11b   :  { %v1038_v55 = vmul.f32 0.2, %v779_v49  ;;  %vm1006_vm3 = vcmp.ge.f32.partialorder %v811_v50, 0.0  ;;  %v1070_v56 = vmul.f32 0.2, %v811_v50  ;;  %v1104_v57 = vsel %vm976_vm0, %v781_v43, %v1040_v53  ;;  %v703_v62 = vpop.f32.mrb[19].mxu1 }
 0x11c   :  { %v1136_v58 = vsel %vm1008_vm1, %v813_v44, %v1072_v54  ;;  %v814_v60 = vadd.f32 %v1366_v52, %v1578_v40  ;;  %1168 = vst [vmem:[%s1839_s3 + $0x90] sm:$0xff] %v1104_v57  ;;  %v780_v1 = vadd.f32 %v1578_v40, %v575_v61  ;;  %v812_v2 = vadd.f32 %v1578_v40, %v703_v62 }
 0x11d   :  { %1200 = vst [vmem:[%s1839_s3 + $0x190] sm:$0xff] %v1136_v58  ;;  %v1102_v63 = vsel %vm974_vm2, %v779_v49, %v1038_v55  ;;  %v1134_v0 = vsel %vm1006_vm3, %v811_v50, %v1070_v56  ;;  %v1337_v3 = vpop.f32.mrb[20].mxu0  ;;  %v1369_v4 = vpop.f32.mrb[20].mxu1  ;;  %vm977_vm4 = vcmp.ge.f32.partialorder %v782_v59, 0.0  ;;  %v1041_v5 = vmul.f32 0.2, %v782_v59 }
 0x11e   :  { %1166 = vst [vmem:[%s1839_s3 + $0x80] sm:$0xff] %v1102_v63  ;;  %1198 = vst [vmem:[%s1839_s3 + $0x180] sm:$0xff] %v1134_v0  ;;  %vm1009_vm5 = vcmp.ge.f32.partialorder %v814_v60, 0.0  ;;  %v1073_v6 = vmul.f32 0.2, %v814_v60  ;;  %vm975_vm6 = vcmp.ge.f32.partialorder %v780_v1, 0.0  ;;  %v785_v11 = vadd.f32 %v1337_v3, %v1578_v40 }
 0x11f   :  { %v1039_v7 = vmul.f32 0.2, %v780_v1  ;;  %vm1007_vm7 = vcmp.ge.f32.partialorder %v812_v2, 0.0  ;;  %v1071_v8 = vmul.f32 0.2, %v812_v2  ;;  %v1105_v9 = vsel %vm977_vm4, %v782_v59, %v1041_v5  ;;  %v588_v13 = vpop.f32.mrb[21].mxu0 }
 0x120   :  { %v1137_v10 = vsel %vm1009_vm5, %v814_v60, %v1073_v6  ;;  %v817_v12 = vadd.f32 %v1369_v4, %v1578_v40  ;;  %v716_v14 = vpop.f32.mrb[21].mxu1  ;;  %1169 = vst [vmem:[%s1839_s3 + $0x98] sm:$0xff] %v1105_v9  ;;  %v783_v17 = vadd.f32 %v1578_v40, %v588_v13  ;;  %v1338_v19 = vpop.f32.mrb[22].mxu0  ;;  %vm980_vm8 = vcmp.ge.f32.partialorder %v785_v11, 0.0 }
 0x121   :  { %1201 = vst [vmem:[%s1839_s3 + $0x198] sm:$0xff] %v1137_v10  ;;  %v1103_v15 = vsel %vm975_vm6, %v780_v1, %v1039_v7  ;;  %v1135_v16 = vsel %vm1007_vm7, %v812_v2, %v1071_v8  ;;  %v815_v18 = vadd.f32 %v1578_v40, %v716_v14  ;;  %v1370_v20 = vpop.f32.mrb[22].mxu1  ;;  %v1044_v21 = vmul.f32 0.2, %v785_v11  ;;  %v591_v29 = vpop.f32.mrb[23].mxu0 }
 0x122   :  { %1167 = vst [vmem:[%s1839_s3 + $0x88] sm:$0xff] %v1103_v15  ;;  %1199 = vst [vmem:[%s1839_s3 + $0x188] sm:$0xff] %v1135_v16  ;;  %vm1012_vm9 = vcmp.ge.f32.partialorder %v817_v12, 0.0  ;;  %v1076_v22 = vmul.f32 0.2, %v817_v12  ;;  %vm978_vm10 = vcmp.ge.f32.partialorder %v783_v17, 0.0  ;;  %v786_v27 = vadd.f32 %v1338_v19, %v1578_v40 }
 0x123   :  { %v1042_v23 = vmul.f32 0.2, %v783_v17  ;;  %vm1010_vm11 = vcmp.ge.f32.partialorder %v815_v18, 0.0  ;;  %v1074_v24 = vmul.f32 0.2, %v815_v18  ;;  %v1108_v25 = vsel %vm980_vm8, %v785_v11, %v1044_v21  ;;  %v719_v30 = vpop.f32.mrb[23].mxu1 }
 0x124   :  { %v1140_v26 = vsel %vm1012_vm9, %v817_v12, %v1076_v22  ;;  %v818_v28 = vadd.f32 %v1370_v20, %v1578_v40  ;;  %1172 = vst [vmem:[%s1839_s3 + $0xb0] sm:$0xff] %v1108_v25  ;;  %v784_v33 = vadd.f32 %v1578_v40, %v591_v29  ;;  %v816_v34 = vadd.f32 %v1578_v40, %v719_v30 }
 0x125   :  { %1204 = vst [vmem:[%s1839_s3 + $0x1b0] sm:$0xff] %v1140_v26  ;;  %v1106_v31 = vsel %vm978_vm10, %v783_v17, %v1042_v23  ;;  %v1138_v32 = vsel %vm1010_vm11, %v815_v18, %v1074_v24  ;;  %v1341_v35 = vpop.f32.mrb[24].mxu0  ;;  %v1373_v36 = vpop.f32.mrb[24].mxu1  ;;  %vm981_vm12 = vcmp.ge.f32.partialorder %v786_v27, 0.0  ;;  %v1045_v37 = vmul.f32 0.2, %v786_v27 }
 0x126   :  { %1170 = vst [vmem:[%s1839_s3 + $0xa0] sm:$0xff] %v1106_v31  ;;  %1202 = vst [vmem:[%s1839_s3 + $0x1a0] sm:$0xff] %v1138_v32  ;;  %vm1013_vm13 = vcmp.ge.f32.partialorder %v818_v28, 0.0  ;;  %v1077_v38 = vmul.f32 0.2, %v818_v28  ;;  %vm979_vm14 = vcmp.ge.f32.partialorder %v784_v33, 0.0  ;;  %v789_v44 = vadd.f32 %v1341_v35, %v1578_v40 }
 0x127   :  { %v1043_v39 = vmul.f32 0.2, %v784_v33  ;;  %vm1011_vm15 = vcmp.ge.f32.partialorder %v816_v34, 0.0  ;;  %v1075_v41 = vmul.f32 0.2, %v816_v34  ;;  %v1109_v42 = vsel %vm981_vm12, %v786_v27, %v1045_v37  ;;  %v604_v46 = vpop.f32.mrb[25].mxu0 }
 0x128   :  { %v1141_v43 = vsel %vm1013_vm13, %v818_v28, %v1077_v38  ;;  %v821_v45 = vadd.f32 %v1373_v36, %v1578_v40  ;;  %v732_v47 = vpop.f32.mrb[25].mxu1  ;;  %1173 = vst [vmem:[%s1839_s3 + $0xb8] sm:$0xff] %v1109_v42  ;;  %v787_v50 = vadd.f32 %v1578_v40, %v604_v46  ;;  %v1342_v52 = vpop.f32.mrb[26].mxu0  ;;  %vm984_vm0 = vcmp.ge.f32.partialorder %v789_v44, 0.0 }
 0x129   :  { %1205 = vst [vmem:[%s1839_s3 + $0x1b8] sm:$0xff] %v1141_v43  ;;  %v1107_v48 = vsel %vm979_vm14, %v784_v33, %v1043_v39  ;;  %v1139_v49 = vsel %vm1011_vm15, %v816_v34, %v1075_v41  ;;  %v819_v51 = vadd.f32 %v1578_v40, %v732_v47  ;;  %v1374_v53 = vpop.f32.mrb[26].mxu1  ;;  %v1048_v54 = vmul.f32 0.2, %v789_v44  ;;  %v607_v62 = vpop.f32.mrb[27].mxu0 }
 0x12a   :  { %1171 = vst [vmem:[%s1839_s3 + $0xa8] sm:$0xff] %v1107_v48  ;;  %1203 = vst [vmem:[%s1839_s3 + $0x1a8] sm:$0xff] %v1139_v49  ;;  %vm1016_vm1 = vcmp.ge.f32.partialorder %v821_v45, 0.0  ;;  %v1080_v55 = vmul.f32 0.2, %v821_v45  ;;  %vm982_vm2 = vcmp.ge.f32.partialorder %v787_v50, 0.0  ;;  %v790_v60 = vadd.f32 %v1342_v52, %v1578_v40 }
 0x12b   :  { %v1046_v56 = vmul.f32 0.2, %v787_v50  ;;  %vm1014_vm3 = vcmp.ge.f32.partialorder %v819_v51, 0.0  ;;  %v1078_v57 = vmul.f32 0.2, %v819_v51  ;;  %v1112_v58 = vsel %vm984_vm0, %v789_v44, %v1048_v54  ;;  %v735_v63 = vpop.f32.mrb[27].mxu1 }
 0x12c   :  { %v1144_v59 = vsel %vm1016_vm1, %v821_v45, %v1080_v55  ;;  %v822_v61 = vadd.f32 %v1374_v53, %v1578_v40  ;;  %1176 = vst [vmem:[%s1839_s3 + $0xd0] sm:$0xff] %v1112_v58  ;;  %v788_v2 = vadd.f32 %v1578_v40, %v607_v62  ;;  %v820_v3 = vadd.f32 %v1578_v40, %v735_v63 }
 0x12d   :  { %1208 = vst [vmem:[%s1839_s3 + $0x1d0] sm:$0xff] %v1144_v59  ;;  %v1110_v0 = vsel %vm982_vm2, %v787_v50, %v1046_v56  ;;  %v1142_v1 = vsel %vm1014_vm3, %v819_v51, %v1078_v57  ;;  %v1345_v4 = vpop.f32.mrb[28].mxu0  ;;  %v1377_v5 = vpop.f32.mrb[28].mxu1  ;;  %vm985_vm4 = vcmp.ge.f32.partialorder %v790_v60, 0.0  ;;  %v1049_v6 = vmul.f32 0.2, %v790_v60 }
 0x12e   :  { %1174 = vst [vmem:[%s1839_s3 + $0xc0] sm:$0xff] %v1110_v0  ;;  %1206 = vst [vmem:[%s1839_s3 + $0x1c0] sm:$0xff] %v1142_v1  ;;  %vm1017_vm5 = vcmp.ge.f32.partialorder %v822_v61, 0.0  ;;  %v1081_v7 = vmul.f32 0.2, %v822_v61  ;;  %vm983_vm6 = vcmp.ge.f32.partialorder %v788_v2, 0.0  ;;  %v793_v12 = vadd.f32 %v1345_v4, %v1578_v40 }
 0x12f   :  { %v1047_v8 = vmul.f32 0.2, %v788_v2  ;;  %vm1015_vm7 = vcmp.ge.f32.partialorder %v820_v3, 0.0  ;;  %v1079_v9 = vmul.f32 0.2, %v820_v3  ;;  %v1113_v10 = vsel %vm985_vm4, %v790_v60, %v1049_v6  ;;  %v620_v14 = vpop.f32.mrb[29].mxu0 }
 0x130   :  { %v1145_v11 = vsel %vm1017_vm5, %v822_v61, %v1081_v7  ;;  %v825_v13 = vadd.f32 %v1377_v5, %v1578_v40  ;;  %v748_v15 = vpop.f32.mrb[29].mxu1  ;;  %1177 = vst [vmem:[%s1839_s3 + $0xd8] sm:$0xff] %v1113_v10  ;;  %v791_v18 = vadd.f32 %v1578_v40, %v620_v14  ;;  %v1346_v20 = vpop.f32.mrb[30].mxu0  ;;  %vm988_vm8 = vcmp.ge.f32.partialorder %v793_v12, 0.0 }
 0x131   :  { %1209 = vst [vmem:[%s1839_s3 + $0x1d8] sm:$0xff] %v1145_v11  ;;  %v1111_v16 = vsel %vm983_vm6, %v788_v2, %v1047_v8  ;;  %v1143_v17 = vsel %vm1015_vm7, %v820_v3, %v1079_v9  ;;  %v823_v19 = vadd.f32 %v1578_v40, %v748_v15  ;;  %v1378_v21 = vpop.f32.mrb[30].mxu1  ;;  %v1052_v22 = vmul.f32 0.2, %v793_v12  ;;  %v623_v30 = vpop.f32.mrb[31].mxu0 }
 0x132   :  { %1175 = vst [vmem:[%s1839_s3 + $0xc8] sm:$0xff] %v1111_v16  ;;  %1207 = vst [vmem:[%s1839_s3 + $0x1c8] sm:$0xff] %v1143_v17  ;;  %vm1020_vm9 = vcmp.ge.f32.partialorder %v825_v13, 0.0  ;;  %v1084_v23 = vmul.f32 0.2, %v825_v13  ;;  %vm986_vm10 = vcmp.ge.f32.partialorder %v791_v18, 0.0  ;;  %v794_v28 = vadd.f32 %v1346_v20, %v1578_v40 }
 0x133   :  { %v1050_v24 = vmul.f32 0.2, %v791_v18  ;;  %vm1018_vm11 = vcmp.ge.f32.partialorder %v823_v19, 0.0  ;;  %v1082_v25 = vmul.f32 0.2, %v823_v19  ;;  %v1116_v26 = vsel %vm988_vm8, %v793_v12, %v1052_v22  ;;  %v751_v31 = vpop.f32.mrb[31].mxu1 }
 0x134   :  { %v1148_v27 = vsel %vm1020_vm9, %v825_v13, %v1084_v23  ;;  %v826_v29 = vadd.f32 %v1378_v21, %v1578_v40  ;;  %1180 = vst [vmem:[%s1839_s3 + $0xf0] sm:$0xff] %v1116_v26  ;;  %v792_v34 = vadd.f32 %v1578_v40, %v623_v30  ;;  %v824_v35 = vadd.f32 %v1578_v40, %v751_v31 }
 0x135   :  { %1212 = vst [vmem:[%s1839_s3 + $0x1f0] sm:$0xff] %v1148_v27  ;;  %v1114_v32 = vsel %vm986_vm10, %v791_v18, %v1050_v24  ;;  %v1146_v33 = vsel %vm1018_vm11, %v823_v19, %v1082_v25  ;;  %vm989_vm12 = vcmp.ge.f32.partialorder %v794_v28, 0.0  ;;  %v1053_v36 = vmul.f32 0.2, %v794_v28 }
 0x136   :  { %1178 = vst [vmem:[%s1839_s3 + $0xe0] sm:$0xff] %v1114_v32  ;;  %1210 = vst [vmem:[%s1839_s3 + $0x1e0] sm:$0xff] %v1146_v33  ;;  %vm1021_vm13 = vcmp.ge.f32.partialorder %v826_v29, 0.0  ;;  %v1085_v37 = vmul.f32 0.2, %v826_v29  ;;  %vm987_vm14 = vcmp.ge.f32.partialorder %v792_v34, 0.0 }
 0x137   :  { %v1051_v38 = vmul.f32 0.2, %v792_v34  ;;  %vm1019_vm15 = vcmp.ge.f32.partialorder %v824_v35, 0.0  ;;  %v1083_v39 = vmul.f32 0.2, %v824_v35  ;;  %v1117_v41 = vsel %vm989_vm12, %v794_v28, %v1053_v36 }
 0x138   :  { %v1149_v42 = vsel %vm1021_vm13, %v826_v29, %v1085_v37  ;;  %1181 = vst [vmem:[%s1839_s3 + $0xf8] sm:$0xff] %v1117_v41 }
 0x139   :  { %1213 = vst [vmem:[%s1839_s3 + $0x1f8] sm:$0xff] %v1149_v42  ;;  %v1115_v40 = vsel %vm987_vm14, %v792_v34, %v1051_v38  ;;  %v1147_v43 = vsel %vm1019_vm15, %v824_v35, %v1083_v39 }
 0x13a   :  { %1179 = vst [vmem:[%s1839_s3 + $0xe8] sm:$0xff] %v1115_v40  ;;  %1211 = vst [vmem:[%s1839_s3 + $0x1e8] sm:$0xff] %v1147_v43 }

// kernel: multiscale_discriminator_forward.6
= control target key start
LH: loop header
LB: loop body
LE: loop exit
PB: predicated region body
PF: predicated region fallthrough
CT: control target
= control target key end

     0   :  { %s2431_s1 = inlined_call_operand.vmem [shape: bf16[1024,128], index: 1, kind: input, shape index: {}]   ;;  %s2432_s0 = inlined_call_operand.vmem [shape: bf16[128,1024], index: 0, kind: input, shape index: {}]   ;;  %s2433_s2 = inlined_call_operand.vmem [shape: f32[1,128], index: 2, kind: input, shape index: {}]   ;;  %s2434_s3 = inlined_call_operand.vmem [shape: f32[128,128], index: 3, kind: output, shape index: {}]  }
   0x1   :  { %v1846_v0 = vld [vmem:[%s2431_s1 + $0x40] sm:$0xff]   ;;  %v1850_v4 = vld [vmem:[%s2431_s1 + $0x48] sm:$0xff]   ;;  %v1854_v8 = vld [vmem:[%s2431_s1 + $0x50] sm:$0xff]  }
   0x2   :  { %v1847_v1 = vld [vmem:[%s2431_s1 + $0xc0] sm:$0xff]   ;;  %1590 = vmatprep.subr.bf16.mxu0 %v1846_v0  ;;  %v1851_v5 = vld [vmem:[%s2431_s1 + $0xc8] sm:$0xff]   ;;  %v1855_v9 = vld [vmem:[%s2431_s1 + $0xd0] sm:$0xff]  }
   0x3   :  { %v1848_v2 = vld [vmem:[%s2431_s1] sm:$0xff]   ;;  %1654 = vmatprep.subr.bf16.mxu1 %v1847_v1  ;;  %v1852_v6 = vld [vmem:[%s2431_s1 + $0x8] sm:$0xff]   ;;  %v1856_v10 = vld [vmem:[%s2431_s1 + $0x10] sm:$0xff]  }
   0x4   :  { %v1849_v3 = vld [vmem:[%s2431_s1 + $0x80] sm:$0xff]   ;;  %1591 = vmatpush3.bf16.msra.mxu0 %v1848_v2  ;;  %v1853_v7 = vld [vmem:[%s2431_s1 + $0x88] sm:$0xff]   ;;  %v1857_v11 = vld [vmem:[%s2431_s1 + $0x90] sm:$0xff]  }
   0x5   :  { %1655 = vmatpush3.bf16.msra.mxu1 %v1849_v3  ;;  %1592 = vmatprep.subr.bf16.mxu0 %v1850_v4  ;;  %v1858_v12 = vld [vmem:[%s2431_s1 + $0x58] sm:$0xff]   ;;  %v1862_v16 = vld [vmem:[%s2431_s1 + $0x60] sm:$0xff]   ;;  %v1866_v20 = vld [vmem:[%s2431_s1 + $0x68] sm:$0xff]  }
   0x6   :  { %1656 = vmatprep.subr.bf16.mxu1 %v1851_v5  ;;  %v1859_v13 = vld [vmem:[%s2431_s1 + $0xd8] sm:$0xff]   ;;  %v1863_v17 = vld [vmem:[%s2431_s1 + $0xe0] sm:$0xff]   ;;  %v1867_v21 = vld [vmem:[%s2431_s1 + $0xe8] sm:$0xff]  }
   0x7   :  { %v1860_v14 = vld [vmem:[%s2431_s1 + $0x18] sm:$0xff]   ;;  %v1864_v18 = vld [vmem:[%s2431_s1 + $0x20] sm:$0xff]   ;;  %v1868_v22 = vld [vmem:[%s2431_s1 + $0x28] sm:$0xff]  }
   0x8   :  { %1593 = vmatpush3.bf16.msra.mxu0 %v1852_v6  ;;  %v1861_v15 = vld [vmem:[%s2431_s1 + $0x98] sm:$0xff]   ;;  %v1865_v19 = vld [vmem:[%s2431_s1 + $0xa0] sm:$0xff]   ;;  %v1869_v23 = vld [vmem:[%s2431_s1 + $0xa8] sm:$0xff]  }
   0x9   :  { %1657 = vmatpush3.bf16.msra.mxu1 %v1853_v7  ;;  %1594 = vmatprep.subr.bf16.mxu0 %v1854_v8  ;;  %v1870_v24 = vld [vmem:[%s2431_s1 + $0x70] sm:$0xff]   ;;  %v1874_v28 = vld [vmem:[%s2431_s1 + $0x78] sm:$0xff]   ;;  %v58_v32 = vld [vmem:[%s2432_s0] sm:$0xff] }
   0xa   :  { %1658 = vmatprep.subr.bf16.mxu1 %v1855_v9  ;;  %v1871_v25 = vld [vmem:[%s2431_s1 + $0xf0] sm:$0xff]   ;;  %v1875_v29 = vld [vmem:[%s2431_s1 + $0xf8] sm:$0xff]   ;;  %v62_v33 = vld [vmem:[%s2432_s0 + $0x20] sm:$0xff] }
   0xb   :  { %v1872_v26 = vld [vmem:[%s2431_s1 + $0x30] sm:$0xff]   ;;  %v1876_v30 = vld [vmem:[%s2431_s1 + $0x38] sm:$0xff]   ;;  %v59_v34 = vld [vmem:[%s2432_s0 + $0x8] sm:$0xff]  ;;  %v1462_v35 = vcombine.low %v58_v32, %v62_v33  ;;  %v1463_v36 = vcombine.high %v58_v32, %v62_v33 }
   0xc   :  { %1595 = vmatpush3.bf16.msra.mxu0 %v1856_v10  ;;  %v1873_v27 = vld [vmem:[%s2431_s1 + $0xb0] sm:$0xff]   ;;  %v1877_v31 = vld [vmem:[%s2431_s1 + $0xb8] sm:$0xff]   ;;  %v63_v37 = vld [vmem:[%s2432_s0 + $0x28] sm:$0xff] }
   0xd   :  { %1659 = vmatpush3.bf16.msra.mxu1 %v1857_v11  ;;  %1596 = vmatprep.subr.bf16.mxu0 %v1858_v12  ;;  %v1464_v38 = vcombine.low %v59_v34, %v63_v37  ;;  %v1465_v39 = vcombine.high %v59_v34, %v63_v37  ;;  %v1878_v40 = vld [vmem:[%s2431_s1 + $0x140] sm:$0xff]   ;;  %v67_v47 = vld [vmem:[%s2432_s0 + $0x48] sm:$0xff]  ;;  %v1886_v62 = vld [vmem:[%s2431_s1 + $0x150] sm:$0xff]  }
   0xe   :  { %1660 = vmatprep.subr.bf16.mxu1 %v1859_v13  ;;  %986 = vmatprep.mubr.bf16.mxu0 %v1463_v36  ;;  %v1879_v41 = vld [vmem:[%s2431_s1 + $0x100] sm:$0xff]   ;;  %v71_v48 = vld [vmem:[%s2432_s0 + $0x68] sm:$0xff]  ;;  %v1887_v63 = vld [vmem:[%s2431_s1 + $0x110] sm:$0xff]  }
   0xf   :  { %1083 = vmatprep.mubr.bf16.mxu1 %v1465_v39  ;;  %v1880_v42 = vld [vmem:[%s2431_s1 + $0x1c0] sm:$0xff]   ;;  %v1473_v49 = vcombine.high %v67_v47, %v71_v48  ;;  %v1882_v50 = vld [vmem:[%s2431_s1 + $0x148] sm:$0xff]   ;;  %v1472_v53 = vcombine.low %v67_v47, %v71_v48  ;;  %v1888_v0 = vld [vmem:[%s2431_s1 + $0x1d0] sm:$0xff]  }
  0x10   :  { %1597 = vmatpush3.bf16.msra.mxu0 %v1860_v14  ;;  %v1881_v43 = vld [vmem:[%s2431_s1 + $0x180] sm:$0xff]   ;;  %v1883_v52 = vld [vmem:[%s2431_s1 + $0x108] sm:$0xff]   ;;  %v1889_v1 = vld [vmem:[%s2431_s1 + $0x190] sm:$0xff]  }
  0x11   :  { %1661 = vmatpush3.bf16.msra.mxu1 %v1861_v15  ;;  %1598 = vmatprep.subr.bf16.mxu0 %v1862_v16  ;;  %v66_v44 = vld [vmem:[%s2432_s0 + $0x40] sm:$0xff]  ;;  %v1884_v54 = vld [vmem:[%s2431_s1 + $0x1c8] sm:$0xff]   ;;  %v1890_v10 = vld [vmem:[%s2431_s1 + $0x158] sm:$0xff]  }
  0x12   :  { %1662 = vmatprep.subr.bf16.mxu1 %v1863_v17  ;;  %v70_v45 = vld [vmem:[%s2432_s0 + $0x60] sm:$0xff]  ;;  %v1885_v55 = vld [vmem:[%s2431_s1 + $0x188] sm:$0xff]   ;;  %v1891_v11 = vld [vmem:[%s2431_s1 + $0x118] sm:$0xff]  }
  0x13   :  { %v1471_v46 = vcombine.high %v66_v44, %v70_v45  ;;  %v1470_v51 = vcombine.low %v66_v44, %v70_v45  ;;  %v74_v56 = vld [vmem:[%s2432_s0 + $0x80] sm:$0xff]  ;;  %v75_v58 = vld [vmem:[%s2432_s0 + $0x88] sm:$0xff]  ;;  %v1892_v12 = vld [vmem:[%s2431_s1 + $0x1d8] sm:$0xff]  }
  0x14   :  { %1599 = vmatpush3.bf16.msra.mxu0 %v1864_v18  ;;  %v78_v57 = vld [vmem:[%s2432_s0 + $0xa0] sm:$0xff]  ;;  %v79_v59 = vld [vmem:[%s2432_s0 + $0xa8] sm:$0xff]  ;;  %v1893_v13 = vld [vmem:[%s2431_s1 + $0x198] sm:$0xff]  }
  0x15   :  { %1663 = vmatpush3.bf16.msra.mxu1 %v1865_v19  ;;  %1600 = vmatprep.subr.bf16.mxu0 %v1866_v20  ;;  %v1479_v60 = vcombine.high %v74_v56, %v78_v57  ;;  %v1481_v61 = vcombine.high %v75_v58, %v79_v59  ;;  %v1478_v2 = vcombine.low %v74_v56, %v78_v57  ;;  %v82_v3 = vld [vmem:[%s2432_s0 + $0xc0] sm:$0xff]  ;;  %v83_v5 = vld [vmem:[%s2432_s0 + $0xc8] sm:$0xff]  ;;  %v1903_v39 = vld [vmem:[%s2431_s1 + $0x130] sm:$0xff]  }
  0x16   :  { %1664 = vmatprep.subr.bf16.mxu1 %v1867_v21  ;;  %v86_v4 = vld [vmem:[%s2432_s0 + $0xe0] sm:$0xff]  ;;  %v1480_v6 = vcombine.low %v75_v58, %v79_v59  ;;  %v87_v8 = vld [vmem:[%s2432_s0 + $0xe8] sm:$0xff]  ;;  %v1907_v48 = vld [vmem:[%s2431_s1 + $0x138] sm:$0xff]  }
  0x17   :  { %v1487_v7 = vcombine.high %v82_v3, %v86_v4  ;;  %v1489_v9 = vcombine.high %v83_v5, %v87_v8  ;;  %v90_v14 = vld [vmem:[%s2432_s0 + $0x100] sm:$0xff]  ;;  %v91_v16 = vld [vmem:[%s2432_s0 + $0x108] sm:$0xff]  ;;  %v1486_v19 = vcombine.low %v82_v3, %v86_v4  ;;  %v1488_v21 = vcombine.low %v83_v5, %v87_v8  ;;  %v69_v8 = vld [vmem:[%s2432_s0 + $0x58] sm:$0xff] }
  0x18   :  { %1601 = vmatpush3.bf16.msra.mxu0 %v1868_v22  ;;  %v94_v15 = vld [vmem:[%s2432_s0 + $0x120] sm:$0xff]  ;;  %v95_v17 = vld [vmem:[%s2432_s0 + $0x128] sm:$0xff] }
  0x19   :  { %1665 = vmatpush3.bf16.msra.mxu1 %v1869_v23  ;;  %1602 = vmatprep.subr.bf16.mxu0 %v1870_v24  ;;  %v1894_v18 = vld [vmem:[%s2431_s1 + $0x160] sm:$0xff]   ;;  %v1495_v22 = vcombine.high %v90_v14, %v94_v15  ;;  %v1497_v24 = vcombine.high %v91_v16, %v95_v17  ;;  %v1900_v32 = vld [vmem:[%s2431_s1 + $0x1e8] sm:$0xff]   ;;  %v1494_v34 = vcombine.low %v90_v14, %v94_v15  ;;  %v76_v14 = vld [vmem:[%s2432_s0 + $0x90] sm:$0xff] }
  0x1a   :  { %1666 = vmatprep.subr.bf16.mxu1 %v1871_v25  ;;  %v1895_v20 = vld [vmem:[%s2431_s1 + $0x120] sm:$0xff]   ;;  %v1901_v33 = vld [vmem:[%s2431_s1 + $0x1a8] sm:$0xff]   ;;  %v80_v15 = vld [vmem:[%s2432_s0 + $0xb0] sm:$0xff] }
  0x1b   :  { %v1896_v23 = vld [vmem:[%s2431_s1 + $0x1e0] sm:$0xff]   ;;  %v107_v44 = vld [vmem:[%s2432_s0 + $0x188] sm:$0xff] }
  0x1c   :  { %1603 = vmatpush3.bf16.msra.mxu0 %v1872_v26  ;;  %v1897_v25 = vld [vmem:[%s2431_s1 + $0x1a0] sm:$0xff]   ;;  %v111_v45 = vld [vmem:[%s2432_s0 + $0x1a8] sm:$0xff] }
  0x1d   :  { %1667 = vmatpush3.bf16.msra.mxu1 %v1873_v27  ;;  %1604 = vmatprep.subr.bf16.mxu0 %v1874_v28  ;;  %v98_v26 = vld [vmem:[%s2432_s0 + $0x140] sm:$0xff]  ;;  %v1898_v28 = vld [vmem:[%s2431_s1 + $0x168] sm:$0xff]   ;;  %v1512_v59 = vcombine.low %v107_v44, %v111_v45 }
  0x1e   :  { %1668 = vmatprep.subr.bf16.mxu1 %v1875_v29  ;;  %v102_v27 = vld [vmem:[%s2432_s0 + $0x160] sm:$0xff]  ;;  %v99_v29 = vld [vmem:[%s2432_s0 + $0x148] sm:$0xff] }
  0x1f   :  { %v1503_v36 = vcombine.high %v98_v26, %v102_v27  ;;  %v1502_v47 = vcombine.low %v98_v26, %v102_v27  ;;  %v115_v56 = vld [vmem:[%s2432_s0 + $0x1c8] sm:$0xff]  ;;  %v1482_v26 = vcombine.low %v76_v14, %v80_v15 }
  0x20   :  { %1605 = vmatpush3.bf16.msra.mxu0 %v1876_v30  ;;  %v103_v30 = vld [vmem:[%s2432_s0 + $0x168] sm:$0xff] }
  0x21   :  { %1669 = vmatpush3.bf16.msra.mxu1 %v1877_v31  ;;  %1718 = vmatprep.subr.bf16.mxu0 %v1878_v40  ;;  %v1899_v31 = vld [vmem:[%s2431_s1 + $0x128] sm:$0xff]   ;;  %v1505_v37 = vcombine.high %v99_v29, %v103_v30  ;;  %v1904_v40 = vld [vmem:[%s2431_s1 + $0x1f0] sm:$0xff]  }
  0x22   :  { %1782 = vmatprep.subr.bf16.mxu1 %v1880_v42  ;;  %v110_v42 = vld [vmem:[%s2432_s0 + $0x1a0] sm:$0xff]  ;;  %v119_v57 = vld [vmem:[%s2432_s0 + $0x1e8] sm:$0xff] }
  0x23   :  { %987 = vmatmul.mubr.bf16.vlgmr.msra.gmra.mrb[0].mxu0 %v1462_v35  ;;  %v1496_v35 = vcombine.low %v91_v16, %v95_v17  ;;  %v1520_v3 = vcombine.low %v115_v56, %v119_v57  ;;  %v77_v16 = vld [vmem:[%s2432_s0 + $0x98] sm:$0xff] }
  0x24   :  { %1084 = vmatmul.mubr.bf16.vlgmr.msra.gmra.mrb[0].mxu1 %v1464_v38  ;;  %1719 = vmatpush3.bf16.msra.mxu0 %v1879_v41  ;;  %v1902_v38 = vld [vmem:[%s2431_s1 + $0x170] sm:$0xff]   ;;  %v106_v41 = vld [vmem:[%s2432_s0 + $0x180] sm:$0xff]  ;;  %v81_v17 = vld [vmem:[%s2432_s0 + $0xb8] sm:$0xff] }
  0x25   :  { %1783 = vmatpush3.bf16.msra.mxu1 %v1881_v43  ;;  %994 = vmatprep.mubr.bf16.mxu0 %v1471_v46  ;;  %v1905_v43 = vld [vmem:[%s2431_s1 + $0x1b0] sm:$0xff]   ;;  %v1906_v46 = vld [vmem:[%s2431_s1 + $0x178] sm:$0xff]   ;;  %v1510_v58 = vcombine.low %v106_v41, %v110_v42  ;;  %v1484_v27 = vcombine.low %v77_v16, %v81_v17 }
  0x26   :  { %1091 = vmatprep.mubr.bf16.mxu1 %v1473_v49  ;;  %1720 = vmatprep.subr.bf16.mxu0 %v1882_v50  ;;  %v1504_v49 = vcombine.low %v99_v29, %v103_v30  ;;  %v1511_v50 = vcombine.high %v106_v41, %v110_v42  ;;  %v92_v30 = vld [vmem:[%s2432_s0 + $0x110] sm:$0xff]  ;;  %v105_v41 = vld [vmem:[%s2432_s0 + $0x178] sm:$0xff] }
  0x27   :  { %1784 = vmatprep.subr.bf16.mxu1 %v1884_v54  ;;  %v114_v54 = vld [vmem:[%s2432_s0 + $0x1c0] sm:$0xff] }
  0x28   :  { %1721 = vmatpush3.bf16.msra.mxu0 %v1883_v52  ;;  %v1513_v52 = vcombine.high %v107_v44, %v111_v45 }
  0x29   :  { %1785 = vmatpush3.bf16.msra.mxu1 %v1885_v55  ;;  %1722 = vmatprep.subr.bf16.mxu0 %v1886_v62  ;;  %v118_v55 = vld [vmem:[%s2432_s0 + $0x1e0] sm:$0xff]  ;;  %v60_v62 = vld [vmem:[%s2432_s0 + $0x10] sm:$0xff] }
  0x2a   :  { %1786 = vmatprep.subr.bf16.mxu1 %v1888_v0  ;;  %v61_v0 = vld [vmem:[%s2432_s0 + $0x18] sm:$0xff] }
  0x2b   :  { %995 = vmatmul.mubr.bf16.gmra.mrb[4].mxu0 %v1470_v51  ;;  %v1908_v51 = vld [vmem:[%s2431_s1 + $0x1f8] sm:$0xff]  }
  0x2c   :  { %1092 = vmatmul.mubr.bf16.gmra.mrb[4].mxu1 %v1472_v53  ;;  %1002 = vmatprep.mubr.bf16.mxu0 %v1479_v60  ;;  %v1909_v53 = vld [vmem:[%s2431_s1 + $0x1b8] sm:$0xff]   ;;  %v1519_v60 = vcombine.high %v114_v54, %v118_v55 }
  0x2d   :  { %1099 = vmatprep.mubr.bf16.mxu1 %v1481_v61  ;;  %1723 = vmatpush3.bf16.msra.mxu0 %v1887_v63  ;;  %v1521_v61 = vcombine.high %v115_v56, %v119_v57  ;;  %v64_v63 = vld [vmem:[%s2432_s0 + $0x30] sm:$0xff]  ;;  %v117_v56 = vld [vmem:[%s2432_s0 + $0x1d8] sm:$0xff] }
  0x2e   :  { %1787 = vmatpush3.bf16.msra.mxu1 %v1889_v1  ;;  %1724 = vmatprep.subr.bf16.mxu0 %v1890_v10  ;;  %v65_v1 = vld [vmem:[%s2432_s0 + $0x38] sm:$0xff]  ;;  %v1467_v4 = vcombine.high %v60_v62, %v64_v63  ;;  %v1466_v10 = vcombine.low %v60_v62, %v64_v63 }
  0x2f   :  { %1788 = vmatprep.subr.bf16.mxu1 %v1892_v12  ;;  %v1469_v5 = vcombine.high %v61_v0, %v65_v1  ;;  %v121_v57 = vld [vmem:[%s2432_s0 + $0x1f8] sm:$0xff] }
  0x30   :  { %v1524_v63 = vcombine.low %v117_v56, %v121_v57 }
  0x31   :  { %1725 = vmatpush3.bf16.msra.mxu0 %v1891_v11  ;;  %v1468_v11 = vcombine.low %v61_v0, %v65_v1 }
  0x32   :  { %1789 = vmatpush3.bf16.msra.mxu1 %v1893_v13  ;;  %1726 = vmatprep.subr.bf16.mxu0 %v1894_v18 }
  0x33   :  { %1003 = vmatmul.mubr.bf16.gmra.mrb[8].mxu0 %v1478_v2  ;;  %1790 = vmatprep.subr.bf16.mxu1 %v1896_v23  ;;  %v1518_v2 = vcombine.low %v114_v54, %v118_v55  ;;  %v88_v23 = vld [vmem:[%s2432_s0 + $0xf0] sm:$0xff] }
  0x34   :  { %1100 = vmatmul.mubr.bf16.gmra.mrb[8].mxu1 %v1480_v6  ;;  %1010 = vmatprep.mubr.bf16.mxu0 %v1487_v7  ;;  %v68_v6 = vld [vmem:[%s2432_s0 + $0x50] sm:$0xff] }
  0x35   :  { %1107 = vmatprep.mubr.bf16.mxu1 %v1489_v9  ;;  %1727 = vmatpush3.bf16.msra.mxu0 %v1895_v20  ;;  %v72_v7 = vld [vmem:[%s2432_s0 + $0x70] sm:$0xff]  ;;  %v73_v9 = vld [vmem:[%s2432_s0 + $0x78] sm:$0xff]  ;;  %v1483_v20 = vcombine.high %v76_v14, %v80_v15 }
  0x36   :  { %1791 = vmatpush3.bf16.msra.mxu1 %v1897_v25  ;;  %1728 = vmatprep.subr.bf16.mxu0 %v1898_v28  ;;  %v1475_v12 = vcombine.high %v68_v6, %v72_v7  ;;  %v1477_v13 = vcombine.high %v69_v8, %v73_v9  ;;  %v1474_v18 = vcombine.low %v68_v6, %v72_v7  ;;  %v89_v25 = vld [vmem:[%s2432_s0 + $0xf8] sm:$0xff]  ;;  %v116_v54 = vld [vmem:[%s2432_s0 + $0x1d0] sm:$0xff] }
  0x37   :  { %1792 = vmatprep.subr.bf16.mxu1 %v1900_v32  ;;  %v93_v32 = vld [vmem:[%s2432_s0 + $0x118] sm:$0xff]  ;;  %v120_v55 = vld [vmem:[%s2432_s0 + $0x1f0] sm:$0xff] }
  0x38   :  { %v1522_v62 = vcombine.low %v116_v54, %v120_v55 }
  0x39   :  { %1729 = vmatpush3.bf16.msra.mxu0 %v1899_v31  ;;  %v96_v31 = vld [vmem:[%s2432_s0 + $0x130] sm:$0xff] }
  0x3a   :  { %1793 = vmatpush3.bf16.msra.mxu1 %v1901_v33  ;;  %1730 = vmatprep.subr.bf16.mxu0 %v1902_v38  ;;  %v97_v33 = vld [vmem:[%s2432_s0 + $0x138] sm:$0xff]  ;;  %v100_v38 = vld [vmem:[%s2432_s0 + $0x150] sm:$0xff]  ;;  %v1498_v42 = vcombine.low %v92_v30, %v96_v31 }
  0x3b   :  { %1011 = vmatmul.mubr.bf16.gmra.mrb[12].mxu0 %v1486_v19  ;;  %1794 = vmatprep.subr.bf16.mxu1 %v1904_v40  ;;  %v1476_v19 = vcombine.low %v69_v8, %v73_v9  ;;  %v101_v40 = vld [vmem:[%s2432_s0 + $0x158] sm:$0xff] }
  0x3c   :  { %1108 = vmatmul.mubr.bf16.gmra.mrb[12].mxu1 %v1488_v21  ;;  %1018 = vmatprep.mubr.bf16.mxu0 %v1495_v22  ;;  %v1485_v21 = vcombine.high %v77_v16, %v81_v17  ;;  %v84_v22 = vld [vmem:[%s2432_s0 + $0xd0] sm:$0xff]  ;;  %v1509_v45 = vcombine.high %v101_v40, %v105_v41 }
  0x3d   :  { %1115 = vmatprep.mubr.bf16.mxu1 %v1497_v24  ;;  %1731 = vmatpush3.bf16.msra.mxu0 %v1903_v39  ;;  %v85_v24 = vld [vmem:[%s2432_s0 + $0xd8] sm:$0xff]  ;;  %v1491_v28 = vcombine.high %v84_v22, %v88_v23  ;;  %v104_v39 = vld [vmem:[%s2432_s0 + $0x170] sm:$0xff] }
  0x3e   :  { %1795 = vmatpush3.bf16.msra.mxu1 %v1905_v43  ;;  %1732 = vmatprep.subr.bf16.mxu0 %v1906_v46  ;;  %v1493_v29 = vcombine.high %v85_v24, %v89_v25  ;;  %v1500_v43 = vcombine.low %v93_v32, %v97_v33  ;;  %v1507_v44 = vcombine.high %v100_v38, %v104_v39  ;;  %v108_v46 = vld [vmem:[%s2432_s0 + $0x190] sm:$0xff] }
  0x3f   :  { %1796 = vmatprep.subr.bf16.mxu1 %v1908_v51  ;;  %v1508_v51 = vcombine.low %v101_v40, %v105_v41 }
  0x41   :  { %1733 = vmatpush3.bf16.msra.mxu0 %v1907_v48  ;;  %v109_v48 = vld [vmem:[%s2432_s0 + $0x198] sm:$0xff] }
  0x42   :  { %1797 = vmatpush3.bf16.msra.mxu1 %v1909_v53 }
  0x43   :  { %1019 = vmatmul.mubr.bf16.gmra.mrb[16].mxu0 %v1494_v34  ;;  %v1490_v34 = vcombine.low %v84_v22, %v88_v23 }
  0x44   :  { %1116 = vmatmul.mubr.bf16.gmra.mrb[16].mxu1 %v1496_v35  ;;  %1026 = vmatprep.mubr.bf16.mxu0 %v1503_v36  ;;  %v1492_v35 = vcombine.low %v85_v24, %v89_v25  ;;  %v1499_v36 = vcombine.high %v92_v30, %v96_v31 }
  0x45   :  { %1123 = vmatprep.mubr.bf16.mxu1 %v1505_v37  ;;  %v1501_v37 = vcombine.high %v93_v32, %v97_v33 }
  0x4b   :  { %1027 = vmatmul.mubr.bf16.gmra.mrb[20].mxu0 %v1502_v47  ;;  %v112_v47 = vld [vmem:[%s2432_s0 + $0x1b0] sm:$0xff] }
  0x4c   :  { %1124 = vmatmul.mubr.bf16.gmra.mrb[20].mxu1 %v1504_v49  ;;  %1034 = vmatprep.mubr.bf16.mxu0 %v1511_v50  ;;  %v113_v49 = vld [vmem:[%s2432_s0 + $0x1b8] sm:$0xff]  ;;  %v1506_v50 = vcombine.low %v100_v38, %v104_v39 }
  0x4d   :  { %1131 = vmatprep.mubr.bf16.mxu1 %v1513_v52  ;;  %v1515_v52 = vcombine.high %v108_v46, %v112_v47  ;;  %v1517_v53 = vcombine.high %v109_v48, %v113_v49 }
  0x53   :  { %1035 = vmatmul.mubr.bf16.gmra.mrb[24].mxu0 %v1510_v58  ;;  %v1514_v58 = vcombine.low %v108_v46, %v112_v47 }
  0x54   :  { %1132 = vmatmul.mubr.bf16.gmra.mrb[24].mxu1 %v1512_v59  ;;  %1042 = vmatprep.mubr.bf16.mxu0 %v1519_v60  ;;  %v1516_v59 = vcombine.low %v109_v48, %v113_v49  ;;  %v1523_v60 = vcombine.high %v116_v54, %v120_v55 }
  0x55   :  { %1139 = vmatprep.mubr.bf16.mxu1 %v1521_v61  ;;  %v1525_v61 = vcombine.high %v117_v56, %v121_v57 }
  0x5b   :  { %1043 = vmatmul.mubr.bf16.gmra.mrb[28].mxu0 %v1518_v2 }
  0x5c   :  { %1140 = vmatmul.mubr.bf16.gmra.mrb[28].mxu1 %v1520_v3  ;;  %1180 = vmatprep.mubr.bf16.mxu0 %v1467_v4 }
  0x5d   :  { %1277 = vmatprep.mubr.bf16.mxu1 %v1469_v5 }
  0x63   :  { %1181 = vmatmul.mubr.bf16.vlgmr.msra.gmra.mrb[32].mxu0 %v1466_v10 }
  0x64   :  { %1278 = vmatmul.mubr.bf16.vlgmr.msra.gmra.mrb[32].mxu1 %v1468_v11  ;;  %1188 = vmatprep.mubr.bf16.mxu0 %v1475_v12 }
  0x65   :  { %1285 = vmatprep.mubr.bf16.mxu1 %v1477_v13 }
  0x6b   :  { %1189 = vmatmul.mubr.bf16.gmra.mrb[36].mxu0 %v1474_v18 }
  0x6c   :  { %1286 = vmatmul.mubr.bf16.gmra.mrb[36].mxu1 %v1476_v19  ;;  %1196 = vmatprep.mubr.bf16.mxu0 %v1483_v20 }
  0x6d   :  { %1293 = vmatprep.mubr.bf16.mxu1 %v1485_v21 }
  0x73   :  { %1197 = vmatmul.mubr.bf16.gmra.mrb[40].mxu0 %v1482_v26 }
  0x74   :  { %1294 = vmatmul.mubr.bf16.gmra.mrb[40].mxu1 %v1484_v27  ;;  %1204 = vmatprep.mubr.bf16.mxu0 %v1491_v28 }
  0x75   :  { %1301 = vmatprep.mubr.bf16.mxu1 %v1493_v29 }
  0x7b   :  { %1205 = vmatmul.mubr.bf16.gmra.mrb[44].mxu0 %v1490_v34 }
  0x7c   :  { %1302 = vmatmul.mubr.bf16.gmra.mrb[44].mxu1 %v1492_v35  ;;  %1212 = vmatprep.mubr.bf16.mxu0 %v1499_v36 }
  0x7d   :  { %1309 = vmatprep.mubr.bf16.mxu1 %v1501_v37 }
  0x83   :  { %1213 = vmatmul.mubr.bf16.gmra.mrb[48].mxu0 %v1498_v42 }
  0x84   :  { %1310 = vmatmul.mubr.bf16.gmra.mrb[48].mxu1 %v1500_v43  ;;  %1220 = vmatprep.mubr.bf16.mxu0 %v1507_v44 }
  0x85   :  { %1317 = vmatprep.mubr.bf16.mxu1 %v1509_v45 }
  0x8b   :  { %1221 = vmatmul.mubr.bf16.gmra.mrb[52].mxu0 %v1506_v50 }
  0x8c   :  { %1318 = vmatmul.mubr.bf16.gmra.mrb[52].mxu1 %v1508_v51  ;;  %1228 = vmatprep.mubr.bf16.mxu0 %v1515_v52 }
  0x8d   :  { %1325 = vmatprep.mubr.bf16.mxu1 %v1517_v53 }
  0x93   :  { %1229 = vmatmul.mubr.bf16.gmra.mrb[56].mxu0 %v1514_v58 }
  0x94   :  { %1326 = vmatmul.mubr.bf16.gmra.mrb[56].mxu1 %v1516_v59  ;;  %1236 = vmatprep.mubr.bf16.mxu0 %v1523_v60 }
  0x95   :  { %1333 = vmatprep.mubr.bf16.mxu1 %v1525_v61 }
  0x9b   :  { %1237 = vmatmul.mubr.bf16.gmra.mrb[60].mxu0 %v1522_v62 }
  0x9c   :  { %1334 = vmatmul.mubr.bf16.gmra.mrb[60].mxu1 %v1524_v63 }
  0xf6   :  { %v1606_v0 = vpop.f32.mrb[0].mxu0 }
  0xf7   :  { %v1670_v1 = vpop.f32.mrb[0].mxu1  ;;  %v1607_v2 = vpop.f32.mrb[1].mxu0 }
  0xf8   :  { %v1608_v3 = vadd.f32 %v1607_v2, %v1606_v0  ;;  %v1671_v4 = vpop.f32.mrb[1].mxu1  ;;  %v1609_v5 = vpop.f32.mrb[2].mxu0 }
  0xf9   :  { %v1672_v6 = vadd.f32 %v1671_v4, %v1670_v1  ;;  %v1673_v7 = vpop.f32.mrb[2].mxu1  ;;  %v1610_v8 = vpop.f32.mrb[3].mxu0 }
  0xfa   :  { %v1611_v9 = vadd.f32 %v1610_v8, %v1609_v5  ;;  %v1674_v10 = vpop.f32.mrb[3].mxu1 }
  0xfb   :  { %v2314_v11 = vadd.f32 %v1672_v6, %v1608_v3  ;;  %v1675_v12 = vadd.f32 %v1674_v10, %v1673_v7 }
  0xfd   :  { %v2316_v13 = vadd.f32 %v1675_v12, %v1611_v9 }
  0xfe   :  { %v1612_v14 = vpop.f32.mrb[4].mxu0 }
  0xff   :  { %v1676_v15 = vpop.f32.mrb[4].mxu1  ;;  %v1613_v16 = vpop.f32.mrb[5].mxu0 }
 0x100   :  { %v1614_v17 = vadd.f32 %v1613_v16, %v1612_v14  ;;  %v1677_v18 = vpop.f32.mrb[5].mxu1  ;;  %v1615_v19 = vpop.f32.mrb[6].mxu0 }
 0x101   :  { %v1678_v20 = vadd.f32 %v1677_v18, %v1676_v15  ;;  %v1679_v21 = vpop.f32.mrb[6].mxu1  ;;  %v1616_v22 = vpop.f32.mrb[7].mxu0 }
 0x102   :  { %v1617_v23 = vadd.f32 %v1616_v22, %v1615_v19  ;;  %v1680_v24 = vpop.f32.mrb[7].mxu1 }
 0x103   :  { %v2318_v25 = vadd.f32 %v1678_v20, %v1614_v17  ;;  %v1681_v26 = vadd.f32 %v1680_v24, %v1679_v21 }
 0x105   :  { %v2320_v27 = vadd.f32 %v1681_v26, %v1617_v23 }
 0x106   :  { %v1618_v28 = vpop.f32.mrb[8].mxu0 }
 0x107   :  { %v1682_v29 = vpop.f32.mrb[8].mxu1  ;;  %v1619_v30 = vpop.f32.mrb[9].mxu0 }
 0x108   :  { %v1620_v31 = vadd.f32 %v1619_v30, %v1618_v28  ;;  %v1683_v32 = vpop.f32.mrb[9].mxu1  ;;  %v1621_v33 = vpop.f32.mrb[10].mxu0 }
 0x109   :  { %v1684_v34 = vadd.f32 %v1683_v32, %v1682_v29  ;;  %v1685_v35 = vpop.f32.mrb[10].mxu1  ;;  %v1622_v36 = vpop.f32.mrb[11].mxu0 }
 0x10a   :  { %v1623_v37 = vadd.f32 %v1622_v36, %v1621_v33  ;;  %v1686_v38 = vpop.f32.mrb[11].mxu1 }
 0x10b   :  { %v2322_v39 = vadd.f32 %v1684_v34, %v1620_v31  ;;  %v1687_v40 = vadd.f32 %v1686_v38, %v1685_v35 }
 0x10d   :  { %v2324_v41 = vadd.f32 %v1687_v40, %v1623_v37 }
 0x10e   :  { %v1624_v42 = vpop.f32.mrb[12].mxu0 }
 0x10f   :  { %v1688_v43 = vpop.f32.mrb[12].mxu1  ;;  %v1625_v44 = vpop.f32.mrb[13].mxu0 }
 0x110   :  { %v1626_v45 = vadd.f32 %v1625_v44, %v1624_v42  ;;  %v1689_v46 = vpop.f32.mrb[13].mxu1  ;;  %v1627_v47 = vpop.f32.mrb[14].mxu0 }
 0x111   :  { %v1690_v48 = vadd.f32 %v1689_v46, %v1688_v43  ;;  %v1691_v49 = vpop.f32.mrb[14].mxu1  ;;  %v1628_v50 = vpop.f32.mrb[15].mxu0 }
 0x112   :  { %v1629_v51 = vadd.f32 %v1628_v50, %v1627_v47  ;;  %v1692_v52 = vpop.f32.mrb[15].mxu1 }
 0x113   :  { %v2326_v53 = vadd.f32 %v1690_v48, %v1626_v45  ;;  %v1693_v54 = vadd.f32 %v1692_v52, %v1691_v49 }
 0x115   :  { %v2328_v55 = vadd.f32 %v1693_v54, %v1629_v51 }
 0x116   :  { %v1630_v56 = vpop.f32.mrb[16].mxu0 }
 0x117   :  { %v1694_v57 = vpop.f32.mrb[16].mxu1  ;;  %v1631_v58 = vpop.f32.mrb[17].mxu0 }
 0x118   :  { %v1632_v59 = vadd.f32 %v1631_v58, %v1630_v56  ;;  %v1695_v60 = vpop.f32.mrb[17].mxu1  ;;  %v1633_v61 = vpop.f32.mrb[18].mxu0 }
 0x119   :  { %v1696_v62 = vadd.f32 %v1695_v60, %v1694_v57  ;;  %v1697_v63 = vpop.f32.mrb[18].mxu1  ;;  %v1634_v0 = vpop.f32.mrb[19].mxu0 }
 0x11a   :  { %v1635_v1 = vadd.f32 %v1634_v0, %v1633_v61  ;;  %v1698_v2 = vpop.f32.mrb[19].mxu1 }
 0x11b   :  { %v2330_v3 = vadd.f32 %v1696_v62, %v1632_v59  ;;  %v1699_v4 = vadd.f32 %v1698_v2, %v1697_v63 }
 0x11d   :  { %v2332_v5 = vadd.f32 %v1699_v4, %v1635_v1 }
 0x11e   :  { %v1636_v6 = vpop.f32.mrb[20].mxu0 }
 0x11f   :  { %v1700_v7 = vpop.f32.mrb[20].mxu1  ;;  %v1637_v8 = vpop.f32.mrb[21].mxu0 }
 0x120   :  { %v1638_v9 = vadd.f32 %v1637_v8, %v1636_v6  ;;  %v1701_v10 = vpop.f32.mrb[21].mxu1  ;;  %v1639_v12 = vpop.f32.mrb[22].mxu0  ;;  %v2350_v6 = vld [vmem:[%s2433_s2] ss:$0 sm:$0xff] }
 0x121   :  { %v1702_v14 = vadd.f32 %v1701_v10, %v1700_v7  ;;  %v1703_v15 = vpop.f32.mrb[22].mxu1  ;;  %v1640_v16 = vpop.f32.mrb[23].mxu0 }
 0x122   :  { %v1641_v17 = vadd.f32 %v1640_v16, %v1639_v12  ;;  %v1704_v18 = vpop.f32.mrb[23].mxu1 }
 0x123   :  { %v2334_v19 = vadd.f32 %v1702_v14, %v1638_v9  ;;  %v1705_v20 = vadd.f32 %v1704_v18, %v1703_v15 }
 0x125   :  { %v2336_v21 = vadd.f32 %v1705_v20, %v1641_v17 }
 0x126   :  { %v1642_v22 = vpop.f32.mrb[24].mxu0 }
 0x127   :  { %v1706_v23 = vpop.f32.mrb[24].mxu1  ;;  %v1643_v24 = vpop.f32.mrb[25].mxu0 }
 0x128   :  { %v1644_v26 = vadd.f32 %v1643_v24, %v1642_v22  ;;  %v1707_v28 = vpop.f32.mrb[25].mxu1  ;;  %v1645_v29 = vpop.f32.mrb[26].mxu0 }
 0x129   :  { %v1708_v30 = vadd.f32 %v1707_v28, %v1706_v23  ;;  %v1709_v31 = vpop.f32.mrb[26].mxu1  ;;  %v1646_v32 = vpop.f32.mrb[27].mxu0 }
 0x12a   :  { %v1647_v33 = vadd.f32 %v1646_v32, %v1645_v29  ;;  %v1710_v34 = vpop.f32.mrb[27].mxu1 }
 0x12b   :  { %v2338_v35 = vadd.f32 %v1708_v30, %v1644_v26  ;;  %v1711_v36 = vadd.f32 %v1710_v34, %v1709_v31 }
 0x12d   :  { %v2340_v37 = vadd.f32 %v1711_v36, %v1647_v33 }
 0x12e   :  { %v1648_v38 = vpop.f32.mrb[28].mxu0 }
 0x12f   :  { %v1712_v40 = vpop.f32.mrb[28].mxu1  ;;  %v1649_v42 = vpop.f32.mrb[29].mxu0 }
 0x130   :  { %v1650_v43 = vadd.f32 %v1649_v42, %v1648_v38  ;;  %v1713_v44 = vpop.f32.mrb[29].mxu1  ;;  %v1651_v45 = vpop.f32.mrb[30].mxu0 }
 0x131   :  { %v1714_v46 = vadd.f32 %v1713_v44, %v1712_v40  ;;  %v1715_v47 = vpop.f32.mrb[30].mxu1  ;;  %v1652_v48 = vpop.f32.mrb[31].mxu0 }
 0x132   :  { %v1653_v49 = vadd.f32 %v1652_v48, %v1651_v45  ;;  %v1716_v50 = vpop.f32.mrb[31].mxu1 }
 0x133   :  { %v2342_v51 = vadd.f32 %v1714_v46, %v1650_v43  ;;  %v1717_v52 = vadd.f32 %v1716_v50, %v1715_v47 }
 0x135   :  { %v2344_v54 = vadd.f32 %v1717_v52, %v1653_v49 }
 0x136   :  { %v1734_v56 = vpop.f32.mrb[32].mxu0 }
 0x137   :  { %v1798_v57 = vpop.f32.mrb[32].mxu1  ;;  %v1735_v58 = vpop.f32.mrb[33].mxu0 }
 0x138   :  { %v1736_v59 = vadd.f32 %v1735_v58, %v1734_v56  ;;  %v1799_v60 = vpop.f32.mrb[33].mxu1  ;;  %v1737_v61 = vpop.f32.mrb[34].mxu0 }
 0x139   :  { %v1800_v62 = vadd.f32 %v1799_v60, %v1798_v57  ;;  %v1801_v63 = vpop.f32.mrb[34].mxu1  ;;  %v1738_v0 = vpop.f32.mrb[35].mxu0 }
 0x13a   :  { %v1183_v1 = vadd.f32 %v1736_v59, %v2314_v11  ;;  %v1739_v2 = vadd.f32 %v1738_v0, %v1737_v61  ;;  %v1802_v4 = vpop.f32.mrb[35].mxu1 }
 0x13b   :  { %v1803_v7 = vadd.f32 %v1802_v4, %v1801_v63 }
 0x13c   :  { %v1280_v8 = vadd.f32 %v1800_v62, %v1183_v1  ;;  %v1186_v9 = vadd.f32 %v1739_v2, %v2316_v13 }
 0x13e   :  { %v1342_v10 = vadd.f32 %v2350_v6, %v1280_v8  ;;  %v1283_v12 = vadd.f32 %v1803_v7, %v1186_v9  ;;  %v1740_v14 = vpop.f32.mrb[36].mxu0 }
 0x13f   :  { %v1804_v15 = vpop.f32.mrb[36].mxu1  ;;  %v1741_v16 = vpop.f32.mrb[37].mxu0 }
 0x140   :  { %vm1393_vm0 = vcmp.ge.f32.partialorder %v1342_v10, 0.0  ;;  %v1409_v17 = vmul.f32 0.2, %v1342_v10  ;;  %v1343_v11 = vadd.f32 %v2350_v6, %v1283_v12  ;;  %v1742_v18 = vadd.f32 %v1741_v16, %v1740_v14  ;;  %v1805_v20 = vpop.f32.mrb[37].mxu1  ;;  %v1743_v22 = vpop.f32.mrb[38].mxu0 }
 0x141   :  { %v1806_v23 = vadd.f32 %v1805_v20, %v1804_v15  ;;  %v1807_v24 = vpop.f32.mrb[38].mxu1  ;;  %v1744_v26 = vpop.f32.mrb[39].mxu0 }
 0x142   :  { %v1425_v28 = vsel %vm1393_vm0, %v1342_v10, %v1409_v17  ;;  %vm1394_vm1 = vcmp.ge.f32.partialorder %v1343_v11, 0.0  ;;  %v1410_v29 = vmul.f32 0.2, %v1343_v11  ;;  %v1191_v13 = vadd.f32 %v1742_v18, %v2318_v25  ;;  %v1808_v30 = vpop.f32.mrb[39].mxu1 }
 0x143   :  { %1441 = vst [vmem:[%s2434_s3] sm:$0xff] %v1425_v28  ;;  %v1745_v31 = vadd.f32 %v1744_v26, %v1743_v22  ;;  %v1809_v32 = vadd.f32 %v1808_v30, %v1807_v24 }
 0x144   :  { %v1426_v33 = vsel %vm1394_vm1, %v1343_v11, %v1410_v29  ;;  %v1288_v34 = vadd.f32 %v1806_v23, %v1191_v13 }
 0x145   :  { %1442 = vst [vmem:[%s2434_s3 + $0x8] sm:$0xff] %v1426_v33  ;;  %v1194_v36 = vadd.f32 %v1745_v31, %v2320_v27 }
 0x146   :  { %v1344_v38 = vadd.f32 %v2350_v6, %v1288_v34  ;;  %v1746_v40 = vpop.f32.mrb[40].mxu0 }
 0x147   :  { %v1291_v42 = vadd.f32 %v1809_v32, %v1194_v36  ;;  %v1810_v25 = vpop.f32.mrb[40].mxu1  ;;  %v1747_v43 = vpop.f32.mrb[41].mxu0 }
 0x148   :  { %vm1395_vm2 = vcmp.ge.f32.partialorder %v1344_v38, 0.0  ;;  %v1411_v44 = vmul.f32 0.2, %v1344_v38  ;;  %v1748_v45 = vadd.f32 %v1747_v43, %v1746_v40  ;;  %v1811_v46 = vpop.f32.mrb[41].mxu1  ;;  %v1749_v47 = vpop.f32.mrb[42].mxu0 }
 0x149   :  { %v1345_v48 = vadd.f32 %v2350_v6, %v1291_v42  ;;  %v1812_v49 = vadd.f32 %v1811_v46, %v1810_v25  ;;  %v1813_v50 = vpop.f32.mrb[42].mxu1  ;;  %v1750_v52 = vpop.f32.mrb[43].mxu0 }
 0x14a   :  { %v1427_v56 = vsel %vm1395_vm2, %v1344_v38, %v1411_v44  ;;  %v1199_v57 = vadd.f32 %v1748_v45, %v2322_v39  ;;  %v1751_v27 = vadd.f32 %v1750_v52, %v1749_v47  ;;  %v1814_v58 = vpop.f32.mrb[43].mxu1 }
 0x14b   :  { %1443 = vst [vmem:[%s2434_s3 + $0x10] sm:$0xff] %v1427_v56  ;;  %vm1396_vm3 = vcmp.ge.f32.partialorder %v1345_v48, 0.0  ;;  %v1412_v59 = vmul.f32 0.2, %v1345_v48  ;;  %v1815_v60 = vadd.f32 %v1814_v58, %v1813_v50 }
 0x14c   :  { %v1296_v61 = vadd.f32 %v1812_v49, %v1199_v57  ;;  %v1202_v62 = vadd.f32 %v1751_v27, %v2324_v41 }
 0x14d   :  { %v1428_v63 = vsel %vm1396_vm3, %v1345_v48, %v1412_v59 }
 0x14e   :  { %1444 = vst [vmem:[%s2434_s3 + $0x18] sm:$0xff] %v1428_v63  ;;  %v1346_v0 = vadd.f32 %v2350_v6, %v1296_v61  ;;  %v1299_v39 = vadd.f32 %v1815_v60, %v1202_v62  ;;  %v1752_v1 = vpop.f32.mrb[44].mxu0 }
 0x14f   :  { %v1816_v2 = vpop.f32.mrb[44].mxu1  ;;  %v1753_v4 = vpop.f32.mrb[45].mxu0 }
 0x150   :  { %vm1397_vm4 = vcmp.ge.f32.partialorder %v1346_v0, 0.0  ;;  %v1413_v7 = vmul.f32 0.2, %v1346_v0  ;;  %v1347_v8 = vadd.f32 %v2350_v6, %v1299_v39  ;;  %v1754_v9 = vadd.f32 %v1753_v4, %v1752_v1  ;;  %v1817_v10 = vpop.f32.mrb[45].mxu1  ;;  %v1755_v12 = vpop.f32.mrb[46].mxu0 }
 0x151   :  { %v1818_v14 = vadd.f32 %v1817_v10, %v1816_v2  ;;  %v1819_v41 = vpop.f32.mrb[46].mxu1  ;;  %v1756_v15 = vpop.f32.mrb[47].mxu0 }
 0x152   :  { %v1429_v16 = vsel %vm1397_vm4, %v1346_v0, %v1413_v7  ;;  %vm1398_vm5 = vcmp.ge.f32.partialorder %v1347_v8, 0.0  ;;  %v1414_v17 = vmul.f32 0.2, %v1347_v8  ;;  %v1207_v11 = vadd.f32 %v1754_v9, %v2326_v53  ;;  %v1820_v18 = vpop.f32.mrb[47].mxu1 }
 0x153   :  { %1445 = vst [vmem:[%s2434_s3 + $0x20] sm:$0xff] %v1429_v16  ;;  %v1757_v20 = vadd.f32 %v1756_v15, %v1755_v12  ;;  %v1821_v22 = vadd.f32 %v1820_v18, %v1819_v41 }
 0x154   :  { %v1430_v23 = vsel %vm1398_vm5, %v1347_v8, %v1414_v17  ;;  %v1304_v24 = vadd.f32 %v1818_v14, %v1207_v11 }
 0x155   :  { %1446 = vst [vmem:[%s2434_s3 + $0x28] sm:$0xff] %v1430_v23  ;;  %v1210_v26 = vadd.f32 %v1757_v20, %v2328_v55 }
 0x156   :  { %v1348_v28 = vadd.f32 %v2350_v6, %v1304_v24  ;;  %v1758_v29 = vpop.f32.mrb[48].mxu0 }
 0x157   :  { %v1307_v13 = vadd.f32 %v1821_v22, %v1210_v26  ;;  %v1822_v53 = vpop.f32.mrb[48].mxu1  ;;  %v1759_v30 = vpop.f32.mrb[49].mxu0 }
 0x158   :  { %vm1399_vm6 = vcmp.ge.f32.partialorder %v1348_v28, 0.0  ;;  %v1415_v31 = vmul.f32 0.2, %v1348_v28  ;;  %v1760_v32 = vadd.f32 %v1759_v30, %v1758_v29  ;;  %v1823_v33 = vpop.f32.mrb[49].mxu1  ;;  %v1761_v34 = vpop.f32.mrb[50].mxu0 }
 0x159   :  { %v1349_v36 = vadd.f32 %v2350_v6, %v1307_v13  ;;  %v1824_v38 = vadd.f32 %v1823_v33, %v1822_v53  ;;  %v1825_v40 = vpop.f32.mrb[50].mxu1  ;;  %v1762_v42 = vpop.f32.mrb[51].mxu0 }
 0x15a   :  { %v1431_v25 = vsel %vm1399_vm6, %v1348_v28, %v1415_v31  ;;  %v1215_v43 = vadd.f32 %v1760_v32, %v2330_v3  ;;  %v1763_v55 = vadd.f32 %v1762_v42, %v1761_v34  ;;  %v1826_v44 = vpop.f32.mrb[51].mxu1 }
 0x15b   :  { %1447 = vst [vmem:[%s2434_s3 + $0x30] sm:$0xff] %v1431_v25  ;;  %vm1400_vm7 = vcmp.ge.f32.partialorder %v1349_v36, 0.0  ;;  %v1416_v45 = vmul.f32 0.2, %v1349_v36  ;;  %v1827_v46 = vadd.f32 %v1826_v44, %v1825_v40 }
 0x15c   :  { %v1312_v47 = vadd.f32 %v1824_v38, %v1215_v43  ;;  %v1218_v48 = vadd.f32 %v1763_v55, %v2332_v5 }
 0x15d   :  { %v1432_v49 = vsel %vm1400_vm7, %v1349_v36, %v1416_v45 }
 0x15e   :  { %1448 = vst [vmem:[%s2434_s3 + $0x38] sm:$0xff] %v1432_v49  ;;  %v1350_v50 = vadd.f32 %v2350_v6, %v1312_v47  ;;  %v1315_v3 = vadd.f32 %v1827_v46, %v1218_v48  ;;  %v1764_v52 = vpop.f32.mrb[52].mxu0 }
 0x15f   :  { %v1828_v56 = vpop.f32.mrb[52].mxu1  ;;  %v1765_v57 = vpop.f32.mrb[53].mxu0 }
 0x160   :  { %vm1401_vm8 = vcmp.ge.f32.partialorder %v1350_v50, 0.0  ;;  %v1417_v27 = vmul.f32 0.2, %v1350_v50  ;;  %v1351_v58 = vadd.f32 %v2350_v6, %v1315_v3  ;;  %v1766_v59 = vadd.f32 %v1765_v57, %v1764_v52  ;;  %v1829_v60 = vpop.f32.mrb[53].mxu1  ;;  %v1767_v61 = vpop.f32.mrb[54].mxu0 }
 0x161   :  { %v1830_v62 = vadd.f32 %v1829_v60, %v1828_v56  ;;  %v1831_v5 = vpop.f32.mrb[54].mxu1  ;;  %v1768_v63 = vpop.f32.mrb[55].mxu0 }
 0x162   :  { %v1433_v0 = vsel %vm1401_vm8, %v1350_v50, %v1417_v27  ;;  %vm1402_vm9 = vcmp.ge.f32.partialorder %v1351_v58, 0.0  ;;  %v1418_v39 = vmul.f32 0.2, %v1351_v58  ;;  %v1223_v1 = vadd.f32 %v1766_v59, %v2334_v19  ;;  %v1832_v2 = vpop.f32.mrb[55].mxu1 }
 0x163   :  { %1449 = vst [vmem:[%s2434_s3 + $0x40] sm:$0xff] %v1433_v0  ;;  %v1769_v4 = vadd.f32 %v1768_v63, %v1767_v61  ;;  %v1833_v7 = vadd.f32 %v1832_v2, %v1831_v5 }
 0x164   :  { %v1434_v8 = vsel %vm1402_vm9, %v1351_v58, %v1418_v39  ;;  %v1320_v9 = vadd.f32 %v1830_v62, %v1223_v1 }
 0x165   :  { %1450 = vst [vmem:[%s2434_s3 + $0x48] sm:$0xff] %v1434_v8  ;;  %v1226_v10 = vadd.f32 %v1769_v4, %v2336_v21 }
 0x166   :  { %v1352_v12 = vadd.f32 %v2350_v6, %v1320_v9  ;;  %v1770_v14 = vpop.f32.mrb[56].mxu0 }
 0x167   :  { %v1323_v41 = vadd.f32 %v1833_v7, %v1226_v10  ;;  %v1834_v19 = vpop.f32.mrb[56].mxu1  ;;  %v1771_v15 = vpop.f32.mrb[57].mxu0 }
 0x168   :  { %vm1403_vm10 = vcmp.ge.f32.partialorder %v1352_v12, 0.0  ;;  %v1419_v16 = vmul.f32 0.2, %v1352_v12  ;;  %v1772_v17 = vadd.f32 %v1771_v15, %v1770_v14  ;;  %v1835_v11 = vpop.f32.mrb[57].mxu1  ;;  %v1773_v18 = vpop.f32.mrb[58].mxu0 }
 0x169   :  { %v1353_v20 = vadd.f32 %v2350_v6, %v1323_v41  ;;  %v1836_v22 = vadd.f32 %v1835_v11, %v1834_v19  ;;  %v1837_v23 = vpop.f32.mrb[58].mxu1  ;;  %v1774_v24 = vpop.f32.mrb[59].mxu0 }
 0x16a   :  { %v1435_v26 = vsel %vm1403_vm10, %v1352_v12, %v1419_v16  ;;  %v1231_v28 = vadd.f32 %v1772_v17, %v2338_v35  ;;  %v1775_v21 = vadd.f32 %v1774_v24, %v1773_v18  ;;  %v1838_v29 = vpop.f32.mrb[59].mxu1 }
 0x16b   :  { %1451 = vst [vmem:[%s2434_s3 + $0x50] sm:$0xff] %v1435_v26  ;;  %vm1404_vm11 = vcmp.ge.f32.partialorder %v1353_v20, 0.0  ;;  %v1420_v13 = vmul.f32 0.2, %v1353_v20  ;;  %v1839_v53 = vadd.f32 %v1838_v29, %v1837_v23 }
 0x16c   :  { %v1328_v30 = vadd.f32 %v1836_v22, %v1231_v28  ;;  %v1234_v31 = vadd.f32 %v1775_v21, %v2340_v37 }
 0x16d   :  { %v1436_v32 = vsel %vm1404_vm11, %v1353_v20, %v1420_v13 }
 0x16e   :  { %1452 = vst [vmem:[%s2434_s3 + $0x58] sm:$0xff] %v1436_v32  ;;  %v1354_v33 = vadd.f32 %v2350_v6, %v1328_v30  ;;  %v1331_v35 = vadd.f32 %v1839_v53, %v1234_v31  ;;  %v1776_v34 = vpop.f32.mrb[60].mxu0 }
 0x16f   :  { %v1840_v36 = vpop.f32.mrb[60].mxu1  ;;  %v1777_v38 = vpop.f32.mrb[61].mxu0 }
 0x170   :  { %vm1405_vm12 = vcmp.ge.f32.partialorder %v1354_v33, 0.0  ;;  %v1421_v40 = vmul.f32 0.2, %v1354_v33  ;;  %v1355_v42 = vadd.f32 %v2350_v6, %v1331_v35  ;;  %v1778_v25 = vadd.f32 %v1777_v38, %v1776_v34  ;;  %v1841_v43 = vpop.f32.mrb[61].mxu1  ;;  %v1779_v55 = vpop.f32.mrb[62].mxu0 }
 0x171   :  { %v1842_v44 = vadd.f32 %v1841_v43, %v1840_v36  ;;  %v1843_v37 = vpop.f32.mrb[62].mxu1  ;;  %v1780_v45 = vpop.f32.mrb[63].mxu0 }
 0x172   :  { %v1437_v46 = vsel %vm1405_vm12, %v1354_v33, %v1421_v40  ;;  %vm1406_vm13 = vcmp.ge.f32.partialorder %v1355_v42, 0.0  ;;  %v1422_v47 = vmul.f32 0.2, %v1355_v42  ;;  %v1239_v48 = vadd.f32 %v1778_v25, %v2342_v51  ;;  %v1844_v49 = vpop.f32.mrb[63].mxu1 }
 0x173   :  { %1453 = vst [vmem:[%s2434_s3 + $0x60] sm:$0xff] %v1437_v46  ;;  %v1781_v50 = vadd.f32 %v1780_v45, %v1779_v55  ;;  %v1845_v3 = vadd.f32 %v1844_v49, %v1843_v37 }
 0x174   :  { %v1438_v52 = vsel %vm1406_vm13, %v1355_v42, %v1422_v47  ;;  %v1336_v56 = vadd.f32 %v1842_v44, %v1239_v48 }
 0x175   :  { %1454 = vst [vmem:[%s2434_s3 + $0x68] sm:$0xff] %v1438_v52  ;;  %v1242_v57 = vadd.f32 %v1781_v50, %v2344_v54 }
 0x176   :  { %v1356_v27 = vadd.f32 %v2350_v6, %v1336_v56 }
 0x177   :  { %v1339_v58 = vadd.f32 %v1845_v3, %v1242_v57 }
 0x178   :  { %vm1407_vm14 = vcmp.ge.f32.partialorder %v1356_v27, 0.0  ;;  %v1423_v51 = vmul.f32 0.2, %v1356_v27 }
 0x179   :  { %v1357_v59 = vadd.f32 %v2350_v6, %v1339_v58 }
 0x17a   :  { %v1439_v60 = vsel %vm1407_vm14, %v1356_v27, %v1423_v51 }
 0x17b   :  { %1455 = vst [vmem:[%s2434_s3 + $0x70] sm:$0xff] %v1439_v60  ;;  %vm1408_vm15 = vcmp.ge.f32.partialorder %v1357_v59, 0.0  ;;  %v1424_v61 = vmul.f32 0.2, %v1357_v59 }
 0x17d   :  { %v1440_v62 = vsel %vm1408_vm15, %v1357_v59, %v1424_v61 }
 0x17e   :  { %1456 = vst [vmem:[%s2434_s3 + $0x78] sm:$0xff] %v1440_v62 }

// kernel: multiscale_discriminator_forward.7
= control target key start
LH: loop header
LB: loop body
LE: loop exit
PB: predicated region body
PF: predicated region fallthrough
CT: control target
= control target key end

     0   :  { %s3948_s1 = inlined_call_operand.vmem [shape: bf16[2048,256], index: 1, kind: input, shape index: {}]   ;;  %s3949_s0 = inlined_call_operand.vmem [shape: bf16[32,2048], index: 0, kind: input, shape index: {}]   ;;  %s3950_s2 = inlined_call_operand.vmem [shape: f32[1,256], index: 2, kind: input, shape index: {}]   ;;  %s3951_s3 = inlined_call_operand.vmem [shape: f32[32,256], index: 3, kind: output, shape index: {}]  }
   0x1   :  { %v2605_v0 = vld [vmem:[%s3948_s1 + $0x4] ss:$8 sps:$4 sm:$0xff]   ;;  %v2609_v2 = vld [vmem:[%s3948_s1] ss:$8 sps:$4 sm:$0xff]   ;;  %v2611_v4 = vld [vmem:[%s3948_s1 + $0x14] ss:$8 sps:$4 sm:$0xff]  }
   0x2   :  { %v2607_v1 = vld [vmem:[%s3948_s1 + $0x404] ss:$8 sps:$4 sm:$0xff]   ;;  %1774 = vmatprep.subr.bf16.mxu1 %v2605_v0  ;;  %v2610_v3 = vld [vmem:[%s3948_s1 + $0x400] ss:$8 sps:$4 sm:$0xff]   ;;  %v2613_v5 = vld [vmem:[%s3948_s1 + $0x414] ss:$8 sps:$4 sm:$0xff]  }
   0x3   :  { %1986 = vmatprep.subr.bf16.mxu0 %v2607_v1  ;;  %1775 = vmatpush1.bf16.msra.mxu1 %v2609_v2  ;;  %v2615_v6 = vld [vmem:[%s3948_s1 + $0x10] ss:$8 sps:$4 sm:$0xff]   ;;  %v2617_v8 = vld [vmem:[%s3948_s1 + $0x24] ss:$8 sps:$4 sm:$0xff]   ;;  %v2621_v10 = vld [vmem:[%s3948_s1 + $0x20] ss:$8 sps:$4 sm:$0xff]  }
   0x4   :  { %1987 = vmatpush1.bf16.msra.mxu0 %v2610_v3  ;;  %1776 = vmatprep.subr.bf16.mxu1 %v2611_v4  ;;  %v2616_v7 = vld [vmem:[%s3948_s1 + $0x410] ss:$8 sps:$4 sm:$0xff]   ;;  %v2619_v9 = vld [vmem:[%s3948_s1 + $0x424] ss:$8 sps:$4 sm:$0xff]   ;;  %v2622_v11 = vld [vmem:[%s3948_s1 + $0x420] ss:$8 sps:$4 sm:$0xff]  }
   0x5   :  { %1988 = vmatprep.subr.bf16.mxu0 %v2613_v5  ;;  %v2623_v12 = vld [vmem:[%s3948_s1 + $0x34] ss:$8 sps:$4 sm:$0xff]   ;;  %v2627_v14 = vld [vmem:[%s3948_s1 + $0x30] ss:$8 sps:$4 sm:$0xff]   ;;  %v2629_v16 = vld [vmem:[%s3948_s1 + $0x44] ss:$8 sps:$4 sm:$0xff]  }
   0x6   :  { %v2625_v13 = vld [vmem:[%s3948_s1 + $0x434] ss:$8 sps:$4 sm:$0xff]   ;;  %v2628_v15 = vld [vmem:[%s3948_s1 + $0x430] ss:$8 sps:$4 sm:$0xff]   ;;  %v2631_v17 = vld [vmem:[%s3948_s1 + $0x444] ss:$8 sps:$4 sm:$0xff]  }
   0x7   :  { %1777 = vmatpush1.bf16.msra.mxu1 %v2615_v6  ;;  %v2633_v18 = vld [vmem:[%s3948_s1 + $0x40] ss:$8 sps:$4 sm:$0xff]   ;;  %v2635_v20 = vld [vmem:[%s3948_s1 + $0x54] ss:$8 sps:$4 sm:$0xff]   ;;  %v2639_v22 = vld [vmem:[%s3948_s1 + $0x50] ss:$8 sps:$4 sm:$0xff]  }
   0x8   :  { %1989 = vmatpush1.bf16.msra.mxu0 %v2616_v7  ;;  %1778 = vmatprep.subr.bf16.mxu1 %v2617_v8  ;;  %v2634_v19 = vld [vmem:[%s3948_s1 + $0x440] ss:$8 sps:$4 sm:$0xff]   ;;  %v2637_v21 = vld [vmem:[%s3948_s1 + $0x454] ss:$8 sps:$4 sm:$0xff]   ;;  %v2640_v23 = vld [vmem:[%s3948_s1 + $0x450] ss:$8 sps:$4 sm:$0xff]  }
   0x9   :  { %1990 = vmatprep.subr.bf16.mxu0 %v2619_v9  ;;  %v2641_v24 = vld [vmem:[%s3948_s1 + $0x64] ss:$8 sps:$4 sm:$0xff]   ;;  %v2645_v26 = vld [vmem:[%s3948_s1 + $0x60] ss:$8 sps:$4 sm:$0xff]   ;;  %v2647_v28 = vld [vmem:[%s3948_s1 + $0x74] ss:$8 sps:$4 sm:$0xff]  }
   0xa   :  { %v2643_v25 = vld [vmem:[%s3948_s1 + $0x464] ss:$8 sps:$4 sm:$0xff]   ;;  %v2646_v27 = vld [vmem:[%s3948_s1 + $0x460] ss:$8 sps:$4 sm:$0xff]   ;;  %v2649_v29 = vld [vmem:[%s3948_s1 + $0x474] ss:$8 sps:$4 sm:$0xff]  }
   0xb   :  { %1779 = vmatpush1.bf16.msra.mxu1 %v2621_v10  ;;  %v2651_v30 = vld [vmem:[%s3948_s1 + $0x70] ss:$8 sps:$4 sm:$0xff]   ;;  %v2653_v32 = vld [vmem:[%s3948_s1 + $0x84] ss:$8 sps:$4 sm:$0xff]   ;;  %v2657_v34 = vld [vmem:[%s3948_s1 + $0x80] ss:$8 sps:$4 sm:$0xff]  }
   0xc   :  { %1991 = vmatpush1.bf16.msra.mxu0 %v2622_v11  ;;  %1780 = vmatprep.subr.bf16.mxu1 %v2623_v12  ;;  %v2652_v31 = vld [vmem:[%s3948_s1 + $0x470] ss:$8 sps:$4 sm:$0xff]   ;;  %v2655_v33 = vld [vmem:[%s3948_s1 + $0x484] ss:$8 sps:$4 sm:$0xff]   ;;  %v2658_v35 = vld [vmem:[%s3948_s1 + $0x480] ss:$8 sps:$4 sm:$0xff]  }
   0xd   :  { %1992 = vmatprep.subr.bf16.mxu0 %v2625_v13  ;;  %v2659_v36 = vld [vmem:[%s3948_s1 + $0x94] ss:$8 sps:$4 sm:$0xff]   ;;  %v2663_v38 = vld [vmem:[%s3948_s1 + $0x90] ss:$8 sps:$4 sm:$0xff]   ;;  %v2665_v40 = vld [vmem:[%s3948_s1 + $0xa4] ss:$8 sps:$4 sm:$0xff]  }
   0xe   :  { %v2661_v37 = vld [vmem:[%s3948_s1 + $0x494] ss:$8 sps:$4 sm:$0xff]   ;;  %v2664_v39 = vld [vmem:[%s3948_s1 + $0x490] ss:$8 sps:$4 sm:$0xff]   ;;  %v2667_v41 = vld [vmem:[%s3948_s1 + $0x4a4] ss:$8 sps:$4 sm:$0xff]  }
   0xf   :  { %1781 = vmatpush1.bf16.msra.mxu1 %v2627_v14  ;;  %v2669_v42 = vld [vmem:[%s3948_s1 + $0xa0] ss:$8 sps:$4 sm:$0xff]   ;;  %v2671_v44 = vld [vmem:[%s3948_s1 + $0xb4] ss:$8 sps:$4 sm:$0xff]   ;;  %v2675_v46 = vld [vmem:[%s3948_s1 + $0xb0] ss:$8 sps:$4 sm:$0xff]  }
  0x10   :  { %1993 = vmatpush1.bf16.msra.mxu0 %v2628_v15  ;;  %1782 = vmatprep.subr.bf16.mxu1 %v2629_v16  ;;  %v2670_v43 = vld [vmem:[%s3948_s1 + $0x4a0] ss:$8 sps:$4 sm:$0xff]   ;;  %v2673_v45 = vld [vmem:[%s3948_s1 + $0x4b4] ss:$8 sps:$4 sm:$0xff]   ;;  %v2676_v47 = vld [vmem:[%s3948_s1 + $0x4b0] ss:$8 sps:$4 sm:$0xff]  }
  0x11   :  { %1994 = vmatprep.subr.bf16.mxu0 %v2631_v17  ;;  %v46_v48 = vld [vmem:[%s3949_s0] sm:$0xff]  ;;  %v2683_v58 = vld [vmem:[%s3948_s1 + $0xd4] ss:$8 sps:$4 sm:$0xff]   ;;  %v2687_v60 = vld [vmem:[%s3948_s1 + $0xd0] ss:$8 sps:$4 sm:$0xff]  }
  0x12   :  { %v54_v49 = vld [vmem:[%s3949_s0 + $0x40] sm:$0xff]  ;;  %v2685_v59 = vld [vmem:[%s3948_s1 + $0x4d4] ss:$8 sps:$4 sm:$0xff]   ;;  %v2688_v61 = vld [vmem:[%s3948_s1 + $0x4d0] ss:$8 sps:$4 sm:$0xff]  }
  0x13   :  { %1783 = vmatpush1.bf16.msra.mxu1 %v2633_v18  ;;  %v2677_v50 = vld [vmem:[%s3948_s1 + $0xc4] ss:$8 sps:$4 sm:$0xff]   ;;  %v2262_v52 = vcombine.high %v46_v48, %v54_v49  ;;  %v2681_v56 = vld [vmem:[%s3948_s1 + $0xc0] ss:$8 sps:$4 sm:$0xff]   ;;  %v2695_v2 = vld [vmem:[%s3948_s1 + $0xf4] ss:$8 sps:$4 sm:$0xff]   ;;  %v2261_v8 = vcombine.low %v46_v48, %v54_v49 }
  0x14   :  { %1995 = vmatpush1.bf16.msra.mxu0 %v2634_v19  ;;  %1784 = vmatprep.subr.bf16.mxu1 %v2635_v20  ;;  %v2679_v51 = vld [vmem:[%s3948_s1 + $0x4c4] ss:$8 sps:$4 sm:$0xff]   ;;  %v2682_v57 = vld [vmem:[%s3948_s1 + $0x4c0] ss:$8 sps:$4 sm:$0xff]   ;;  %v2697_v3 = vld [vmem:[%s3948_s1 + $0x4f4] ss:$8 sps:$4 sm:$0xff]  }
  0x15   :  { %1996 = vmatprep.subr.bf16.mxu0 %v2637_v21  ;;  %v50_v53 = vld [vmem:[%s3949_s0 + $0x20] sm:$0xff]  ;;  %1806 = vmatprep.mubr.bf16.mxu1 %v2262_v52  ;;  %v2699_v4 = vld [vmem:[%s3948_s1 + $0xf0] ss:$8 sps:$4 sm:$0xff]   ;;  %v2709_v12 = vld [vmem:[%s3948_s1 + $0x114] ss:$8 sps:$4 sm:$0xff]  }
  0x16   :  { %v58_v54 = vld [vmem:[%s3949_s0 + $0x60] sm:$0xff]  ;;  %v2700_v5 = vld [vmem:[%s3948_s1 + $0x4f0] ss:$8 sps:$4 sm:$0xff]   ;;  %v2712_v13 = vld [vmem:[%s3948_s1 + $0x514] ss:$8 sps:$4 sm:$0xff]  }
  0x17   :  { %1785 = vmatpush1.bf16.msra.mxu1 %v2639_v22  ;;  %v2270_v55 = vcombine.high %v50_v53, %v58_v54  ;;  %v2689_v62 = vld [vmem:[%s3948_s1 + $0xe4] ss:$8 sps:$4 sm:$0xff]   ;;  %v2693_v0 = vld [vmem:[%s3948_s1 + $0xe0] ss:$8 sps:$4 sm:$0xff]   ;;  %v2269_v10 = vcombine.low %v50_v53, %v58_v54  ;;  %v2707_v14 = vld [vmem:[%s3948_s1 + $0x110] ss:$8 sps:$4 sm:$0xff]  }
  0x18   :  { %1997 = vmatpush1.bf16.msra.mxu0 %v2640_v23  ;;  %1786 = vmatprep.subr.bf16.mxu1 %v2641_v24  ;;  %v2691_v63 = vld [vmem:[%s3948_s1 + $0x4e4] ss:$8 sps:$4 sm:$0xff]   ;;  %v2694_v1 = vld [vmem:[%s3948_s1 + $0x4e0] ss:$8 sps:$4 sm:$0xff]   ;;  %v2710_v15 = vld [vmem:[%s3948_s1 + $0x510] ss:$8 sps:$4 sm:$0xff]  }
  0x19   :  { %1998 = vmatprep.subr.bf16.mxu0 %v2643_v25  ;;  %2018 = vmatprep.mubr.bf16.mxu0 %v2270_v55  ;;  %v2703_v6 = vld [vmem:[%s3948_s1 + $0x104] ss:$8 sps:$4 sm:$0xff]   ;;  %v2701_v9 = vld [vmem:[%s3948_s1 + $0x100] ss:$8 sps:$4 sm:$0xff]   ;;  %v2721_v20 = vld [vmem:[%s3948_s1 + $0x134] ss:$8 sps:$4 sm:$0xff]  }
  0x1a   :  { %v2706_v7 = vld [vmem:[%s3948_s1 + $0x504] ss:$8 sps:$4 sm:$0xff]   ;;  %v2704_v11 = vld [vmem:[%s3948_s1 + $0x500] ss:$8 sps:$4 sm:$0xff]   ;;  %v2724_v21 = vld [vmem:[%s3948_s1 + $0x534] ss:$8 sps:$4 sm:$0xff]  }
  0x1b   :  { %1787 = vmatpush1.bf16.msra.mxu1 %v2645_v26  ;;  %v2715_v16 = vld [vmem:[%s3948_s1 + $0x124] ss:$8 sps:$4 sm:$0xff]   ;;  %v2713_v18 = vld [vmem:[%s3948_s1 + $0x120] ss:$8 sps:$4 sm:$0xff]   ;;  %v2719_v22 = vld [vmem:[%s3948_s1 + $0x130] ss:$8 sps:$4 sm:$0xff]  }
  0x1c   :  { %1999 = vmatpush1.bf16.msra.mxu0 %v2646_v27  ;;  %1788 = vmatprep.subr.bf16.mxu1 %v2647_v28  ;;  %v2718_v17 = vld [vmem:[%s3948_s1 + $0x524] ss:$8 sps:$4 sm:$0xff]   ;;  %v2716_v19 = vld [vmem:[%s3948_s1 + $0x520] ss:$8 sps:$4 sm:$0xff]   ;;  %v2722_v23 = vld [vmem:[%s3948_s1 + $0x530] ss:$8 sps:$4 sm:$0xff]  }
  0x1d   :  { %2000 = vmatprep.subr.bf16.mxu0 %v2649_v29  ;;  %v2727_v24 = vld [vmem:[%s3948_s1 + $0x144] ss:$8 sps:$4 sm:$0xff]   ;;  %v2725_v26 = vld [vmem:[%s3948_s1 + $0x140] ss:$8 sps:$4 sm:$0xff]   ;;  %v2733_v28 = vld [vmem:[%s3948_s1 + $0x154] ss:$8 sps:$4 sm:$0xff]  }
  0x1e   :  { %v2730_v25 = vld [vmem:[%s3948_s1 + $0x544] ss:$8 sps:$4 sm:$0xff]   ;;  %v2728_v27 = vld [vmem:[%s3948_s1 + $0x540] ss:$8 sps:$4 sm:$0xff]   ;;  %v2736_v29 = vld [vmem:[%s3948_s1 + $0x554] ss:$8 sps:$4 sm:$0xff]  }
  0x1f   :  { %1789 = vmatpush1.bf16.msra.mxu1 %v2651_v30  ;;  %v62_v30 = vld [vmem:[%s3949_s0 + $0x80] sm:$0xff]  ;;  %v3330_v49 = vld [vmem:[%s3949_s0 + $0x28] sm:$0xff]  ;;  %v2746_v52 = vld [vmem:[%s3948_s1 + $0x570] ss:$8 sps:$4 sm:$0xff]  }
  0x20   :  { %2001 = vmatpush1.bf16.msra.mxu0 %v2652_v31  ;;  %1790 = vmatprep.subr.bf16.mxu1 %v2653_v32  ;;  %v70_v31 = vld [vmem:[%s3949_s0 + $0xc0] sm:$0xff]  ;;  %v2731_v32 = vld [vmem:[%s3948_s1 + $0x150] ss:$8 sps:$4 sm:$0xff]  }
  0x21   :  { %2002 = vmatprep.subr.bf16.mxu0 %v2655_v33  ;;  %v2278_v33 = vcombine.high %v62_v30, %v70_v31  ;;  %v2751_v54 = vld [vmem:[%s3948_s1 + $0x184] ss:$8 sps:$4 sm:$0xff]  }
  0x22   :  { %v2754_v55 = vld [vmem:[%s3948_s1 + $0x584] ss:$8 sps:$4 sm:$0xff]  }
  0x23   :  { %1791 = vmatpush1.bf16.msra.mxu1 %v2657_v34  ;;  %v2734_v34 = vld [vmem:[%s3948_s1 + $0x550] ss:$8 sps:$4 sm:$0xff]  }
  0x24   :  { %2003 = vmatpush1.bf16.msra.mxu0 %v2658_v35  ;;  %1792 = vmatprep.subr.bf16.mxu1 %v2659_v36  ;;  %v66_v35 = vld [vmem:[%s3949_s0 + $0xa0] sm:$0xff] }
  0x25   :  { %2004 = vmatprep.subr.bf16.mxu0 %v2661_v37  ;;  %v74_v36 = vld [vmem:[%s3949_s0 + $0xe0] sm:$0xff]  ;;  %v2277_v37 = vcombine.low %v62_v30, %v70_v31  ;;  %v2805_v30 = vld [vmem:[%s3948_s1 + $0x214] ss:$8 sps:$4 sm:$0xff]  }
  0x26   :  { %v2808_v31 = vld [vmem:[%s3948_s1 + $0x614] ss:$8 sps:$4 sm:$0xff]  }
  0x27   :  { %1793 = vmatpush1.bf16.msra.mxu1 %v2663_v38  ;;  %v2739_v38 = vld [vmem:[%s3948_s1 + $0x164] ss:$8 sps:$4 sm:$0xff]  }
  0x28   :  { %2005 = vmatpush1.bf16.msra.mxu0 %v2664_v39  ;;  %1794 = vmatprep.subr.bf16.mxu1 %v2665_v40  ;;  %v2286_v39 = vcombine.high %v66_v35, %v74_v36  ;;  %v2285_v40 = vcombine.low %v66_v35, %v74_v36  ;;  %v2803_v36 = vld [vmem:[%s3948_s1 + $0x210] ss:$8 sps:$4 sm:$0xff]  }
  0x29   :  { %2006 = vmatprep.subr.bf16.mxu0 %v2667_v41  ;;  %v2742_v41 = vld [vmem:[%s3948_s1 + $0x564] ss:$8 sps:$4 sm:$0xff]  }
  0x2b   :  { %1795 = vmatpush1.bf16.msra.mxu1 %v2669_v42  ;;  %v2737_v42 = vld [vmem:[%s3948_s1 + $0x160] ss:$8 sps:$4 sm:$0xff]  }
  0x2c   :  { %2007 = vmatpush1.bf16.msra.mxu0 %v2670_v43  ;;  %1796 = vmatprep.subr.bf16.mxu1 %v2671_v44  ;;  %v2740_v43 = vld [vmem:[%s3948_s1 + $0x560] ss:$8 sps:$4 sm:$0xff]  }
  0x2d   :  { %2008 = vmatprep.subr.bf16.mxu0 %v2673_v45  ;;  %v3312_v44 = vld [vmem:[%s3949_s0 + $0x8] sm:$0xff] }
  0x2e   :  { %v3317_v45 = vld [vmem:[%s3949_s0 + $0x48] sm:$0xff] }
  0x2f   :  { %1797 = vmatpush1.bf16.msra.mxu1 %v2675_v46  ;;  %v2745_v46 = vld [vmem:[%s3948_s1 + $0x174] ss:$8 sps:$4 sm:$0xff]   ;;  %v2264_v48 = vcombine.high %v3312_v44, %v3317_v45 }
  0x30   :  { %2009 = vmatpush1.bf16.msra.mxu0 %v2676_v47  ;;  %1798 = vmatprep.subr.bf16.mxu1 %v2677_v50  ;;  %v2748_v47 = vld [vmem:[%s3948_s1 + $0x574] ss:$8 sps:$4 sm:$0xff]   ;;  %v3335_v50 = vld [vmem:[%s3949_s0 + $0x68] sm:$0xff] }
  0x31   :  { %2010 = vmatprep.subr.bf16.mxu0 %v2679_v51  ;;  %v2743_v51 = vld [vmem:[%s3948_s1 + $0x170] ss:$8 sps:$4 sm:$0xff]   ;;  %v2272_v53 = vcombine.high %v3330_v49, %v3335_v50 }
  0x33   :  { %1799 = vmatpush1.bf16.msra.mxu1 %v2681_v56  ;;  %v2749_v56 = vld [vmem:[%s3948_s1 + $0x180] ss:$8 sps:$4 sm:$0xff]  }
  0x34   :  { %2011 = vmatpush1.bf16.msra.mxu0 %v2682_v57  ;;  %1800 = vmatprep.subr.bf16.mxu1 %v2683_v58  ;;  %v2752_v57 = vld [vmem:[%s3948_s1 + $0x580] ss:$8 sps:$4 sm:$0xff]   ;;  %v2757_v58 = vld [vmem:[%s3948_s1 + $0x194] ss:$8 sps:$4 sm:$0xff]  }
  0x35   :  { %2012 = vmatprep.subr.bf16.mxu0 %v2685_v59  ;;  %v2760_v59 = vld [vmem:[%s3948_s1 + $0x594] ss:$8 sps:$4 sm:$0xff]  }
  0x37   :  { %1801 = vmatpush1.bf16.msra.mxu1 %v2687_v60  ;;  %v2755_v60 = vld [vmem:[%s3948_s1 + $0x190] ss:$8 sps:$4 sm:$0xff]  }
  0x38   :  { %2013 = vmatpush1.bf16.msra.mxu0 %v2688_v61  ;;  %1802 = vmatprep.subr.bf16.mxu1 %v2689_v62  ;;  %v2758_v61 = vld [vmem:[%s3948_s1 + $0x590] ss:$8 sps:$4 sm:$0xff]   ;;  %v2763_v62 = vld [vmem:[%s3948_s1 + $0x1a4] ss:$8 sps:$4 sm:$0xff]  }
  0x39   :  { %2014 = vmatprep.subr.bf16.mxu0 %v2691_v63  ;;  %v2766_v63 = vld [vmem:[%s3948_s1 + $0x5a4] ss:$8 sps:$4 sm:$0xff]  }
  0x3b   :  { %1803 = vmatpush1.bf16.msra.mxu1 %v2693_v0  ;;  %v2761_v0 = vld [vmem:[%s3948_s1 + $0x1a0] ss:$8 sps:$4 sm:$0xff]  }
  0x3c   :  { %2015 = vmatpush1.bf16.msra.mxu0 %v2694_v1  ;;  %1804 = vmatprep.subr.bf16.mxu1 %v2695_v2  ;;  %v2764_v1 = vld [vmem:[%s3948_s1 + $0x5a0] ss:$8 sps:$4 sm:$0xff]   ;;  %v2769_v2 = vld [vmem:[%s3948_s1 + $0x1b4] ss:$8 sps:$4 sm:$0xff]  }
  0x3d   :  { %2016 = vmatprep.subr.bf16.mxu0 %v2697_v3  ;;  %v2772_v3 = vld [vmem:[%s3948_s1 + $0x5b4] ss:$8 sps:$4 sm:$0xff]  }
  0x3f   :  { %1805 = vmatpush1.bf16.msra.mxu1 %v2699_v4  ;;  %v2767_v4 = vld [vmem:[%s3948_s1 + $0x1b0] ss:$8 sps:$4 sm:$0xff]  }
  0x40   :  { %2017 = vmatpush1.bf16.msra.mxu0 %v2700_v5  ;;  %1827 = vmatprep.subr.bf16.mxu1 %v2703_v6  ;;  %v2770_v5 = vld [vmem:[%s3948_s1 + $0x5b0] ss:$8 sps:$4 sm:$0xff]   ;;  %v2775_v6 = vld [vmem:[%s3948_s1 + $0x1c4] ss:$8 sps:$4 sm:$0xff]  }
  0x41   :  { %2039 = vmatprep.subr.bf16.mxu0 %v2706_v7  ;;  %v2778_v7 = vld [vmem:[%s3948_s1 + $0x5c4] ss:$8 sps:$4 sm:$0xff]  }
  0x42   :  { %1807 = vmatmul.mubr.bf16.vlgmr.msra.gmra.mrb[0].mxu1 %v2261_v8  ;;  %v2773_v8 = vld [vmem:[%s3948_s1 + $0x1c0] ss:$8 sps:$4 sm:$0xff]  }
  0x43   :  { %2019 = vmatmul.mubr.bf16.vlgmr.msra.gmra.mrb[0].mxu0 %v2269_v10  ;;  %1828 = vmatpush1.bf16.msra.mxu1 %v2701_v9  ;;  %v2776_v9 = vld [vmem:[%s3948_s1 + $0x5c0] ss:$8 sps:$4 sm:$0xff]   ;;  %v2781_v10 = vld [vmem:[%s3948_s1 + $0x1d4] ss:$8 sps:$4 sm:$0xff]  }
  0x44   :  { %2040 = vmatpush1.bf16.msra.mxu0 %v2704_v11  ;;  %1829 = vmatprep.subr.bf16.mxu1 %v2709_v12  ;;  %v2784_v11 = vld [vmem:[%s3948_s1 + $0x5d4] ss:$8 sps:$4 sm:$0xff]   ;;  %v2779_v12 = vld [vmem:[%s3948_s1 + $0x1d0] ss:$8 sps:$4 sm:$0xff]  }
  0x45   :  { %2041 = vmatprep.subr.bf16.mxu0 %v2712_v13  ;;  %1816 = vmatprep.mubr.bf16.mxu1 %v2278_v33  ;;  %v2782_v13 = vld [vmem:[%s3948_s1 + $0x5d0] ss:$8 sps:$4 sm:$0xff]   ;;  %v75_v33 = vld [vmem:[%s3949_s0 + $0xe8] sm:$0xff] }
  0x46   :  { %2028 = vmatprep.mubr.bf16.mxu0 %v2286_v39  ;;  %v2814_v39 = vld [vmem:[%s3948_s1 + $0x624] ss:$8 sps:$4 sm:$0xff]  }
  0x47   :  { %1830 = vmatpush1.bf16.msra.mxu1 %v2707_v14  ;;  %v2787_v14 = vld [vmem:[%s3948_s1 + $0x1e4] ss:$8 sps:$4 sm:$0xff]  }
  0x48   :  { %2042 = vmatpush1.bf16.msra.mxu0 %v2710_v15  ;;  %1831 = vmatprep.subr.bf16.mxu1 %v2715_v16  ;;  %v2790_v15 = vld [vmem:[%s3948_s1 + $0x5e4] ss:$8 sps:$4 sm:$0xff]   ;;  %v2785_v16 = vld [vmem:[%s3948_s1 + $0x1e0] ss:$8 sps:$4 sm:$0xff]  }
  0x49   :  { %2043 = vmatprep.subr.bf16.mxu0 %v2718_v17  ;;  %v2788_v17 = vld [vmem:[%s3948_s1 + $0x5e0] ss:$8 sps:$4 sm:$0xff]  }
  0x4a   :  { %1817 = vmatmul.mubr.bf16.gmra.mrb[4].mxu1 %v2277_v37  ;;  %v2806_v37 = vld [vmem:[%s3948_s1 + $0x610] ss:$8 sps:$4 sm:$0xff]  }
  0x4b   :  { %1832 = vmatpush1.bf16.msra.mxu1 %v2713_v18  ;;  %2029 = vmatmul.mubr.bf16.gmra.mrb[4].mxu0 %v2285_v40  ;;  %v2793_v18 = vld [vmem:[%s3948_s1 + $0x1f4] ss:$8 sps:$4 sm:$0xff]   ;;  %v2809_v40 = vld [vmem:[%s3948_s1 + $0x220] ss:$8 sps:$4 sm:$0xff]  }
  0x4c   :  { %2044 = vmatpush1.bf16.msra.mxu0 %v2716_v19  ;;  %1833 = vmatprep.subr.bf16.mxu1 %v2721_v20  ;;  %v2796_v19 = vld [vmem:[%s3948_s1 + $0x5f4] ss:$8 sps:$4 sm:$0xff]   ;;  %v2791_v20 = vld [vmem:[%s3948_s1 + $0x1f0] ss:$8 sps:$4 sm:$0xff]  }
  0x4d   :  { %2045 = vmatprep.subr.bf16.mxu0 %v2724_v21  ;;  %1859 = vmatprep.mubr.bf16.mxu1 %v2264_v48  ;;  %v2794_v21 = vld [vmem:[%s3948_s1 + $0x5f0] ss:$8 sps:$4 sm:$0xff]   ;;  %v2817_v48 = vld [vmem:[%s3948_s1 + $0x234] ss:$8 sps:$4 sm:$0xff]  }
  0x4e   :  { %2071 = vmatprep.mubr.bf16.mxu0 %v2272_v53  ;;  %v2818_v53 = vld [vmem:[%s3948_s1 + $0x630] ss:$8 sps:$4 sm:$0xff]  }
  0x4f   :  { %1834 = vmatpush1.bf16.msra.mxu1 %v2719_v22  ;;  %v2799_v22 = vld [vmem:[%s3948_s1 + $0x204] ss:$8 sps:$4 sm:$0xff]  }
  0x50   :  { %2046 = vmatpush1.bf16.msra.mxu0 %v2722_v23  ;;  %1835 = vmatprep.subr.bf16.mxu1 %v2727_v24  ;;  %v2802_v23 = vld [vmem:[%s3948_s1 + $0x604] ss:$8 sps:$4 sm:$0xff]   ;;  %v2797_v24 = vld [vmem:[%s3948_s1 + $0x200] ss:$8 sps:$4 sm:$0xff]  }
  0x51   :  { %2047 = vmatprep.subr.bf16.mxu0 %v2730_v25  ;;  %v2800_v25 = vld [vmem:[%s3948_s1 + $0x600] ss:$8 sps:$4 sm:$0xff]  }
  0x53   :  { %1836 = vmatpush1.bf16.msra.mxu1 %v2725_v26  ;;  %v63_v26 = vld [vmem:[%s3949_s0 + $0x88] sm:$0xff] }
  0x54   :  { %2048 = vmatpush1.bf16.msra.mxu0 %v2728_v27  ;;  %1837 = vmatprep.subr.bf16.mxu1 %v2733_v28  ;;  %v2263_v27 = vcombine.low %v3312_v44, %v3317_v45  ;;  %v2271_v28 = vcombine.low %v3330_v49, %v3335_v50  ;;  %v3501_v45 = vld [vmem:[%s3949_s0 + $0x50] sm:$0xff] }
  0x55   :  { %2049 = vmatprep.subr.bf16.mxu0 %v2736_v29  ;;  %v71_v29 = vld [vmem:[%s3949_s0 + $0xc8] sm:$0xff]  ;;  %v2820_v49 = vld [vmem:[%s3948_s1 + $0x634] ss:$8 sps:$4 sm:$0xff]  }
  0x57   :  { %1838 = vmatpush1.bf16.msra.mxu1 %v2731_v32  ;;  %v67_v32 = vld [vmem:[%s3949_s0 + $0xa8] sm:$0xff] }
  0x58   :  { %2050 = vmatpush1.bf16.msra.mxu0 %v2734_v34  ;;  %1839 = vmatprep.subr.bf16.mxu1 %v2739_v38  ;;  %v2280_v34 = vcombine.high %v63_v26, %v71_v29  ;;  %v2288_v35 = vcombine.high %v67_v32, %v75_v33  ;;  %v2811_v38 = vld [vmem:[%s3948_s1 + $0x224] ss:$8 sps:$4 sm:$0xff]   ;;  %v2287_v44 = vcombine.low %v67_v32, %v75_v33  ;;  %v2881_v32 = vld [vmem:[%s3948_s1 + $0x2e0] ss:$8 sps:$4 sm:$0xff]  }
  0x59   :  { %2051 = vmatprep.subr.bf16.mxu0 %v2742_v41  ;;  %v2812_v41 = vld [vmem:[%s3948_s1 + $0x620] ss:$8 sps:$4 sm:$0xff]  }
  0x5a   :  { %v2884_v33 = vld [vmem:[%s3948_s1 + $0x6e0] ss:$8 sps:$4 sm:$0xff]  }
  0x5b   :  { %1840 = vmatpush1.bf16.msra.mxu1 %v2737_v42  ;;  %v3496_v42 = vld [vmem:[%s3949_s0 + $0x10] sm:$0xff] }
  0x5c   :  { %2052 = vmatpush1.bf16.msra.mxu0 %v2740_v43  ;;  %1841 = vmatprep.subr.bf16.mxu1 %v2745_v46  ;;  %v2279_v43 = vcombine.low %v63_v26, %v71_v29  ;;  %v3506_v46 = vld [vmem:[%s3949_s0 + $0x30] sm:$0xff]  ;;  %v2266_v50 = vcombine.high %v3496_v42, %v3501_v45 }
  0x5d   :  { %2053 = vmatprep.subr.bf16.mxu0 %v2748_v47  ;;  %v3511_v47 = vld [vmem:[%s3949_s0 + $0x70] sm:$0xff] }
  0x5e   :  { %v2877_v26 = vld [vmem:[%s3948_s1 + $0x2d4] ss:$8 sps:$4 sm:$0xff]   ;;  %v2878_v29 = vld [vmem:[%s3948_s1 + $0x6d0] ss:$8 sps:$4 sm:$0xff]  }
  0x5f   :  { %1842 = vmatpush1.bf16.msra.mxu1 %v2743_v51  ;;  %v2274_v51 = vcombine.high %v3506_v46, %v3511_v47 }
  0x60   :  { %2054 = vmatpush1.bf16.msra.mxu0 %v2746_v52  ;;  %1843 = vmatprep.subr.bf16.mxu1 %v2751_v54  ;;  %v2815_v52 = vld [vmem:[%s3948_s1 + $0x230] ss:$8 sps:$4 sm:$0xff]   ;;  %v2823_v54 = vld [vmem:[%s3948_s1 + $0x244] ss:$8 sps:$4 sm:$0xff]  }
  0x61   :  { %2055 = vmatprep.subr.bf16.mxu0 %v2754_v55  ;;  %v2826_v55 = vld [vmem:[%s3948_s1 + $0x644] ss:$8 sps:$4 sm:$0xff]  }
  0x63   :  { %1844 = vmatpush1.bf16.msra.mxu1 %v2749_v56  ;;  %v2821_v56 = vld [vmem:[%s3948_s1 + $0x240] ss:$8 sps:$4 sm:$0xff]  }
  0x64   :  { %2056 = vmatpush1.bf16.msra.mxu0 %v2752_v57  ;;  %1845 = vmatprep.subr.bf16.mxu1 %v2757_v58  ;;  %v2824_v57 = vld [vmem:[%s3948_s1 + $0x640] ss:$8 sps:$4 sm:$0xff]   ;;  %v2829_v58 = vld [vmem:[%s3948_s1 + $0x254] ss:$8 sps:$4 sm:$0xff]  }
  0x65   :  { %2057 = vmatprep.subr.bf16.mxu0 %v2760_v59  ;;  %v2832_v59 = vld [vmem:[%s3948_s1 + $0x654] ss:$8 sps:$4 sm:$0xff]  }
  0x67   :  { %1846 = vmatpush1.bf16.msra.mxu1 %v2755_v60  ;;  %v2827_v60 = vld [vmem:[%s3948_s1 + $0x250] ss:$8 sps:$4 sm:$0xff]  }
  0x68   :  { %2058 = vmatpush1.bf16.msra.mxu0 %v2758_v61  ;;  %1847 = vmatprep.subr.bf16.mxu1 %v2763_v62  ;;  %v2830_v61 = vld [vmem:[%s3948_s1 + $0x650] ss:$8 sps:$4 sm:$0xff]   ;;  %v2835_v62 = vld [vmem:[%s3948_s1 + $0x264] ss:$8 sps:$4 sm:$0xff]  }
  0x69   :  { %2059 = vmatprep.subr.bf16.mxu0 %v2766_v63  ;;  %v2838_v63 = vld [vmem:[%s3948_s1 + $0x664] ss:$8 sps:$4 sm:$0xff]  }
  0x6b   :  { %1848 = vmatpush1.bf16.msra.mxu1 %v2761_v0  ;;  %v2833_v0 = vld [vmem:[%s3948_s1 + $0x260] ss:$8 sps:$4 sm:$0xff]  }
  0x6c   :  { %2060 = vmatpush1.bf16.msra.mxu0 %v2764_v1  ;;  %1849 = vmatprep.subr.bf16.mxu1 %v2769_v2  ;;  %v2836_v1 = vld [vmem:[%s3948_s1 + $0x660] ss:$8 sps:$4 sm:$0xff]   ;;  %v2841_v2 = vld [vmem:[%s3948_s1 + $0x274] ss:$8 sps:$4 sm:$0xff]  }
  0x6d   :  { %2061 = vmatprep.subr.bf16.mxu0 %v2772_v3  ;;  %v2844_v3 = vld [vmem:[%s3948_s1 + $0x674] ss:$8 sps:$4 sm:$0xff]  }
  0x6f   :  { %1850 = vmatpush1.bf16.msra.mxu1 %v2767_v4  ;;  %v2839_v4 = vld [vmem:[%s3948_s1 + $0x270] ss:$8 sps:$4 sm:$0xff]  }
  0x70   :  { %2062 = vmatpush1.bf16.msra.mxu0 %v2770_v5  ;;  %1851 = vmatprep.subr.bf16.mxu1 %v2775_v6  ;;  %v2842_v5 = vld [vmem:[%s3948_s1 + $0x670] ss:$8 sps:$4 sm:$0xff]   ;;  %v2847_v6 = vld [vmem:[%s3948_s1 + $0x284] ss:$8 sps:$4 sm:$0xff]  }
  0x71   :  { %2063 = vmatprep.subr.bf16.mxu0 %v2778_v7  ;;  %v2850_v7 = vld [vmem:[%s3948_s1 + $0x684] ss:$8 sps:$4 sm:$0xff]  }
  0x73   :  { %1852 = vmatpush1.bf16.msra.mxu1 %v2773_v8  ;;  %v2845_v8 = vld [vmem:[%s3948_s1 + $0x280] ss:$8 sps:$4 sm:$0xff]  }
  0x74   :  { %2064 = vmatpush1.bf16.msra.mxu0 %v2776_v9  ;;  %1853 = vmatprep.subr.bf16.mxu1 %v2781_v10  ;;  %v2848_v9 = vld [vmem:[%s3948_s1 + $0x680] ss:$8 sps:$4 sm:$0xff]   ;;  %v2853_v10 = vld [vmem:[%s3948_s1 + $0x294] ss:$8 sps:$4 sm:$0xff]  }
  0x75   :  { %2065 = vmatprep.subr.bf16.mxu0 %v2784_v11  ;;  %v2856_v11 = vld [vmem:[%s3948_s1 + $0x694] ss:$8 sps:$4 sm:$0xff]  }
  0x77   :  { %1854 = vmatpush1.bf16.msra.mxu1 %v2779_v12  ;;  %v2851_v12 = vld [vmem:[%s3948_s1 + $0x290] ss:$8 sps:$4 sm:$0xff]  }
  0x78   :  { %2066 = vmatpush1.bf16.msra.mxu0 %v2782_v13  ;;  %1855 = vmatprep.subr.bf16.mxu1 %v2787_v14  ;;  %v2854_v13 = vld [vmem:[%s3948_s1 + $0x690] ss:$8 sps:$4 sm:$0xff]   ;;  %v2859_v14 = vld [vmem:[%s3948_s1 + $0x2a4] ss:$8 sps:$4 sm:$0xff]  }
  0x79   :  { %2067 = vmatprep.subr.bf16.mxu0 %v2790_v15  ;;  %v2862_v15 = vld [vmem:[%s3948_s1 + $0x6a4] ss:$8 sps:$4 sm:$0xff]  }
  0x7b   :  { %1856 = vmatpush1.bf16.msra.mxu1 %v2785_v16  ;;  %v2857_v16 = vld [vmem:[%s3948_s1 + $0x2a0] ss:$8 sps:$4 sm:$0xff]  }
  0x7c   :  { %2068 = vmatpush1.bf16.msra.mxu0 %v2788_v17  ;;  %1857 = vmatprep.subr.bf16.mxu1 %v2793_v18  ;;  %v2860_v17 = vld [vmem:[%s3948_s1 + $0x6a0] ss:$8 sps:$4 sm:$0xff]   ;;  %v2865_v18 = vld [vmem:[%s3948_s1 + $0x2b4] ss:$8 sps:$4 sm:$0xff]  }
  0x7d   :  { %2069 = vmatprep.subr.bf16.mxu0 %v2796_v19  ;;  %v2868_v19 = vld [vmem:[%s3948_s1 + $0x6b4] ss:$8 sps:$4 sm:$0xff]  }
  0x7f   :  { %1858 = vmatpush1.bf16.msra.mxu1 %v2791_v20  ;;  %v2863_v20 = vld [vmem:[%s3948_s1 + $0x2b0] ss:$8 sps:$4 sm:$0xff]  }
  0x80   :  { %2070 = vmatpush1.bf16.msra.mxu0 %v2794_v21  ;;  %1880 = vmatprep.subr.bf16.mxu1 %v2799_v22  ;;  %v2866_v21 = vld [vmem:[%s3948_s1 + $0x6b0] ss:$8 sps:$4 sm:$0xff]   ;;  %v2871_v22 = vld [vmem:[%s3948_s1 + $0x2c4] ss:$8 sps:$4 sm:$0xff]  }
  0x81   :  { %2092 = vmatprep.subr.bf16.mxu0 %v2802_v23  ;;  %v2874_v23 = vld [vmem:[%s3948_s1 + $0x6c4] ss:$8 sps:$4 sm:$0xff]  }
  0x82   :  { %1860 = vmatmul.mubr.bf16.vlgmr.msra.gmra.mrb[0].mxu1 %v2263_v27  ;;  %v2880_v27 = vld [vmem:[%s3948_s1 + $0x6d4] ss:$8 sps:$4 sm:$0xff]  }
  0x83   :  { %2072 = vmatmul.mubr.bf16.vlgmr.msra.gmra.mrb[0].mxu0 %v2271_v28  ;;  %1881 = vmatpush1.bf16.msra.mxu1 %v2797_v24  ;;  %v2869_v24 = vld [vmem:[%s3948_s1 + $0x2c0] ss:$8 sps:$4 sm:$0xff]   ;;  %v2875_v28 = vld [vmem:[%s3948_s1 + $0x2d0] ss:$8 sps:$4 sm:$0xff]  }
  0x84   :  { %2093 = vmatpush1.bf16.msra.mxu0 %v2800_v25  ;;  %1882 = vmatprep.subr.bf16.mxu1 %v2805_v30  ;;  %v2872_v25 = vld [vmem:[%s3948_s1 + $0x6c0] ss:$8 sps:$4 sm:$0xff]   ;;  %v2883_v30 = vld [vmem:[%s3948_s1 + $0x2e4] ss:$8 sps:$4 sm:$0xff]  }
  0x85   :  { %2094 = vmatprep.subr.bf16.mxu0 %v2808_v31  ;;  %1869 = vmatprep.mubr.bf16.mxu1 %v2280_v34  ;;  %v2886_v31 = vld [vmem:[%s3948_s1 + $0x6e4] ss:$8 sps:$4 sm:$0xff]   ;;  %v2889_v34 = vld [vmem:[%s3948_s1 + $0x2f4] ss:$8 sps:$4 sm:$0xff]  }
  0x86   :  { %2081 = vmatprep.mubr.bf16.mxu0 %v2288_v35  ;;  %v2892_v35 = vld [vmem:[%s3948_s1 + $0x6f4] ss:$8 sps:$4 sm:$0xff]  }
  0x87   :  { %1883 = vmatpush1.bf16.msra.mxu1 %v2803_v36  ;;  %v2887_v36 = vld [vmem:[%s3948_s1 + $0x2f0] ss:$8 sps:$4 sm:$0xff]  }
  0x88   :  { %2095 = vmatpush1.bf16.msra.mxu0 %v2806_v37  ;;  %1884 = vmatprep.subr.bf16.mxu1 %v2811_v38  ;;  %v2890_v37 = vld [vmem:[%s3948_s1 + $0x6f0] ss:$8 sps:$4 sm:$0xff]   ;;  %v2895_v38 = vld [vmem:[%s3948_s1 + $0x304] ss:$8 sps:$4 sm:$0xff]  }
  0x89   :  { %2096 = vmatprep.subr.bf16.mxu0 %v2814_v39  ;;  %v2898_v39 = vld [vmem:[%s3948_s1 + $0x704] ss:$8 sps:$4 sm:$0xff]  }
  0x8a   :  { %1870 = vmatmul.mubr.bf16.gmra.mrb[4].mxu1 %v2279_v43  ;;  %v2273_v43 = vcombine.low %v3506_v46, %v3511_v47  ;;  %v2901_v46 = vld [vmem:[%s3948_s1 + $0x314] ss:$8 sps:$4 sm:$0xff]  }
  0x8b   :  { %2082 = vmatmul.mubr.bf16.gmra.mrb[4].mxu0 %v2287_v44  ;;  %1885 = vmatpush1.bf16.msra.mxu1 %v2809_v40  ;;  %v64_v40 = vld [vmem:[%s3949_s0 + $0x90] sm:$0xff] }
  0x8c   :  { %2097 = vmatpush1.bf16.msra.mxu0 %v2812_v41  ;;  %1886 = vmatprep.subr.bf16.mxu1 %v2817_v48  ;;  %v2265_v41 = vcombine.low %v3496_v42, %v3501_v45  ;;  %v72_v44 = vld [vmem:[%s3949_s0 + $0xd0] sm:$0xff]  ;;  %v2893_v42 = vld [vmem:[%s3948_s1 + $0x300] ss:$8 sps:$4 sm:$0xff]  }
  0x8d   :  { %2098 = vmatprep.subr.bf16.mxu0 %v2820_v49  ;;  %1912 = vmatprep.mubr.bf16.mxu1 %v2266_v50  ;;  %v68_v48 = vld [vmem:[%s3949_s0 + $0xb0] sm:$0xff]  ;;  %v2896_v45 = vld [vmem:[%s3948_s1 + $0x700] ss:$8 sps:$4 sm:$0xff]   ;;  %v2282_v50 = vcombine.high %v64_v40, %v72_v44 }
  0x8e   :  { %2124 = vmatprep.mubr.bf16.mxu0 %v2274_v51  ;;  %v76_v49 = vld [vmem:[%s3949_s0 + $0xf0] sm:$0xff] }
  0x8f   :  { %1887 = vmatpush1.bf16.msra.mxu1 %v2815_v52  ;;  %v2904_v47 = vld [vmem:[%s3948_s1 + $0x714] ss:$8 sps:$4 sm:$0xff]   ;;  %v2290_v51 = vcombine.high %v68_v48, %v76_v49  ;;  %v2899_v52 = vld [vmem:[%s3948_s1 + $0x310] ss:$8 sps:$4 sm:$0xff]  }
  0x90   :  { %2099 = vmatpush1.bf16.msra.mxu0 %v2818_v53  ;;  %1888 = vmatprep.subr.bf16.mxu1 %v2823_v54  ;;  %v2902_v53 = vld [vmem:[%s3948_s1 + $0x710] ss:$8 sps:$4 sm:$0xff]   ;;  %v2907_v54 = vld [vmem:[%s3948_s1 + $0x324] ss:$8 sps:$4 sm:$0xff]  }
  0x91   :  { %2100 = vmatprep.subr.bf16.mxu0 %v2826_v55  ;;  %v2910_v55 = vld [vmem:[%s3948_s1 + $0x724] ss:$8 sps:$4 sm:$0xff]  }
  0x93   :  { %1889 = vmatpush1.bf16.msra.mxu1 %v2821_v56  ;;  %v3722_v56 = vld [vmem:[%s3949_s0 + $0x18] sm:$0xff] }
  0x94   :  { %2101 = vmatpush1.bf16.msra.mxu0 %v2824_v57  ;;  %1890 = vmatprep.subr.bf16.mxu1 %v2829_v58  ;;  %v2281_v57 = vcombine.low %v64_v40, %v72_v44  ;;  %v2289_v58 = vcombine.low %v68_v48, %v76_v49  ;;  %v2965_v40 = vld [vmem:[%s3948_s1 + $0x3c0] ss:$8 sps:$4 sm:$0xff]   ;;  %v2976_v44 = vld [vmem:[%s3948_s1 + $0x7d4] ss:$8 sps:$4 sm:$0xff]   ;;  %v2971_v48 = vld [vmem:[%s3948_s1 + $0x3d0] ss:$8 sps:$4 sm:$0xff]  }
  0x95   :  { %2102 = vmatprep.subr.bf16.mxu0 %v2832_v59  ;;  %v3727_v59 = vld [vmem:[%s3949_s0 + $0x58] sm:$0xff] }
  0x96   :  { %v2974_v49 = vld [vmem:[%s3948_s1 + $0x7d0] ss:$8 sps:$4 sm:$0xff]  }
  0x97   :  { %1891 = vmatpush1.bf16.msra.mxu1 %v2827_v60  ;;  %v3732_v60 = vld [vmem:[%s3949_s0 + $0x38] sm:$0xff] }
  0x98   :  { %2103 = vmatpush1.bf16.msra.mxu0 %v2830_v61  ;;  %1892 = vmatprep.subr.bf16.mxu1 %v2835_v62  ;;  %v3737_v61 = vld [vmem:[%s3949_s0 + $0x78] sm:$0xff]  ;;  %v2905_v62 = vld [vmem:[%s3948_s1 + $0x320] ss:$8 sps:$4 sm:$0xff]  }
  0x99   :  { %2104 = vmatprep.subr.bf16.mxu0 %v2838_v63  ;;  %v2908_v63 = vld [vmem:[%s3948_s1 + $0x720] ss:$8 sps:$4 sm:$0xff]  }
  0x9b   :  { %1893 = vmatpush1.bf16.msra.mxu1 %v2833_v0  ;;  %v2913_v0 = vld [vmem:[%s3948_s1 + $0x334] ss:$8 sps:$4 sm:$0xff]  }
  0x9c   :  { %2105 = vmatpush1.bf16.msra.mxu0 %v2836_v1  ;;  %1894 = vmatprep.subr.bf16.mxu1 %v2841_v2  ;;  %v2916_v1 = vld [vmem:[%s3948_s1 + $0x734] ss:$8 sps:$4 sm:$0xff]   ;;  %v2268_v2 = vcombine.high %v3722_v56, %v3727_v59 }
  0x9d   :  { %2106 = vmatprep.subr.bf16.mxu0 %v2844_v3  ;;  %v2276_v3 = vcombine.high %v3732_v60, %v3737_v61 }
  0x9f   :  { %1895 = vmatpush1.bf16.msra.mxu1 %v2839_v4  ;;  %v2911_v4 = vld [vmem:[%s3948_s1 + $0x330] ss:$8 sps:$4 sm:$0xff]  }
  0xa0   :  { %2107 = vmatpush1.bf16.msra.mxu0 %v2842_v5  ;;  %1896 = vmatprep.subr.bf16.mxu1 %v2847_v6  ;;  %v2914_v5 = vld [vmem:[%s3948_s1 + $0x730] ss:$8 sps:$4 sm:$0xff]   ;;  %v2919_v6 = vld [vmem:[%s3948_s1 + $0x344] ss:$8 sps:$4 sm:$0xff]  }
  0xa1   :  { %2108 = vmatprep.subr.bf16.mxu0 %v2850_v7  ;;  %v2922_v7 = vld [vmem:[%s3948_s1 + $0x744] ss:$8 sps:$4 sm:$0xff]  }
  0xa3   :  { %1897 = vmatpush1.bf16.msra.mxu1 %v2845_v8  ;;  %v2917_v8 = vld [vmem:[%s3948_s1 + $0x340] ss:$8 sps:$4 sm:$0xff]  }
  0xa4   :  { %2109 = vmatpush1.bf16.msra.mxu0 %v2848_v9  ;;  %1898 = vmatprep.subr.bf16.mxu1 %v2853_v10  ;;  %v2920_v9 = vld [vmem:[%s3948_s1 + $0x740] ss:$8 sps:$4 sm:$0xff]   ;;  %v2925_v10 = vld [vmem:[%s3948_s1 + $0x354] ss:$8 sps:$4 sm:$0xff]  }
  0xa5   :  { %2110 = vmatprep.subr.bf16.mxu0 %v2856_v11  ;;  %v2928_v11 = vld [vmem:[%s3948_s1 + $0x754] ss:$8 sps:$4 sm:$0xff]  }
  0xa7   :  { %1899 = vmatpush1.bf16.msra.mxu1 %v2851_v12  ;;  %v2923_v12 = vld [vmem:[%s3948_s1 + $0x350] ss:$8 sps:$4 sm:$0xff]  }
  0xa8   :  { %2111 = vmatpush1.bf16.msra.mxu0 %v2854_v13  ;;  %1900 = vmatprep.subr.bf16.mxu1 %v2859_v14  ;;  %v2926_v13 = vld [vmem:[%s3948_s1 + $0x750] ss:$8 sps:$4 sm:$0xff]   ;;  %v2931_v14 = vld [vmem:[%s3948_s1 + $0x364] ss:$8 sps:$4 sm:$0xff]  }
  0xa9   :  { %2112 = vmatprep.subr.bf16.mxu0 %v2862_v15  ;;  %v2934_v15 = vld [vmem:[%s3948_s1 + $0x764] ss:$8 sps:$4 sm:$0xff]  }
  0xab   :  { %1901 = vmatpush1.bf16.msra.mxu1 %v2857_v16  ;;  %v2929_v16 = vld [vmem:[%s3948_s1 + $0x360] ss:$8 sps:$4 sm:$0xff]  }
  0xac   :  { %2113 = vmatpush1.bf16.msra.mxu0 %v2860_v17  ;;  %1902 = vmatprep.subr.bf16.mxu1 %v2865_v18  ;;  %v2932_v17 = vld [vmem:[%s3948_s1 + $0x760] ss:$8 sps:$4 sm:$0xff]   ;;  %v2937_v18 = vld [vmem:[%s3948_s1 + $0x374] ss:$8 sps:$4 sm:$0xff]  }
  0xad   :  { %2114 = vmatprep.subr.bf16.mxu0 %v2868_v19  ;;  %v2940_v19 = vld [vmem:[%s3948_s1 + $0x774] ss:$8 sps:$4 sm:$0xff]  }
  0xaf   :  { %1903 = vmatpush1.bf16.msra.mxu1 %v2863_v20  ;;  %v2935_v20 = vld [vmem:[%s3948_s1 + $0x370] ss:$8 sps:$4 sm:$0xff]  }
  0xb0   :  { %2115 = vmatpush1.bf16.msra.mxu0 %v2866_v21  ;;  %1904 = vmatprep.subr.bf16.mxu1 %v2871_v22  ;;  %v2938_v21 = vld [vmem:[%s3948_s1 + $0x770] ss:$8 sps:$4 sm:$0xff]   ;;  %v2943_v22 = vld [vmem:[%s3948_s1 + $0x384] ss:$8 sps:$4 sm:$0xff]  }
  0xb1   :  { %2116 = vmatprep.subr.bf16.mxu0 %v2874_v23  ;;  %v2946_v23 = vld [vmem:[%s3948_s1 + $0x784] ss:$8 sps:$4 sm:$0xff]  }
  0xb3   :  { %1905 = vmatpush1.bf16.msra.mxu1 %v2869_v24  ;;  %v2941_v24 = vld [vmem:[%s3948_s1 + $0x380] ss:$8 sps:$4 sm:$0xff]  }
  0xb4   :  { %2117 = vmatpush1.bf16.msra.mxu0 %v2872_v25  ;;  %1906 = vmatprep.subr.bf16.mxu1 %v2877_v26  ;;  %v2944_v25 = vld [vmem:[%s3948_s1 + $0x780] ss:$8 sps:$4 sm:$0xff]   ;;  %v2949_v26 = vld [vmem:[%s3948_s1 + $0x394] ss:$8 sps:$4 sm:$0xff]  }
  0xb5   :  { %2118 = vmatprep.subr.bf16.mxu0 %v2880_v27  ;;  %v2952_v27 = vld [vmem:[%s3948_s1 + $0x794] ss:$8 sps:$4 sm:$0xff]  }
  0xb7   :  { %1907 = vmatpush1.bf16.msra.mxu1 %v2875_v28  ;;  %v2947_v28 = vld [vmem:[%s3948_s1 + $0x390] ss:$8 sps:$4 sm:$0xff]  }
  0xb8   :  { %2119 = vmatpush1.bf16.msra.mxu0 %v2878_v29  ;;  %1908 = vmatprep.subr.bf16.mxu1 %v2883_v30  ;;  %v2950_v29 = vld [vmem:[%s3948_s1 + $0x790] ss:$8 sps:$4 sm:$0xff]   ;;  %v2955_v30 = vld [vmem:[%s3948_s1 + $0x3a4] ss:$8 sps:$4 sm:$0xff]  }
  0xb9   :  { %2120 = vmatprep.subr.bf16.mxu0 %v2886_v31  ;;  %v2958_v31 = vld [vmem:[%s3948_s1 + $0x7a4] ss:$8 sps:$4 sm:$0xff]  }
  0xbb   :  { %1909 = vmatpush1.bf16.msra.mxu1 %v2881_v32  ;;  %v2953_v32 = vld [vmem:[%s3948_s1 + $0x3a0] ss:$8 sps:$4 sm:$0xff]  }
  0xbc   :  { %2121 = vmatpush1.bf16.msra.mxu0 %v2884_v33  ;;  %1910 = vmatprep.subr.bf16.mxu1 %v2889_v34  ;;  %v2956_v33 = vld [vmem:[%s3948_s1 + $0x7a0] ss:$8 sps:$4 sm:$0xff]   ;;  %v2961_v34 = vld [vmem:[%s3948_s1 + $0x3b4] ss:$8 sps:$4 sm:$0xff]  }
  0xbd   :  { %2122 = vmatprep.subr.bf16.mxu0 %v2892_v35  ;;  %v2964_v35 = vld [vmem:[%s3948_s1 + $0x7b4] ss:$8 sps:$4 sm:$0xff]  }
  0xbf   :  { %1911 = vmatpush1.bf16.msra.mxu1 %v2887_v36  ;;  %v2959_v36 = vld [vmem:[%s3948_s1 + $0x3b0] ss:$8 sps:$4 sm:$0xff]  }
  0xc0   :  { %2123 = vmatpush1.bf16.msra.mxu0 %v2890_v37  ;;  %1933 = vmatprep.subr.bf16.mxu1 %v2895_v38  ;;  %v2962_v37 = vld [vmem:[%s3948_s1 + $0x7b0] ss:$8 sps:$4 sm:$0xff]   ;;  %v2967_v38 = vld [vmem:[%s3948_s1 + $0x3c4] ss:$8 sps:$4 sm:$0xff]  }
  0xc1   :  { %2145 = vmatprep.subr.bf16.mxu0 %v2898_v39  ;;  %v2970_v39 = vld [vmem:[%s3948_s1 + $0x7c4] ss:$8 sps:$4 sm:$0xff]  }
  0xc2   :  { %1913 = vmatmul.mubr.bf16.vlgmr.msra.gmra.mrb[0].mxu1 %v2265_v41  ;;  %v2968_v41 = vld [vmem:[%s3948_s1 + $0x7c0] ss:$8 sps:$4 sm:$0xff]  }
  0xc3   :  { %2125 = vmatmul.mubr.bf16.vlgmr.msra.gmra.mrb[0].mxu0 %v2273_v43  ;;  %1934 = vmatpush1.bf16.msra.mxu1 %v2893_v42  ;;  %v2973_v43 = vld [vmem:[%s3948_s1 + $0x3d4] ss:$8 sps:$4 sm:$0xff]   ;;  %v2979_v42 = vld [vmem:[%s3948_s1 + $0x3e4] ss:$8 sps:$4 sm:$0xff]  }
  0xc4   :  { %2146 = vmatpush1.bf16.msra.mxu0 %v2896_v45  ;;  %1935 = vmatprep.subr.bf16.mxu1 %v2901_v46  ;;  %v2982_v45 = vld [vmem:[%s3948_s1 + $0x7e4] ss:$8 sps:$4 sm:$0xff]   ;;  %v2977_v46 = vld [vmem:[%s3948_s1 + $0x3e0] ss:$8 sps:$4 sm:$0xff]  }
  0xc5   :  { %2147 = vmatprep.subr.bf16.mxu0 %v2904_v47  ;;  %1922 = vmatprep.mubr.bf16.mxu1 %v2282_v50  ;;  %v2980_v47 = vld [vmem:[%s3948_s1 + $0x7e0] ss:$8 sps:$4 sm:$0xff]   ;;  %v2985_v50 = vld [vmem:[%s3948_s1 + $0x3f4] ss:$8 sps:$4 sm:$0xff]  }
  0xc6   :  { %2134 = vmatprep.mubr.bf16.mxu0 %v2290_v51  ;;  %v2988_v51 = vld [vmem:[%s3948_s1 + $0x7f4] ss:$8 sps:$4 sm:$0xff]  }
  0xc7   :  { %1936 = vmatpush1.bf16.msra.mxu1 %v2899_v52  ;;  %v2983_v52 = vld [vmem:[%s3948_s1 + $0x3f0] ss:$8 sps:$4 sm:$0xff]  }
  0xc8   :  { %2148 = vmatpush1.bf16.msra.mxu0 %v2902_v53  ;;  %1937 = vmatprep.subr.bf16.mxu1 %v2907_v54  ;;  %v2986_v53 = vld [vmem:[%s3948_s1 + $0x7f0] ss:$8 sps:$4 sm:$0xff]  }
  0xc9   :  { %2149 = vmatprep.subr.bf16.mxu0 %v2910_v55  ;;  %v65_v54 = vld [vmem:[%s3949_s0 + $0x98] sm:$0xff] }
  0xca   :  { %1923 = vmatmul.mubr.bf16.gmra.mrb[4].mxu1 %v2281_v57  ;;  %v73_v55 = vld [vmem:[%s3949_s0 + $0xd8] sm:$0xff] }
  0xcb   :  { %2135 = vmatmul.mubr.bf16.gmra.mrb[4].mxu0 %v2289_v58  ;;  %1938 = vmatpush1.bf16.msra.mxu1 %v2905_v62  ;;  %v69_v57 = vld [vmem:[%s3949_s0 + $0xb8] sm:$0xff]  ;;  %v2267_v62 = vcombine.low %v3722_v56, %v3727_v59  ;;  %v18_v56 = vld [vmem:[%s3950_s2] sm:$0x3] }
  0xcc   :  { %2150 = vmatpush1.bf16.msra.mxu0 %v2908_v63  ;;  %1939 = vmatprep.subr.bf16.mxu1 %v2913_v0  ;;  %v77_v58 = vld [vmem:[%s3949_s0 + $0xf8] sm:$0xff]  ;;  %v2275_v63 = vcombine.low %v3732_v60, %v3737_v61  ;;  %v2284_v0 = vcombine.high %v65_v54, %v73_v55 }
  0xcd   :  { %2151 = vmatprep.subr.bf16.mxu0 %v2916_v1  ;;  %1965 = vmatprep.mubr.bf16.mxu1 %v2268_v2  ;;  %v2292_v1 = vcombine.high %v69_v57, %v77_v58  ;;  %v2283_v2 = vcombine.low %v65_v54, %v73_v55 }
  0xce   :  { %2177 = vmatprep.mubr.bf16.mxu0 %v2276_v3  ;;  %v2291_v3 = vcombine.low %v69_v57, %v77_v58 }
  0xcf   :  { %1940 = vmatpush1.bf16.msra.mxu1 %v2911_v4  ;;  %v20_v4 = vlaneseq }
  0xd0   :  { %2152 = vmatpush1.bf16.msra.mxu0 %v2914_v5  ;;  %1941 = vmatprep.subr.bf16.mxu1 %v2919_v6 }
  0xd1   :  { %2153 = vmatprep.subr.bf16.mxu0 %v2922_v7  ;;  %v21_v5 = vshrl.u32 %v20_v4, 7 }
  0xd3   :  { %1942 = vmatpush1.bf16.msra.mxu1 %v2917_v8  ;;  %v22_v6 = vsub.s32 0, %v21_v5  ;;  %v26_v59 = vsub.s32 1, %v21_v5 }
  0xd4   :  { %2154 = vmatpush1.bf16.msra.mxu0 %v2920_v9  ;;  %1943 = vmatprep.subr.bf16.mxu1 %v2925_v10 }
  0xd5   :  { %2155 = vmatprep.subr.bf16.mxu0 %v2928_v11  ;;  %v23_v60 = vrot.slane %v18_v56, %v22_v6  ;;  %v27_v8 = vrot.slane %v18_v56, %v26_v59 }
  0xd7   :  { %1944 = vmatpush1.bf16.msra.mxu1 %v2923_v12 }
  0xd8   :  { %2156 = vmatpush1.bf16.msra.mxu0 %v2926_v13  ;;  %1945 = vmatprep.subr.bf16.mxu1 %v2931_v14 }
  0xd9   :  { %2157 = vmatprep.subr.bf16.mxu0 %v2934_v15 }
  0xdb   :  { %1946 = vmatpush1.bf16.msra.mxu1 %v2929_v16 }
  0xdc   :  { %2158 = vmatpush1.bf16.msra.mxu0 %v2932_v17  ;;  %1947 = vmatprep.subr.bf16.mxu1 %v2937_v18 }
  0xdd   :  { %2159 = vmatprep.subr.bf16.mxu0 %v2940_v19 }
  0xdf   :  { %1948 = vmatpush1.bf16.msra.mxu1 %v2935_v20 }
  0xe0   :  { %2160 = vmatpush1.bf16.msra.mxu0 %v2938_v21  ;;  %1949 = vmatprep.subr.bf16.mxu1 %v2943_v22 }
  0xe1   :  { %2161 = vmatprep.subr.bf16.mxu0 %v2946_v23 }
  0xe3   :  { %1950 = vmatpush1.bf16.msra.mxu1 %v2941_v24 }
  0xe4   :  { %2162 = vmatpush1.bf16.msra.mxu0 %v2944_v25  ;;  %1951 = vmatprep.subr.bf16.mxu1 %v2949_v26 }
  0xe5   :  { %2163 = vmatprep.subr.bf16.mxu0 %v2952_v27 }
  0xe7   :  { %1952 = vmatpush1.bf16.msra.mxu1 %v2947_v28 }
  0xe8   :  { %2164 = vmatpush1.bf16.msra.mxu0 %v2950_v29  ;;  %1953 = vmatprep.subr.bf16.mxu1 %v2955_v30 }
  0xe9   :  { %2165 = vmatprep.subr.bf16.mxu0 %v2958_v31 }
  0xeb   :  { %1954 = vmatpush1.bf16.msra.mxu1 %v2953_v32 }
  0xec   :  { %2166 = vmatpush1.bf16.msra.mxu0 %v2956_v33  ;;  %1955 = vmatprep.subr.bf16.mxu1 %v2961_v34 }
  0xed   :  { %2167 = vmatprep.subr.bf16.mxu0 %v2964_v35 }
  0xef   :  { %1956 = vmatpush1.bf16.msra.mxu1 %v2959_v36 }
  0xf0   :  { %2168 = vmatpush1.bf16.msra.mxu0 %v2962_v37  ;;  %1957 = vmatprep.subr.bf16.mxu1 %v2967_v38 }
  0xf1   :  { %2169 = vmatprep.subr.bf16.mxu0 %v2970_v39 }
  0xf3   :  { %1958 = vmatpush1.bf16.msra.mxu1 %v2965_v40 }
  0xf4   :  { %2170 = vmatpush1.bf16.msra.mxu0 %v2968_v41  ;;  %1959 = vmatprep.subr.bf16.mxu1 %v2973_v43 }
  0xf5   :  { %2171 = vmatprep.subr.bf16.mxu0 %v2976_v44 }
  0xf7   :  { %1960 = vmatpush1.bf16.msra.mxu1 %v2971_v48 }
  0xf8   :  { %2172 = vmatpush1.bf16.msra.mxu0 %v2974_v49  ;;  %1961 = vmatprep.subr.bf16.mxu1 %v2979_v42 }
  0xf9   :  { %2173 = vmatprep.subr.bf16.mxu0 %v2982_v45 }
  0xfb   :  { %1962 = vmatpush1.bf16.msra.mxu1 %v2977_v46 }
  0xfc   :  { %2174 = vmatpush1.bf16.msra.mxu0 %v2980_v47  ;;  %1963 = vmatprep.subr.bf16.mxu1 %v2985_v50 }
  0xfd   :  { %2175 = vmatprep.subr.bf16.mxu0 %v2988_v51 }
  0xff   :  { %1964 = vmatpush1.bf16.msra.mxu1 %v2983_v52 }
 0x100   :  { %2176 = vmatpush1.bf16.msra.mxu0 %v2986_v53 }
 0x102   :  { %1966 = vmatmul.mubr.bf16.vlgmr.msra.gmra.mrb[0].mxu1 %v2267_v62 }
 0x103   :  { %2178 = vmatmul.mubr.bf16.vlgmr.msra.gmra.mrb[0].mxu0 %v2275_v63  ;;  %1975 = vmatprep.mubr.bf16.mxu1 %v2284_v0 }
 0x104   :  { %2187 = vmatprep.mubr.bf16.mxu0 %v2292_v1 }
 0x10a   :  { %1976 = vmatmul.mubr.bf16.gmra.mrb[4].mxu1 %v2283_v2 }
 0x10b   :  { %2188 = vmatmul.mubr.bf16.gmra.mrb[4].mxu0 %v2291_v3 }
 0x1d5   :  { %v1967_v61 = vpop.f32.mrb[0].mxu1 }
 0x1d6   :  { %v2179_v7 = vpop.f32.mrb[0].mxu0  ;;  %v1969_v10 = vpop.f32.mrb[1].mxu1 }
 0x1d7   :  { %v2549_v9 = vadd.f32 %v2179_v7, %v1967_v61  ;;  %v2181_v11 = vpop.f32.mrb[1].mxu0  ;;  %v1971_v13 = vpop.f32.mrb[2].mxu1 }
 0x1d8   :  { %v2550_v12 = vadd.f32 %v2181_v11, %v1969_v10  ;;  %v2183_v14 = vpop.f32.mrb[2].mxu0  ;;  %v1973_v17 = vpop.f32.mrb[3].mxu1 }
 0x1d9   :  { %v2198_v15 = vadd.f32 %v2549_v9, %v23_v60  ;;  %v2551_v16 = vadd.f32 %v2183_v14, %v1971_v13  ;;  %v2185_v18 = vpop.f32.mrb[3].mxu0 }
 0x1da   :  { %v2199_v19 = vadd.f32 %v2550_v12, %v27_v8  ;;  %v2552_v20 = vadd.f32 %v2185_v18, %v1973_v17 }
 0x1db   :  { %vm2225_vm0 = vcmp.ge.f32.partialorder %v2198_v15, 0.0  ;;  %v2233_v21 = vmul.f32 0.2, %v2198_v15  ;;  %v2200_v22 = vadd.f32 %v2551_v16, %v23_v60 }
 0x1dc   :  { %vm2226_vm1 = vcmp.ge.f32.partialorder %v2199_v19, 0.0  ;;  %v2234_v23 = vmul.f32 0.2, %v2199_v19  ;;  %v2201_v24 = vadd.f32 %v2552_v20, %v27_v8 }
 0x1dd   :  { %v2241_v25 = vsel %vm2225_vm0, %v2198_v15, %v2233_v21  ;;  %vm2227_vm2 = vcmp.ge.f32.partialorder %v2200_v22, 0.0  ;;  %v2235_v26 = vmul.f32 0.2, %v2200_v22  ;;  %v1977_v29 = vpop.f32.mrb[4].mxu1 }
 0x1de   :  { %2249 = vst [vmem:[%s3951_s3] sm:$0xff] %v2241_v25  ;;  %v2242_v27 = vsel %vm2226_vm1, %v2199_v19, %v2234_v23  ;;  %vm2228_vm3 = vcmp.ge.f32.partialorder %v2201_v24, 0.0  ;;  %v2236_v28 = vmul.f32 0.2, %v2201_v24  ;;  %v2189_v30 = vpop.f32.mrb[4].mxu0  ;;  %v1979_v33 = vpop.f32.mrb[5].mxu1 }
 0x1df   :  { %2250 = vst [vmem:[%s3951_s3 + $0x8] sm:$0xff] %v2242_v27  ;;  %v2243_v31 = vsel %vm2227_vm2, %v2200_v22, %v2235_v26  ;;  %v2553_v32 = vadd.f32 %v2189_v30, %v1977_v29  ;;  %v2191_v34 = vpop.f32.mrb[5].mxu0  ;;  %v1981_v37 = vpop.f32.mrb[6].mxu1 }
 0x1e0   :  { %2251 = vst [vmem:[%s3951_s3 + $0x10] sm:$0xff] %v2243_v31  ;;  %v2244_v35 = vsel %vm2228_vm3, %v2201_v24, %v2236_v28  ;;  %v2554_v36 = vadd.f32 %v2191_v34, %v1979_v33  ;;  %v2193_v38 = vpop.f32.mrb[6].mxu0  ;;  %v1983_v41 = vpop.f32.mrb[7].mxu1 }
 0x1e1   :  { %2252 = vst [vmem:[%s3951_s3 + $0x18] sm:$0xff] %v2244_v35  ;;  %v2202_v39 = vadd.f32 %v2553_v32, %v23_v60  ;;  %v2555_v40 = vadd.f32 %v2193_v38, %v1981_v37  ;;  %v2195_v43 = vpop.f32.mrb[7].mxu0 }
 0x1e2   :  { %v2203_v44 = vadd.f32 %v2554_v36, %v27_v8  ;;  %v2556_v48 = vadd.f32 %v2195_v43, %v1983_v41 }
 0x1e3   :  { %vm2229_vm4 = vcmp.ge.f32.partialorder %v2202_v39, 0.0  ;;  %v2237_v49 = vmul.f32 0.2, %v2202_v39  ;;  %v2204_v42 = vadd.f32 %v2555_v40, %v23_v60 }
 0x1e4   :  { %vm2230_vm5 = vcmp.ge.f32.partialorder %v2203_v44, 0.0  ;;  %v2238_v45 = vmul.f32 0.2, %v2203_v44  ;;  %v2205_v46 = vadd.f32 %v2556_v48, %v27_v8 }
 0x1e5   :  { %v2245_v47 = vsel %vm2229_vm4, %v2202_v39, %v2237_v49  ;;  %vm2231_vm6 = vcmp.ge.f32.partialorder %v2204_v42, 0.0  ;;  %v2239_v50 = vmul.f32 0.2, %v2204_v42 }
 0x1e6   :  { %2253 = vst [vmem:[%s3951_s3 + $0x20] sm:$0xff] %v2245_v47  ;;  %v2246_v51 = vsel %vm2230_vm5, %v2203_v44, %v2238_v45  ;;  %vm2232_vm7 = vcmp.ge.f32.partialorder %v2205_v46, 0.0  ;;  %v2240_v52 = vmul.f32 0.2, %v2205_v46 }
 0x1e7   :  { %2254 = vst [vmem:[%s3951_s3 + $0x28] sm:$0xff] %v2246_v51  ;;  %v2247_v53 = vsel %vm2231_vm6, %v2204_v42, %v2239_v50 }
 0x1e8   :  { %2255 = vst [vmem:[%s3951_s3 + $0x30] sm:$0xff] %v2247_v53  ;;  %v2248_v54 = vsel %vm2232_vm7, %v2205_v46, %v2240_v52 }
 0x1e9   :  { %2256 = vst [vmem:[%s3951_s3 + $0x38] sm:$0xff] %v2248_v54 }

// kernel: multiscale_discriminator_forward.8
= control target key start
LH: loop header
LB: loop body
LE: loop exit
PB: predicated region body
PF: predicated region fallthrough
CT: control target
= control target key end

     0   :  { %s5649_s12 = smov 0   ;;  %s5651_s13 = smov 0   ;;  %s6345_s0 = inlined_call_operand.vmem [shape: bf16[8,4096], index: 0, kind: input, shape index: {}]   ;;  %s6346_s1 = inlined_call_operand.vmem [shape: bf16[4096,512], index: 1, kind: input, shape index: {}]   ;;  %s6347_s2 = inlined_call_operand.vmem [shape: f32[1,512], index: 2, kind: input, shape index: {}]   ;;  %s6348_s3 = inlined_call_operand.vmem [shape: f32[8,512], index: 3, kind: output, shape index: {}]  }
   0x1   :  { %s5653_s14 = smov 0  }
   0x2 LB: > { %s25_s15 = sadd.s32 1, %s5623_s13  ;;  %p4256_p0 = scmp.ge.s32.totalorder %s5627_s14, 1  ;;  %s5627_s14 = sphi %s5653_s14, %s13_s14   ;;  %s5623_s13 = sphi %s5651_s13, %s6350_s13   ;;  %s5619_s12 = sphi %s5649_s12, %s6349_s12  }
   0x3   : > { %p26_p1 = scmp.ge.s32.totalorder %s25_s15, 2  ;;  %p194_p2 = scmp.lt.s32.totalorder %s5627_s14, 3 }
   0x5   : > { %s6352_s15 = smov (%p26_p1, %s25_s15), 0  ;;  %p195_p3 = pnand %p4256_p0, %p194_p2 }
   0x6   : > { %s4257_s16 = sshll.u32 (!%p195_p3), %s5619_s12, 4  ;;  %s4259_s17 = sshll.u32 (!%p195_p3), %s5619_s12, 8 }
   0x7   : > { %198 = sbr.rel (%p195_p3) target bundleno = 769 (0x301), region = 32  ;;  %p243_p4 = scmp.lt.s32.totalorder (!%p195_p3), %s4257_s16, 31 }
   0x8   : > { %p252_p5 = scmp.lt.s32.totalorder (!%p195_p3), %s4259_s17, 511  ;;  %p4262_p6 = scmp.ne.s32.totalorder (!%p195_p3), %s5619_s12, 0 }
   0xe   : > { %s6354_s16 = smov (!%p243_p4, %s4257_s16), 31  ;;  %s6356_s17 = smov (!%p252_p5, %s4259_s17), 511 }
   0xf   : > { %s4258_s18 = sshll.u32 %s6354_s16, 2  ;;  %s4796_s22 = sshll.u32 %s6356_s17, 4  ;;  %v283_v0 = vlaneseq (!%p4262_p6)  ;;  %v281_v2 = vld [vmem:[%s6347_s2] sm:$0xf] (!%p4262_p6) }
  0x10   : > { %s5674_s21 = scalar_lea.vmem %s6345_s0, %s4258_s18  ;;  %s5679_s25 = scalar_lea.vmem %s6346_s1, %s4796_s22 }
  0x11   : > { %280 = sbr.rel (%p4262_p6) target bundleno = 25 (0x19), region = 36  ;;  %v284_v1 = vshrl.u32 (!%p4262_p6), %v283_v0, 7 }
  0x13   : > { %v285_v3 = vsub.s32 (!%p4262_p6), 0, %v284_v1  ;;  %v289_v4 = vsub.s32 (!%p4262_p6), 1, %v284_v1  ;;  %v293_v5 = vsub.s32 (!%p4262_p6), 2, %v284_v1  ;;  %v297_v6 = vsub.s32 (!%p4262_p6), 3, %v284_v1 }
  0x15   : > { %v286_v7 = vrot.slane (!%p4262_p6), %v281_v2, %v285_v3  ;;  %v290_v8 = vrot.slane (!%p4262_p6), %v281_v2, %v289_v4  ;;  %v294_v9 = vrot.slane (!%p4262_p6), %v281_v2, %v293_v5  ;;  %v298_v10 = vrot.slane (!%p4262_p6), %v281_v2, %v297_v6 }
  0x17   : > { %303 = vst [vmem:[#allocation2] sm:$0xff] (!%p4262_p6), %v286_v7  ;;  %304 = vst [vmem:[#allocation2 + $0x8] sm:$0xff] (!%p4262_p6), %v290_v8 }
  0x18   : > { %305 = vst [vmem:[#allocation2 + $0x10] sm:$0xff] %v294_v9  ;;  %306 = vst [vmem:[#allocation2 + $0x18] sm:$0xff] %v298_v10 }
  0x19 PF: > { %v4821_v11 = vld [vmem:[%s5679_s25 + $0x4] ss:$16 sps:$4 sm:$0xff]   ;;  %v4825_v13 = vld [vmem:[%s5679_s25] ss:$16 sps:$4 sm:$0xff]   ;;  %v312_v59 = vld [vmem:[%s5674_s21 + $0x8] sm:$0xff]  ;;  %p4791_p7 = scmp.ne.s32.totalorder %s5619_s12, 1 }
  0x1a   : > { %v4823_v12 = vld [vmem:[%s5679_s25 + $0x204] ss:$16 sps:$4 sm:$0xff]   ;;  %3447 = vmatprep.subr.bf16.mxu0 %v4821_v11  ;;  %v4826_v14 = vld [vmem:[%s5679_s25 + $0x200] ss:$16 sps:$4 sm:$0xff]   ;;  %v5737_v62 = vcombine.high %v312_v59, %v312_v59 }
  0x1b   : > { %3488 = vmatprep.subr.bf16.mxu1 %v4823_v12  ;;  %v4827_v15 = vld [vmem:[%s5679_s25 + $0x24] ss:$16 sps:$4 sm:$0xff]   ;;  %3448 = vmatpush1.bf16.msra.mxu0 %v4825_v13  ;;  %v4831_v17 = vld [vmem:[%s5679_s25 + $0x20] ss:$16 sps:$4 sm:$0xff]  }
  0x1c   : > { %3489 = vmatpush1.bf16.msra.mxu1 %v4826_v14  ;;  %v4829_v16 = vld [vmem:[%s5679_s25 + $0x224] ss:$16 sps:$4 sm:$0xff]   ;;  %3449 = vmatprep.subr.bf16.mxu0 %v4827_v15  ;;  %v4832_v18 = vld [vmem:[%s5679_s25 + $0x220] ss:$16 sps:$4 sm:$0xff]  }
  0x1d   : > { %3490 = vmatprep.subr.bf16.mxu1 %v4829_v16  ;;  %v4833_v19 = vld [vmem:[%s5679_s25 + $0x44] ss:$16 sps:$4 sm:$0xff]   ;;  %v4837_v21 = vld [vmem:[%s5679_s25 + $0x40] ss:$16 sps:$4 sm:$0xff]   ;;  %3520 = vmatprep.mubr.bf16.mxu1 %v5737_v62 }
  0x1e   : > { %v4835_v20 = vld [vmem:[%s5679_s25 + $0x244] ss:$16 sps:$4 sm:$0xff]   ;;  %v4838_v22 = vld [vmem:[%s5679_s25 + $0x240] ss:$16 sps:$4 sm:$0xff]  }
  0x1f   : > { %3450 = vmatpush1.bf16.msra.mxu0 %v4831_v17  ;;  %v4839_v23 = vld [vmem:[%s5679_s25 + $0x64] ss:$16 sps:$4 sm:$0xff]   ;;  %v4843_v25 = vld [vmem:[%s5679_s25 + $0x60] ss:$16 sps:$4 sm:$0xff]  }
  0x20   : > { %3491 = vmatpush1.bf16.msra.mxu1 %v4832_v18  ;;  %3451 = vmatprep.subr.bf16.mxu0 %v4833_v19  ;;  %v4841_v24 = vld [vmem:[%s5679_s25 + $0x264] ss:$16 sps:$4 sm:$0xff]   ;;  %v4844_v26 = vld [vmem:[%s5679_s25 + $0x260] ss:$16 sps:$4 sm:$0xff]   ;;  %v5761_v18 = vcombine.low %v312_v59, %v312_v59 }
  0x21   : > { %3492 = vmatprep.subr.bf16.mxu1 %v4835_v20  ;;  %v4845_v27 = vld [vmem:[%s5679_s25 + $0x84] ss:$16 sps:$4 sm:$0xff]   ;;  %v4849_v29 = vld [vmem:[%s5679_s25 + $0x80] ss:$16 sps:$4 sm:$0xff]  }
  0x22   : > { %v4847_v28 = vld [vmem:[%s5679_s25 + $0x284] ss:$16 sps:$4 sm:$0xff]   ;;  %v4850_v30 = vld [vmem:[%s5679_s25 + $0x280] ss:$16 sps:$4 sm:$0xff]  }
  0x23   : > { %3452 = vmatpush1.bf16.msra.mxu0 %v4837_v21  ;;  %v4851_v31 = vld [vmem:[%s5679_s25 + $0xa4] ss:$16 sps:$4 sm:$0xff]   ;;  %v4855_v33 = vld [vmem:[%s5679_s25 + $0xa0] ss:$16 sps:$4 sm:$0xff]  }
  0x24   : > { %3493 = vmatpush1.bf16.msra.mxu1 %v4838_v22  ;;  %3453 = vmatprep.subr.bf16.mxu0 %v4839_v23  ;;  %v4853_v32 = vld [vmem:[%s5679_s25 + $0x2a4] ss:$16 sps:$4 sm:$0xff]   ;;  %v4856_v34 = vld [vmem:[%s5679_s25 + $0x2a0] ss:$16 sps:$4 sm:$0xff]  }
  0x25   : > { %3494 = vmatprep.subr.bf16.mxu1 %v4841_v24  ;;  %v4857_v35 = vld [vmem:[%s5679_s25 + $0xc4] ss:$16 sps:$4 sm:$0xff]   ;;  %v4861_v37 = vld [vmem:[%s5679_s25 + $0xc0] ss:$16 sps:$4 sm:$0xff]  }
  0x26   : > { %v4859_v36 = vld [vmem:[%s5679_s25 + $0x2c4] ss:$16 sps:$4 sm:$0xff]   ;;  %v4862_v38 = vld [vmem:[%s5679_s25 + $0x2c0] ss:$16 sps:$4 sm:$0xff]  }
  0x27   : > { %3454 = vmatpush1.bf16.msra.mxu0 %v4843_v25  ;;  %v4863_v39 = vld [vmem:[%s5679_s25 + $0xe4] ss:$16 sps:$4 sm:$0xff]   ;;  %v4867_v41 = vld [vmem:[%s5679_s25 + $0xe0] ss:$16 sps:$4 sm:$0xff]  }
  0x28   : > { %3495 = vmatpush1.bf16.msra.mxu1 %v4844_v26  ;;  %3455 = vmatprep.subr.bf16.mxu0 %v4845_v27  ;;  %v4865_v40 = vld [vmem:[%s5679_s25 + $0x2e4] ss:$16 sps:$4 sm:$0xff]   ;;  %v4868_v42 = vld [vmem:[%s5679_s25 + $0x2e0] ss:$16 sps:$4 sm:$0xff]  }
  0x29   : > { %3496 = vmatprep.subr.bf16.mxu1 %v4847_v28  ;;  %v4869_v43 = vld [vmem:[%s5679_s25 + $0x104] ss:$16 sps:$4 sm:$0xff]   ;;  %v4873_v45 = vld [vmem:[%s5679_s25 + $0x100] ss:$16 sps:$4 sm:$0xff]  }
  0x2a   : > { %v4871_v44 = vld [vmem:[%s5679_s25 + $0x304] ss:$16 sps:$4 sm:$0xff]   ;;  %v4874_v46 = vld [vmem:[%s5679_s25 + $0x300] ss:$16 sps:$4 sm:$0xff]  }
  0x2b   : > { %3456 = vmatpush1.bf16.msra.mxu0 %v4849_v29  ;;  %v4875_v47 = vld [vmem:[%s5679_s25 + $0x124] ss:$16 sps:$4 sm:$0xff]   ;;  %v4879_v49 = vld [vmem:[%s5679_s25 + $0x120] ss:$16 sps:$4 sm:$0xff]  }
  0x2c   : > { %3497 = vmatpush1.bf16.msra.mxu1 %v4850_v30  ;;  %3457 = vmatprep.subr.bf16.mxu0 %v4851_v31  ;;  %v4877_v48 = vld [vmem:[%s5679_s25 + $0x324] ss:$16 sps:$4 sm:$0xff]   ;;  %v4880_v50 = vld [vmem:[%s5679_s25 + $0x320] ss:$16 sps:$4 sm:$0xff]  }
  0x2d   : > { %3498 = vmatprep.subr.bf16.mxu1 %v4853_v32  ;;  %v4881_v51 = vld [vmem:[%s5679_s25 + $0x144] ss:$16 sps:$4 sm:$0xff]   ;;  %v4885_v53 = vld [vmem:[%s5679_s25 + $0x140] ss:$16 sps:$4 sm:$0xff]  }
  0x2e   : > { %v4883_v52 = vld [vmem:[%s5679_s25 + $0x344] ss:$16 sps:$4 sm:$0xff]   ;;  %v4886_v54 = vld [vmem:[%s5679_s25 + $0x340] ss:$16 sps:$4 sm:$0xff]  }
  0x2f   : > { %3458 = vmatpush1.bf16.msra.mxu0 %v4855_v33  ;;  %v4887_v55 = vld [vmem:[%s5679_s25 + $0x164] ss:$16 sps:$4 sm:$0xff]   ;;  %v4891_v60 = vld [vmem:[%s5679_s25 + $0x160] ss:$16 sps:$4 sm:$0xff]  }
  0x30   : > { %3499 = vmatpush1.bf16.msra.mxu1 %v4856_v34  ;;  %3459 = vmatprep.subr.bf16.mxu0 %v4857_v35  ;;  %v4889_v56 = vld [vmem:[%s5679_s25 + $0x364] ss:$16 sps:$4 sm:$0xff]   ;;  %v4892_v61 = vld [vmem:[%s5679_s25 + $0x360] ss:$16 sps:$4 sm:$0xff]  }
  0x31   : > { %3500 = vmatprep.subr.bf16.mxu1 %v4859_v36  ;;  %v311_v57 = vld [vmem:[%s5674_s21] sm:$0xff] }
  0x32   : > { %v5732_v58 = vcombine.high %v311_v57, %v311_v57  ;;  %v4893_v63 = vld [vmem:[%s5679_s25 + $0x184] ss:$16 sps:$4 sm:$0xff]   ;;  %v4897_v1 = vld [vmem:[%s5679_s25 + $0x180] ss:$16 sps:$4 sm:$0xff]   ;;  %v5759_v17 = vcombine.low %v311_v57, %v311_v57 }
  0x33   : > { %3460 = vmatpush1.bf16.msra.mxu0 %v4861_v37  ;;  %v4895_v0 = vld [vmem:[%s5679_s25 + $0x384] ss:$16 sps:$4 sm:$0xff]   ;;  %v4898_v2 = vld [vmem:[%s5679_s25 + $0x380] ss:$16 sps:$4 sm:$0xff]  }
  0x34   : > { %3501 = vmatpush1.bf16.msra.mxu1 %v4862_v38  ;;  %3461 = vmatprep.subr.bf16.mxu0 %v4863_v39  ;;  %v4899_v3 = vld [vmem:[%s5679_s25 + $0x1a4] ss:$16 sps:$4 sm:$0xff]   ;;  %v4903_v5 = vld [vmem:[%s5679_s25 + $0x1a0] ss:$16 sps:$4 sm:$0xff]  }
  0x35   : > { %3502 = vmatprep.subr.bf16.mxu1 %v4865_v40  ;;  %3479 = vmatprep.mubr.bf16.mxu0 %v5732_v58  ;;  %v4901_v4 = vld [vmem:[%s5679_s25 + $0x3a4] ss:$16 sps:$4 sm:$0xff]   ;;  %v4904_v6 = vld [vmem:[%s5679_s25 + $0x3a0] ss:$16 sps:$4 sm:$0xff]  }
  0x36   : > { %v4905_v7 = vld [vmem:[%s5679_s25 + $0x1c4] ss:$16 sps:$4 sm:$0xff]   ;;  %v4909_v9 = vld [vmem:[%s5679_s25 + $0x1c0] ss:$16 sps:$4 sm:$0xff]  }
  0x37   : > { %3462 = vmatpush1.bf16.msra.mxu0 %v4867_v41  ;;  %v4907_v8 = vld [vmem:[%s5679_s25 + $0x3c4] ss:$16 sps:$4 sm:$0xff]   ;;  %v4910_v10 = vld [vmem:[%s5679_s25 + $0x3c0] ss:$16 sps:$4 sm:$0xff]  }
  0x38   : > { %3503 = vmatpush1.bf16.msra.mxu1 %v4868_v42  ;;  %3463 = vmatprep.subr.bf16.mxu0 %v4869_v43  ;;  %v4911_v11 = vld [vmem:[%s5679_s25 + $0x1e4] ss:$16 sps:$4 sm:$0xff]   ;;  %v4915_v13 = vld [vmem:[%s5679_s25 + $0x1e0] ss:$16 sps:$4 sm:$0xff]  }
  0x39   : > { %3504 = vmatprep.subr.bf16.mxu1 %v4871_v44  ;;  %v4913_v12 = vld [vmem:[%s5679_s25 + $0x3e4] ss:$16 sps:$4 sm:$0xff]   ;;  %v4916_v14 = vld [vmem:[%s5679_s25 + $0x3e0] ss:$16 sps:$4 sm:$0xff]   ;;  %v5793_v44 = vld [vmem:[%s5674_s21 + $0x18] sm:$0xff] }
  0x3a   : > { %v4923_v15 = vld [vmem:[%s5679_s25 + $0x404] ss:$16 sps:$4 sm:$0xff]   ;;  %v4921_v19 = vld [vmem:[%s5679_s25 + $0x400] ss:$16 sps:$4 sm:$0xff]  }
  0x3b   : > { %3464 = vmatpush1.bf16.msra.mxu0 %v4873_v45  ;;  %v4926_v16 = vld [vmem:[%s5679_s25 + $0x604] ss:$16 sps:$4 sm:$0xff]   ;;  %v4924_v20 = vld [vmem:[%s5679_s25 + $0x600] ss:$16 sps:$4 sm:$0xff]  }
  0x3c   : > { %3505 = vmatpush1.bf16.msra.mxu1 %v4874_v46  ;;  %3465 = vmatprep.subr.bf16.mxu0 %v4875_v47  ;;  %v4929_v21 = vld [vmem:[%s5679_s25 + $0x424] ss:$16 sps:$4 sm:$0xff]   ;;  %v4927_v23 = vld [vmem:[%s5679_s25 + $0x420] ss:$16 sps:$4 sm:$0xff]  }
  0x3d   : > { %3506 = vmatprep.subr.bf16.mxu1 %v4877_v48  ;;  %v4932_v22 = vld [vmem:[%s5679_s25 + $0x624] ss:$16 sps:$4 sm:$0xff]   ;;  %v4930_v24 = vld [vmem:[%s5679_s25 + $0x620] ss:$16 sps:$4 sm:$0xff]   ;;  %v5803_v48 = vcombine.high %v5793_v44, %v5793_v44 }
  0x3e   : > { %v4935_v25 = vld [vmem:[%s5679_s25 + $0x444] ss:$16 sps:$4 sm:$0xff]   ;;  %v4933_v27 = vld [vmem:[%s5679_s25 + $0x440] ss:$16 sps:$4 sm:$0xff]  }
  0x3f   : > { %3466 = vmatpush1.bf16.msra.mxu0 %v4879_v49  ;;  %v4938_v26 = vld [vmem:[%s5679_s25 + $0x644] ss:$16 sps:$4 sm:$0xff]   ;;  %v4936_v28 = vld [vmem:[%s5679_s25 + $0x640] ss:$16 sps:$4 sm:$0xff]  }
  0x40   : > { %3507 = vmatpush1.bf16.msra.mxu1 %v4880_v50  ;;  %3467 = vmatprep.subr.bf16.mxu0 %v4881_v51  ;;  %v4941_v29 = vld [vmem:[%s5679_s25 + $0x464] ss:$16 sps:$4 sm:$0xff]   ;;  %v4939_v31 = vld [vmem:[%s5679_s25 + $0x460] ss:$16 sps:$4 sm:$0xff]  }
  0x41   : > { %3508 = vmatprep.subr.bf16.mxu1 %v4883_v52  ;;  %v4944_v30 = vld [vmem:[%s5679_s25 + $0x664] ss:$16 sps:$4 sm:$0xff]   ;;  %v4942_v32 = vld [vmem:[%s5679_s25 + $0x660] ss:$16 sps:$4 sm:$0xff]  }
  0x42   : > { %v4947_v33 = vld [vmem:[%s5679_s25 + $0x484] ss:$16 sps:$4 sm:$0xff]   ;;  %v4945_v35 = vld [vmem:[%s5679_s25 + $0x480] ss:$16 sps:$4 sm:$0xff]  }
  0x43   : > { %3468 = vmatpush1.bf16.msra.mxu0 %v4885_v53  ;;  %v4950_v34 = vld [vmem:[%s5679_s25 + $0x684] ss:$16 sps:$4 sm:$0xff]   ;;  %v4948_v36 = vld [vmem:[%s5679_s25 + $0x680] ss:$16 sps:$4 sm:$0xff]  }
  0x44   : > { %3509 = vmatpush1.bf16.msra.mxu1 %v4886_v54  ;;  %3469 = vmatprep.subr.bf16.mxu0 %v4887_v55  ;;  %v4953_v37 = vld [vmem:[%s5679_s25 + $0x4a4] ss:$16 sps:$4 sm:$0xff]   ;;  %v4951_v39 = vld [vmem:[%s5679_s25 + $0x4a0] ss:$16 sps:$4 sm:$0xff]  }
  0x45   : > { %3510 = vmatprep.subr.bf16.mxu1 %v4889_v56  ;;  %v4956_v38 = vld [vmem:[%s5679_s25 + $0x6a4] ss:$16 sps:$4 sm:$0xff]   ;;  %v4954_v40 = vld [vmem:[%s5679_s25 + $0x6a0] ss:$16 sps:$4 sm:$0xff]  }
  0x46   : > { %v4959_v41 = vld [vmem:[%s5679_s25 + $0x4c4] ss:$16 sps:$4 sm:$0xff]   ;;  %v4957_v45 = vld [vmem:[%s5679_s25 + $0x4c0] ss:$16 sps:$4 sm:$0xff]  }
  0x47   : > { %3470 = vmatpush1.bf16.msra.mxu0 %v4891_v60  ;;  %v4962_v42 = vld [vmem:[%s5679_s25 + $0x6c4] ss:$16 sps:$4 sm:$0xff]   ;;  %v4960_v46 = vld [vmem:[%s5679_s25 + $0x6c0] ss:$16 sps:$4 sm:$0xff]  }
  0x48   : > { %3511 = vmatpush1.bf16.msra.mxu1 %v4892_v61  ;;  %3471 = vmatprep.subr.bf16.mxu0 %v4893_v63  ;;  %v5790_v43 = vld [vmem:[%s5674_s21 + $0x10] sm:$0xff] }
  0x49   : > { %3512 = vmatprep.subr.bf16.mxu1 %v4895_v0  ;;  %v5799_v47 = vcombine.high %v5790_v43, %v5790_v43  ;;  %v4965_v49 = vld [vmem:[%s5679_s25 + $0x4e4] ss:$16 sps:$4 sm:$0xff]   ;;  %v4963_v51 = vld [vmem:[%s5679_s25 + $0x4e0] ss:$16 sps:$4 sm:$0xff]  }
  0x4a   : > { %v4968_v50 = vld [vmem:[%s5679_s25 + $0x6e4] ss:$16 sps:$4 sm:$0xff]   ;;  %v4966_v52 = vld [vmem:[%s5679_s25 + $0x6e0] ss:$16 sps:$4 sm:$0xff]  }
  0x4b   : > { %3472 = vmatpush1.bf16.msra.mxu0 %v4897_v1  ;;  %v4971_v53 = vld [vmem:[%s5679_s25 + $0x504] ss:$16 sps:$4 sm:$0xff]   ;;  %v4969_v55 = vld [vmem:[%s5679_s25 + $0x500] ss:$16 sps:$4 sm:$0xff]  }
  0x4c   : > { %3513 = vmatpush1.bf16.msra.mxu1 %v4898_v2  ;;  %3473 = vmatprep.subr.bf16.mxu0 %v4899_v3  ;;  %v4974_v54 = vld [vmem:[%s5679_s25 + $0x704] ss:$16 sps:$4 sm:$0xff]   ;;  %v4972_v56 = vld [vmem:[%s5679_s25 + $0x700] ss:$16 sps:$4 sm:$0xff]  }
  0x4d   : > { %3514 = vmatprep.subr.bf16.mxu1 %v4901_v4  ;;  %v4977_v57 = vld [vmem:[%s5679_s25 + $0x524] ss:$16 sps:$4 sm:$0xff]   ;;  %v4975_v60 = vld [vmem:[%s5679_s25 + $0x520] ss:$16 sps:$4 sm:$0xff]  }
  0x4e   : > { %v4980_v59 = vld [vmem:[%s5679_s25 + $0x724] ss:$16 sps:$4 sm:$0xff]   ;;  %v4978_v61 = vld [vmem:[%s5679_s25 + $0x720] ss:$16 sps:$4 sm:$0xff]  }
  0x4f   : > { %3474 = vmatpush1.bf16.msra.mxu0 %v4903_v5  ;;  %v4983_v63 = vld [vmem:[%s5679_s25 + $0x544] ss:$16 sps:$4 sm:$0xff]   ;;  %v4981_v1 = vld [vmem:[%s5679_s25 + $0x540] ss:$16 sps:$4 sm:$0xff]  }
  0x50   : > { %3515 = vmatpush1.bf16.msra.mxu1 %v4904_v6  ;;  %3475 = vmatprep.subr.bf16.mxu0 %v4905_v7  ;;  %v4986_v0 = vld [vmem:[%s5679_s25 + $0x744] ss:$16 sps:$4 sm:$0xff]   ;;  %v4984_v2 = vld [vmem:[%s5679_s25 + $0x740] ss:$16 sps:$4 sm:$0xff]  }
  0x51   : > { %3516 = vmatprep.subr.bf16.mxu1 %v4907_v8  ;;  %v4989_v3 = vld [vmem:[%s5679_s25 + $0x564] ss:$16 sps:$4 sm:$0xff]   ;;  %v4987_v5 = vld [vmem:[%s5679_s25 + $0x560] ss:$16 sps:$4 sm:$0xff]  }
  0x52   : > { %v4992_v4 = vld [vmem:[%s5679_s25 + $0x764] ss:$16 sps:$4 sm:$0xff]   ;;  %v4990_v6 = vld [vmem:[%s5679_s25 + $0x760] ss:$16 sps:$4 sm:$0xff]  }
  0x53   : > { %3476 = vmatpush1.bf16.msra.mxu0 %v4909_v9  ;;  %v4995_v7 = vld [vmem:[%s5679_s25 + $0x584] ss:$16 sps:$4 sm:$0xff]   ;;  %v4993_v9 = vld [vmem:[%s5679_s25 + $0x580] ss:$16 sps:$4 sm:$0xff]  }
  0x54   : > { %3517 = vmatpush1.bf16.msra.mxu1 %v4910_v10  ;;  %3477 = vmatprep.subr.bf16.mxu0 %v4911_v11  ;;  %v4998_v8 = vld [vmem:[%s5679_s25 + $0x784] ss:$16 sps:$4 sm:$0xff]   ;;  %v4996_v10 = vld [vmem:[%s5679_s25 + $0x780] ss:$16 sps:$4 sm:$0xff]  }
  0x55   : > { %3518 = vmatprep.subr.bf16.mxu1 %v4913_v12  ;;  %v5001_v11 = vld [vmem:[%s5679_s25 + $0x5a4] ss:$16 sps:$4 sm:$0xff]  }
  0x56   : > { %v5004_v12 = vld [vmem:[%s5679_s25 + $0x7a4] ss:$16 sps:$4 sm:$0xff]  }
  0x57   : > { %3478 = vmatpush1.bf16.msra.mxu0 %v4915_v13  ;;  %v4999_v13 = vld [vmem:[%s5679_s25 + $0x5a0] ss:$16 sps:$4 sm:$0xff]  }
  0x58   : > { %3519 = vmatpush1.bf16.msra.mxu1 %v4916_v14  ;;  %3529 = vmatprep.subr.bf16.mxu0 %v4923_v15  ;;  %v5002_v14 = vld [vmem:[%s5679_s25 + $0x7a0] ss:$16 sps:$4 sm:$0xff]   ;;  %v5007_v15 = vld [vmem:[%s5679_s25 + $0x5c4] ss:$16 sps:$4 sm:$0xff]  }
  0x59   : > { %3570 = vmatprep.subr.bf16.mxu1 %v4926_v16  ;;  %v5010_v16 = vld [vmem:[%s5679_s25 + $0x7c4] ss:$16 sps:$4 sm:$0xff]  }
  0x5a   : > { %3480 = vmatmul.mubr.bf16.vlgmr.msra.gmra.mrb[0].mxu0 %v5759_v17 }
  0x5b   : > { %3521 = vmatmul.mubr.bf16.vlgmr.msra.gmra.mrb[0].mxu1 %v5761_v18  ;;  %3530 = vmatpush1.bf16.msra.mxu0 %v4921_v19  ;;  %v5005_v19 = vld [vmem:[%s5679_s25 + $0x5c0] ss:$16 sps:$4 sm:$0xff]  }
  0x5c   : > { %3571 = vmatpush1.bf16.msra.mxu1 %v4924_v20  ;;  %3531 = vmatprep.subr.bf16.mxu0 %v4929_v21  ;;  %v5008_v20 = vld [vmem:[%s5679_s25 + $0x7c0] ss:$16 sps:$4 sm:$0xff]   ;;  %v5013_v21 = vld [vmem:[%s5679_s25 + $0x5e4] ss:$16 sps:$4 sm:$0xff]  }
  0x5d   : > { %3572 = vmatprep.subr.bf16.mxu1 %v4932_v22  ;;  %3561 = vmatprep.mubr.bf16.mxu0 %v5799_v47  ;;  %v5016_v22 = vld [vmem:[%s5679_s25 + $0x7e4] ss:$16 sps:$4 sm:$0xff]  }
  0x5e   : > { %3602 = vmatprep.mubr.bf16.mxu1 %v5803_v48 }
  0x5f   : > { %3532 = vmatpush1.bf16.msra.mxu0 %v4927_v23  ;;  %v5011_v23 = vld [vmem:[%s5679_s25 + $0x5e0] ss:$16 sps:$4 sm:$0xff]  }
  0x60   : > { %3573 = vmatpush1.bf16.msra.mxu1 %v4930_v24  ;;  %3533 = vmatprep.subr.bf16.mxu0 %v4935_v25  ;;  %v5014_v24 = vld [vmem:[%s5679_s25 + $0x7e0] ss:$16 sps:$4 sm:$0xff]   ;;  %v5023_v25 = vld [vmem:[%s5679_s25 + $0x804] ss:$16 sps:$4 sm:$0xff]  }
  0x61   : > { %3574 = vmatprep.subr.bf16.mxu1 %v4938_v26  ;;  %v5026_v26 = vld [vmem:[%s5679_s25 + $0xa04] ss:$16 sps:$4 sm:$0xff]  }
  0x63   : > { %3534 = vmatpush1.bf16.msra.mxu0 %v4933_v27  ;;  %v5847_v27 = vcombine.low %v5790_v43, %v5790_v43  ;;  %v5041_v43 = vld [vmem:[%s5679_s25 + $0x864] ss:$16 sps:$4 sm:$0xff]  }
  0x64   : > { %3575 = vmatpush1.bf16.msra.mxu1 %v4936_v28  ;;  %3535 = vmatprep.subr.bf16.mxu0 %v4941_v29  ;;  %v5851_v28 = vcombine.low %v5793_v44, %v5793_v44  ;;  %v5021_v29 = vld [vmem:[%s5679_s25 + $0x800] ss:$16 sps:$4 sm:$0xff]   ;;  %v5044_v44 = vld [vmem:[%s5679_s25 + $0xa64] ss:$16 sps:$4 sm:$0xff]  }
  0x65   : > { %3576 = vmatprep.subr.bf16.mxu1 %v4944_v30  ;;  %v5024_v30 = vld [vmem:[%s5679_s25 + $0xa00] ss:$16 sps:$4 sm:$0xff]  }
  0x67   : > { %3536 = vmatpush1.bf16.msra.mxu0 %v4939_v31  ;;  %v5029_v31 = vld [vmem:[%s5679_s25 + $0x824] ss:$16 sps:$4 sm:$0xff]  }
  0x68   : > { %3577 = vmatpush1.bf16.msra.mxu1 %v4942_v32  ;;  %3537 = vmatprep.subr.bf16.mxu0 %v4947_v33  ;;  %v5032_v32 = vld [vmem:[%s5679_s25 + $0xa24] ss:$16 sps:$4 sm:$0xff]  }
  0x69   : > { %3578 = vmatprep.subr.bf16.mxu1 %v4950_v34  ;;  %v5858_v33 = vld [vmem:[%s5674_s21 + $0x20] sm:$0xff]  ;;  %v5861_v34 = vld [vmem:[%s5674_s21 + $0x28] sm:$0xff] }
  0x6b   : > { %3538 = vmatpush1.bf16.msra.mxu0 %v4945_v35  ;;  %v5865_v35 = vcombine.high %v5858_v33, %v5858_v33 }
  0x6c   : > { %3579 = vmatpush1.bf16.msra.mxu1 %v4948_v36  ;;  %3539 = vmatprep.subr.bf16.mxu0 %v4953_v37  ;;  %v5869_v36 = vcombine.high %v5861_v34, %v5861_v34  ;;  %v5027_v37 = vld [vmem:[%s5679_s25 + $0x820] ss:$16 sps:$4 sm:$0xff]  }
  0x6d   : > { %3580 = vmatprep.subr.bf16.mxu1 %v4956_v38  ;;  %v5030_v38 = vld [vmem:[%s5679_s25 + $0xa20] ss:$16 sps:$4 sm:$0xff]  }
  0x6f   : > { %3540 = vmatpush1.bf16.msra.mxu0 %v4951_v39  ;;  %v5035_v39 = vld [vmem:[%s5679_s25 + $0x844] ss:$16 sps:$4 sm:$0xff]  }
  0x70   : > { %3581 = vmatpush1.bf16.msra.mxu1 %v4954_v40  ;;  %3541 = vmatprep.subr.bf16.mxu0 %v4959_v41  ;;  %v5038_v40 = vld [vmem:[%s5679_s25 + $0xa44] ss:$16 sps:$4 sm:$0xff]   ;;  %v5033_v41 = vld [vmem:[%s5679_s25 + $0x840] ss:$16 sps:$4 sm:$0xff]  }
  0x71   : > { %3582 = vmatprep.subr.bf16.mxu1 %v4962_v42  ;;  %v5036_v42 = vld [vmem:[%s5679_s25 + $0xa40] ss:$16 sps:$4 sm:$0xff]  }
  0x73   : > { %3542 = vmatpush1.bf16.msra.mxu0 %v4957_v45  ;;  %v5039_v45 = vld [vmem:[%s5679_s25 + $0x860] ss:$16 sps:$4 sm:$0xff]  }
  0x74   : > { %3583 = vmatpush1.bf16.msra.mxu1 %v4960_v46  ;;  %3543 = vmatprep.subr.bf16.mxu0 %v4965_v49  ;;  %v5042_v46 = vld [vmem:[%s5679_s25 + $0xa60] ss:$16 sps:$4 sm:$0xff]   ;;  %v5047_v49 = vld [vmem:[%s5679_s25 + $0x884] ss:$16 sps:$4 sm:$0xff]  }
  0x75   : > { %3584 = vmatprep.subr.bf16.mxu1 %v4968_v50  ;;  %v5050_v50 = vld [vmem:[%s5679_s25 + $0xa84] ss:$16 sps:$4 sm:$0xff]  }
  0x77   : > { %3544 = vmatpush1.bf16.msra.mxu0 %v4963_v51  ;;  %v5045_v51 = vld [vmem:[%s5679_s25 + $0x880] ss:$16 sps:$4 sm:$0xff]  }
  0x78   : > { %3585 = vmatpush1.bf16.msra.mxu1 %v4966_v52  ;;  %3545 = vmatprep.subr.bf16.mxu0 %v4971_v53  ;;  %v5048_v52 = vld [vmem:[%s5679_s25 + $0xa80] ss:$16 sps:$4 sm:$0xff]   ;;  %v5053_v53 = vld [vmem:[%s5679_s25 + $0x8a4] ss:$16 sps:$4 sm:$0xff]  }
  0x79   : > { %3586 = vmatprep.subr.bf16.mxu1 %v4974_v54  ;;  %v5056_v54 = vld [vmem:[%s5679_s25 + $0xaa4] ss:$16 sps:$4 sm:$0xff]  }
  0x7b   : > { %3546 = vmatpush1.bf16.msra.mxu0 %v4969_v55  ;;  %v5051_v55 = vld [vmem:[%s5679_s25 + $0x8a0] ss:$16 sps:$4 sm:$0xff]  }
  0x7c   : > { %3587 = vmatpush1.bf16.msra.mxu1 %v4972_v56  ;;  %3547 = vmatprep.subr.bf16.mxu0 %v4977_v57  ;;  %v5054_v56 = vld [vmem:[%s5679_s25 + $0xaa0] ss:$16 sps:$4 sm:$0xff]   ;;  %v5059_v57 = vld [vmem:[%s5679_s25 + $0x8c4] ss:$16 sps:$4 sm:$0xff]  }
  0x7d   : > { %3588 = vmatprep.subr.bf16.mxu1 %v4980_v59  ;;  %v5062_v59 = vld [vmem:[%s5679_s25 + $0xac4] ss:$16 sps:$4 sm:$0xff]  }
  0x7f   : > { %3548 = vmatpush1.bf16.msra.mxu0 %v4975_v60  ;;  %v5057_v60 = vld [vmem:[%s5679_s25 + $0x8c0] ss:$16 sps:$4 sm:$0xff]  }
  0x80   : > { %3589 = vmatpush1.bf16.msra.mxu1 %v4978_v61  ;;  %3549 = vmatprep.subr.bf16.mxu0 %v4983_v63  ;;  %v5060_v61 = vld [vmem:[%s5679_s25 + $0xac0] ss:$16 sps:$4 sm:$0xff]   ;;  %v5065_v63 = vld [vmem:[%s5679_s25 + $0x8e4] ss:$16 sps:$4 sm:$0xff]  }
  0x81   : > { %3590 = vmatprep.subr.bf16.mxu1 %v4986_v0  ;;  %v5068_v0 = vld [vmem:[%s5679_s25 + $0xae4] ss:$16 sps:$4 sm:$0xff]  }
  0x83   : > { %3550 = vmatpush1.bf16.msra.mxu0 %v4981_v1  ;;  %v5063_v1 = vld [vmem:[%s5679_s25 + $0x8e0] ss:$16 sps:$4 sm:$0xff]  }
  0x84   : > { %3591 = vmatpush1.bf16.msra.mxu1 %v4984_v2  ;;  %3551 = vmatprep.subr.bf16.mxu0 %v4989_v3  ;;  %v5066_v2 = vld [vmem:[%s5679_s25 + $0xae0] ss:$16 sps:$4 sm:$0xff]   ;;  %v5071_v3 = vld [vmem:[%s5679_s25 + $0x904] ss:$16 sps:$4 sm:$0xff]  }
  0x85   : > { %3592 = vmatprep.subr.bf16.mxu1 %v4992_v4  ;;  %v5074_v4 = vld [vmem:[%s5679_s25 + $0xb04] ss:$16 sps:$4 sm:$0xff]  }
  0x87   : > { %3552 = vmatpush1.bf16.msra.mxu0 %v4987_v5  ;;  %v5069_v5 = vld [vmem:[%s5679_s25 + $0x900] ss:$16 sps:$4 sm:$0xff]  }
  0x88   : > { %3593 = vmatpush1.bf16.msra.mxu1 %v4990_v6  ;;  %3553 = vmatprep.subr.bf16.mxu0 %v4995_v7  ;;  %v5072_v6 = vld [vmem:[%s5679_s25 + $0xb00] ss:$16 sps:$4 sm:$0xff]   ;;  %v5077_v7 = vld [vmem:[%s5679_s25 + $0x924] ss:$16 sps:$4 sm:$0xff]  }
  0x89   : > { %3594 = vmatprep.subr.bf16.mxu1 %v4998_v8  ;;  %v5080_v8 = vld [vmem:[%s5679_s25 + $0xb24] ss:$16 sps:$4 sm:$0xff]  }
  0x8b   : > { %3554 = vmatpush1.bf16.msra.mxu0 %v4993_v9  ;;  %v5075_v9 = vld [vmem:[%s5679_s25 + $0x920] ss:$16 sps:$4 sm:$0xff]  }
  0x8c   : > { %3595 = vmatpush1.bf16.msra.mxu1 %v4996_v10  ;;  %3555 = vmatprep.subr.bf16.mxu0 %v5001_v11  ;;  %v5078_v10 = vld [vmem:[%s5679_s25 + $0xb20] ss:$16 sps:$4 sm:$0xff]   ;;  %v5083_v11 = vld [vmem:[%s5679_s25 + $0x944] ss:$16 sps:$4 sm:$0xff]  }
  0x8d   : > { %3596 = vmatprep.subr.bf16.mxu1 %v5004_v12  ;;  %v5086_v12 = vld [vmem:[%s5679_s25 + $0xb44] ss:$16 sps:$4 sm:$0xff]  }
  0x8f   : > { %3556 = vmatpush1.bf16.msra.mxu0 %v4999_v13  ;;  %v5081_v13 = vld [vmem:[%s5679_s25 + $0x940] ss:$16 sps:$4 sm:$0xff]  }
  0x90   : > { %3597 = vmatpush1.bf16.msra.mxu1 %v5002_v14  ;;  %3557 = vmatprep.subr.bf16.mxu0 %v5007_v15  ;;  %v5084_v14 = vld [vmem:[%s5679_s25 + $0xb40] ss:$16 sps:$4 sm:$0xff]   ;;  %v5089_v15 = vld [vmem:[%s5679_s25 + $0x964] ss:$16 sps:$4 sm:$0xff]  }
  0x91   : > { %3598 = vmatprep.subr.bf16.mxu1 %v5010_v16  ;;  %v5092_v16 = vld [vmem:[%s5679_s25 + $0xb64] ss:$16 sps:$4 sm:$0xff]  }
  0x93   : > { %3558 = vmatpush1.bf16.msra.mxu0 %v5005_v19  ;;  %v5087_v19 = vld [vmem:[%s5679_s25 + $0x960] ss:$16 sps:$4 sm:$0xff]  }
  0x94   : > { %3599 = vmatpush1.bf16.msra.mxu1 %v5008_v20  ;;  %3559 = vmatprep.subr.bf16.mxu0 %v5013_v21  ;;  %v5090_v20 = vld [vmem:[%s5679_s25 + $0xb60] ss:$16 sps:$4 sm:$0xff]   ;;  %v5095_v21 = vld [vmem:[%s5679_s25 + $0x984] ss:$16 sps:$4 sm:$0xff]  }
  0x95   : > { %3600 = vmatprep.subr.bf16.mxu1 %v5016_v22  ;;  %v5098_v22 = vld [vmem:[%s5679_s25 + $0xb84] ss:$16 sps:$4 sm:$0xff]  }
  0x97   : > { %3560 = vmatpush1.bf16.msra.mxu0 %v5011_v23  ;;  %v5093_v23 = vld [vmem:[%s5679_s25 + $0x980] ss:$16 sps:$4 sm:$0xff]  }
  0x98   : > { %3601 = vmatpush1.bf16.msra.mxu1 %v5014_v24  ;;  %3611 = vmatprep.subr.bf16.mxu0 %v5023_v25  ;;  %v5096_v24 = vld [vmem:[%s5679_s25 + $0xb80] ss:$16 sps:$4 sm:$0xff]   ;;  %v5101_v25 = vld [vmem:[%s5679_s25 + $0x9a4] ss:$16 sps:$4 sm:$0xff]  }
  0x99   : > { %3652 = vmatprep.subr.bf16.mxu1 %v5026_v26  ;;  %v5104_v26 = vld [vmem:[%s5679_s25 + $0xba4] ss:$16 sps:$4 sm:$0xff]  }
  0x9a   : > { %3562 = vmatmul.mubr.bf16.vlgmr.msra.gmra.mrb[4].mxu0 %v5847_v27 }
  0x9b   : > { %3603 = vmatmul.mubr.bf16.vlgmr.msra.gmra.mrb[4].mxu1 %v5851_v28  ;;  %3612 = vmatpush1.bf16.msra.mxu0 %v5021_v29  ;;  %v5099_v29 = vld [vmem:[%s5679_s25 + $0x9a0] ss:$16 sps:$4 sm:$0xff]  }
  0x9c   : > { %3653 = vmatpush1.bf16.msra.mxu1 %v5024_v30  ;;  %3613 = vmatprep.subr.bf16.mxu0 %v5029_v31  ;;  %v5102_v30 = vld [vmem:[%s5679_s25 + $0xba0] ss:$16 sps:$4 sm:$0xff]   ;;  %v5107_v31 = vld [vmem:[%s5679_s25 + $0x9c4] ss:$16 sps:$4 sm:$0xff]  }
  0x9d   : > { %3654 = vmatprep.subr.bf16.mxu1 %v5032_v32  ;;  %3643 = vmatprep.mubr.bf16.mxu0 %v5865_v35  ;;  %v5110_v32 = vld [vmem:[%s5679_s25 + $0xbc4] ss:$16 sps:$4 sm:$0xff]  }
  0x9e   : > { %3684 = vmatprep.mubr.bf16.mxu1 %v5869_v36 }
  0x9f   : > { %3614 = vmatpush1.bf16.msra.mxu0 %v5027_v37  ;;  %v5105_v37 = vld [vmem:[%s5679_s25 + $0x9c0] ss:$16 sps:$4 sm:$0xff]  }
  0xa0   : > { %3655 = vmatpush1.bf16.msra.mxu1 %v5030_v38  ;;  %3615 = vmatprep.subr.bf16.mxu0 %v5035_v39  ;;  %v5108_v38 = vld [vmem:[%s5679_s25 + $0xbc0] ss:$16 sps:$4 sm:$0xff]   ;;  %v5113_v39 = vld [vmem:[%s5679_s25 + $0x9e4] ss:$16 sps:$4 sm:$0xff]  }
  0xa1   : > { %3656 = vmatprep.subr.bf16.mxu1 %v5038_v40  ;;  %v5116_v40 = vld [vmem:[%s5679_s25 + $0xbe4] ss:$16 sps:$4 sm:$0xff]  }
  0xa3   : > { %3616 = vmatpush1.bf16.msra.mxu0 %v5033_v41  ;;  %v5111_v41 = vld [vmem:[%s5679_s25 + $0x9e0] ss:$16 sps:$4 sm:$0xff]  }
  0xa4   : > { %3657 = vmatpush1.bf16.msra.mxu1 %v5036_v42  ;;  %3617 = vmatprep.subr.bf16.mxu0 %v5041_v43  ;;  %v5114_v42 = vld [vmem:[%s5679_s25 + $0xbe0] ss:$16 sps:$4 sm:$0xff]   ;;  %v5123_v43 = vld [vmem:[%s5679_s25 + $0xc04] ss:$16 sps:$4 sm:$0xff]  }
  0xa5   : > { %3658 = vmatprep.subr.bf16.mxu1 %v5044_v44  ;;  %v5126_v44 = vld [vmem:[%s5679_s25 + $0xe04] ss:$16 sps:$4 sm:$0xff]  }
  0xa7   : > { %3618 = vmatpush1.bf16.msra.mxu0 %v5039_v45  ;;  %v5121_v45 = vld [vmem:[%s5679_s25 + $0xc00] ss:$16 sps:$4 sm:$0xff]  }
  0xa8   : > { %3659 = vmatpush1.bf16.msra.mxu1 %v5042_v46  ;;  %3619 = vmatprep.subr.bf16.mxu0 %v5047_v49  ;;  %v5124_v46 = vld [vmem:[%s5679_s25 + $0xe00] ss:$16 sps:$4 sm:$0xff]   ;;  %v5939_v49 = vcombine.low %v5858_v33, %v5858_v33 }
  0xa9   : > { %3660 = vmatprep.subr.bf16.mxu1 %v5050_v50  ;;  %v5943_v50 = vcombine.low %v5861_v34, %v5861_v34 }
  0xab   : > { %3620 = vmatpush1.bf16.msra.mxu0 %v5045_v51  ;;  %v5946_v51 = vld [vmem:[%s5674_s21 + $0x30] sm:$0xff] }
  0xac   : > { %3661 = vmatpush1.bf16.msra.mxu1 %v5048_v52  ;;  %3621 = vmatprep.subr.bf16.mxu0 %v5053_v53  ;;  %v5949_v52 = vld [vmem:[%s5674_s21 + $0x38] sm:$0xff]  ;;  %v5129_v53 = vld [vmem:[%s5679_s25 + $0xc24] ss:$16 sps:$4 sm:$0xff]   ;;  %v5955_v33 = vcombine.high %v5946_v51, %v5946_v51 }
  0xad   : > { %3662 = vmatprep.subr.bf16.mxu1 %v5056_v54  ;;  %v5132_v54 = vld [vmem:[%s5679_s25 + $0xe24] ss:$16 sps:$4 sm:$0xff]   ;;  %v5959_v34 = vcombine.high %v5949_v52, %v5949_v52 }
  0xaf   : > { %3622 = vmatpush1.bf16.msra.mxu0 %v5051_v55  ;;  %v5127_v55 = vld [vmem:[%s5679_s25 + $0xc20] ss:$16 sps:$4 sm:$0xff]  }
  0xb0   : > { %3663 = vmatpush1.bf16.msra.mxu1 %v5054_v56  ;;  %3623 = vmatprep.subr.bf16.mxu0 %v5059_v57  ;;  %v5130_v56 = vld [vmem:[%s5679_s25 + $0xe20] ss:$16 sps:$4 sm:$0xff]   ;;  %v5135_v57 = vld [vmem:[%s5679_s25 + $0xc44] ss:$16 sps:$4 sm:$0xff]  }
  0xb1   : > { %3664 = vmatprep.subr.bf16.mxu1 %v5062_v59  ;;  %v5138_v59 = vld [vmem:[%s5679_s25 + $0xe44] ss:$16 sps:$4 sm:$0xff]  }
  0xb3   : > { %3624 = vmatpush1.bf16.msra.mxu0 %v5057_v60  ;;  %v5133_v60 = vld [vmem:[%s5679_s25 + $0xc40] ss:$16 sps:$4 sm:$0xff]  }
  0xb4   : > { %3665 = vmatpush1.bf16.msra.mxu1 %v5060_v61  ;;  %3625 = vmatprep.subr.bf16.mxu0 %v5065_v63  ;;  %v5136_v61 = vld [vmem:[%s5679_s25 + $0xe40] ss:$16 sps:$4 sm:$0xff]   ;;  %v5141_v63 = vld [vmem:[%s5679_s25 + $0xc64] ss:$16 sps:$4 sm:$0xff]  }
  0xb5   : > { %3666 = vmatprep.subr.bf16.mxu1 %v5068_v0  ;;  %v5144_v0 = vld [vmem:[%s5679_s25 + $0xe64] ss:$16 sps:$4 sm:$0xff]  }
  0xb7   : > { %3626 = vmatpush1.bf16.msra.mxu0 %v5063_v1  ;;  %v5139_v1 = vld [vmem:[%s5679_s25 + $0xc60] ss:$16 sps:$4 sm:$0xff]  }
  0xb8   : > { %3667 = vmatpush1.bf16.msra.mxu1 %v5066_v2  ;;  %3627 = vmatprep.subr.bf16.mxu0 %v5071_v3  ;;  %v5142_v2 = vld [vmem:[%s5679_s25 + $0xe60] ss:$16 sps:$4 sm:$0xff]   ;;  %v5147_v3 = vld [vmem:[%s5679_s25 + $0xc84] ss:$16 sps:$4 sm:$0xff]  }
  0xb9   : > { %3668 = vmatprep.subr.bf16.mxu1 %v5074_v4  ;;  %v5150_v4 = vld [vmem:[%s5679_s25 + $0xe84] ss:$16 sps:$4 sm:$0xff]  }
  0xbb   : > { %3628 = vmatpush1.bf16.msra.mxu0 %v5069_v5  ;;  %v5145_v5 = vld [vmem:[%s5679_s25 + $0xc80] ss:$16 sps:$4 sm:$0xff]  }
  0xbc   : > { %3669 = vmatpush1.bf16.msra.mxu1 %v5072_v6  ;;  %3629 = vmatprep.subr.bf16.mxu0 %v5077_v7  ;;  %v5148_v6 = vld [vmem:[%s5679_s25 + $0xe80] ss:$16 sps:$4 sm:$0xff]   ;;  %v5153_v7 = vld [vmem:[%s5679_s25 + $0xca4] ss:$16 sps:$4 sm:$0xff]  }
  0xbd   : > { %3670 = vmatprep.subr.bf16.mxu1 %v5080_v8  ;;  %v5156_v8 = vld [vmem:[%s5679_s25 + $0xea4] ss:$16 sps:$4 sm:$0xff]  }
  0xbf   : > { %3630 = vmatpush1.bf16.msra.mxu0 %v5075_v9  ;;  %v5151_v9 = vld [vmem:[%s5679_s25 + $0xca0] ss:$16 sps:$4 sm:$0xff]  }
  0xc0   : > { %3671 = vmatpush1.bf16.msra.mxu1 %v5078_v10  ;;  %3631 = vmatprep.subr.bf16.mxu0 %v5083_v11  ;;  %v5154_v10 = vld [vmem:[%s5679_s25 + $0xea0] ss:$16 sps:$4 sm:$0xff]   ;;  %v5159_v11 = vld [vmem:[%s5679_s25 + $0xcc4] ss:$16 sps:$4 sm:$0xff]  }
  0xc1   : > { %3672 = vmatprep.subr.bf16.mxu1 %v5086_v12  ;;  %v5162_v12 = vld [vmem:[%s5679_s25 + $0xec4] ss:$16 sps:$4 sm:$0xff]  }
  0xc3   : > { %3632 = vmatpush1.bf16.msra.mxu0 %v5081_v13  ;;  %v5157_v13 = vld [vmem:[%s5679_s25 + $0xcc0] ss:$16 sps:$4 sm:$0xff]  }
  0xc4   : > { %3673 = vmatpush1.bf16.msra.mxu1 %v5084_v14  ;;  %3633 = vmatprep.subr.bf16.mxu0 %v5089_v15  ;;  %v5160_v14 = vld [vmem:[%s5679_s25 + $0xec0] ss:$16 sps:$4 sm:$0xff]   ;;  %v5165_v15 = vld [vmem:[%s5679_s25 + $0xce4] ss:$16 sps:$4 sm:$0xff]  }
  0xc5   : > { %3674 = vmatprep.subr.bf16.mxu1 %v5092_v16  ;;  %v5168_v16 = vld [vmem:[%s5679_s25 + $0xee4] ss:$16 sps:$4 sm:$0xff]  }
  0xc7   : > { %3634 = vmatpush1.bf16.msra.mxu0 %v5087_v19  ;;  %v5163_v19 = vld [vmem:[%s5679_s25 + $0xce0] ss:$16 sps:$4 sm:$0xff]  }
  0xc8   : > { %3675 = vmatpush1.bf16.msra.mxu1 %v5090_v20  ;;  %3635 = vmatprep.subr.bf16.mxu0 %v5095_v21  ;;  %v5166_v20 = vld [vmem:[%s5679_s25 + $0xee0] ss:$16 sps:$4 sm:$0xff]   ;;  %v5171_v21 = vld [vmem:[%s5679_s25 + $0xd04] ss:$16 sps:$4 sm:$0xff]  }
  0xc9   : > { %3676 = vmatprep.subr.bf16.mxu1 %v5098_v22  ;;  %v5174_v22 = vld [vmem:[%s5679_s25 + $0xf04] ss:$16 sps:$4 sm:$0xff]  }
  0xcb   : > { %3636 = vmatpush1.bf16.msra.mxu0 %v5093_v23  ;;  %v5169_v23 = vld [vmem:[%s5679_s25 + $0xd00] ss:$16 sps:$4 sm:$0xff]  }
  0xcc   : > { %3677 = vmatpush1.bf16.msra.mxu1 %v5096_v24  ;;  %3637 = vmatprep.subr.bf16.mxu0 %v5101_v25  ;;  %v5172_v24 = vld [vmem:[%s5679_s25 + $0xf00] ss:$16 sps:$4 sm:$0xff]   ;;  %v5177_v25 = vld [vmem:[%s5679_s25 + $0xd24] ss:$16 sps:$4 sm:$0xff]  }
  0xcd   : > { %3678 = vmatprep.subr.bf16.mxu1 %v5104_v26  ;;  %v5180_v26 = vld [vmem:[%s5679_s25 + $0xf24] ss:$16 sps:$4 sm:$0xff]  }
  0xcf   : > { %3638 = vmatpush1.bf16.msra.mxu0 %v5099_v29  ;;  %v5175_v29 = vld [vmem:[%s5679_s25 + $0xd20] ss:$16 sps:$4 sm:$0xff]  }
  0xd0   : > { %3679 = vmatpush1.bf16.msra.mxu1 %v5102_v30  ;;  %3639 = vmatprep.subr.bf16.mxu0 %v5107_v31  ;;  %v5178_v30 = vld [vmem:[%s5679_s25 + $0xf20] ss:$16 sps:$4 sm:$0xff]   ;;  %v5183_v31 = vld [vmem:[%s5679_s25 + $0xd44] ss:$16 sps:$4 sm:$0xff]  }
  0xd1   : > { %3680 = vmatprep.subr.bf16.mxu1 %v5110_v32  ;;  %v5186_v32 = vld [vmem:[%s5679_s25 + $0xf44] ss:$16 sps:$4 sm:$0xff]  }
  0xd3   : > { %3640 = vmatpush1.bf16.msra.mxu0 %v5105_v37  ;;  %v5181_v37 = vld [vmem:[%s5679_s25 + $0xd40] ss:$16 sps:$4 sm:$0xff]  }
  0xd4   : > { %3681 = vmatpush1.bf16.msra.mxu1 %v5108_v38  ;;  %3641 = vmatprep.subr.bf16.mxu0 %v5113_v39  ;;  %v5184_v38 = vld [vmem:[%s5679_s25 + $0xf40] ss:$16 sps:$4 sm:$0xff]   ;;  %v5189_v39 = vld [vmem:[%s5679_s25 + $0xd64] ss:$16 sps:$4 sm:$0xff]  }
  0xd5   : > { %3682 = vmatprep.subr.bf16.mxu1 %v5116_v40  ;;  %v5192_v40 = vld [vmem:[%s5679_s25 + $0xf64] ss:$16 sps:$4 sm:$0xff]  }
  0xd7   : > { %3642 = vmatpush1.bf16.msra.mxu0 %v5111_v41  ;;  %v5187_v41 = vld [vmem:[%s5679_s25 + $0xd60] ss:$16 sps:$4 sm:$0xff]  }
  0xd8   : > { %3683 = vmatpush1.bf16.msra.mxu1 %v5114_v42  ;;  %3693 = vmatprep.subr.bf16.mxu0 %v5123_v43  ;;  %v5190_v42 = vld [vmem:[%s5679_s25 + $0xf60] ss:$16 sps:$4 sm:$0xff]   ;;  %v5195_v43 = vld [vmem:[%s5679_s25 + $0xd84] ss:$16 sps:$4 sm:$0xff]  }
  0xd9   : > { %3734 = vmatprep.subr.bf16.mxu1 %v5126_v44  ;;  %v5198_v44 = vld [vmem:[%s5679_s25 + $0xf84] ss:$16 sps:$4 sm:$0xff]  }
  0xda   : > { %3644 = vmatmul.mubr.bf16.vlgmr.msra.gmra.mrb[8].mxu0 %v5939_v49 }
  0xdb   : > { %3685 = vmatmul.mubr.bf16.vlgmr.msra.gmra.mrb[8].mxu1 %v5943_v50  ;;  %3694 = vmatpush1.bf16.msra.mxu0 %v5121_v45  ;;  %v5193_v45 = vld [vmem:[%s5679_s25 + $0xd80] ss:$16 sps:$4 sm:$0xff]  }
  0xdc   : > { %3735 = vmatpush1.bf16.msra.mxu1 %v5124_v46  ;;  %3695 = vmatprep.subr.bf16.mxu0 %v5129_v53  ;;  %v5196_v46 = vld [vmem:[%s5679_s25 + $0xf80] ss:$16 sps:$4 sm:$0xff]   ;;  %v5201_v53 = vld [vmem:[%s5679_s25 + $0xda4] ss:$16 sps:$4 sm:$0xff]  }
  0xdd   : > { %3736 = vmatprep.subr.bf16.mxu1 %v5132_v54  ;;  %3725 = vmatprep.mubr.bf16.mxu0 %v5955_v33  ;;  %v5204_v54 = vld [vmem:[%s5679_s25 + $0xfa4] ss:$16 sps:$4 sm:$0xff]  }
  0xde   : > { %3766 = vmatprep.mubr.bf16.mxu1 %v5959_v34 }
  0xdf   : > { %3696 = vmatpush1.bf16.msra.mxu0 %v5127_v55  ;;  %v5199_v55 = vld [vmem:[%s5679_s25 + $0xda0] ss:$16 sps:$4 sm:$0xff]  }
  0xe0   : > { %3737 = vmatpush1.bf16.msra.mxu1 %v5130_v56  ;;  %3697 = vmatprep.subr.bf16.mxu0 %v5135_v57  ;;  %v5202_v56 = vld [vmem:[%s5679_s25 + $0xfa0] ss:$16 sps:$4 sm:$0xff]   ;;  %v5207_v57 = vld [vmem:[%s5679_s25 + $0xdc4] ss:$16 sps:$4 sm:$0xff]  }
  0xe1   : > { %3738 = vmatprep.subr.bf16.mxu1 %v5138_v59  ;;  %v5210_v59 = vld [vmem:[%s5679_s25 + $0xfc4] ss:$16 sps:$4 sm:$0xff]  }
  0xe3   : > { %3698 = vmatpush1.bf16.msra.mxu0 %v5133_v60  ;;  %v5205_v60 = vld [vmem:[%s5679_s25 + $0xdc0] ss:$16 sps:$4 sm:$0xff]  }
  0xe4   : > { %3739 = vmatpush1.bf16.msra.mxu1 %v5136_v61  ;;  %3699 = vmatprep.subr.bf16.mxu0 %v5141_v63  ;;  %v5208_v61 = vld [vmem:[%s5679_s25 + $0xfc0] ss:$16 sps:$4 sm:$0xff]   ;;  %v5213_v63 = vld [vmem:[%s5679_s25 + $0xde4] ss:$16 sps:$4 sm:$0xff]  }
  0xe5   : > { %3740 = vmatprep.subr.bf16.mxu1 %v5144_v0  ;;  %v5216_v0 = vld [vmem:[%s5679_s25 + $0xfe4] ss:$16 sps:$4 sm:$0xff]  }
  0xe7   : > { %3700 = vmatpush1.bf16.msra.mxu0 %v5139_v1  ;;  %v5211_v1 = vld [vmem:[%s5679_s25 + $0xde0] ss:$16 sps:$4 sm:$0xff]  }
  0xe8   : > { %3741 = vmatpush1.bf16.msra.mxu1 %v5142_v2  ;;  %3701 = vmatprep.subr.bf16.mxu0 %v5147_v3  ;;  %v5214_v2 = vld [vmem:[%s5679_s25 + $0xfe0] ss:$16 sps:$4 sm:$0xff]   ;;  %v5223_v3 = vld [vmem:[%s5679_s25 + $0xc] ss:$16 sps:$4 sm:$0xff]  }
  0xe9   : > { %3742 = vmatprep.subr.bf16.mxu1 %v5150_v4  ;;  %v5226_v4 = vld [vmem:[%s5679_s25 + $0x20c] ss:$16 sps:$4 sm:$0xff]  }
  0xeb   : > { %3702 = vmatpush1.bf16.msra.mxu0 %v5145_v5  ;;  %v6027_v5 = vcombine.low %v5946_v51, %v5946_v51  ;;  %v5227_v51 = vld [vmem:[%s5679_s25 + $0x28] ss:$16 sps:$4 sm:$0xff]  }
  0xec   : > { %3743 = vmatpush1.bf16.msra.mxu1 %v5148_v6  ;;  %3703 = vmatprep.subr.bf16.mxu0 %v5153_v7  ;;  %v6031_v6 = vcombine.low %v5949_v52, %v5949_v52  ;;  %v5221_v7 = vld [vmem:[%s5679_s25 + $0x8] ss:$16 sps:$4 sm:$0xff]   ;;  %v5235_v52 = vld [vmem:[%s5679_s25 + $0x4c] ss:$16 sps:$4 sm:$0xff]  }
  0xed   : > { %3744 = vmatprep.subr.bf16.mxu1 %v5156_v8  ;;  %v5224_v8 = vld [vmem:[%s5679_s25 + $0x208] ss:$16 sps:$4 sm:$0xff]  }
  0xef   : > { %3704 = vmatpush1.bf16.msra.mxu0 %v5151_v9  ;;  %v5229_v9 = vld [vmem:[%s5679_s25 + $0x2c] ss:$16 sps:$4 sm:$0xff]  }
  0xf0   : > { %3745 = vmatpush1.bf16.msra.mxu1 %v5154_v10  ;;  %3705 = vmatprep.subr.bf16.mxu0 %v5159_v11  ;;  %v5232_v10 = vld [vmem:[%s5679_s25 + $0x22c] ss:$16 sps:$4 sm:$0xff]   ;;  %v5230_v11 = vld [vmem:[%s5679_s25 + $0x228] ss:$16 sps:$4 sm:$0xff]  }
  0xf1   : > { %3746 = vmatprep.subr.bf16.mxu1 %v5162_v12  ;;  %v5238_v12 = vld [vmem:[%s5679_s25 + $0x24c] ss:$16 sps:$4 sm:$0xff]  }
  0xf3   : > { %3706 = vmatpush1.bf16.msra.mxu0 %v5157_v13  ;;  %v5233_v13 = vld [vmem:[%s5679_s25 + $0x48] ss:$16 sps:$4 sm:$0xff]  }
  0xf4   : > { %3747 = vmatpush1.bf16.msra.mxu1 %v5160_v14  ;;  %3707 = vmatprep.subr.bf16.mxu0 %v5165_v15  ;;  %v5236_v14 = vld [vmem:[%s5679_s25 + $0x248] ss:$16 sps:$4 sm:$0xff]   ;;  %v5241_v15 = vld [vmem:[%s5679_s25 + $0x6c] ss:$16 sps:$4 sm:$0xff]  }
  0xf5   : > { %3748 = vmatprep.subr.bf16.mxu1 %v5168_v16  ;;  %v5244_v16 = vld [vmem:[%s5679_s25 + $0x26c] ss:$16 sps:$4 sm:$0xff]  }
  0xf7   : > { %3708 = vmatpush1.bf16.msra.mxu0 %v5163_v19  ;;  %v5242_v19 = vld [vmem:[%s5679_s25 + $0x268] ss:$16 sps:$4 sm:$0xff]  }
  0xf8   : > { %3749 = vmatpush1.bf16.msra.mxu1 %v5166_v20  ;;  %3709 = vmatprep.subr.bf16.mxu0 %v5171_v21  ;;  %v5250_v20 = vld [vmem:[%s5679_s25 + $0x28c] ss:$16 sps:$4 sm:$0xff]   ;;  %v5245_v21 = vld [vmem:[%s5679_s25 + $0x88] ss:$16 sps:$4 sm:$0xff]  }
  0xf9   : > { %3750 = vmatprep.subr.bf16.mxu1 %v5174_v22  ;;  %v5248_v22 = vld [vmem:[%s5679_s25 + $0x288] ss:$16 sps:$4 sm:$0xff]  }
  0xfb   : > { %3710 = vmatpush1.bf16.msra.mxu0 %v5169_v23  ;;  %v5253_v23 = vld [vmem:[%s5679_s25 + $0xac] ss:$16 sps:$4 sm:$0xff]  }
  0xfc   : > { %3751 = vmatpush1.bf16.msra.mxu1 %v5172_v24  ;;  %3711 = vmatprep.subr.bf16.mxu0 %v5177_v25  ;;  %v5256_v24 = vld [vmem:[%s5679_s25 + $0x2ac] ss:$16 sps:$4 sm:$0xff]   ;;  %v5251_v25 = vld [vmem:[%s5679_s25 + $0xa8] ss:$16 sps:$4 sm:$0xff]  }
  0xfd   : > { %3752 = vmatprep.subr.bf16.mxu1 %v5180_v26  ;;  %v5254_v26 = vld [vmem:[%s5679_s25 + $0x2a8] ss:$16 sps:$4 sm:$0xff]  }
  0xff   : > { %3712 = vmatpush1.bf16.msra.mxu0 %v5175_v29  ;;  %v5259_v29 = vld [vmem:[%s5679_s25 + $0xcc] ss:$16 sps:$4 sm:$0xff]  }
 0x100   : > { %3753 = vmatpush1.bf16.msra.mxu1 %v5178_v30  ;;  %3713 = vmatprep.subr.bf16.mxu0 %v5183_v31  ;;  %v5262_v30 = vld [vmem:[%s5679_s25 + $0x2cc] ss:$16 sps:$4 sm:$0xff]  }
 0x101   : > { %3754 = vmatprep.subr.bf16.mxu1 %v5186_v32 }
 0x103   : > { %3714 = vmatpush1.bf16.msra.mxu0 %v5181_v37  ;;  %v5257_v37 = vld [vmem:[%s5679_s25 + $0xc8] ss:$16 sps:$4 sm:$0xff]  }
 0x104   : > { %3755 = vmatpush1.bf16.msra.mxu1 %v5184_v38  ;;  %3715 = vmatprep.subr.bf16.mxu0 %v5189_v39  ;;  %v5260_v38 = vld [vmem:[%s5679_s25 + $0x2c8] ss:$16 sps:$4 sm:$0xff]  }
 0x105   : > { %3756 = vmatprep.subr.bf16.mxu1 %v5192_v40 }
 0x107   : > { %3716 = vmatpush1.bf16.msra.mxu0 %v5187_v41 }
 0x108   : > { %3757 = vmatpush1.bf16.msra.mxu1 %v5190_v42  ;;  %3717 = vmatprep.subr.bf16.mxu0 %v5195_v43 }
 0x109   : > { %3758 = vmatprep.subr.bf16.mxu1 %v5198_v44 }
 0x10b   : > { %3718 = vmatpush1.bf16.msra.mxu0 %v5193_v45 }
 0x10c   : > { %3759 = vmatpush1.bf16.msra.mxu1 %v5196_v46  ;;  %3719 = vmatprep.subr.bf16.mxu0 %v5201_v53  ;;  %v5265_v53 = vld [vmem:[%s5679_s25 + $0xec] ss:$16 sps:$4 sm:$0xff]  }
 0x10d   : > { %3760 = vmatprep.subr.bf16.mxu1 %v5204_v54  ;;  %v5268_v54 = vld [vmem:[%s5679_s25 + $0x2ec] ss:$16 sps:$4 sm:$0xff]  }
 0x10f   : > { %3720 = vmatpush1.bf16.msra.mxu0 %v5199_v55  ;;  %v5263_v55 = vld [vmem:[%s5679_s25 + $0xe8] ss:$16 sps:$4 sm:$0xff]  }
 0x110   : > { %3761 = vmatpush1.bf16.msra.mxu1 %v5202_v56  ;;  %3721 = vmatprep.subr.bf16.mxu0 %v5207_v57  ;;  %v5266_v56 = vld [vmem:[%s5679_s25 + $0x2e8] ss:$16 sps:$4 sm:$0xff]   ;;  %v5271_v57 = vld [vmem:[%s5679_s25 + $0x10c] ss:$16 sps:$4 sm:$0xff]  }
 0x111   : > { %3762 = vmatprep.subr.bf16.mxu1 %v5210_v59  ;;  %v5274_v59 = vld [vmem:[%s5679_s25 + $0x30c] ss:$16 sps:$4 sm:$0xff]  }
 0x113   : > { %3722 = vmatpush1.bf16.msra.mxu0 %v5205_v60  ;;  %v5269_v60 = vld [vmem:[%s5679_s25 + $0x108] ss:$16 sps:$4 sm:$0xff]  }
 0x114   : > { %3763 = vmatpush1.bf16.msra.mxu1 %v5208_v61  ;;  %3723 = vmatprep.subr.bf16.mxu0 %v5213_v63  ;;  %v5272_v61 = vld [vmem:[%s5679_s25 + $0x308] ss:$16 sps:$4 sm:$0xff]   ;;  %v5277_v63 = vld [vmem:[%s5679_s25 + $0x12c] ss:$16 sps:$4 sm:$0xff]  }
 0x115   : > { %3764 = vmatprep.subr.bf16.mxu1 %v5216_v0  ;;  %v5280_v0 = vld [vmem:[%s5679_s25 + $0x32c] ss:$16 sps:$4 sm:$0xff]  }
 0x117   : > { %3724 = vmatpush1.bf16.msra.mxu0 %v5211_v1  ;;  %v5275_v1 = vld [vmem:[%s5679_s25 + $0x128] ss:$16 sps:$4 sm:$0xff]  }
 0x118   : > { %3765 = vmatpush1.bf16.msra.mxu1 %v5214_v2  ;;  %3775 = vmatprep.subr.bf16.mxu0 %v5223_v3  ;;  %v5278_v2 = vld [vmem:[%s5679_s25 + $0x328] ss:$16 sps:$4 sm:$0xff]   ;;  %v5283_v3 = vld [vmem:[%s5679_s25 + $0x14c] ss:$16 sps:$4 sm:$0xff]  }
 0x119   : > { %3816 = vmatprep.subr.bf16.mxu1 %v5226_v4  ;;  %v5286_v4 = vld [vmem:[%s5679_s25 + $0x34c] ss:$16 sps:$4 sm:$0xff]  }
 0x11a   : > { %3726 = vmatmul.mubr.bf16.vlgmr.msra.gmra.mrb[12].mxu0 %v6027_v5 }
 0x11b   : > { %3767 = vmatmul.mubr.bf16.vlgmr.msra.gmra.mrb[12].mxu1 %v6031_v6  ;;  %3776 = vmatpush1.bf16.msra.mxu0 %v5221_v7  ;;  %v5281_v7 = vld [vmem:[%s5679_s25 + $0x148] ss:$16 sps:$4 sm:$0xff]  }
 0x11c   : > { %3817 = vmatpush1.bf16.msra.mxu1 %v5224_v8  ;;  %3777 = vmatprep.subr.bf16.mxu0 %v5229_v9  ;;  %v5284_v8 = vld [vmem:[%s5679_s25 + $0x348] ss:$16 sps:$4 sm:$0xff]   ;;  %v5289_v9 = vld [vmem:[%s5679_s25 + $0x16c] ss:$16 sps:$4 sm:$0xff]  }
 0x11d   : > { %3818 = vmatprep.subr.bf16.mxu1 %v5232_v10  ;;  %3807 = vmatprep.mubr.bf16.mxu0 %v5732_v58  ;;  %v5239_v58 = vld [vmem:[%s5679_s25 + $0x68] ss:$16 sps:$4 sm:$0xff]   ;;  %v5292_v10 = vld [vmem:[%s5679_s25 + $0x36c] ss:$16 sps:$4 sm:$0xff]  }
 0x11e   : > { %3848 = vmatprep.mubr.bf16.mxu1 %v5737_v62  ;;  %v5247_v62 = vld [vmem:[%s5679_s25 + $0x8c] ss:$16 sps:$4 sm:$0xff]  }
 0x11f   : > { %3778 = vmatpush1.bf16.msra.mxu0 %v5227_v51  ;;  %v5287_v51 = vld [vmem:[%s5679_s25 + $0x168] ss:$16 sps:$4 sm:$0xff]  }
 0x120   : > { %3819 = vmatpush1.bf16.msra.mxu1 %v5230_v11  ;;  %3779 = vmatprep.subr.bf16.mxu0 %v5235_v52  ;;  %v5290_v11 = vld [vmem:[%s5679_s25 + $0x368] ss:$16 sps:$4 sm:$0xff]   ;;  %v5295_v52 = vld [vmem:[%s5679_s25 + $0x18c] ss:$16 sps:$4 sm:$0xff]  }
 0x121   : > { %3820 = vmatprep.subr.bf16.mxu1 %v5238_v12  ;;  %v5298_v12 = vld [vmem:[%s5679_s25 + $0x38c] ss:$16 sps:$4 sm:$0xff]  }
 0x123   : > { %3780 = vmatpush1.bf16.msra.mxu0 %v5233_v13  ;;  %v5293_v13 = vld [vmem:[%s5679_s25 + $0x188] ss:$16 sps:$4 sm:$0xff]  }
 0x124   : > { %3821 = vmatpush1.bf16.msra.mxu1 %v5236_v14  ;;  %3781 = vmatprep.subr.bf16.mxu0 %v5241_v15  ;;  %v5296_v14 = vld [vmem:[%s5679_s25 + $0x388] ss:$16 sps:$4 sm:$0xff]   ;;  %v5301_v15 = vld [vmem:[%s5679_s25 + $0x1ac] ss:$16 sps:$4 sm:$0xff]  }
 0x125   : > { %3822 = vmatprep.subr.bf16.mxu1 %v5244_v16  ;;  %v5304_v16 = vld [vmem:[%s5679_s25 + $0x3ac] ss:$16 sps:$4 sm:$0xff]  }
 0x127   : > { %3782 = vmatpush1.bf16.msra.mxu0 %v5239_v58  ;;  %v5299_v58 = vld [vmem:[%s5679_s25 + $0x1a8] ss:$16 sps:$4 sm:$0xff]  }
 0x128   : > { %3823 = vmatpush1.bf16.msra.mxu1 %v5242_v19  ;;  %3783 = vmatprep.subr.bf16.mxu0 %v5247_v62  ;;  %v5302_v19 = vld [vmem:[%s5679_s25 + $0x3a8] ss:$16 sps:$4 sm:$0xff]   ;;  %v5307_v62 = vld [vmem:[%s5679_s25 + $0x1cc] ss:$16 sps:$4 sm:$0xff]  }
 0x129   : > { %3824 = vmatprep.subr.bf16.mxu1 %v5250_v20  ;;  %v5310_v20 = vld [vmem:[%s5679_s25 + $0x3cc] ss:$16 sps:$4 sm:$0xff]  }
 0x12b   : > { %3784 = vmatpush1.bf16.msra.mxu0 %v5245_v21  ;;  %v5305_v21 = vld [vmem:[%s5679_s25 + $0x1c8] ss:$16 sps:$4 sm:$0xff]  }
 0x12c   : > { %3825 = vmatpush1.bf16.msra.mxu1 %v5248_v22  ;;  %3785 = vmatprep.subr.bf16.mxu0 %v5253_v23  ;;  %v5308_v22 = vld [vmem:[%s5679_s25 + $0x3c8] ss:$16 sps:$4 sm:$0xff]   ;;  %v5313_v23 = vld [vmem:[%s5679_s25 + $0x1ec] ss:$16 sps:$4 sm:$0xff]  }
 0x12d   : > { %3826 = vmatprep.subr.bf16.mxu1 %v5256_v24  ;;  %v3481_v31 = vpop.f32.mrb[0].mxu0  ;;  %v5316_v24 = vld [vmem:[%s5679_s25 + $0x3ec] ss:$16 sps:$4 sm:$0xff]  }
 0x12e   : > { %v3522_v32 = vpop.f32.mrb[0].mxu1  ;;  %v3483_v40 = vpop.f32.mrb[1].mxu0 }
 0x12f   : > { %v6063_v39 = vadd.f32 %v3522_v32, %v3481_v31  ;;  %v3524_v41 = vpop.f32.mrb[1].mxu1  ;;  %v3485_v43 = vpop.f32.mrb[2].mxu0  ;;  %3786 = vmatpush1.bf16.msra.mxu0 %v5251_v25  ;;  %v5311_v25 = vld [vmem:[%s5679_s25 + $0x1e8] ss:$16 sps:$4 sm:$0xff]  }
 0x130   : > { %v6065_v42 = vadd.f32 %v3524_v41, %v3483_v40  ;;  %v3526_v44 = vpop.f32.mrb[2].mxu1  ;;  %3827 = vmatpush1.bf16.msra.mxu1 %v5254_v26  ;;  %v3486_v45 = vpop.f32.mrb[3].mxu0  ;;  %3787 = vmatprep.subr.bf16.mxu0 %v5259_v29  ;;  %v5314_v26 = vld [vmem:[%s5679_s25 + $0x3e8] ss:$16 sps:$4 sm:$0xff]   ;;  %v5319_v29 = vld [vmem:[%s5679_s25 + $0x40c] ss:$16 sps:$4 sm:$0xff]  }
 0x131   : > { %v3527_v46 = vpop.f32.mrb[3].mxu1  ;;  %3828 = vmatprep.subr.bf16.mxu1 %v5262_v30  ;;  %v5322_v30 = vld [vmem:[%s5679_s25 + $0x60c] ss:$16 sps:$4 sm:$0xff]   ;;  %v5317_v31 = vld [vmem:[%s5679_s25 + $0x408] ss:$16 sps:$4 sm:$0xff]  }
 0x132   : > { %v5320_v32 = vld [vmem:[%s5679_s25 + $0x608] ss:$16 sps:$4 sm:$0xff]   ;;  %v5331_v43 = vld [vmem:[%s5679_s25 + $0x44c] ss:$16 sps:$4 sm:$0xff]  }
 0x133   : > { %3788 = vmatpush1.bf16.msra.mxu0 %v5257_v37  ;;  %v5325_v37 = vld [vmem:[%s5679_s25 + $0x42c] ss:$16 sps:$4 sm:$0xff]   ;;  %v5323_v40 = vld [vmem:[%s5679_s25 + $0x428] ss:$16 sps:$4 sm:$0xff]  }
 0x134   : > { %3829 = vmatpush1.bf16.msra.mxu1 %v5260_v38  ;;  %3789 = vmatprep.subr.bf16.mxu0 %v5265_v53  ;;  %v5328_v38 = vld [vmem:[%s5679_s25 + $0x62c] ss:$16 sps:$4 sm:$0xff]   ;;  %v5326_v41 = vld [vmem:[%s5679_s25 + $0x628] ss:$16 sps:$4 sm:$0xff]  }
 0x135   : > { %3830 = vmatprep.subr.bf16.mxu1 %v5268_v54  ;;  %v5334_v44 = vld [vmem:[%s5679_s25 + $0x64c] ss:$16 sps:$4 sm:$0xff]   ;;  %v5335_v53 = vld [vmem:[%s5679_s25 + $0x468] ss:$16 sps:$4 sm:$0xff]  }
 0x136   : > { %v5337_v45 = vld [vmem:[%s5679_s25 + $0x46c] ss:$16 sps:$4 sm:$0xff]  }
 0x137   : > { %3790 = vmatpush1.bf16.msra.mxu0 %v5263_v55  ;;  %v5340_v46 = vld [vmem:[%s5679_s25 + $0x66c] ss:$16 sps:$4 sm:$0xff]   ;;  %v5341_v55 = vld [vmem:[%s5679_s25 + $0x488] ss:$16 sps:$4 sm:$0xff]  }
 0x138   : > { %3831 = vmatpush1.bf16.msra.mxu1 %v5266_v56  ;;  %3791 = vmatprep.subr.bf16.mxu0 %v5271_v57  ;;  %v5346_v54 = vld [vmem:[%s5679_s25 + $0x68c] ss:$16 sps:$4 sm:$0xff]   ;;  %v5344_v56 = vld [vmem:[%s5679_s25 + $0x688] ss:$16 sps:$4 sm:$0xff]  }
 0x139   : > { %3832 = vmatprep.subr.bf16.mxu1 %v5274_v59  ;;  %v5349_v57 = vld [vmem:[%s5679_s25 + $0x4ac] ss:$16 sps:$4 sm:$0xff]  }
 0x13a   : > { %v5352_v59 = vld [vmem:[%s5679_s25 + $0x6ac] ss:$16 sps:$4 sm:$0xff]  }
 0x13b   : > { %3792 = vmatpush1.bf16.msra.mxu0 %v5269_v60  ;;  %v5347_v60 = vld [vmem:[%s5679_s25 + $0x4a8] ss:$16 sps:$4 sm:$0xff]  }
 0x13c   : > { %3833 = vmatpush1.bf16.msra.mxu1 %v5272_v61  ;;  %3793 = vmatprep.subr.bf16.mxu0 %v5277_v63  ;;  %v5350_v61 = vld [vmem:[%s5679_s25 + $0x6a8] ss:$16 sps:$4 sm:$0xff]   ;;  %v5355_v63 = vld [vmem:[%s5679_s25 + $0x4cc] ss:$16 sps:$4 sm:$0xff]  }
 0x13d   : > { %3834 = vmatprep.subr.bf16.mxu1 %v5280_v0  ;;  %v5358_v0 = vld [vmem:[%s5679_s25 + $0x6cc] ss:$16 sps:$4 sm:$0xff]  }
 0x13f   : > { %3794 = vmatpush1.bf16.msra.mxu0 %v5275_v1 }
 0x140   : > { %3835 = vmatpush1.bf16.msra.mxu1 %v5278_v2  ;;  %3795 = vmatprep.subr.bf16.mxu0 %v5283_v3 }
 0x141   : > { %3836 = vmatprep.subr.bf16.mxu1 %v5286_v4 }
 0x143   : > { %3796 = vmatpush1.bf16.msra.mxu0 %v5281_v7 }
 0x144   : > { %3837 = vmatpush1.bf16.msra.mxu1 %v5284_v8  ;;  %3797 = vmatprep.subr.bf16.mxu0 %v5289_v9 }
 0x145   : > { %3838 = vmatprep.subr.bf16.mxu1 %v5292_v10 }
 0x147   : > { %3798 = vmatpush1.bf16.msra.mxu0 %v5287_v51  ;;  %v5353_v51 = vld [vmem:[%s5679_s25 + $0x4c8] ss:$16 sps:$4 sm:$0xff]  }
 0x148   : > { %3839 = vmatpush1.bf16.msra.mxu1 %v5290_v11  ;;  %3799 = vmatprep.subr.bf16.mxu0 %v5295_v52  ;;  %v5356_v11 = vld [vmem:[%s5679_s25 + $0x6c8] ss:$16 sps:$4 sm:$0xff]  }
 0x149   : > { %3840 = vmatprep.subr.bf16.mxu1 %v5298_v12 }
 0x14b   : > { %3800 = vmatpush1.bf16.msra.mxu0 %v5293_v13 }
 0x14c   : > { %3841 = vmatpush1.bf16.msra.mxu1 %v5296_v14  ;;  %3801 = vmatprep.subr.bf16.mxu0 %v5301_v15  ;;  %v5359_v15 = vld [vmem:[%s5679_s25 + $0x4e8] ss:$16 sps:$4 sm:$0xff]  }
 0x14d   : > { %3842 = vmatprep.subr.bf16.mxu1 %v5304_v16  ;;  %v5362_v16 = vld [vmem:[%s5679_s25 + $0x6e8] ss:$16 sps:$4 sm:$0xff]  }
 0x14f   : > { %3802 = vmatpush1.bf16.msra.mxu0 %v5299_v58  ;;  %v5367_v58 = vld [vmem:[%s5679_s25 + $0x50c] ss:$16 sps:$4 sm:$0xff]  }
 0x150   : > { %3843 = vmatpush1.bf16.msra.mxu1 %v5302_v19  ;;  %3803 = vmatprep.subr.bf16.mxu0 %v5307_v62  ;;  %v5370_v19 = vld [vmem:[%s5679_s25 + $0x70c] ss:$16 sps:$4 sm:$0xff]   ;;  %v5365_v62 = vld [vmem:[%s5679_s25 + $0x508] ss:$16 sps:$4 sm:$0xff]  }
 0x151   : > { %3844 = vmatprep.subr.bf16.mxu1 %v5310_v20  ;;  %v5368_v20 = vld [vmem:[%s5679_s25 + $0x708] ss:$16 sps:$4 sm:$0xff]  }
 0x153   : > { %3804 = vmatpush1.bf16.msra.mxu0 %v5305_v21  ;;  %v5373_v21 = vld [vmem:[%s5679_s25 + $0x52c] ss:$16 sps:$4 sm:$0xff]  }
 0x154   : > { %3845 = vmatpush1.bf16.msra.mxu1 %v5308_v22  ;;  %3805 = vmatprep.subr.bf16.mxu0 %v5313_v23  ;;  %v5376_v22 = vld [vmem:[%s5679_s25 + $0x72c] ss:$16 sps:$4 sm:$0xff]   ;;  %v5371_v23 = vld [vmem:[%s5679_s25 + $0x528] ss:$16 sps:$4 sm:$0xff]  }
 0x155   : > { %3846 = vmatprep.subr.bf16.mxu1 %v5316_v24  ;;  %v5374_v24 = vld [vmem:[%s5679_s25 + $0x728] ss:$16 sps:$4 sm:$0xff]  }
 0x157   : > { %3806 = vmatpush1.bf16.msra.mxu0 %v5311_v25  ;;  %v5379_v25 = vld [vmem:[%s5679_s25 + $0x54c] ss:$16 sps:$4 sm:$0xff]  }
 0x158   : > { %3847 = vmatpush1.bf16.msra.mxu1 %v5314_v26  ;;  %3857 = vmatprep.subr.bf16.mxu0 %v5319_v29  ;;  %v5382_v26 = vld [vmem:[%s5679_s25 + $0x74c] ss:$16 sps:$4 sm:$0xff]   ;;  %v5377_v29 = vld [vmem:[%s5679_s25 + $0x548] ss:$16 sps:$4 sm:$0xff]  }
 0x159   : > { %3898 = vmatprep.subr.bf16.mxu1 %v5322_v30  ;;  %v5380_v30 = vld [vmem:[%s5679_s25 + $0x748] ss:$16 sps:$4 sm:$0xff]  }
 0x15a   : > { %3808 = vmatmul.mubr.bf16.vlgmr.msra.gmra.mrb[16].mxu0 %v5759_v17  ;;  %v5329_v17 = vld [vmem:[%s5679_s25 + $0x448] ss:$16 sps:$4 sm:$0xff]  }
 0x15b   : > { %3849 = vmatmul.mubr.bf16.vlgmr.msra.gmra.mrb[16].mxu1 %v5761_v18  ;;  %3858 = vmatpush1.bf16.msra.mxu0 %v5317_v31  ;;  %v5332_v18 = vld [vmem:[%s5679_s25 + $0x648] ss:$16 sps:$4 sm:$0xff]   ;;  %v5385_v31 = vld [vmem:[%s5679_s25 + $0x56c] ss:$16 sps:$4 sm:$0xff]  }
 0x15c   : > { %3899 = vmatpush1.bf16.msra.mxu1 %v5320_v32  ;;  %3859 = vmatprep.subr.bf16.mxu0 %v5325_v37  ;;  %v5388_v32 = vld [vmem:[%s5679_s25 + $0x76c] ss:$16 sps:$4 sm:$0xff]   ;;  %v5383_v37 = vld [vmem:[%s5679_s25 + $0x568] ss:$16 sps:$4 sm:$0xff]  }
 0x15d   : > { %3900 = vmatprep.subr.bf16.mxu1 %v5328_v38  ;;  %3889 = vmatprep.mubr.bf16.mxu0 %v5799_v47  ;;  %v5338_v47 = vld [vmem:[%s5679_s25 + $0x668] ss:$16 sps:$4 sm:$0xff]  }
 0x15e   : > { %3930 = vmatprep.mubr.bf16.mxu1 %v5803_v48  ;;  %v5343_v48 = vld [vmem:[%s5679_s25 + $0x48c] ss:$16 sps:$4 sm:$0xff]   ;;  %v5386_v38 = vld [vmem:[%s5679_s25 + $0x768] ss:$16 sps:$4 sm:$0xff]  }
 0x15f   : > { %3860 = vmatpush1.bf16.msra.mxu0 %v5323_v40  ;;  %v5391_v40 = vld [vmem:[%s5679_s25 + $0x58c] ss:$16 sps:$4 sm:$0xff]  }
 0x160   : > { %3901 = vmatpush1.bf16.msra.mxu1 %v5326_v41  ;;  %3861 = vmatprep.subr.bf16.mxu0 %v5331_v43  ;;  %v5394_v41 = vld [vmem:[%s5679_s25 + $0x78c] ss:$16 sps:$4 sm:$0xff]   ;;  %v5389_v43 = vld [vmem:[%s5679_s25 + $0x588] ss:$16 sps:$4 sm:$0xff]  }
 0x161   : > { %3902 = vmatprep.subr.bf16.mxu1 %v5334_v44  ;;  %v5392_v44 = vld [vmem:[%s5679_s25 + $0x788] ss:$16 sps:$4 sm:$0xff]  }
 0x163   : > { %3862 = vmatpush1.bf16.msra.mxu0 %v5329_v17  ;;  %v5397_v17 = vld [vmem:[%s5679_s25 + $0x5ac] ss:$16 sps:$4 sm:$0xff]  }
 0x164   : > { %3903 = vmatpush1.bf16.msra.mxu1 %v5332_v18  ;;  %3863 = vmatprep.subr.bf16.mxu0 %v5337_v45  ;;  %v5400_v18 = vld [vmem:[%s5679_s25 + $0x7ac] ss:$16 sps:$4 sm:$0xff]   ;;  %v5395_v45 = vld [vmem:[%s5679_s25 + $0x5a8] ss:$16 sps:$4 sm:$0xff]  }
 0x165   : > { %3904 = vmatprep.subr.bf16.mxu1 %v5340_v46  ;;  %v5398_v46 = vld [vmem:[%s5679_s25 + $0x7a8] ss:$16 sps:$4 sm:$0xff]  }
 0x167   : > { %3864 = vmatpush1.bf16.msra.mxu0 %v5335_v53  ;;  %v5403_v53 = vld [vmem:[%s5679_s25 + $0x5cc] ss:$16 sps:$4 sm:$0xff]  }
 0x168   : > { %3905 = vmatpush1.bf16.msra.mxu1 %v5338_v47  ;;  %3865 = vmatprep.subr.bf16.mxu0 %v5343_v48  ;;  %v5406_v47 = vld [vmem:[%s5679_s25 + $0x7cc] ss:$16 sps:$4 sm:$0xff]   ;;  %v5401_v48 = vld [vmem:[%s5679_s25 + $0x5c8] ss:$16 sps:$4 sm:$0xff]  }
 0x169   : > { %3906 = vmatprep.subr.bf16.mxu1 %v5346_v54  ;;  %v5404_v54 = vld [vmem:[%s5679_s25 + $0x7c8] ss:$16 sps:$4 sm:$0xff]  }
 0x16b   : > { %3866 = vmatpush1.bf16.msra.mxu0 %v5341_v55  ;;  %v5409_v55 = vld [vmem:[%s5679_s25 + $0x5ec] ss:$16 sps:$4 sm:$0xff]  }
 0x16c   : > { %3907 = vmatpush1.bf16.msra.mxu1 %v5344_v56  ;;  %3867 = vmatprep.subr.bf16.mxu0 %v5349_v57  ;;  %v5412_v56 = vld [vmem:[%s5679_s25 + $0x7ec] ss:$16 sps:$4 sm:$0xff]   ;;  %v5407_v57 = vld [vmem:[%s5679_s25 + $0x5e8] ss:$16 sps:$4 sm:$0xff]  }
 0x16d   : > { %3908 = vmatprep.subr.bf16.mxu1 %v5352_v59  ;;  %v3563_v1 = vpop.f32.mrb[4].mxu0  ;;  %v5410_v59 = vld [vmem:[%s5679_s25 + $0x7e8] ss:$16 sps:$4 sm:$0xff]  }
 0x16e   : > { %v3604_v2 = vpop.f32.mrb[4].mxu1  ;;  %v3564_v3 = vadd.f32 %v3563_v1, %v6063_v39  ;;  %v3565_v4 = vpop.f32.mrb[5].mxu0  ;;  %v5361_v39 = vld [vmem:[%s5679_s25 + $0x4ec] ss:$16 sps:$4 sm:$0xff]  }
 0x16f   : > { %v3606_v7 = vpop.f32.mrb[5].mxu1  ;;  %v3566_v8 = vadd.f32 %v3565_v4, %v6065_v42  ;;  %v3567_v9 = vpop.f32.mrb[6].mxu0  ;;  %3868 = vmatpush1.bf16.msra.mxu0 %v5347_v60  ;;  %v5364_v42 = vld [vmem:[%s5679_s25 + $0x6ec] ss:$16 sps:$4 sm:$0xff]   ;;  %v5422_v4 = vld [vmem:[%s5679_s25 + $0xa28] ss:$16 sps:$4 sm:$0xff]  }
 0x170   : > { %v3608_v10 = vpop.f32.mrb[6].mxu1  ;;  %3909 = vmatpush1.bf16.msra.mxu1 %v5350_v61  ;;  %v6137_v52 = vadd.f32 %v3604_v2, %v3564_v3  ;;  %v3568_v12 = vpop.f32.mrb[7].mxu0  ;;  %3869 = vmatprep.subr.bf16.mxu0 %v5355_v63  ;;  %v5415_v60 = vld [vmem:[%s5679_s25 + $0x80c] ss:$16 sps:$4 sm:$0xff]   ;;  %v5413_v63 = vld [vmem:[%s5679_s25 + $0x808] ss:$16 sps:$4 sm:$0xff]  }
 0x171   : > { %v3609_v13 = vpop.f32.mrb[7].mxu1  ;;  %3910 = vmatprep.subr.bf16.mxu1 %v5358_v0  ;;  %v6141_v14 = vadd.f32 %v3606_v7, %v3566_v8  ;;  %v5418_v61 = vld [vmem:[%s5679_s25 + $0xa0c] ss:$16 sps:$4 sm:$0xff]   ;;  %v5416_v0 = vld [vmem:[%s5679_s25 + $0xa08] ss:$16 sps:$4 sm:$0xff]  }
 0x172   : > { %v5421_v1 = vld [vmem:[%s5679_s25 + $0x82c] ss:$16 sps:$4 sm:$0xff]   ;;  %v5419_v3 = vld [vmem:[%s5679_s25 + $0x828] ss:$16 sps:$4 sm:$0xff]  }
 0x173   : > { %3870 = vmatpush1.bf16.msra.mxu0 %v5353_v51  ;;  %v5424_v2 = vld [vmem:[%s5679_s25 + $0xa2c] ss:$16 sps:$4 sm:$0xff]   ;;  %v5431_v51 = vld [vmem:[%s5679_s25 + $0x868] ss:$16 sps:$4 sm:$0xff]  }
 0x174   : > { %3911 = vmatpush1.bf16.msra.mxu1 %v5356_v11  ;;  %3871 = vmatprep.subr.bf16.mxu0 %v5361_v39  ;;  %v5427_v7 = vld [vmem:[%s5679_s25 + $0x84c] ss:$16 sps:$4 sm:$0xff]   ;;  %v5437_v12 = vld [vmem:[%s5679_s25 + $0x888] ss:$16 sps:$4 sm:$0xff]  }
 0x175   : > { %3912 = vmatprep.subr.bf16.mxu1 %v5364_v42  ;;  %v5430_v8 = vld [vmem:[%s5679_s25 + $0xa4c] ss:$16 sps:$4 sm:$0xff]   ;;  %v5440_v13 = vld [vmem:[%s5679_s25 + $0xa88] ss:$16 sps:$4 sm:$0xff]  }
 0x176   : > { %v5433_v9 = vld [vmem:[%s5679_s25 + $0x86c] ss:$16 sps:$4 sm:$0xff]  }
 0x177   : > { %3872 = vmatpush1.bf16.msra.mxu0 %v5359_v15  ;;  %v5436_v10 = vld [vmem:[%s5679_s25 + $0xa6c] ss:$16 sps:$4 sm:$0xff]   ;;  %v5443_v15 = vld [vmem:[%s5679_s25 + $0x8a8] ss:$16 sps:$4 sm:$0xff]  }
 0x178   : > { %3913 = vmatpush1.bf16.msra.mxu1 %v5362_v16  ;;  %3873 = vmatprep.subr.bf16.mxu0 %v5367_v58  ;;  %v5442_v11 = vld [vmem:[%s5679_s25 + $0xa8c] ss:$16 sps:$4 sm:$0xff]   ;;  %v5446_v16 = vld [vmem:[%s5679_s25 + $0xaa8] ss:$16 sps:$4 sm:$0xff]  }
 0x179   : > { %3914 = vmatprep.subr.bf16.mxu1 %v5370_v19  ;;  %v5445_v39 = vld [vmem:[%s5679_s25 + $0x8ac] ss:$16 sps:$4 sm:$0xff]  }
 0x17a   : > { %v5448_v42 = vld [vmem:[%s5679_s25 + $0xaac] ss:$16 sps:$4 sm:$0xff]  }
 0x17b   : > { %3874 = vmatpush1.bf16.msra.mxu0 %v5365_v62  ;;  %v5451_v58 = vld [vmem:[%s5679_s25 + $0x8cc] ss:$16 sps:$4 sm:$0xff]  }
 0x17c   : > { %3915 = vmatpush1.bf16.msra.mxu1 %v5368_v20  ;;  %3875 = vmatprep.subr.bf16.mxu0 %v5373_v21  ;;  %v5454_v19 = vld [vmem:[%s5679_s25 + $0xacc] ss:$16 sps:$4 sm:$0xff]  }
 0x17d   : > { %3916 = vmatprep.subr.bf16.mxu1 %v5376_v22 }
 0x17f   : > { %3876 = vmatpush1.bf16.msra.mxu0 %v5371_v23 }
 0x180   : > { %3917 = vmatpush1.bf16.msra.mxu1 %v5374_v24  ;;  %3877 = vmatprep.subr.bf16.mxu0 %v5379_v25 }
 0x181   : > { %3918 = vmatprep.subr.bf16.mxu1 %v5382_v26 }
 0x183   : > { %3878 = vmatpush1.bf16.msra.mxu0 %v5377_v29  ;;  %v5449_v29 = vld [vmem:[%s5679_s25 + $0x8c8] ss:$16 sps:$4 sm:$0xff]  }
 0x184   : > { %3919 = vmatpush1.bf16.msra.mxu1 %v5380_v30  ;;  %3879 = vmatprep.subr.bf16.mxu0 %v5385_v31  ;;  %v5452_v30 = vld [vmem:[%s5679_s25 + $0xac8] ss:$16 sps:$4 sm:$0xff]  }
 0x185   : > { %3920 = vmatprep.subr.bf16.mxu1 %v5388_v32 }
 0x187   : > { %3880 = vmatpush1.bf16.msra.mxu0 %v5383_v37 }
 0x188   : > { %3921 = vmatpush1.bf16.msra.mxu1 %v5386_v38  ;;  %3881 = vmatprep.subr.bf16.mxu0 %v5391_v40  ;;  %v5455_v40 = vld [vmem:[%s5679_s25 + $0x8e8] ss:$16 sps:$4 sm:$0xff]  }
 0x189   : > { %3922 = vmatprep.subr.bf16.mxu1 %v5394_v41  ;;  %v5458_v41 = vld [vmem:[%s5679_s25 + $0xae8] ss:$16 sps:$4 sm:$0xff]  }
 0x18b   : > { %3882 = vmatpush1.bf16.msra.mxu0 %v5389_v43  ;;  %v5463_v43 = vld [vmem:[%s5679_s25 + $0x90c] ss:$16 sps:$4 sm:$0xff]  }
 0x18c   : > { %3923 = vmatpush1.bf16.msra.mxu1 %v5392_v44  ;;  %3883 = vmatprep.subr.bf16.mxu0 %v5397_v17  ;;  %v5466_v44 = vld [vmem:[%s5679_s25 + $0xb0c] ss:$16 sps:$4 sm:$0xff]   ;;  %v5461_v17 = vld [vmem:[%s5679_s25 + $0x908] ss:$16 sps:$4 sm:$0xff]  }
 0x18d   : > { %3924 = vmatprep.subr.bf16.mxu1 %v5400_v18  ;;  %v5464_v18 = vld [vmem:[%s5679_s25 + $0xb08] ss:$16 sps:$4 sm:$0xff]  }
 0x18f   : > { %3884 = vmatpush1.bf16.msra.mxu0 %v5395_v45  ;;  %v5469_v45 = vld [vmem:[%s5679_s25 + $0x92c] ss:$16 sps:$4 sm:$0xff]  }
 0x190   : > { %3925 = vmatpush1.bf16.msra.mxu1 %v5398_v46  ;;  %3885 = vmatprep.subr.bf16.mxu0 %v5403_v53  ;;  %v5472_v46 = vld [vmem:[%s5679_s25 + $0xb2c] ss:$16 sps:$4 sm:$0xff]   ;;  %v5467_v53 = vld [vmem:[%s5679_s25 + $0x928] ss:$16 sps:$4 sm:$0xff]  }
 0x191   : > { %3926 = vmatprep.subr.bf16.mxu1 %v5406_v47  ;;  %v5470_v47 = vld [vmem:[%s5679_s25 + $0xb28] ss:$16 sps:$4 sm:$0xff]  }
 0x193   : > { %3886 = vmatpush1.bf16.msra.mxu0 %v5401_v48  ;;  %v5475_v48 = vld [vmem:[%s5679_s25 + $0x94c] ss:$16 sps:$4 sm:$0xff]  }
 0x194   : > { %3927 = vmatpush1.bf16.msra.mxu1 %v5404_v54  ;;  %3887 = vmatprep.subr.bf16.mxu0 %v5409_v55  ;;  %v5478_v54 = vld [vmem:[%s5679_s25 + $0xb4c] ss:$16 sps:$4 sm:$0xff]   ;;  %v5473_v55 = vld [vmem:[%s5679_s25 + $0x948] ss:$16 sps:$4 sm:$0xff]  }
 0x195   : > { %3928 = vmatprep.subr.bf16.mxu1 %v5412_v56  ;;  %v5476_v56 = vld [vmem:[%s5679_s25 + $0xb48] ss:$16 sps:$4 sm:$0xff]  }
 0x197   : > { %3888 = vmatpush1.bf16.msra.mxu0 %v5407_v57  ;;  %v5481_v57 = vld [vmem:[%s5679_s25 + $0x96c] ss:$16 sps:$4 sm:$0xff]  }
 0x198   : > { %3929 = vmatpush1.bf16.msra.mxu1 %v5410_v59  ;;  %3939 = vmatprep.subr.bf16.mxu0 %v5415_v60  ;;  %v5484_v59 = vld [vmem:[%s5679_s25 + $0xb6c] ss:$16 sps:$4 sm:$0xff]   ;;  %v5479_v60 = vld [vmem:[%s5679_s25 + $0x968] ss:$16 sps:$4 sm:$0xff]  }
 0x199   : > { %3980 = vmatprep.subr.bf16.mxu1 %v5418_v61  ;;  %v5482_v61 = vld [vmem:[%s5679_s25 + $0xb68] ss:$16 sps:$4 sm:$0xff]  }
 0x19a   : > { %3890 = vmatmul.mubr.bf16.vlgmr.msra.gmra.mrb[20].mxu0 %v5847_v27  ;;  %v5425_v27 = vld [vmem:[%s5679_s25 + $0x848] ss:$16 sps:$4 sm:$0xff]  }
 0x19b   : > { %3931 = vmatmul.mubr.bf16.vlgmr.msra.gmra.mrb[20].mxu1 %v5851_v28  ;;  %3940 = vmatpush1.bf16.msra.mxu0 %v5413_v63  ;;  %v5428_v28 = vld [vmem:[%s5679_s25 + $0xa48] ss:$16 sps:$4 sm:$0xff]   ;;  %v5487_v63 = vld [vmem:[%s5679_s25 + $0x98c] ss:$16 sps:$4 sm:$0xff]  }
 0x19c   : > { %3981 = vmatpush1.bf16.msra.mxu1 %v5416_v0  ;;  %3941 = vmatprep.subr.bf16.mxu0 %v5421_v1  ;;  %v5490_v0 = vld [vmem:[%s5679_s25 + $0xb8c] ss:$16 sps:$4 sm:$0xff]   ;;  %v5485_v1 = vld [vmem:[%s5679_s25 + $0x988] ss:$16 sps:$4 sm:$0xff]  }
 0x19d   : > { %3982 = vmatprep.subr.bf16.mxu1 %v5424_v2  ;;  %3971 = vmatprep.mubr.bf16.mxu0 %v5865_v35  ;;  %v5434_v35 = vld [vmem:[%s5679_s25 + $0xa68] ss:$16 sps:$4 sm:$0xff]  }
 0x19e   : > { %4012 = vmatprep.mubr.bf16.mxu1 %v5869_v36  ;;  %v5439_v36 = vld [vmem:[%s5679_s25 + $0x88c] ss:$16 sps:$4 sm:$0xff]   ;;  %v5488_v2 = vld [vmem:[%s5679_s25 + $0xb88] ss:$16 sps:$4 sm:$0xff]  }
 0x19f   : > { %3942 = vmatpush1.bf16.msra.mxu0 %v5419_v3  ;;  %v5493_v3 = vld [vmem:[%s5679_s25 + $0x9ac] ss:$16 sps:$4 sm:$0xff]  }
 0x1a0   : > { %3983 = vmatpush1.bf16.msra.mxu1 %v5422_v4  ;;  %3943 = vmatprep.subr.bf16.mxu0 %v5427_v7  ;;  %v5496_v4 = vld [vmem:[%s5679_s25 + $0xbac] ss:$16 sps:$4 sm:$0xff]   ;;  %v5491_v7 = vld [vmem:[%s5679_s25 + $0x9a8] ss:$16 sps:$4 sm:$0xff]  }
 0x1a1   : > { %3984 = vmatprep.subr.bf16.mxu1 %v5430_v8  ;;  %v5494_v8 = vld [vmem:[%s5679_s25 + $0xba8] ss:$16 sps:$4 sm:$0xff]  }
 0x1a3   : > { %3944 = vmatpush1.bf16.msra.mxu0 %v5425_v27  ;;  %v5499_v27 = vld [vmem:[%s5679_s25 + $0x9cc] ss:$16 sps:$4 sm:$0xff]  }
 0x1a4   : > { %3985 = vmatpush1.bf16.msra.mxu1 %v5428_v28  ;;  %3945 = vmatprep.subr.bf16.mxu0 %v5433_v9  ;;  %v5502_v28 = vld [vmem:[%s5679_s25 + $0xbcc] ss:$16 sps:$4 sm:$0xff]   ;;  %v5497_v9 = vld [vmem:[%s5679_s25 + $0x9c8] ss:$16 sps:$4 sm:$0xff]  }
 0x1a5   : > { %3986 = vmatprep.subr.bf16.mxu1 %v5436_v10  ;;  %v5500_v10 = vld [vmem:[%s5679_s25 + $0xbc8] ss:$16 sps:$4 sm:$0xff]  }
 0x1a7   : > { %3946 = vmatpush1.bf16.msra.mxu0 %v5431_v51  ;;  %v5505_v51 = vld [vmem:[%s5679_s25 + $0x9ec] ss:$16 sps:$4 sm:$0xff]  }
 0x1a8   : > { %3987 = vmatpush1.bf16.msra.mxu1 %v5434_v35  ;;  %3947 = vmatprep.subr.bf16.mxu0 %v5439_v36  ;;  %v5508_v35 = vld [vmem:[%s5679_s25 + $0xbec] ss:$16 sps:$4 sm:$0xff]   ;;  %v5503_v36 = vld [vmem:[%s5679_s25 + $0x9e8] ss:$16 sps:$4 sm:$0xff]  }
 0x1a9   : > { %3988 = vmatprep.subr.bf16.mxu1 %v5442_v11  ;;  %v5506_v11 = vld [vmem:[%s5679_s25 + $0xbe8] ss:$16 sps:$4 sm:$0xff]  }
 0x1ab   : > { %3948 = vmatpush1.bf16.msra.mxu0 %v5437_v12  ;;  %v5511_v12 = vld [vmem:[%s5679_s25 + $0xc0c] ss:$16 sps:$4 sm:$0xff]  }
 0x1ac   : > { %3989 = vmatpush1.bf16.msra.mxu1 %v5440_v13  ;;  %3949 = vmatprep.subr.bf16.mxu0 %v5445_v39  ;;  %v5514_v13 = vld [vmem:[%s5679_s25 + $0xe0c] ss:$16 sps:$4 sm:$0xff]   ;;  %v5509_v39 = vld [vmem:[%s5679_s25 + $0xc08] ss:$16 sps:$4 sm:$0xff]  }
 0x1ad   : > { %3990 = vmatprep.subr.bf16.mxu1 %v5448_v42  ;;  %v3645_v62 = vpop.f32.mrb[8].mxu0  ;;  %v5512_v42 = vld [vmem:[%s5679_s25 + $0xe08] ss:$16 sps:$4 sm:$0xff]  }
 0x1ae   : > { %v3686_v20 = vpop.f32.mrb[8].mxu1  ;;  %v3646_v21 = vadd.f32 %v3645_v62, %v6137_v52  ;;  %v3647_v22 = vpop.f32.mrb[9].mxu0  ;;  %v5457_v52 = vld [vmem:[%s5679_s25 + $0x8ec] ss:$16 sps:$4 sm:$0xff]  }
 0x1af   : > { %v3688_v23 = vpop.f32.mrb[9].mxu1  ;;  %v3648_v24 = vadd.f32 %v3647_v22, %v6141_v14  ;;  %v3649_v25 = vpop.f32.mrb[10].mxu0  ;;  %3950 = vmatpush1.bf16.msra.mxu0 %v5443_v15  ;;  %v5460_v14 = vld [vmem:[%s5679_s25 + $0xaec] ss:$16 sps:$4 sm:$0xff]  }
 0x1b0   : > { %v3690_v26 = vpop.f32.mrb[10].mxu1  ;;  %3991 = vmatpush1.bf16.msra.mxu1 %v5446_v16  ;;  %v6211_v31 = vadd.f32 %v3686_v20, %v3646_v21  ;;  %v3650_v32 = vpop.f32.mrb[11].mxu0  ;;  %3951 = vmatprep.subr.bf16.mxu0 %v5451_v58  ;;  %v5517_v15 = vld [vmem:[%s5679_s25 + $0xc2c] ss:$16 sps:$4 sm:$0xff]   ;;  %v5515_v58 = vld [vmem:[%s5679_s25 + $0xc28] ss:$16 sps:$4 sm:$0xff]  }
 0x1b1   : > { %v3691_v37 = vpop.f32.mrb[11].mxu1  ;;  %3992 = vmatprep.subr.bf16.mxu1 %v5454_v19  ;;  %v6215_v38 = vadd.f32 %v3688_v23, %v3648_v24  ;;  %v5520_v16 = vld [vmem:[%s5679_s25 + $0xe2c] ss:$16 sps:$4 sm:$0xff]   ;;  %v5518_v19 = vld [vmem:[%s5679_s25 + $0xe28] ss:$16 sps:$4 sm:$0xff]  }
 0x1b2   : > { %v5523_v62 = vld [vmem:[%s5679_s25 + $0xc4c] ss:$16 sps:$4 sm:$0xff]   ;;  %v5527_v23 = vld [vmem:[%s5679_s25 + $0xc68] ss:$16 sps:$4 sm:$0xff]  }
 0x1b3   : > { %3952 = vmatpush1.bf16.msra.mxu0 %v5449_v29  ;;  %v5526_v20 = vld [vmem:[%s5679_s25 + $0xe4c] ss:$16 sps:$4 sm:$0xff]   ;;  %v5533_v25 = vld [vmem:[%s5679_s25 + $0xc88] ss:$16 sps:$4 sm:$0xff]  }
 0x1b4   : > { %3993 = vmatpush1.bf16.msra.mxu1 %v5452_v30  ;;  %3953 = vmatprep.subr.bf16.mxu0 %v5457_v52  ;;  %v5529_v21 = vld [vmem:[%s5679_s25 + $0xc6c] ss:$16 sps:$4 sm:$0xff]   ;;  %v5536_v26 = vld [vmem:[%s5679_s25 + $0xe88] ss:$16 sps:$4 sm:$0xff]  }
 0x1b5   : > { %3994 = vmatprep.subr.bf16.mxu1 %v5460_v14  ;;  %v5532_v22 = vld [vmem:[%s5679_s25 + $0xe6c] ss:$16 sps:$4 sm:$0xff]   ;;  %v5539_v32 = vld [vmem:[%s5679_s25 + $0xca8] ss:$16 sps:$4 sm:$0xff]  }
 0x1b6   : > { %v5538_v24 = vld [vmem:[%s5679_s25 + $0xe8c] ss:$16 sps:$4 sm:$0xff]   ;;  %v5542_v37 = vld [vmem:[%s5679_s25 + $0xea8] ss:$16 sps:$4 sm:$0xff]  }
 0x1b7   : > { %3954 = vmatpush1.bf16.msra.mxu0 %v5455_v40  ;;  %v5541_v29 = vld [vmem:[%s5679_s25 + $0xcac] ss:$16 sps:$4 sm:$0xff]  }
 0x1b8   : > { %3995 = vmatpush1.bf16.msra.mxu1 %v5458_v41  ;;  %3955 = vmatprep.subr.bf16.mxu0 %v5463_v43  ;;  %v5544_v30 = vld [vmem:[%s5679_s25 + $0xeac] ss:$16 sps:$4 sm:$0xff]  }
 0x1b9   : > { %3996 = vmatprep.subr.bf16.mxu1 %v5466_v44  ;;  %v5547_v52 = vld [vmem:[%s5679_s25 + $0xccc] ss:$16 sps:$4 sm:$0xff]  }
 0x1ba   : > { %v5550_v14 = vld [vmem:[%s5679_s25 + $0xecc] ss:$16 sps:$4 sm:$0xff]  }
 0x1bb   : > { %3956 = vmatpush1.bf16.msra.mxu0 %v5461_v17 }
 0x1bc   : > { %3997 = vmatpush1.bf16.msra.mxu1 %v5464_v18  ;;  %3957 = vmatprep.subr.bf16.mxu0 %v5469_v45  ;;  %v5545_v18 = vld [vmem:[%s5679_s25 + $0xcc8] ss:$16 sps:$4 sm:$0xff]   ;;  %v307_v45 = vld [vmem:[#allocation2] sm:$0xff] }
 0x1bd   : > { %3998 = vmatprep.subr.bf16.mxu1 %v5472_v46 }
 0x1bf   : > { %3958 = vmatpush1.bf16.msra.mxu0 %v5467_v53  ;;  %v308_v53 = vld [vmem:[#allocation2 + $0x8] sm:$0xff] }
 0x1c0   : > { %3999 = vmatpush1.bf16.msra.mxu1 %v5470_v47  ;;  %3959 = vmatprep.subr.bf16.mxu0 %v5475_v48 }
 0x1c1   : > { %4000 = vmatprep.subr.bf16.mxu1 %v5478_v54  ;;  %v5548_v54 = vld [vmem:[%s5679_s25 + $0xec8] ss:$16 sps:$4 sm:$0xff]  }
 0x1c3   : > { %3960 = vmatpush1.bf16.msra.mxu0 %v5473_v55 }
 0x1c4   : > { %4001 = vmatpush1.bf16.msra.mxu1 %v5476_v56  ;;  %3961 = vmatprep.subr.bf16.mxu0 %v5481_v57  ;;  %v5553_v57 = vld [vmem:[%s5679_s25 + $0xcec] ss:$16 sps:$4 sm:$0xff]  }
 0x1c5   : > { %4002 = vmatprep.subr.bf16.mxu1 %v5484_v59  ;;  %v5556_v59 = vld [vmem:[%s5679_s25 + $0xeec] ss:$16 sps:$4 sm:$0xff]  }
 0x1c7   : > { %3962 = vmatpush1.bf16.msra.mxu0 %v5479_v60 }
 0x1c8   : > { %4003 = vmatpush1.bf16.msra.mxu1 %v5482_v61  ;;  %3963 = vmatprep.subr.bf16.mxu0 %v5487_v63  ;;  %v5551_v63 = vld [vmem:[%s5679_s25 + $0xce8] ss:$16 sps:$4 sm:$0xff]  }
 0x1c9   : > { %4004 = vmatprep.subr.bf16.mxu1 %v5490_v0  ;;  %v5554_v0 = vld [vmem:[%s5679_s25 + $0xee8] ss:$16 sps:$4 sm:$0xff]  }
 0x1cb   : > { %3964 = vmatpush1.bf16.msra.mxu0 %v5485_v1  ;;  %v5559_v1 = vld [vmem:[%s5679_s25 + $0xd0c] ss:$16 sps:$4 sm:$0xff]  }
 0x1cc   : > { %4005 = vmatpush1.bf16.msra.mxu1 %v5488_v2  ;;  %3965 = vmatprep.subr.bf16.mxu0 %v5493_v3  ;;  %v5562_v2 = vld [vmem:[%s5679_s25 + $0xf0c] ss:$16 sps:$4 sm:$0xff]   ;;  %v5557_v3 = vld [vmem:[%s5679_s25 + $0xd08] ss:$16 sps:$4 sm:$0xff]  }
 0x1cd   : > { %4006 = vmatprep.subr.bf16.mxu1 %v5496_v4  ;;  %v5560_v4 = vld [vmem:[%s5679_s25 + $0xf08] ss:$16 sps:$4 sm:$0xff]  }
 0x1cf   : > { %3966 = vmatpush1.bf16.msra.mxu0 %v5491_v7  ;;  %v5565_v7 = vld [vmem:[%s5679_s25 + $0xd2c] ss:$16 sps:$4 sm:$0xff]  }
 0x1d0   : > { %4007 = vmatpush1.bf16.msra.mxu1 %v5494_v8  ;;  %3967 = vmatprep.subr.bf16.mxu0 %v5499_v27  ;;  %v5568_v8 = vld [vmem:[%s5679_s25 + $0xf2c] ss:$16 sps:$4 sm:$0xff]   ;;  %v5563_v27 = vld [vmem:[%s5679_s25 + $0xd28] ss:$16 sps:$4 sm:$0xff]  }
 0x1d1   : > { %4008 = vmatprep.subr.bf16.mxu1 %v5502_v28  ;;  %v5566_v28 = vld [vmem:[%s5679_s25 + $0xf28] ss:$16 sps:$4 sm:$0xff]  }
 0x1d3   : > { %3968 = vmatpush1.bf16.msra.mxu0 %v5497_v9  ;;  %v5571_v9 = vld [vmem:[%s5679_s25 + $0xd4c] ss:$16 sps:$4 sm:$0xff]  }
 0x1d4   : > { %4009 = vmatpush1.bf16.msra.mxu1 %v5500_v10  ;;  %3969 = vmatprep.subr.bf16.mxu0 %v5505_v51  ;;  %v5574_v10 = vld [vmem:[%s5679_s25 + $0xf4c] ss:$16 sps:$4 sm:$0xff]   ;;  %v5569_v51 = vld [vmem:[%s5679_s25 + $0xd48] ss:$16 sps:$4 sm:$0xff]  }
 0x1d5   : > { %4010 = vmatprep.subr.bf16.mxu1 %v5508_v35  ;;  %v5572_v35 = vld [vmem:[%s5679_s25 + $0xf48] ss:$16 sps:$4 sm:$0xff]  }
 0x1d7   : > { %3970 = vmatpush1.bf16.msra.mxu0 %v5503_v36  ;;  %v5577_v36 = vld [vmem:[%s5679_s25 + $0xd6c] ss:$16 sps:$4 sm:$0xff]  }
 0x1d8   : > { %4011 = vmatpush1.bf16.msra.mxu1 %v5506_v11  ;;  %4021 = vmatprep.subr.bf16.mxu0 %v5511_v12  ;;  %v5580_v11 = vld [vmem:[%s5679_s25 + $0xf6c] ss:$16 sps:$4 sm:$0xff]   ;;  %v5575_v12 = vld [vmem:[%s5679_s25 + $0xd68] ss:$16 sps:$4 sm:$0xff]  }
 0x1d9   : > { %4062 = vmatprep.subr.bf16.mxu1 %v5514_v13  ;;  %v5578_v13 = vld [vmem:[%s5679_s25 + $0xf68] ss:$16 sps:$4 sm:$0xff]  }
 0x1da   : > { %3972 = vmatmul.mubr.bf16.vlgmr.msra.gmra.mrb[24].mxu0 %v5939_v49  ;;  %v5521_v49 = vld [vmem:[%s5679_s25 + $0xc48] ss:$16 sps:$4 sm:$0xff]  }
 0x1db   : > { %4013 = vmatmul.mubr.bf16.vlgmr.msra.gmra.mrb[24].mxu1 %v5943_v50  ;;  %4022 = vmatpush1.bf16.msra.mxu0 %v5509_v39  ;;  %v5524_v50 = vld [vmem:[%s5679_s25 + $0xe48] ss:$16 sps:$4 sm:$0xff]   ;;  %v5583_v39 = vld [vmem:[%s5679_s25 + $0xd8c] ss:$16 sps:$4 sm:$0xff]  }
 0x1dc   : > { %4063 = vmatpush1.bf16.msra.mxu1 %v5512_v42  ;;  %4023 = vmatprep.subr.bf16.mxu0 %v5517_v15  ;;  %v5586_v42 = vld [vmem:[%s5679_s25 + $0xf8c] ss:$16 sps:$4 sm:$0xff]   ;;  %v5581_v15 = vld [vmem:[%s5679_s25 + $0xd88] ss:$16 sps:$4 sm:$0xff]  }
 0x1dd   : > { %4064 = vmatprep.subr.bf16.mxu1 %v5520_v16  ;;  %4053 = vmatprep.mubr.bf16.mxu0 %v5955_v33  ;;  %v5530_v33 = vld [vmem:[%s5679_s25 + $0xe68] ss:$16 sps:$4 sm:$0xff]  }
 0x1de   : > { %4094 = vmatprep.mubr.bf16.mxu1 %v5959_v34  ;;  %v5535_v34 = vld [vmem:[%s5679_s25 + $0xc8c] ss:$16 sps:$4 sm:$0xff]   ;;  %v5584_v16 = vld [vmem:[%s5679_s25 + $0xf88] ss:$16 sps:$4 sm:$0xff]  }
 0x1df   : > { %4024 = vmatpush1.bf16.msra.mxu0 %v5515_v58  ;;  %v5589_v58 = vld [vmem:[%s5679_s25 + $0xdac] ss:$16 sps:$4 sm:$0xff]  }
 0x1e0   : > { %4065 = vmatpush1.bf16.msra.mxu1 %v5518_v19  ;;  %4025 = vmatprep.subr.bf16.mxu0 %v5523_v62  ;;  %v5592_v19 = vld [vmem:[%s5679_s25 + $0xfac] ss:$16 sps:$4 sm:$0xff]   ;;  %v5587_v62 = vld [vmem:[%s5679_s25 + $0xda8] ss:$16 sps:$4 sm:$0xff]  }
 0x1e1   : > { %4066 = vmatprep.subr.bf16.mxu1 %v5526_v20  ;;  %v5590_v20 = vld [vmem:[%s5679_s25 + $0xfa8] ss:$16 sps:$4 sm:$0xff]  }
 0x1e3   : > { %4026 = vmatpush1.bf16.msra.mxu0 %v5521_v49  ;;  %v5595_v49 = vld [vmem:[%s5679_s25 + $0xdcc] ss:$16 sps:$4 sm:$0xff]  }
 0x1e4   : > { %4067 = vmatpush1.bf16.msra.mxu1 %v5524_v50  ;;  %4027 = vmatprep.subr.bf16.mxu0 %v5529_v21  ;;  %v5598_v50 = vld [vmem:[%s5679_s25 + $0xfcc] ss:$16 sps:$4 sm:$0xff]   ;;  %v5593_v21 = vld [vmem:[%s5679_s25 + $0xdc8] ss:$16 sps:$4 sm:$0xff]  }
 0x1e5   : > { %4068 = vmatprep.subr.bf16.mxu1 %v5532_v22  ;;  %v5596_v22 = vld [vmem:[%s5679_s25 + $0xfc8] ss:$16 sps:$4 sm:$0xff]  }
 0x1e7   : > { %4028 = vmatpush1.bf16.msra.mxu0 %v5527_v23  ;;  %v5601_v23 = vld [vmem:[%s5679_s25 + $0xdec] ss:$16 sps:$4 sm:$0xff]  }
 0x1e8   : > { %4069 = vmatpush1.bf16.msra.mxu1 %v5530_v33  ;;  %4029 = vmatprep.subr.bf16.mxu0 %v5535_v34  ;;  %v5604_v33 = vld [vmem:[%s5679_s25 + $0xfec] ss:$16 sps:$4 sm:$0xff]   ;;  %v5599_v34 = vld [vmem:[%s5679_s25 + $0xde8] ss:$16 sps:$4 sm:$0xff]  }
 0x1e9   : > { %4070 = vmatprep.subr.bf16.mxu1 %v5538_v24  ;;  %v5602_v24 = vld [vmem:[%s5679_s25 + $0xfe8] ss:$16 sps:$4 sm:$0xff]  }
 0x1eb   : > { %4030 = vmatpush1.bf16.msra.mxu0 %v5533_v25 }
 0x1ec   : > { %4071 = vmatpush1.bf16.msra.mxu1 %v5536_v26  ;;  %4031 = vmatprep.subr.bf16.mxu0 %v5541_v29 }
 0x1ed   : > { %4072 = vmatprep.subr.bf16.mxu1 %v5544_v30  ;;  %v3727_v40 = vpop.f32.mrb[12].mxu0 }
 0x1ee   : > { %v3768_v41 = vpop.f32.mrb[12].mxu1  ;;  %v3728_v43 = vadd.f32 %v3727_v40, %v6211_v31  ;;  %v3729_v44 = vpop.f32.mrb[13].mxu0 }
 0x1ef   : > { %v3770_v17 = vpop.f32.mrb[13].mxu1  ;;  %v3730_v46 = vadd.f32 %v3729_v44, %v6215_v38  ;;  %v3731_v47 = vpop.f32.mrb[14].mxu0  ;;  %4032 = vmatpush1.bf16.msra.mxu0 %v5539_v32 }
 0x1f0   : > { %v3772_v48 = vpop.f32.mrb[14].mxu1  ;;  %4073 = vmatpush1.bf16.msra.mxu1 %v5542_v37  ;;  %v3769_v55 = vadd.f32 %v3768_v41, %v3728_v43  ;;  %v3732_v56 = vpop.f32.mrb[15].mxu0  ;;  %4033 = vmatprep.subr.bf16.mxu0 %v5547_v52 }
 0x1f1   : > { %v3773_v31 = vpop.f32.mrb[15].mxu1  ;;  %4074 = vmatprep.subr.bf16.mxu1 %v5550_v14  ;;  %v3771_v60 = vadd.f32 %v3770_v17, %v3730_v46 }
 0x1f2   : > { %v4103_v38 = vadd.f32 %v3769_v55, %v307_v45 }
 0x1f3   : > { %v4104_v61 = vadd.f32 %v3771_v60, %v308_v53  ;;  %4034 = vmatpush1.bf16.msra.mxu0 %v5545_v18 }
 0x1f4   : > { %4075 = vmatpush1.bf16.msra.mxu1 %v5548_v54  ;;  %4107 = vst [vmem:[#allocation2] sm:$0xff] %v4103_v38  ;;  %4035 = vmatprep.subr.bf16.mxu0 %v5553_v57 }
 0x1f5   : > { %4076 = vmatprep.subr.bf16.mxu1 %v5556_v59  ;;  %4108 = vst [vmem:[#allocation2 + $0x8] sm:$0xff] %v4104_v61 }
 0x1f7   : > { %4036 = vmatpush1.bf16.msra.mxu0 %v5551_v63 }
 0x1f8   : > { %4077 = vmatpush1.bf16.msra.mxu1 %v5554_v0  ;;  %4037 = vmatprep.subr.bf16.mxu0 %v5559_v1 }
 0x1f9   : > { %4078 = vmatprep.subr.bf16.mxu1 %v5562_v2 }
 0x1fb   : > { %4038 = vmatpush1.bf16.msra.mxu0 %v5557_v3 }
 0x1fc   : > { %4079 = vmatpush1.bf16.msra.mxu1 %v5560_v4  ;;  %4039 = vmatprep.subr.bf16.mxu0 %v5565_v7 }
 0x1fd   : > { %4080 = vmatprep.subr.bf16.mxu1 %v5568_v8 }
 0x1ff   : > { %4040 = vmatpush1.bf16.msra.mxu0 %v5563_v27 }
 0x200   : > { %4081 = vmatpush1.bf16.msra.mxu1 %v5566_v28  ;;  %4041 = vmatprep.subr.bf16.mxu0 %v5571_v9  ;;  %v309_v28 = vld [vmem:[#allocation2 + $0x10] sm:$0xff] }
 0x201   : > { %4082 = vmatprep.subr.bf16.mxu1 %v5574_v10 }
 0x203   : > { %4042 = vmatpush1.bf16.msra.mxu0 %v5569_v51 }
 0x204   : > { %4083 = vmatpush1.bf16.msra.mxu1 %v5572_v35  ;;  %4043 = vmatprep.subr.bf16.mxu0 %v5577_v36  ;;  %v310_v36 = vld [vmem:[#allocation2 + $0x18] sm:$0xff] }
 0x205   : > { %4084 = vmatprep.subr.bf16.mxu1 %v5580_v11 }
 0x207   : > { %4044 = vmatpush1.bf16.msra.mxu0 %v5575_v12 }
 0x208   : > { %4085 = vmatpush1.bf16.msra.mxu1 %v5578_v13  ;;  %4045 = vmatprep.subr.bf16.mxu0 %v5583_v39 }
 0x209   : > { %4086 = vmatprep.subr.bf16.mxu1 %v5586_v42 }
 0x20b   : > { %4046 = vmatpush1.bf16.msra.mxu0 %v5581_v15  ;;  %v4115_v15 = vld [vmem:[#allocation2] sm:$0xff] (!%p4791_p7) }
 0x20c   : > { %4087 = vmatpush1.bf16.msra.mxu1 %v5584_v16  ;;  %4047 = vmatprep.subr.bf16.mxu0 %v5589_v58  ;;  %v4116_v16 = vld [vmem:[#allocation2 + $0x8] sm:$0xff] (!%p4791_p7)  ;;  %vm4119_vm0 = vcmp.ge.f32.partialorder (!%p4791_p7), %v4115_v15, 0.0 }
 0x20d   : > { %4088 = vmatprep.subr.bf16.mxu1 %v5592_v19  ;;  %v4123_v19 = vmul.f32 (!%p4791_p7), 0.2, %v4115_v15  ;;  %vm4120_vm1 = vcmp.ge.f32.partialorder (!%p4791_p7), %v4116_v16, 0.0 }
 0x20f   : > { %4048 = vmatpush1.bf16.msra.mxu0 %v5587_v62  ;;  %v4124_v62 = vmul.f32 (!%p4791_p7), 0.2, %v4116_v16 }
 0x210   : > { %4089 = vmatpush1.bf16.msra.mxu1 %v5590_v20  ;;  %4049 = vmatprep.subr.bf16.mxu0 %v5595_v49 }
 0x211   : > { %4090 = vmatprep.subr.bf16.mxu1 %v5598_v50  ;;  %v4127_v50 = vsel (!%p4791_p7), %vm4119_vm0, %v4115_v15, %v4123_v19 }
 0x212   : > { %4131 = vst [vmem:[%s6348_s3] sm:$0xff] (!%p4791_p7), %v4127_v50 }
 0x213   : > { %4050 = vmatpush1.bf16.msra.mxu0 %v5593_v21  ;;  %v4128_v21 = vsel (!%p4791_p7), %vm4120_vm1, %v4116_v16, %v4124_v62 }
 0x214   : > { %4091 = vmatpush1.bf16.msra.mxu1 %v5596_v22  ;;  %4051 = vmatprep.subr.bf16.mxu0 %v5601_v23  ;;  %4132 = vst [vmem:[%s6348_s3 + $0x8] sm:$0xff] (!%p4791_p7), %v4128_v21 }
 0x215   : > { %4092 = vmatprep.subr.bf16.mxu1 %v5604_v33 }
 0x217   : > { %4052 = vmatpush1.bf16.msra.mxu0 %v5599_v34 }
 0x218   : > { %4093 = vmatpush1.bf16.msra.mxu1 %v5602_v24 }
 0x21a   : > { %4054 = vmatmul.mubr.bf16.vlgmr.msra.gmra.mrb[28].mxu0 %v6027_v5 }
 0x21b   : > { %4095 = vmatmul.mubr.bf16.vlgmr.msra.gmra.mrb[28].mxu1 %v6031_v6 }
 0x22d   : > { %v3809_v25 = vpop.f32.mrb[16].mxu0 }
 0x22e   : > { %v3850_v26 = vpop.f32.mrb[16].mxu1  ;;  %v3811_v30 = vpop.f32.mrb[17].mxu0 }
 0x22f   : > { %v3851_v29 = vadd.f32 %v3850_v26, %v3809_v25  ;;  %v3852_v32 = vpop.f32.mrb[17].mxu1  ;;  %v3813_v52 = vpop.f32.mrb[18].mxu0 }
 0x230   : > { %v3853_v37 = vadd.f32 %v3852_v32, %v3811_v30  ;;  %v3854_v14 = vpop.f32.mrb[18].mxu1  ;;  %v3814_v40 = vpop.f32.mrb[19].mxu0 }
 0x231   : > { %v3855_v41 = vpop.f32.mrb[19].mxu1 }
 0x26d   : > { %v3891_v43 = vpop.f32.mrb[20].mxu0 }
 0x26e   : > { %v3932_v44 = vpop.f32.mrb[20].mxu1  ;;  %v3892_v17 = vadd.f32 %v3891_v43, %v3851_v29  ;;  %v3893_v18 = vpop.f32.mrb[21].mxu0 }
 0x26f   : > { %v3934_v45 = vpop.f32.mrb[21].mxu1  ;;  %v3894_v46 = vadd.f32 %v3893_v18, %v3853_v37  ;;  %v3895_v53 = vpop.f32.mrb[22].mxu0 }
 0x270   : > { %v3936_v5 = vpop.f32.mrb[22].mxu1  ;;  %v3933_v47 = vadd.f32 %v3932_v44, %v3892_v17  ;;  %v3896_v6 = vpop.f32.mrb[23].mxu0 }
 0x271   : > { %v3937_v48 = vpop.f32.mrb[23].mxu1  ;;  %v3935_v54 = vadd.f32 %v3934_v45, %v3894_v46 }
 0x2ad   : > { %v3973_v55 = vpop.f32.mrb[24].mxu0 }
 0x2ae   : > { %v4014_v56 = vpop.f32.mrb[24].mxu1  ;;  %v3974_v31 = vadd.f32 %v3973_v55, %v3933_v47  ;;  %v3975_v57 = vpop.f32.mrb[25].mxu0 }
 0x2af   : > { %v4016_v59 = vpop.f32.mrb[25].mxu1  ;;  %v3976_v60 = vadd.f32 %v3975_v57, %v3935_v54  ;;  %v3977_v38 = vpop.f32.mrb[26].mxu0 }
 0x2b0   : > { %v4018_v61 = vpop.f32.mrb[26].mxu1  ;;  %v4015_v63 = vadd.f32 %v4014_v56, %v3974_v31  ;;  %v3978_v0 = vpop.f32.mrb[27].mxu0 }
 0x2b1   : > { %v4019_v1 = vpop.f32.mrb[27].mxu1  ;;  %v4017_v2 = vadd.f32 %v4016_v59, %v3976_v60 }
 0x2ed   : > { %v4055_v3 = vpop.f32.mrb[28].mxu0 }
 0x2ee   : > { %v4096_v4 = vpop.f32.mrb[28].mxu1  ;;  %v4056_v7 = vadd.f32 %v4055_v3, %v4015_v63  ;;  %v4057_v8 = vpop.f32.mrb[29].mxu0 }
 0x2ef   : > { %v4098_v27 = vpop.f32.mrb[29].mxu1  ;;  %v4058_v9 = vadd.f32 %v4057_v8, %v4017_v2  ;;  %v4059_v10 = vpop.f32.mrb[30].mxu0  ;;  %4114 = sbr.rel (%p4791_p7) target bundleno = 769 (0x301), region = 40 }
 0x2f0   : > { %v4100_v51 = vpop.f32.mrb[30].mxu1  ;;  %v4097_v35 = vadd.f32 %v4096_v4, %v4056_v7  ;;  %v4060_v11 = vpop.f32.mrb[31].mxu0 }
 0x2f1   : > { %v4101_v12 = vpop.f32.mrb[31].mxu1  ;;  %v4099_v13 = vadd.f32 %v4098_v27, %v4058_v9 }
 0x2f2   : > { %v4105_v39 = vadd.f32 %v4097_v35, %v309_v28 }
 0x2f3   : > { %v4106_v42 = vadd.f32 %v4099_v13, %v310_v36 }
 0x2f4   : > { %4109 = vst [vmem:[#allocation2 + $0x10] sm:$0xff] %v4105_v39 }
 0x2f5   : > { %4110 = vst [vmem:[#allocation2 + $0x18] sm:$0xff] %v4106_v42 }
 0x2fb   : > { %v4117_v58 = vld [vmem:[#allocation2 + $0x10] sm:$0xff] }
 0x2fc   : > { %vm4121_vm2 = vcmp.ge.f32.partialorder %v4117_v58, 0.0  ;;  %v4125_v20 = vmul.f32 0.2, %v4117_v58  ;;  %v4118_v49 = vld [vmem:[#allocation2 + $0x18] sm:$0xff] }
 0x2fd   : > { %vm4122_vm3 = vcmp.ge.f32.partialorder %v4118_v49, 0.0  ;;  %v4126_v22 = vmul.f32 0.2, %v4118_v49 }
 0x2fe   : > { %v4129_v23 = vsel %vm4121_vm2, %v4117_v58, %v4125_v20 }
 0x2ff   : > { %4133 = vst [vmem:[%s6348_s3 + $0x10] sm:$0xff] %v4129_v23  ;;  %v4130_v33 = vsel %vm4122_vm3, %v4118_v49, %v4126_v22 }
 0x300   : > { %4134 = vst [vmem:[%s6348_s3 + $0x18] sm:$0xff] %v4130_v33 }
 0x301 PF: > { %s13_s14 = sadd.s32 1, %s5627_s14   ;;  %s6349_s12 = smov %s5623_s13 }
 0x302   : > { %p10_p8 = scmp.ge.s32.totalorder %s13_s14, 4   ;;  %s6350_s13 = smov %s6352_s15 }
 0x304   :  { %12 = sbr.rel (!%p10_p8) target bundleno = 2 (0x2), region = 76 }

// kernel: multiscale_discriminator_forward.9
= control target key start
LH: loop header
LB: loop body
LE: loop exit
PB: predicated region body
PF: predicated region fallthrough
CT: control target
= control target key end

     0   :  { %s2341_s12 = smov 0   ;;  %s2343_s13 = smov 0   ;;  %s2526_s0 = inlined_call_operand.vmem [shape: bf16[8,8192], index: 0, kind: input, shape index: {}]   ;;  %s2527_s1 = inlined_call_operand.vmem [shape: bf16[8192,128], index: 1, kind: input, shape index: {}]   ;;  %s2528_s2 = inlined_call_operand.vmem [shape: f32[1,128], index: 2, kind: input, shape index: {}]   ;;  %s2529_s3 = inlined_call_operand.vmem [shape: f32[8,128], index: 3, kind: output, shape index: {}]  }
   0x1   :  { %s2345_s14 = smov 0  }
   0x2 LB: > { %s25_s15 = sadd.s32 1, %s2315_s13  ;;  %p1798_p0 = scmp.ge.s32.totalorder %s2319_s14, 1  ;;  %s2319_s14 = sphi %s2345_s14, %s13_s14   ;;  %s2315_s13 = sphi %s2343_s13, %s2531_s13   ;;  %s2311_s12 = sphi %s2341_s12, %s2530_s12  }
   0x3   : > { %p26_p1 = scmp.ge.s32.totalorder %s25_s15, 4  ;;  %p189_p2 = scmp.lt.s32.totalorder %s2319_s14, 5 }
   0x5   : > { %s2533_s15 = smov (%p26_p1, %s25_s15), 0  ;;  %p190_p3 = pnand %p1798_p0, %p189_p2 }
   0x6   : > { %s1799_s16 = sshll.u32 (!%p190_p3), %s2311_s12, 4  ;;  %s1801_s17 = sshll.u32 (!%p190_p3), %s2311_s12, 8 }
   0x7   : > { %193 = sbr.rel (%p190_p3) target bundleno = 384 (0x180), region = 32  ;;  %p233_p4 = scmp.lt.s32.totalorder (!%p190_p3), %s1799_s16, 63 }
   0x8   : > { %p241_p5 = scmp.lt.s32.totalorder (!%p190_p3), %s1801_s17, 1023  ;;  %p1803_p6 = scmp.ne.s32.totalorder (!%p190_p3), %s2311_s12, 0 }
   0xe   : > { %s2535_s16 = smov (!%p233_p4, %s1799_s16), 63  ;;  %s2537_s17 = smov (!%p241_p5, %s1801_s17), 1023 }
   0xf   : > { %s1800_s18 = sshll.u32 %s2535_s16, 2  ;;  %s1802_s22 = sshll.u32 %s2537_s17, 2  ;;  %v1804_v0 = vld [vmem:[%s2528_s2] ss:$0 sm:$0xff] (!%p1803_p6) }
  0x10   : > { %s2366_s21 = scalar_lea.vmem %s2526_s0, %s1800_s18  ;;  %s2371_s25 = scalar_lea.vmem %s2527_s1, %s1802_s22  ;;  %271 = vst [vmem:[#allocation2] sm:$0xff] (!%p1803_p6), %v1804_v0 }
  0x11   : > { %263 = sbr.rel (%p1803_p6) target bundleno = 24 (0x18), region = 36 }
  0x18 PF: > { %v2153_v1 = vld [vmem:[%s2371_s25 + $0x40] sm:$0xff]   ;;  %v2157_v5 = vld [vmem:[%s2371_s25 + $0x48] sm:$0xff]   ;;  %v2161_v9 = vld [vmem:[%s2371_s25 + $0x50] sm:$0xff]   ;;  %p1949_p7 = scmp.ne.s32.totalorder %s2311_s12, 3 }
  0x19   : > { %v2154_v2 = vld [vmem:[%s2371_s25 + $0xc0] sm:$0xff]   ;;  %1953 = vmatprep.subr.bf16.mxu0 %v2153_v1  ;;  %v2158_v6 = vld [vmem:[%s2371_s25 + $0xc8] sm:$0xff]   ;;  %v2162_v10 = vld [vmem:[%s2371_s25 + $0xd0] sm:$0xff]  }
  0x1a   : > { %v2155_v3 = vld [vmem:[%s2371_s25] sm:$0xff]   ;;  %1975 = vmatprep.subr.bf16.mxu1 %v2154_v2  ;;  %v2159_v7 = vld [vmem:[%s2371_s25 + $0x8] sm:$0xff]   ;;  %v2163_v11 = vld [vmem:[%s2371_s25 + $0x10] sm:$0xff]  }
  0x1b   : > { %v2156_v4 = vld [vmem:[%s2371_s25 + $0x80] sm:$0xff]   ;;  %1954 = vmatpush3.bf16.msra.mxu0 %v2155_v3  ;;  %v2160_v8 = vld [vmem:[%s2371_s25 + $0x88] sm:$0xff]   ;;  %v2164_v12 = vld [vmem:[%s2371_s25 + $0x90] sm:$0xff]  }
  0x1c   : > { %1976 = vmatpush3.bf16.msra.mxu1 %v2156_v4  ;;  %1955 = vmatprep.subr.bf16.mxu0 %v2157_v5  ;;  %v2165_v13 = vld [vmem:[%s2371_s25 + $0x58] sm:$0xff]   ;;  %v2169_v17 = vld [vmem:[%s2371_s25 + $0x60] sm:$0xff]   ;;  %v2173_v21 = vld [vmem:[%s2371_s25 + $0x68] sm:$0xff]  }
  0x1d   : > { %1977 = vmatprep.subr.bf16.mxu1 %v2158_v6  ;;  %v2166_v14 = vld [vmem:[%s2371_s25 + $0xd8] sm:$0xff]   ;;  %v2170_v18 = vld [vmem:[%s2371_s25 + $0xe0] sm:$0xff]   ;;  %v2174_v22 = vld [vmem:[%s2371_s25 + $0xe8] sm:$0xff]  }
  0x1e   : > { %v2167_v15 = vld [vmem:[%s2371_s25 + $0x18] sm:$0xff]   ;;  %v2171_v19 = vld [vmem:[%s2371_s25 + $0x20] sm:$0xff]   ;;  %v2175_v23 = vld [vmem:[%s2371_s25 + $0x28] sm:$0xff]  }
  0x1f   : > { %1956 = vmatpush3.bf16.msra.mxu0 %v2159_v7  ;;  %v2168_v16 = vld [vmem:[%s2371_s25 + $0x98] sm:$0xff]   ;;  %v2172_v20 = vld [vmem:[%s2371_s25 + $0xa0] sm:$0xff]   ;;  %v2176_v24 = vld [vmem:[%s2371_s25 + $0xa8] sm:$0xff]  }
  0x20   : > { %1978 = vmatpush3.bf16.msra.mxu1 %v2160_v8  ;;  %1957 = vmatprep.subr.bf16.mxu0 %v2161_v9  ;;  %v2177_v25 = vld [vmem:[%s2371_s25 + $0x70] sm:$0xff]   ;;  %v2181_v29 = vld [vmem:[%s2371_s25 + $0x78] sm:$0xff]   ;;  %v273_v33 = vld [vmem:[%s2366_s21] sm:$0xff] }
  0x21   : > { %1979 = vmatprep.subr.bf16.mxu1 %v2162_v10  ;;  %v2178_v26 = vld [vmem:[%s2371_s25 + $0xf0] sm:$0xff]   ;;  %v2182_v30 = vld [vmem:[%s2371_s25 + $0xf8] sm:$0xff]   ;;  %v274_v34 = vld [vmem:[%s2366_s21 + $0x8] sm:$0xff]  ;;  %v1805_v35 = vcombine.low %v273_v33, %v273_v33  ;;  %v1806_v36 = vcombine.high %v273_v33, %v273_v33 }
  0x22   : > { %v2179_v27 = vld [vmem:[%s2371_s25 + $0x30] sm:$0xff]   ;;  %v2183_v31 = vld [vmem:[%s2371_s25 + $0x38] sm:$0xff]   ;;  %v1807_v37 = vcombine.low %v274_v34, %v274_v34  ;;  %v1808_v38 = vcombine.high %v274_v34, %v274_v34  ;;  %v2189_v39 = vld [vmem:[%s2371_s25 + $0x140] sm:$0xff]  }
  0x23   : > { %1958 = vmatpush3.bf16.msra.mxu0 %v2163_v11  ;;  %v2180_v28 = vld [vmem:[%s2371_s25 + $0xb0] sm:$0xff]   ;;  %v2184_v32 = vld [vmem:[%s2371_s25 + $0xb8] sm:$0xff]   ;;  %v2190_v40 = vld [vmem:[%s2371_s25 + $0x1c0] sm:$0xff]   ;;  %1393 = vmatprep.mubr.bf16.mxu0 %v1806_v36 }
  0x24   : > { %1980 = vmatpush3.bf16.msra.mxu1 %v2164_v12  ;;  %1959 = vmatprep.subr.bf16.mxu0 %v2165_v13  ;;  %v2191_v41 = vld [vmem:[%s2371_s25 + $0x100] sm:$0xff]   ;;  %v2193_v43 = vld [vmem:[%s2371_s25 + $0x148] sm:$0xff]   ;;  %v2197_v47 = vld [vmem:[%s2371_s25 + $0x150] sm:$0xff]  }
  0x25   : > { %1981 = vmatprep.subr.bf16.mxu1 %v2166_v14  ;;  %1433 = vmatprep.mubr.bf16.mxu1 %v1808_v38  ;;  %v2192_v42 = vld [vmem:[%s2371_s25 + $0x180] sm:$0xff]   ;;  %v2194_v44 = vld [vmem:[%s2371_s25 + $0x1c8] sm:$0xff]   ;;  %v2198_v48 = vld [vmem:[%s2371_s25 + $0x1d0] sm:$0xff]  }
  0x26   : > { %v2195_v45 = vld [vmem:[%s2371_s25 + $0x108] sm:$0xff]   ;;  %v2199_v49 = vld [vmem:[%s2371_s25 + $0x110] sm:$0xff]   ;;  %v2201_v51 = vld [vmem:[%s2371_s25 + $0x158] sm:$0xff]  }
  0x27   : > { %1960 = vmatpush3.bf16.msra.mxu0 %v2167_v15  ;;  %v2196_v46 = vld [vmem:[%s2371_s25 + $0x188] sm:$0xff]   ;;  %v2200_v50 = vld [vmem:[%s2371_s25 + $0x190] sm:$0xff]   ;;  %v2202_v52 = vld [vmem:[%s2371_s25 + $0x1d8] sm:$0xff]  }
  0x28   : > { %1982 = vmatpush3.bf16.msra.mxu1 %v2168_v16  ;;  %1961 = vmatprep.subr.bf16.mxu0 %v2169_v17  ;;  %v2203_v53 = vld [vmem:[%s2371_s25 + $0x118] sm:$0xff]   ;;  %v2205_v55 = vld [vmem:[%s2371_s25 + $0x160] sm:$0xff]   ;;  %v2209_v59 = vld [vmem:[%s2371_s25 + $0x168] sm:$0xff]  }
  0x29   : > { %1983 = vmatprep.subr.bf16.mxu1 %v2170_v18  ;;  %v2204_v54 = vld [vmem:[%s2371_s25 + $0x198] sm:$0xff]   ;;  %v2206_v56 = vld [vmem:[%s2371_s25 + $0x1e0] sm:$0xff]   ;;  %v2210_v60 = vld [vmem:[%s2371_s25 + $0x1e8] sm:$0xff]  }
  0x2a   : > { %v2207_v57 = vld [vmem:[%s2371_s25 + $0x120] sm:$0xff]   ;;  %v2211_v61 = vld [vmem:[%s2371_s25 + $0x128] sm:$0xff]   ;;  %v2213_v63 = vld [vmem:[%s2371_s25 + $0x170] sm:$0xff]  }
  0x2b   : > { %1962 = vmatpush3.bf16.msra.mxu0 %v2171_v19  ;;  %v2208_v58 = vld [vmem:[%s2371_s25 + $0x1a0] sm:$0xff]   ;;  %v2212_v62 = vld [vmem:[%s2371_s25 + $0x1a8] sm:$0xff]   ;;  %v2214_v0 = vld [vmem:[%s2371_s25 + $0x1f0] sm:$0xff]  }
  0x2c   : > { %1984 = vmatpush3.bf16.msra.mxu1 %v2172_v20  ;;  %1963 = vmatprep.subr.bf16.mxu0 %v2173_v21  ;;  %v2215_v1 = vld [vmem:[%s2371_s25 + $0x130] sm:$0xff]   ;;  %v2217_v3 = vld [vmem:[%s2371_s25 + $0x178] sm:$0xff]   ;;  %v2225_v13 = vld [vmem:[%s2371_s25 + $0x240] sm:$0xff]  }
  0x2d   : > { %1985 = vmatprep.subr.bf16.mxu1 %v2174_v22  ;;  %v2216_v2 = vld [vmem:[%s2371_s25 + $0x1b0] sm:$0xff]   ;;  %v2218_v4 = vld [vmem:[%s2371_s25 + $0x1f8] sm:$0xff]   ;;  %v2226_v14 = vld [vmem:[%s2371_s25 + $0x2c0] sm:$0xff]  }
  0x2e   : > { %v2219_v5 = vld [vmem:[%s2371_s25 + $0x138] sm:$0xff]   ;;  %v275_v7 = vld [vmem:[%s2366_s21 + $0x10] sm:$0xff]  ;;  %v2227_v15 = vld [vmem:[%s2371_s25 + $0x200] sm:$0xff]  }
  0x2f   : > { %1964 = vmatpush3.bf16.msra.mxu0 %v2175_v23  ;;  %v2220_v6 = vld [vmem:[%s2371_s25 + $0x1b8] sm:$0xff]   ;;  %v1809_v8 = vcombine.low %v275_v7, %v275_v7  ;;  %v1810_v9 = vcombine.high %v275_v7, %v275_v7  ;;  %v2228_v16 = vld [vmem:[%s2371_s25 + $0x280] sm:$0xff]   ;;  %v2229_v17 = vld [vmem:[%s2371_s25 + $0x248] sm:$0xff]  }
  0x30   : > { %1986 = vmatpush3.bf16.msra.mxu1 %v2176_v24  ;;  %1965 = vmatprep.subr.bf16.mxu0 %v2177_v25  ;;  %v276_v10 = vld [vmem:[%s2366_s21 + $0x18] sm:$0xff]  ;;  %v2230_v18 = vld [vmem:[%s2371_s25 + $0x2c8] sm:$0xff]   ;;  %v2233_v21 = vld [vmem:[%s2371_s25 + $0x250] sm:$0xff]  }
  0x31   : > { %1987 = vmatprep.subr.bf16.mxu1 %v2178_v26  ;;  %v1811_v11 = vcombine.low %v276_v10, %v276_v10  ;;  %v1812_v12 = vcombine.high %v276_v10, %v276_v10  ;;  %v2231_v19 = vld [vmem:[%s2371_s25 + $0x208] sm:$0xff]   ;;  %v2234_v22 = vld [vmem:[%s2371_s25 + $0x2d0] sm:$0xff]   ;;  %v2237_v25 = vld [vmem:[%s2371_s25 + $0x258] sm:$0xff]  }
  0x32   : > { %v2232_v20 = vld [vmem:[%s2371_s25 + $0x288] sm:$0xff]   ;;  %v2235_v23 = vld [vmem:[%s2371_s25 + $0x210] sm:$0xff]   ;;  %v2238_v26 = vld [vmem:[%s2371_s25 + $0x2d8] sm:$0xff]  }
  0x33   : > { %1966 = vmatpush3.bf16.msra.mxu0 %v2179_v27  ;;  %v2236_v24 = vld [vmem:[%s2371_s25 + $0x290] sm:$0xff]   ;;  %v2239_v27 = vld [vmem:[%s2371_s25 + $0x218] sm:$0xff]   ;;  %v2245_v33 = vld [vmem:[%s2371_s25 + $0x268] sm:$0xff]  }
  0x34   : > { %1988 = vmatpush3.bf16.msra.mxu1 %v2180_v28  ;;  %1967 = vmatprep.subr.bf16.mxu0 %v2181_v29  ;;  %v2240_v28 = vld [vmem:[%s2371_s25 + $0x298] sm:$0xff]   ;;  %v2241_v29 = vld [vmem:[%s2371_s25 + $0x260] sm:$0xff]   ;;  %v2246_v34 = vld [vmem:[%s2371_s25 + $0x2e8] sm:$0xff]  }
  0x35   : > { %1989 = vmatprep.subr.bf16.mxu1 %v2182_v30  ;;  %v2242_v30 = vld [vmem:[%s2371_s25 + $0x2e0] sm:$0xff]   ;;  %v2248_v36 = vld [vmem:[%s2371_s25 + $0x2a8] sm:$0xff]   ;;  %v2250_v38 = vld [vmem:[%s2371_s25 + $0x2f0] sm:$0xff]  }
  0x36   : > { %v2281_v7 = vld [vmem:[%s2371_s25 + $0x368] sm:$0xff]  }
  0x37   : > { %1968 = vmatpush3.bf16.msra.mxu0 %v2183_v31  ;;  %v2243_v31 = vld [vmem:[%s2371_s25 + $0x220] sm:$0xff]   ;;  %v2284_v10 = vld [vmem:[%s2371_s25 + $0x3a8] sm:$0xff]  }
  0x38   : > { %1990 = vmatpush3.bf16.msra.mxu1 %v2184_v32  ;;  %1997 = vmatprep.subr.bf16.mxu0 %v2189_v39  ;;  %v2244_v32 = vld [vmem:[%s2371_s25 + $0x2a0] sm:$0xff]   ;;  %v2251_v39 = vld [vmem:[%s2371_s25 + $0x230] sm:$0xff]  }
  0x39   : > { %2019 = vmatprep.subr.bf16.mxu1 %v2190_v40  ;;  %v2252_v40 = vld [vmem:[%s2371_s25 + $0x2b0] sm:$0xff]  }
  0x3a   : > { %1394 = vmatmul.mubr.bf16.vlgmr.msra.gmra.mrb[0].mxu0 %v1805_v35  ;;  %v2247_v35 = vld [vmem:[%s2371_s25 + $0x228] sm:$0xff]  }
  0x3b   : > { %1434 = vmatmul.mubr.bf16.vlgmr.msra.gmra.mrb[0].mxu1 %v1807_v37  ;;  %1998 = vmatpush3.bf16.msra.mxu0 %v2191_v41  ;;  %v2249_v37 = vld [vmem:[%s2371_s25 + $0x270] sm:$0xff]   ;;  %v2253_v41 = vld [vmem:[%s2371_s25 + $0x278] sm:$0xff]  }
  0x3c   : > { %2020 = vmatpush3.bf16.msra.mxu1 %v2192_v42  ;;  %1999 = vmatprep.subr.bf16.mxu0 %v2193_v43  ;;  %v2254_v42 = vld [vmem:[%s2371_s25 + $0x2f8] sm:$0xff]  }
  0x3d   : > { %2021 = vmatprep.subr.bf16.mxu1 %v2194_v44  ;;  %1473 = vmatprep.mubr.bf16.mxu0 %v1810_v9  ;;  %v2255_v43 = vld [vmem:[%s2371_s25 + $0x238] sm:$0xff]   ;;  %v2283_v9 = vld [vmem:[%s2371_s25 + $0x328] sm:$0xff]  }
  0x3e   : > { %1513 = vmatprep.mubr.bf16.mxu1 %v1812_v12  ;;  %v2256_v44 = vld [vmem:[%s2371_s25 + $0x2b8] sm:$0xff]   ;;  %v2286_v12 = vld [vmem:[%s2371_s25 + $0x3f0] sm:$0xff]  }
  0x3f   : > { %2000 = vmatpush3.bf16.msra.mxu0 %v2195_v45  ;;  %v277_v45 = vld [vmem:[%s2366_s21 + $0x20] sm:$0xff] }
  0x40   : > { %2022 = vmatpush3.bf16.msra.mxu1 %v2196_v46  ;;  %2001 = vmatprep.subr.bf16.mxu0 %v2197_v47  ;;  %v278_v46 = vld [vmem:[%s2366_s21 + $0x28] sm:$0xff]  ;;  %v1813_v47 = vcombine.low %v277_v45, %v277_v45 }
  0x41   : > { %2023 = vmatprep.subr.bf16.mxu1 %v2198_v48  ;;  %v1814_v48 = vcombine.high %v277_v45, %v277_v45 }
  0x43   : > { %2002 = vmatpush3.bf16.msra.mxu0 %v2199_v49  ;;  %v1815_v49 = vcombine.low %v278_v46, %v278_v46 }
  0x44   : > { %2024 = vmatpush3.bf16.msra.mxu1 %v2200_v50  ;;  %2003 = vmatprep.subr.bf16.mxu0 %v2201_v51  ;;  %v1816_v50 = vcombine.high %v278_v46, %v278_v46  ;;  %v2261_v51 = vld [vmem:[%s2371_s25 + $0x340] sm:$0xff]  }
  0x45   : > { %2025 = vmatprep.subr.bf16.mxu1 %v2202_v52  ;;  %v2262_v52 = vld [vmem:[%s2371_s25 + $0x3c0] sm:$0xff]  }
  0x47   : > { %2004 = vmatpush3.bf16.msra.mxu0 %v2203_v53  ;;  %v2263_v53 = vld [vmem:[%s2371_s25 + $0x300] sm:$0xff]  }
  0x48   : > { %2026 = vmatpush3.bf16.msra.mxu1 %v2204_v54  ;;  %2005 = vmatprep.subr.bf16.mxu0 %v2205_v55  ;;  %v2264_v54 = vld [vmem:[%s2371_s25 + $0x380] sm:$0xff]   ;;  %v2265_v55 = vld [vmem:[%s2371_s25 + $0x348] sm:$0xff]  }
  0x49   : > { %2027 = vmatprep.subr.bf16.mxu1 %v2206_v56  ;;  %v2266_v56 = vld [vmem:[%s2371_s25 + $0x3c8] sm:$0xff]  }
  0x4b   : > { %2006 = vmatpush3.bf16.msra.mxu0 %v2207_v57  ;;  %v2267_v57 = vld [vmem:[%s2371_s25 + $0x308] sm:$0xff]  }
  0x4c   : > { %2028 = vmatpush3.bf16.msra.mxu1 %v2208_v58  ;;  %2007 = vmatprep.subr.bf16.mxu0 %v2209_v59  ;;  %v2268_v58 = vld [vmem:[%s2371_s25 + $0x388] sm:$0xff]   ;;  %v2269_v59 = vld [vmem:[%s2371_s25 + $0x350] sm:$0xff]  }
  0x4d   : > { %2029 = vmatprep.subr.bf16.mxu1 %v2210_v60  ;;  %v2270_v60 = vld [vmem:[%s2371_s25 + $0x3d0] sm:$0xff]  }
  0x4f   : > { %2008 = vmatpush3.bf16.msra.mxu0 %v2211_v61  ;;  %v2271_v61 = vld [vmem:[%s2371_s25 + $0x310] sm:$0xff]  }
  0x50   : > { %2030 = vmatpush3.bf16.msra.mxu1 %v2212_v62  ;;  %2009 = vmatprep.subr.bf16.mxu0 %v2213_v63  ;;  %v2272_v62 = vld [vmem:[%s2371_s25 + $0x390] sm:$0xff]   ;;  %v2273_v63 = vld [vmem:[%s2371_s25 + $0x358] sm:$0xff]  }
  0x51   : > { %2031 = vmatprep.subr.bf16.mxu1 %v2214_v0  ;;  %v2274_v0 = vld [vmem:[%s2371_s25 + $0x3d8] sm:$0xff]  }
  0x53   : > { %2010 = vmatpush3.bf16.msra.mxu0 %v2215_v1  ;;  %v2275_v1 = vld [vmem:[%s2371_s25 + $0x318] sm:$0xff]  }
  0x54   : > { %2032 = vmatpush3.bf16.msra.mxu1 %v2216_v2  ;;  %2011 = vmatprep.subr.bf16.mxu0 %v2217_v3  ;;  %v2276_v2 = vld [vmem:[%s2371_s25 + $0x398] sm:$0xff]   ;;  %v2277_v3 = vld [vmem:[%s2371_s25 + $0x360] sm:$0xff]  }
  0x55   : > { %2033 = vmatprep.subr.bf16.mxu1 %v2218_v4  ;;  %v2278_v4 = vld [vmem:[%s2371_s25 + $0x3e0] sm:$0xff]  }
  0x57   : > { %2012 = vmatpush3.bf16.msra.mxu0 %v2219_v5  ;;  %v2279_v5 = vld [vmem:[%s2371_s25 + $0x320] sm:$0xff]  }
  0x58   : > { %2034 = vmatpush3.bf16.msra.mxu1 %v2220_v6  ;;  %2041 = vmatprep.subr.bf16.mxu0 %v2225_v13  ;;  %v2280_v6 = vld [vmem:[%s2371_s25 + $0x3a0] sm:$0xff]   ;;  %v2287_v13 = vld [vmem:[%s2371_s25 + $0x330] sm:$0xff]  }
  0x59   : > { %2063 = vmatprep.subr.bf16.mxu1 %v2226_v14  ;;  %v2288_v14 = vld [vmem:[%s2371_s25 + $0x3b0] sm:$0xff]  }
  0x5a   : > { %1474 = vmatmul.mubr.bf16.vlgmr.msra.gmra.mrb[4].mxu0 %v1809_v8  ;;  %v2282_v8 = vld [vmem:[%s2371_s25 + $0x3e8] sm:$0xff]  }
  0x5b   : > { %1514 = vmatmul.mubr.bf16.vlgmr.msra.gmra.mrb[4].mxu1 %v1811_v11  ;;  %2042 = vmatpush3.bf16.msra.mxu0 %v2227_v15  ;;  %v2285_v11 = vld [vmem:[%s2371_s25 + $0x370] sm:$0xff]   ;;  %v2289_v15 = vld [vmem:[%s2371_s25 + $0x378] sm:$0xff]  }
  0x5c   : > { %2064 = vmatpush3.bf16.msra.mxu1 %v2228_v16  ;;  %2043 = vmatprep.subr.bf16.mxu0 %v2229_v17  ;;  %v2290_v16 = vld [vmem:[%s2371_s25 + $0x3f8] sm:$0xff]  }
  0x5d   : > { %2065 = vmatprep.subr.bf16.mxu1 %v2230_v18  ;;  %1553 = vmatprep.mubr.bf16.mxu0 %v1814_v48  ;;  %v2291_v17 = vld [vmem:[%s2371_s25 + $0x338] sm:$0xff]  }
  0x5e   : > { %1593 = vmatprep.mubr.bf16.mxu1 %v1816_v50  ;;  %v2292_v18 = vld [vmem:[%s2371_s25 + $0x3b8] sm:$0xff]  }
  0x5f   : > { %2044 = vmatpush3.bf16.msra.mxu0 %v2231_v19  ;;  %v279_v19 = vld [vmem:[%s2366_s21 + $0x30] sm:$0xff] }
  0x60   : > { %2066 = vmatpush3.bf16.msra.mxu1 %v2232_v20  ;;  %2045 = vmatprep.subr.bf16.mxu0 %v2233_v21  ;;  %v280_v20 = vld [vmem:[%s2366_s21 + $0x38] sm:$0xff]  ;;  %v1817_v21 = vcombine.low %v279_v19, %v279_v19 }
  0x61   : > { %2067 = vmatprep.subr.bf16.mxu1 %v2234_v22  ;;  %v1818_v22 = vcombine.high %v279_v19, %v279_v19 }
  0x63   : > { %2046 = vmatpush3.bf16.msra.mxu0 %v2235_v23  ;;  %v1819_v23 = vcombine.low %v280_v20, %v280_v20 }
  0x64   : > { %2068 = vmatpush3.bf16.msra.mxu1 %v2236_v24  ;;  %2047 = vmatprep.subr.bf16.mxu0 %v2237_v25  ;;  %v1820_v24 = vcombine.high %v280_v20, %v280_v20 }
  0x65   : > { %2069 = vmatprep.subr.bf16.mxu1 %v2238_v26 }
  0x67   : > { %2048 = vmatpush3.bf16.msra.mxu0 %v2239_v27 }
  0x68   : > { %2070 = vmatpush3.bf16.msra.mxu1 %v2240_v28  ;;  %2049 = vmatprep.subr.bf16.mxu0 %v2241_v29 }
  0x69   : > { %2071 = vmatprep.subr.bf16.mxu1 %v2242_v30 }
  0x6b   : > { %2050 = vmatpush3.bf16.msra.mxu0 %v2243_v31 }
  0x6c   : > { %2072 = vmatpush3.bf16.msra.mxu1 %v2244_v32  ;;  %2051 = vmatprep.subr.bf16.mxu0 %v2245_v33 }
  0x6d   : > { %2073 = vmatprep.subr.bf16.mxu1 %v2246_v34 }
  0x6f   : > { %2052 = vmatpush3.bf16.msra.mxu0 %v2247_v35 }
  0x70   : > { %2074 = vmatpush3.bf16.msra.mxu1 %v2248_v36  ;;  %2053 = vmatprep.subr.bf16.mxu0 %v2249_v37 }
  0x71   : > { %2075 = vmatprep.subr.bf16.mxu1 %v2250_v38 }
  0x73   : > { %2054 = vmatpush3.bf16.msra.mxu0 %v2251_v39 }
  0x74   : > { %2076 = vmatpush3.bf16.msra.mxu1 %v2252_v40  ;;  %2055 = vmatprep.subr.bf16.mxu0 %v2253_v41 }
  0x75   : > { %2077 = vmatprep.subr.bf16.mxu1 %v2254_v42 }
  0x77   : > { %2056 = vmatpush3.bf16.msra.mxu0 %v2255_v43 }
  0x78   : > { %2078 = vmatpush3.bf16.msra.mxu1 %v2256_v44  ;;  %2085 = vmatprep.subr.bf16.mxu0 %v2261_v51 }
  0x79   : > { %2107 = vmatprep.subr.bf16.mxu1 %v2262_v52 }
  0x7a   : > { %1554 = vmatmul.mubr.bf16.vlgmr.msra.gmra.mrb[8].mxu0 %v1813_v47 }
  0x7b   : > { %1594 = vmatmul.mubr.bf16.vlgmr.msra.gmra.mrb[8].mxu1 %v1815_v49  ;;  %2086 = vmatpush3.bf16.msra.mxu0 %v2263_v53 }
  0x7c   : > { %2108 = vmatpush3.bf16.msra.mxu1 %v2264_v54  ;;  %2087 = vmatprep.subr.bf16.mxu0 %v2265_v55 }
  0x7d   : > { %2109 = vmatprep.subr.bf16.mxu1 %v2266_v56  ;;  %1633 = vmatprep.mubr.bf16.mxu0 %v1818_v22 }
  0x7e   : > { %1673 = vmatprep.mubr.bf16.mxu1 %v1820_v24 }
  0x7f   : > { %2088 = vmatpush3.bf16.msra.mxu0 %v2267_v57 }
  0x80   : > { %2110 = vmatpush3.bf16.msra.mxu1 %v2268_v58  ;;  %2089 = vmatprep.subr.bf16.mxu0 %v2269_v59 }
  0x81   : > { %2111 = vmatprep.subr.bf16.mxu1 %v2270_v60 }
  0x83   : > { %2090 = vmatpush3.bf16.msra.mxu0 %v2271_v61 }
  0x84   : > { %2112 = vmatpush3.bf16.msra.mxu1 %v2272_v62  ;;  %2091 = vmatprep.subr.bf16.mxu0 %v2273_v63 }
  0x85   : > { %2113 = vmatprep.subr.bf16.mxu1 %v2274_v0 }
  0x87   : > { %2092 = vmatpush3.bf16.msra.mxu0 %v2275_v1 }
  0x88   : > { %2114 = vmatpush3.bf16.msra.mxu1 %v2276_v2  ;;  %2093 = vmatprep.subr.bf16.mxu0 %v2277_v3 }
  0x89   : > { %2115 = vmatprep.subr.bf16.mxu1 %v2278_v4 }
  0x8b   : > { %2094 = vmatpush3.bf16.msra.mxu0 %v2279_v5 }
  0x8c   : > { %2116 = vmatpush3.bf16.msra.mxu1 %v2280_v6  ;;  %2095 = vmatprep.subr.bf16.mxu0 %v2281_v7  ;;  %v272_v7 = vld [vmem:[#allocation2] sm:$0xff] }
  0x8d   : > { %2117 = vmatprep.subr.bf16.mxu1 %v2282_v8 }
  0x8f   : > { %2096 = vmatpush3.bf16.msra.mxu0 %v2283_v9 }
  0x90   : > { %2118 = vmatpush3.bf16.msra.mxu1 %v2284_v10  ;;  %2097 = vmatprep.subr.bf16.mxu0 %v2285_v11 }
  0x91   : > { %2119 = vmatprep.subr.bf16.mxu1 %v2286_v12 }
  0x93   : > { %2098 = vmatpush3.bf16.msra.mxu0 %v2287_v13 }
  0x94   : > { %2120 = vmatpush3.bf16.msra.mxu1 %v2288_v14  ;;  %2099 = vmatprep.subr.bf16.mxu0 %v2289_v15 }
  0x95   : > { %2121 = vmatprep.subr.bf16.mxu1 %v2290_v16 }
  0x97   : > { %2100 = vmatpush3.bf16.msra.mxu0 %v2291_v17 }
  0x98   : > { %2122 = vmatpush3.bf16.msra.mxu1 %v2292_v18 }
  0x9a   : > { %1634 = vmatmul.mubr.bf16.vlgmr.msra.gmra.mrb[12].mxu0 %v1817_v21 }
  0x9b   : > { %1674 = vmatmul.mubr.bf16.vlgmr.msra.gmra.mrb[12].mxu1 %v1819_v23 }
 0x10d   : > { %v1969_v25 = vpop.f32.mrb[0].mxu0 }
 0x10e   : > { %v1991_v26 = vpop.f32.mrb[0].mxu1  ;;  %v1970_v27 = vpop.f32.mrb[1].mxu0 }
 0x10f   : > { %v1992_v28 = vpop.f32.mrb[1].mxu1  ;;  %v1971_v29 = vadd.f32 %v1970_v27, %v1969_v25  ;;  %v1972_v31 = vpop.f32.mrb[2].mxu0 }
 0x110   : > { %v1993_v30 = vadd.f32 %v1992_v28, %v1991_v26  ;;  %v1994_v32 = vpop.f32.mrb[2].mxu1  ;;  %v1973_v33 = vpop.f32.mrb[3].mxu0 }
 0x111   : > { %v1995_v34 = vpop.f32.mrb[3].mxu1 }
 0x112   : > { %v1436_v35 = vadd.f32 %v1993_v30, %v1971_v29 }
 0x12d   : > { %v2013_v36 = vpop.f32.mrb[4].mxu0 }
 0x12e   : > { %v2035_v37 = vpop.f32.mrb[4].mxu1  ;;  %v2014_v38 = vpop.f32.mrb[5].mxu0 }
 0x12f   : > { %v2036_v39 = vpop.f32.mrb[5].mxu1  ;;  %v2015_v40 = vadd.f32 %v2014_v38, %v2013_v36  ;;  %v2016_v42 = vpop.f32.mrb[6].mxu0 }
 0x130   : > { %v2037_v41 = vadd.f32 %v2036_v39, %v2035_v37  ;;  %v2038_v43 = vpop.f32.mrb[6].mxu1  ;;  %v2017_v44 = vpop.f32.mrb[7].mxu0 }
 0x131   : > { %v2039_v45 = vpop.f32.mrb[7].mxu1  ;;  %v1476_v46 = vadd.f32 %v2015_v40, %v1436_v35 }
 0x133   : > { %v1516_v47 = vadd.f32 %v2037_v41, %v1476_v46 }
 0x14d   : > { %v2057_v48 = vpop.f32.mrb[8].mxu0 }
 0x14e   : > { %v2079_v49 = vpop.f32.mrb[8].mxu1  ;;  %v2058_v50 = vpop.f32.mrb[9].mxu0 }
 0x14f   : > { %v2059_v51 = vadd.f32 %v2058_v50, %v2057_v48  ;;  %v2080_v52 = vpop.f32.mrb[9].mxu1  ;;  %v2060_v53 = vpop.f32.mrb[10].mxu0 }
 0x150   : > { %v2081_v54 = vadd.f32 %v2080_v52, %v2079_v49  ;;  %v2082_v55 = vpop.f32.mrb[10].mxu1  ;;  %v2061_v56 = vpop.f32.mrb[11].mxu0 }
 0x151   : > { %v1556_v57 = vadd.f32 %v2059_v51, %v1516_v47  ;;  %v2083_v58 = vpop.f32.mrb[11].mxu1 }
 0x153   : > { %v1596_v59 = vadd.f32 %v2081_v54, %v1556_v57 }
 0x16d   : > { %v2101_v60 = vpop.f32.mrb[12].mxu0 }
 0x16e   : > { %v2123_v61 = vpop.f32.mrb[12].mxu1  ;;  %v2102_v62 = vpop.f32.mrb[13].mxu0 }
 0x16f   : > { %v2103_v63 = vadd.f32 %v2102_v62, %v2101_v60  ;;  %v2124_v0 = vpop.f32.mrb[13].mxu1  ;;  %v2104_v1 = vpop.f32.mrb[14].mxu0 }
 0x170   : > { %v2125_v2 = vadd.f32 %v2124_v0, %v2123_v61  ;;  %v2126_v3 = vpop.f32.mrb[14].mxu1  ;;  %v2105_v4 = vpop.f32.mrb[15].mxu0 }
 0x171   : > { %v1636_v5 = vadd.f32 %v2103_v63, %v1596_v59  ;;  %v2127_v6 = vpop.f32.mrb[15].mxu1  ;;  %1686 = sbr.rel (%p1949_p7) target bundleno = 384 (0x180), region = 40 }
 0x173   : > { %v1676_v8 = vadd.f32 %v2125_v2, %v1636_v5 }
 0x175   : > { %v1681_v9 = vadd.f32 %v1676_v8, %v272_v7 }
 0x177   : > { %1682 = vst [vmem:[#allocation2] sm:$0xff] %v1681_v9 }
 0x17e   : > { %v1687_v10 = vld [vmem:[#allocation2] sm:$0xff] }
 0x17f   : > { %1688 = vst [vmem:[%s2529_s3] sm:$0xff] %v1687_v10 }
 0x180 PF: > { %s13_s14 = sadd.s32 1, %s2319_s14   ;;  %s2530_s12 = smov %s2315_s13 }
 0x181   : > { %p10_p8 = scmp.ge.s32.totalorder %s13_s14, 6   ;;  %s2531_s13 = smov %s2533_s15 }
 0x183   :  { %12 = sbr.rel (!%p10_p8) target bundleno = 2 (0x2), region = 76 }

</bundles_post_ra>
